<compile_context>
chip_gen: v6e
topology: v6e:2x2x1
jax: 0.10.0
libtpu: 0.0.40
codegen_flags: <defaults>
</compile_context>

<pallas_src>
import functools
import math

import jax
import jax.numpy as jnp
from jax import lax
from jax.experimental import pallas as pl
from jax.experimental.pallas import tpu as pltpu

NUM_HEADS = 8        # cross_attn_config num_heads
LN_EPS = 1e-5        # torch.nn.LayerNorm default eps
CLS_COEF = 0.7
LANE = 128           # classifier logits padded to a full lane slab
MAX_Q_TILE = 512     # query-row tile for the encoder grid


# ----------------------------------------------------------------------------
# in-kernel helpers (pure jnp, traced inside the Pallas kernels)
# ----------------------------------------------------------------------------
def _layer_norm(x, g, b):
    mu = jnp.mean(x, axis=-1, keepdims=True)
    var = jnp.mean(jnp.square(x - mu), axis=-1, keepdims=True)
    return (x - mu) * lax.rsqrt(var + LN_EPS) * g + b


def _erf(x):
    # Abramowitz & Stegun 7.1.26 rational approximation (|err| < 1.5e-7 ~ f32 eps).
    a1, a2, a3, a4, a5 = 0.254829592, -0.284496736, 1.421413741, -1.453152027, 1.061405429
    p = 0.3275911
    s = jnp.where(x >= 0.0, 1.0, -1.0)
    z = jnp.abs(x)
    t = 1.0 / (1.0 + p * z)
    poly = ((((a5 * t + a4) * t + a3) * t + a2) * t + a1) * t
    return s * (1.0 - poly * jnp.exp(-z * z))


def _gelu_exact(x):
    # matches torch.nn.GELU() (erf form) to f32 precision
    return 0.5 * x * (1.0 + _erf(x * (1.0 / math.sqrt(2.0))))


def _vmem_limit_bytes():
    # raise the scoped VMEM limit (defaults 16/32 MiB) so the layer weights +
    # activations stay resident at production D; ~3/4 of physical per chip.
    try:
        return int(pltpu.get_tpu_info().vmem_capacity_bytes * 3 // 4)
    except Exception:
        return 48 * 1024 * 1024


# ----------------------------------------------------------------------------
# Kernel 1: one MulT cross-attention TransformerEncoder (layers=1), fused with
#   the classifier pooling.  Per grid step (b, qt): one query-row tile vs. the
#   full KV sequence — embed_scale + sinusoidal pos-emb, pre-LN MHA cross
#   attention, residual, pre-LN FFN (relu), residual, final LayerNorm, then
#   pool the tile (row-sum for mean pooling / row 0 for first-token pooling).
# ----------------------------------------------------------------------------
def cross_encoder_kernel(q_ref, kv_ref, posq_ref, poskv_ref,
                         ln0g_ref, ln0b_ref,
                         wq_ref, bq_ref, wk_ref, bk_ref, wv_ref, bv_ref,
                         wo_ref, bo_ref,
                         ln1g_ref, ln1b_ref,
                         w1_ref, b1_ref, w2_ref, b2_ref,
                         lnfg_ref, lnfb_ref,
                         out_ref, *, pool):
    tq, D = q_ref.shape
    H, _, hd = wq_ref.shape
    embed_scale = jnp.float32(math.sqrt(D))
    attn_scale = jnp.float32(hd ** -0.5)

    # embed scale + positional embedding (f32)
    xq = q_ref[...] * embed_scale + posq_ref[...]          # (tq, D)
    xkv = kv_ref[...] * embed_scale + poskv_ref[...]       # (Sk, D)

    g0, b0 = ln0g_ref[...], ln0b_ref[...]
    qn = _layer_norm(xq, g0, b0).astype(jnp.bfloat16)      # key/value input is same LN
    kvn = _layer_norm(xkv, g0, b0).astype(jnp.bfloat16)

    # fairseq MultiheadAttention, head-major layout: every per-head weight /
    # activation slice is a leading-axis index (no lane slicing, no concat).
    attn = jnp.zeros((tq, D), jnp.float32)
    for h in range(H):                                     # static unroll
        qh = (jnp.dot(qn, wq_ref[h], preferred_element_type=jnp.float32)
              + bq_ref[h]) * attn_scale                    # (tq, hd) f32
        kh = jnp.dot(kvn, wk_ref[h], preferred_element_type=jnp.float32) + bk_ref[h]
        vh = jnp.dot(kvn, wv_ref[h], preferred_element_type=jnp.float32) + bv_ref[h]
        # scores: contract last dims (MXU takes the transposed operand natively)
        s = lax.dot_general(qh.astype(jnp.bfloat16), kh.astype(jnp.bfloat16),
                            (((1,), (1,)), ((), ())),
                            preferred_element_type=jnp.float32)   # (tq, Sk)
        s = s - jnp.max(s, axis=-1, keepdims=True)
        p = jnp.exp(s)
        p = p * pl.reciprocal(jnp.sum(p, axis=-1, keepdims=True), approx=True)
        oh = jnp.dot(p.astype(jnp.bfloat16), vh.astype(jnp.bfloat16),
                     preferred_element_type=jnp.float32)          # (tq, hd)
        # concat_h(o_h) @ Wo  ==  sum_h o_h @ Wo[h]
        attn = attn + jnp.dot(oh.astype(jnp.bfloat16), wo_ref[h],
                              preferred_element_type=jnp.float32)  # (tq, D)
    x = xq + attn + bo_ref[...]                            # residual

    # FFN block (pre-LN, relu)
    xn = _layer_norm(x, ln1g_ref[...], ln1b_ref[...]).astype(jnp.bfloat16)
    h1 = jnp.maximum(jnp.dot(xn, w1_ref[...], preferred_element_type=jnp.float32)
                     + b1_ref[...], 0.0)
    x = x + (jnp.dot(h1.astype(jnp.bfloat16), w2_ref[...],
                     preferred_element_type=jnp.float32) + b2_ref[...])

    y = _layer_norm(x, lnfg_ref[...], lnfb_ref[...])       # (tq, D) f32

    # fused classifier pooling — only a (1, D) feature leaves the kernel
    if pool == "sum":
        out_ref[...] = jnp.sum(y, axis=0, keepdims=True)   # per-tile partial sum
    else:  # "first"
        out_ref[...] = y[0:1, :]


ENC_PARAM_ORDER = ("ln0_g", "ln0_b", "wq", "bq", "wk", "bk", "wv", "bv",
                   "wo", "bo", "ln1_g", "ln1_b", "w1", "b1", "w2", "b2",
                   "lnf_g", "lnf_b")


def sinusoidal_positions(seq_len, dim):
    """MulT SinusoidalPositionalEmbedding; positions are padding_idx+1 .. seq_len."""
    half = dim // 2
    freq = jnp.exp(jnp.arange(half, dtype=jnp.float32) * -(math.log(10000.0) / (half - 1)))
    pos = jnp.arange(1, seq_len + 1, dtype=jnp.float32)[:, None]
    ang = pos * freq[None, :]
    return jnp.concatenate([jnp.sin(ang), jnp.cos(ang)], axis=1)   # (S, D), D even


def prep_encoder_params(p, num_heads=NUM_HEADS):
    """Head-major, bf16 weight layout for the kernel (biases / LN stay f32)."""
    D = p["wq"].shape[0]
    hd = D // num_heads
    in_heads = lambda w: w.reshape(D, num_heads, hd).transpose(1, 0, 2).astype(jnp.bfloat16)
    b_heads = lambda b: b.reshape(num_heads, 1, hd)
    q = dict(p)
    q["wq"], q["wk"], q["wv"] = in_heads(p["wq"]), in_heads(p["wk"]), in_heads(p["wv"])
    q["bq"], q["bk"], q["bv"] = b_heads(p["bq"]), b_heads(p["bk"]), b_heads(p["bv"])
    q["wo"] = p["wo"].reshape(num_heads, hd, D).astype(jnp.bfloat16)
    q["w1"] = p["w1"].astype(jnp.bfloat16)
    q["w2"] = p["w2"].astype(jnp.bfloat16)
    return q


def _pick_q_tile(sq, max_tile=MAX_Q_TILE):
    if sq <= max_tile:
        return sq
    for t in range(max_tile, 7, -1):           # largest sublane-aligned divisor
        if sq % t == 0 and t % 8 == 0:
            return t
    return sq                                  # no aligned divisor: single full tile


def cross_attention_encoder(q_bsd, kv_bsd, p, *, pool):
    """One cross-attention encoder; returns the pooled (B, D) feature the
    classifier consumes (pool="mean": seq-mean of the output; pool="first":
    output at query position 0).  The full encoder output never hits HBM."""
    if pool == "first":
        # each output row depends only on its own query row (attention mixes
        # over keys/values only), so an 8-row leading query slab suffices.
        q_bsd = q_bsd[:, :min(q_bsd.shape[1], 8)]
    B, Sq, D = q_bsd.shape
    Sk = kv_bsd.shape[1]
    tq = Sq if pool == "first" else _pick_q_tile(Sq)
    n_qt = Sq // tq
    posq = sinusoidal_positions(Sq, D)
    poskv = sinusoidal_positions(Sk, D)
    weights = [p[k] for k in ENC_PARAM_ORDER]

    def full_spec(a):
        # constant index map: DMA'd once, stays resident across the grid.
        # TODO(synk): pipeline_mode=pl.Buffered(1) would drop the second weight
        #   buffer on v7x's 64 MiB VMEM; default kept for lowering portability.
        return pl.BlockSpec(a.shape, lambda b, qt, _nd=a.ndim: (0,) * _nd)

    in_specs = ([pl.BlockSpec((None, tq, D), lambda b, qt: (b, qt, 0)),
                 pl.BlockSpec((None, Sk, D), lambda b, qt: (b, 0, 0)),
                 pl.BlockSpec((tq, D), lambda b, qt: (qt, 0)),
                 pl.BlockSpec((Sk, D), lambda b, qt: (0, 0))]
                + [full_spec(w) for w in weights])

    kernel = functools.partial(cross_encoder_kernel,
                               pool="sum" if pool == "mean" else "first")
    out = pl.pallas_call(
        kernel,
        out_shape=jax.ShapeDtypeStruct((B, n_qt, D), jnp.float32),
        grid=(B, n_qt),
        in_specs=in_specs,
        out_specs=pl.BlockSpec((None, 1, D), lambda b, qt: (b, qt, 0)),
        compiler_params=pltpu.CompilerParams(
            dimension_semantics=("parallel", "parallel"),
            vmem_limit_bytes=_vmem_limit_bytes()),
    )(q_bsd, kv_bsd, posq, poskv, *weights)

    if pool == "mean":
        return jnp.sum(out, axis=1) / jnp.float32(Sq)      # combine tile partial sums
    return out[:, 0, :]


# ----------------------------------------------------------------------------
# Kernel 2: classifier head, one batched single-step pallas_call
#   concat([mean-pooled w2t, first-token t2w]) -> Linear(2D,512) -> GELU(exact)
#   -> Linear(512,9).  The concat is a split matmul; the 9-wide output is
#   padded to 128 lanes for dense stores and un-padded outside.
# ----------------------------------------------------------------------------
def classifier_kernel(pooled_ref, first_ref, w1a_ref, w1b_ref, b1_ref,
                      w2_ref, b2_ref, out_ref):
    h = (jnp.dot(pooled_ref[...], w1a_ref[...], preferred_element_type=jnp.float32)
         + jnp.dot(first_ref[...], w1b_ref[...], preferred_element_type=jnp.float32)
         + b1_ref[...])
    h = _gelu_exact(h)
    out_ref[...] = jnp.dot(h, w2_ref[...], preferred_element_type=jnp.float32) + b2_ref[...]


def classifier_head(pooled_w2t, first_t2w, p):
    B, D = pooled_w2t.shape
    n_out = p["cw2"].shape[1]                              # 9 = 7 classes + 2 regress
    w1a, w1b = p["cw1"][:D], p["cw1"][D:]
    w2p = jnp.pad(p["cw2"], ((0, 0), (0, LANE - n_out)))
    b2p = jnp.pad(p["cb2"], ((0, 0), (0, LANE - n_out)))
    out = pl.pallas_call(
        classifier_kernel,
        out_shape=jax.ShapeDtypeStruct((B, LANE), jnp.float32),
    )(pooled_w2t, first_t2w, w1a, w1b, p["cb1"], w2p, b2p)
    return out[:, :n_out]                                  # (B, 9)


# ----------------------------------------------------------------------------
# losses (plain-JAX glue; criterions assumed CrossEntropyLoss / MSELoss)
# ----------------------------------------------------------------------------
def _losses(logits, emotion, regress, cls_coef=CLS_COEF):
    cls_logits = logits[:, :-2]
    reg_logits = logits[:, -2:]
    logp = jax.nn.log_softmax(cls_logits, axis=-1)
    cls_loss = -jnp.mean(jnp.take_along_axis(logp, emotion[:, None], axis=-1))
    reg_loss = jnp.mean(jnp.square(reg_logits - regress))
    loss = cls_loss * cls_coef + reg_loss * (1.0 - cls_coef)
    return loss, cls_loss, reg_loss, cls_logits, reg_logits


@jax.jit
def model_forward(wav_hidden, txt_hidden, emotion, regress, params):
    enc_w2t = prep_encoder_params(params["wav2txt"])
    enc_t2w = prep_encoder_params(params["txt2wav"])
    pooled_w2t = cross_attention_encoder(wav_hidden, txt_hidden, enc_w2t, pool="mean")   # (B, D)
    first_t2w = cross_attention_encoder(txt_hidden, wav_hidden, enc_t2w, pool="first")   # (B, D)
    logits = classifier_head(pooled_w2t, first_t2w, params["classifier"])                # (B, 9)
    loss, cls_loss, reg_loss, cls_logits, reg_logits = _losses(logits, emotion, regress)
    return {"loss": loss, "cls_loss": cls_loss, "reg_loss": reg_loss,
            "emotion": emotion, "regress": regress.astype(jnp.float32),
            "cls_pred": cls_logits, "reg_pred": reg_logits}


# ----------------------------------------------------------------------------
# pure-JAX f32 reference (mirrors the PyTorch math, full encoder outputs)
# ----------------------------------------------------------------------------
def ref_cross_encoder(q_bsd, kv_bsd, p):
    B, Sq, D = q_bsd.shape
    Sk = kv_bsd.shape[1]
    hd = D // NUM_HEADS
    xq = q_bsd * math.sqrt(D) + sinusoidal_positions(Sq, D)[None]
    xkv = kv_bsd * math.sqrt(D) + sinusoidal_positions(Sk, D)[None]

    def ln(x, g, b):
        mu = x.mean(-1, keepdims=True)
        var = jnp.square(x - mu).mean(-1, keepdims=True)
        return (x - mu) / jnp.sqrt(var + LN_EPS) * g + b

    qn = ln(xq, p["ln0_g"], p["ln0_b"])
    kvn = ln(xkv, p["ln0_g"], p["ln0_b"])
    q = (qn @ p["wq"] + p["bq"]) * (hd ** -0.5)
    k = kvn @ p["wk"] + p["bk"]
    v = kvn @ p["wv"] + p["bv"]
    q = q.reshape(B, Sq, NUM_HEADS, hd).transpose(0, 2, 1, 3)
    k = k.reshape(B, Sk, NUM_HEADS, hd).transpose(0, 2, 1, 3)
    v = v.reshape(B, Sk, NUM_HEADS, hd).transpose(0, 2, 1, 3)
    a = jax.nn.softmax(jnp.einsum("bhqd,bhkd->bhqk", q, k), axis=-1)
    o = jnp.einsum("bhqk,bhkd->bhqd", a, v).transpose(0, 2, 1, 3).reshape(B, Sq, D)
    x = xq + (o @ p["wo"] + p["bo"])
    xn = ln(x, p["ln1_g"], p["ln1_b"])
    h = jax.nn.relu(xn @ p["w1"] + p["b1"])
    x = x + (h @ p["w2"] + p["b2"])
    return ln(x, p["lnf_g"], p["lnf_b"])


def reference_forward(wav_hidden, txt_hidden, emotion, regress, params):
    w2t = ref_cross_encoder(wav_hidden, txt_hidden, params["wav2txt"])
    t2w = ref_cross_encoder(txt_hidden, wav_hidden, params["txt2wav"])
    p = params["classifier"]
    feat = jnp.concatenate([jnp.mean(w2t, axis=1), t2w[:, 0, :]], axis=-1)
    h = jax.nn.gelu(feat @ p["cw1"] + p["cb1"], approximate=False)
    logits = h @ p["cw2"] + p["cb2"]
    loss, cls_loss, reg_loss, cls_logits, reg_logits = _losses(logits, emotion, regress)
    return {"loss": loss, "cls_pred": cls_logits, "reg_pred": reg_logits}


# ----------------------------------------------------------------------------
# deterministic parameter construction (canonical f32 layout, as in PyTorch)
# ----------------------------------------------------------------------------
def init_encoder_params(key, D):
    ks = jax.random.split(key, 10)
    w = lambda k, s: jax.random.normal(k, s, jnp.float32) * 0.02
    D4 = 4 * D
    return dict(
        ln0_g=jnp.ones((1, D), jnp.float32), ln0_b=jnp.zeros((1, D), jnp.float32),
        wq=w(ks[0], (D, D)), bq=w(ks[1], (1, D)),
        wk=w(ks[2], (D, D)), bk=w(ks[3], (1, D)),
        wv=w(ks[4], (D, D)), bv=w(ks[5], (1, D)),
        wo=w(ks[6], (D, D)), bo=w(ks[7], (1, D)),
        ln1_g=jnp.ones((1, D), jnp.float32), ln1_b=jnp.zeros((1, D), jnp.float32),
        w1=w(ks[8], (D, D4)), b1=jnp.zeros((1, D4), jnp.float32),
        w2=w(ks[9], (D4, D)), b2=jnp.zeros((1, D), jnp.float32),
        lnf_g=jnp.ones((1, D), jnp.float32), lnf_b=jnp.zeros((1, D), jnp.float32),
    )


def init_classifier_params(key, D):
    k1, k2, k3, k4 = jax.random.split(key, 4)
    return dict(
        cw1=jax.random.normal(k1, (2 * D, 512), jnp.float32) * 0.02,
        cb1=jax.random.normal(k2, (1, 512), jnp.float32) * 0.02,
        cw2=jax.random.normal(k3, (512, 9), jnp.float32) * 0.02,
        cb2=jax.random.normal(k4, (1, 9), jnp.float32) * 0.02,
    )


if __name__ == "__main__":
    B, SW, ST, D = 2, 16, 8, 64   # small stand-ins for wav/txt seq lens and hidden=768/1024
    key = jax.random.PRNGKey(0)
    k1, k2, k3, k4, k5, k6, k7 = jax.random.split(key, 7)

    wav_hidden = jax.random.normal(k1, (B, SW, D), jnp.float32)   # wav_model(...).last_hidden_state
    txt_hidden = jax.random.normal(k2, (B, ST, D), jnp.float32)   # txt_model(...).last_hidden_state
    emotion = jax.random.randint(k3, (B,), 0, 7)                  # labels['emotion']
    regress = jax.random.uniform(k4, (B, 2), jnp.float32)         # labels['regress']

    params = {
        "wav2txt": init_encoder_params(k5, D),
        "txt2wav": init_encoder_params(k6, D),
        "classifier": init_classifier_params(k7, D),
    }

    out = model_forward(wav_hidden, txt_hidden, emotion, regress, params)
    out = jax.block_until_ready(out)

    ref = reference_forward(wav_hidden, txt_hidden, emotion, regress, params)
    # tolerance reflects bf16 MXU matmuls (f32 accumulation) vs the pure-f32 reference
    assert bool(jnp.all(jnp.isfinite(out["loss"])))
    assert jnp.allclose(out["cls_pred"], ref["cls_pred"], rtol=1e-2, atol=1e-2)
    assert jnp.allclose(out["reg_pred"], ref["reg_pred"], rtol=1e-2, atol=1e-2)
    assert jnp.allclose(out["loss"], ref["loss"], rtol=1e-2, atol=1e-2)

    print("KERNEL_OK")
</pallas_src>

<mosaic_0001>
module attributes {stable_mosaic.version = 11 : i64} {
  func.func @cross_encoder_kernel(%arg0: i32, %arg1: i32, %arg2: memref<1x8x64xf32, #tpu.memory_space<vmem>>, %arg3: memref<1x16x64xf32, #tpu.memory_space<vmem>>, %arg4: memref<8x64xf32, #tpu.memory_space<vmem>>, %arg5: memref<16x64xf32, #tpu.memory_space<vmem>>, %arg6: memref<1x64xf32, #tpu.memory_space<vmem>>, %arg7: memref<1x64xf32, #tpu.memory_space<vmem>>, %arg8: memref<8x64x8xbf16, #tpu.memory_space<vmem>>, %arg9: memref<8x1x8xf32, #tpu.memory_space<vmem>>, %arg10: memref<8x64x8xbf16, #tpu.memory_space<vmem>>, %arg11: memref<8x1x8xf32, #tpu.memory_space<vmem>>, %arg12: memref<8x64x8xbf16, #tpu.memory_space<vmem>>, %arg13: memref<8x1x8xf32, #tpu.memory_space<vmem>>, %arg14: memref<8x8x64xbf16, #tpu.memory_space<vmem>>, %arg15: memref<1x64xf32, #tpu.memory_space<vmem>>, %arg16: memref<1x64xf32, #tpu.memory_space<vmem>>, %arg17: memref<1x64xf32, #tpu.memory_space<vmem>>, %arg18: memref<64x256xbf16, #tpu.memory_space<vmem>>, %arg19: memref<1x256xf32, #tpu.memory_space<vmem>>, %arg20: memref<256x64xbf16, #tpu.memory_space<vmem>>, %arg21: memref<1x64xf32, #tpu.memory_space<vmem>>, %arg22: memref<1x64xf32, #tpu.memory_space<vmem>>, %arg23: memref<1x64xf32, #tpu.memory_space<vmem>>, %arg24: memref<1x1x64xf32, #tpu.memory_space<vmem>>) attributes {dimension_semantics = [#tpu.dimension_semantics<parallel>, #tpu.dimension_semantics<parallel>], iteration_bounds = array<i64: 2, 1>, scalar_prefetch = 0 : i64, scratch_operands = 0 : i64, tpu.core_type = #tpu.core_type<tc>, window_params = [{transform_indices = @transform_0, window_bounds = array<i64: 1, 8, 64>}, {transform_indices = @transform_1, window_bounds = array<i64: 1, 16, 64>}, {transform_indices = @transform_2, window_bounds = array<i64: 8, 64>}, {pipeline_mode = #tpu.pipeline_mode<synchronous>, transform_indices = @transform_3, window_bounds = array<i64: 16, 64>}, {pipeline_mode = #tpu.pipeline_mode<synchronous>, transform_indices = @transform_4, window_bounds = array<i64: 1, 64>}, {pipeline_mode = #tpu.pipeline_mode<synchronous>, transform_indices = @transform_5, window_bounds = array<i64: 1, 64>}, {pipeline_mode = #tpu.pipeline_mode<synchronous>, transform_indices = @transform_6, window_bounds = array<i64: 8, 64, 8>}, {pipeline_mode = #tpu.pipeline_mode<synchronous>, transform_indices = @transform_7, window_bounds = array<i64: 8, 1, 8>}, {pipeline_mode = #tpu.pipeline_mode<synchronous>, transform_indices = @transform_8, window_bounds = array<i64: 8, 64, 8>}, {pipeline_mode = #tpu.pipeline_mode<synchronous>, transform_indices = @transform_9, window_bounds = array<i64: 8, 1, 8>}, {pipeline_mode = #tpu.pipeline_mode<synchronous>, transform_indices = @transform_10, window_bounds = array<i64: 8, 64, 8>}, {pipeline_mode = #tpu.pipeline_mode<synchronous>, transform_indices = @transform_11, window_bounds = array<i64: 8, 1, 8>}, {pipeline_mode = #tpu.pipeline_mode<synchronous>, transform_indices = @transform_12, window_bounds = array<i64: 8, 8, 64>}, {pipeline_mode = #tpu.pipeline_mode<synchronous>, transform_indices = @transform_13, window_bounds = array<i64: 1, 64>}, {pipeline_mode = #tpu.pipeline_mode<synchronous>, transform_indices = @transform_14, window_bounds = array<i64: 1, 64>}, {pipeline_mode = #tpu.pipeline_mode<synchronous>, transform_indices = @transform_15, window_bounds = array<i64: 1, 64>}, {pipeline_mode = #tpu.pipeline_mode<synchronous>, transform_indices = @transform_16, window_bounds = array<i64: 64, 256>}, {pipeline_mode = #tpu.pipeline_mode<synchronous>, transform_indices = @transform_17, window_bounds = array<i64: 1, 256>}, {pipeline_mode = #tpu.pipeline_mode<synchronous>, transform_indices = @transform_18, window_bounds = array<i64: 256, 64>}, {pipeline_mode = #tpu.pipeline_mode<synchronous>, transform_indices = @transform_19, window_bounds = array<i64: 1, 64>}, {pipeline_mode = #tpu.pipeline_mode<synchronous>, transform_indices = @transform_20, window_bounds = array<i64: 1, 64>}, {pipeline_mode = #tpu.pipeline_mode<synchronous>, transform_indices = @transform_21, window_bounds = array<i64: 1, 64>}, {transform_indices = @transform_22, window_bounds = array<i64: 1, 1, 64>}]} {
    %c0 = arith.constant 0 : index
    %c0_0 = arith.constant 0 : index
    %c0_1 = arith.constant 0 : index
    %0 = vector.load %arg2[%c0, %c0_0, %c0_1] : memref<1x8x64xf32, #tpu.memory_space<vmem>>, vector<1x8x64xf32>
    %1 = vector.shape_cast %0 : vector<1x8x64xf32> to vector<8x64xf32>
    %cst = arith.constant 8.000000e+00 : f32
    %2 = vector.broadcast %cst : f32 to vector<8x64xf32>
    %3 = arith.mulf %1, %2 : vector<8x64xf32>
    %c0_2 = arith.constant 0 : index
    %c0_3 = arith.constant 0 : index
    %4 = vector.load %arg4[%c0_2, %c0_3] : memref<8x64xf32, #tpu.memory_space<vmem>>, vector<8x64xf32>
    %5 = arith.addf %3, %4 : vector<8x64xf32>
    %c0_4 = arith.constant 0 : index
    %c0_5 = arith.constant 0 : index
    %c0_6 = arith.constant 0 : index
    %6 = vector.load %arg3[%c0_4, %c0_5, %c0_6] : memref<1x16x64xf32, #tpu.memory_space<vmem>>, vector<1x16x64xf32>
    %7 = vector.shape_cast %6 : vector<1x16x64xf32> to vector<16x64xf32>
    %cst_7 = arith.constant 8.000000e+00 : f32
    %8 = vector.broadcast %cst_7 : f32 to vector<16x64xf32>
    %9 = arith.mulf %7, %8 : vector<16x64xf32>
    %c0_8 = arith.constant 0 : index
    %c0_9 = arith.constant 0 : index
    %10 = vector.load %arg5[%c0_8, %c0_9] : memref<16x64xf32, #tpu.memory_space<vmem>>, vector<16x64xf32>
    %11 = arith.addf %9, %10 : vector<16x64xf32>
    %c0_10 = arith.constant 0 : index
    %c0_11 = arith.constant 0 : index
    %12 = vector.load %arg6[%c0_10, %c0_11] : memref<1x64xf32, #tpu.memory_space<vmem>>, vector<1x64xf32>
    %c0_12 = arith.constant 0 : index
    %c0_13 = arith.constant 0 : index
    %13 = vector.load %arg7[%c0_12, %c0_13] : memref<1x64xf32, #tpu.memory_space<vmem>>, vector<1x64xf32>
    %cst_14 = arith.constant dense<0.000000e+00> : vector<8xf32>
    %14 = vector.multi_reduction <add>, %5, %cst_14 [1] : vector<8x64xf32> to vector<8xf32>
    %15 = vector.shape_cast %14 : vector<8xf32> to vector<8x1xf32>
    %cst_15 = arith.constant 6.400000e+01 : f32
    %16 = vector.broadcast %cst_15 : f32 to vector<8x1xf32>
    %17 = arith.divf %15, %16 : vector<8x1xf32>
    %18 = vector.broadcast %17 : vector<8x1xf32> to vector<8x64xf32>
    %19 = arith.subf %5, %18 : vector<8x64xf32>
    %20 = arith.mulf %19, %19 : vector<8x64xf32>
    %cst_16 = arith.constant dense<0.000000e+00> : vector<8xf32>
    %21 = vector.multi_reduction <add>, %20, %cst_16 [1] : vector<8x64xf32> to vector<8xf32>
    %22 = vector.shape_cast %21 : vector<8xf32> to vector<8x1xf32>
    %cst_17 = arith.constant 6.400000e+01 : f32
    %23 = vector.broadcast %cst_17 : f32 to vector<8x1xf32>
    %24 = arith.divf %22, %23 : vector<8x1xf32>
    %25 = vector.broadcast %17 : vector<8x1xf32> to vector<8x64xf32>
    %26 = arith.subf %5, %25 : vector<8x64xf32>
    %cst_18 = arith.constant 9.99999974E-6 : f32
    %27 = vector.broadcast %cst_18 : f32 to vector<8x1xf32>
    %28 = arith.addf %24, %27 : vector<8x1xf32>
    %29 = math.rsqrt %28 : vector<8x1xf32>
    %30 = vector.broadcast %29 : vector<8x1xf32> to vector<8x64xf32>
    %31 = arith.mulf %26, %30 : vector<8x64xf32>
    %32 = vector.broadcast %12 : vector<1x64xf32> to vector<8x64xf32>
    %33 = arith.mulf %31, %32 : vector<8x64xf32>
    %34 = vector.broadcast %13 : vector<1x64xf32> to vector<8x64xf32>
    %35 = arith.addf %33, %34 : vector<8x64xf32>
    %36 = arith.truncf %35 : vector<8x64xf32> to vector<8x64xbf16>
    %cst_19 = arith.constant dense<0.000000e+00> : vector<16xf32>
    %37 = vector.multi_reduction <add>, %11, %cst_19 [1] : vector<16x64xf32> to vector<16xf32>
    %38 = vector.shape_cast %37 : vector<16xf32> to vector<16x1xf32>
    %cst_20 = arith.constant 6.400000e+01 : f32
    %39 = vector.broadcast %cst_20 : f32 to vector<16x1xf32>
    %40 = arith.divf %38, %39 : vector<16x1xf32>
    %41 = vector.broadcast %40 : vector<16x1xf32> to vector<16x64xf32>
    %42 = arith.subf %11, %41 : vector<16x64xf32>
    %43 = arith.mulf %42, %42 : vector<16x64xf32>
    %cst_21 = arith.constant dense<0.000000e+00> : vector<16xf32>
    %44 = vector.multi_reduction <add>, %43, %cst_21 [1] : vector<16x64xf32> to vector<16xf32>
    %45 = vector.shape_cast %44 : vector<16xf32> to vector<16x1xf32>
    %cst_22 = arith.constant 6.400000e+01 : f32
    %46 = vector.broadcast %cst_22 : f32 to vector<16x1xf32>
    %47 = arith.divf %45, %46 : vector<16x1xf32>
    %48 = vector.broadcast %40 : vector<16x1xf32> to vector<16x64xf32>
    %49 = arith.subf %11, %48 : vector<16x64xf32>
    %cst_23 = arith.constant 9.99999974E-6 : f32
    %50 = vector.broadcast %cst_23 : f32 to vector<16x1xf32>
    %51 = arith.addf %47, %50 : vector<16x1xf32>
    %52 = math.rsqrt %51 : vector<16x1xf32>
    %53 = vector.broadcast %52 : vector<16x1xf32> to vector<16x64xf32>
    %54 = arith.mulf %49, %53 : vector<16x64xf32>
    %55 = vector.broadcast %12 : vector<1x64xf32> to vector<16x64xf32>
    %56 = arith.mulf %54, %55 : vector<16x64xf32>
    %57 = vector.broadcast %13 : vector<1x64xf32> to vector<16x64xf32>
    %58 = arith.addf %56, %57 : vector<16x64xf32>
    %59 = arith.truncf %58 : vector<16x64xf32> to vector<16x64xbf16>
    %cst_24 = arith.constant 0.000000e+00 : f32
    %60 = vector.broadcast %cst_24 : f32 to vector<8x64xf32>
    %c0_25 = arith.constant 0 : index
    %c0_26 = arith.constant 0 : index
    %c0_27 = arith.constant 0 : index
    %61 = vector.load %arg8[%c0_25, %c0_26, %c0_27] : memref<8x64x8xbf16, #tpu.memory_space<vmem>>, vector<1x64x8xbf16>
    %62 = vector.shape_cast %61 : vector<1x64x8xbf16> to vector<64x8xbf16>
    %cst_28 = arith.constant dense<0.000000e+00> : vector<8x8xf32>
    %63 = tpu.matmul %36, %62, %cst_28 {dimension_numbers = #tpu.dot_dimension_numbers<[1], [0], [0], [1], [0, 0, 1, 1], [], []>} : vector<8x64xbf16>, vector<64x8xbf16>, vector<8x8xf32> -> vector<8x8xf32>
    %c0_29 = arith.constant 0 : index
    %c0_30 = arith.constant 0 : index
    %c0_31 = arith.constant 0 : index
    %64 = vector.load %arg9[%c0_29, %c0_30, %c0_31] : memref<8x1x8xf32, #tpu.memory_space<vmem>>, vector<1x1x8xf32>
    %65 = vector.shape_cast %64 : vector<1x1x8xf32> to vector<1x8xf32>
    %66 = vector.broadcast %65 : vector<1x8xf32> to vector<8x8xf32>
    %67 = arith.addf %63, %66 : vector<8x8xf32>
    %cst_32 = arith.constant 0.353553385 : f32
    %68 = vector.broadcast %cst_32 : f32 to vector<8x8xf32>
    %69 = arith.mulf %67, %68 : vector<8x8xf32>
    %c0_33 = arith.constant 0 : index
    %c0_34 = arith.constant 0 : index
    %c0_35 = arith.constant 0 : index
    %70 = vector.load %arg10[%c0_33, %c0_34, %c0_35] : memref<8x64x8xbf16, #tpu.memory_space<vmem>>, vector<1x64x8xbf16>
    %71 = vector.shape_cast %70 : vector<1x64x8xbf16> to vector<64x8xbf16>
    %cst_36 = arith.constant dense<0.000000e+00> : vector<16x8xf32>
    %72 = tpu.matmul %59, %71, %cst_36 {dimension_numbers = #tpu.dot_dimension_numbers<[1], [0], [0], [1], [0, 0, 1, 1], [], []>} : vector<16x64xbf16>, vector<64x8xbf16>, vector<16x8xf32> -> vector<16x8xf32>
    %c0_37 = arith.constant 0 : index
    %c0_38 = arith.constant 0 : index
    %c0_39 = arith.constant 0 : index
    %73 = vector.load %arg11[%c0_37, %c0_38, %c0_39] : memref<8x1x8xf32, #tpu.memory_space<vmem>>, vector<1x1x8xf32>
    %74 = vector.shape_cast %73 : vector<1x1x8xf32> to vector<1x8xf32>
    %75 = vector.broadcast %74 : vector<1x8xf32> to vector<16x8xf32>
    %76 = arith.addf %72, %75 : vector<16x8xf32>
    %c0_40 = arith.constant 0 : index
    %c0_41 = arith.constant 0 : index
    %c0_42 = arith.constant 0 : index
    %77 = vector.load %arg12[%c0_40, %c0_41, %c0_42] : memref<8x64x8xbf16, #tpu.memory_space<vmem>>, vector<1x64x8xbf16>
    %78 = vector.shape_cast %77 : vector<1x64x8xbf16> to vector<64x8xbf16>
    %cst_43 = arith.constant dense<0.000000e+00> : vector<16x8xf32>
    %79 = tpu.matmul %59, %78, %cst_43 {dimension_numbers = #tpu.dot_dimension_numbers<[1], [0], [0], [1], [0, 0, 1, 1], [], []>} : vector<16x64xbf16>, vector<64x8xbf16>, vector<16x8xf32> -> vector<16x8xf32>
    %c0_44 = arith.constant 0 : index
    %c0_45 = arith.constant 0 : index
    %c0_46 = arith.constant 0 : index
    %80 = vector.load %arg13[%c0_44, %c0_45, %c0_46] : memref<8x1x8xf32, #tpu.memory_space<vmem>>, vector<1x1x8xf32>
    %81 = vector.shape_cast %80 : vector<1x1x8xf32> to vector<1x8xf32>
    %82 = vector.broadcast %81 : vector<1x8xf32> to vector<16x8xf32>
    %83 = arith.addf %79, %82 : vector<16x8xf32>
    %84 = arith.truncf %69 : vector<8x8xf32> to vector<8x8xbf16>
    %85 = arith.truncf %76 : vector<16x8xf32> to vector<16x8xbf16>
    %cst_47 = arith.constant dense<0.000000e+00> : vector<8x16xf32>
    %86 = tpu.matmul %84, %85, %cst_47 {dimension_numbers = #tpu.dot_dimension_numbers<[1], [1], [0], [0], [0, 0, 1, 0], [], []>} : vector<8x8xbf16>, vector<16x8xbf16>, vector<8x16xf32> -> vector<8x16xf32>
    %cst_48 = arith.constant dense<0xFF800000> : vector<8xf32>
    %87 = vector.multi_reduction <maximumf>, %86, %cst_48 [1] : vector<8x16xf32> to vector<8xf32>
    %88 = vector.shape_cast %87 : vector<8xf32> to vector<8x1xf32>
    %89 = vector.broadcast %88 : vector<8x1xf32> to vector<8x16xf32>
    %90 = arith.subf %86, %89 : vector<8x16xf32>
    %91 = math.exp %90 : vector<8x16xf32>
    %cst_49 = arith.constant dense<0.000000e+00> : vector<8xf32>
    %92 = vector.multi_reduction <add>, %91, %cst_49 [1] : vector<8x16xf32> to vector<8xf32>
    %93 = vector.shape_cast %92 : vector<8xf32> to vector<8x1xf32>
    %94 = tpu.reciprocal %93 {approx = true} : vector<8x1xf32> -> vector<8x1xf32>
    %95 = vector.broadcast %94 : vector<8x1xf32> to vector<8x16xf32>
    %96 = arith.mulf %91, %95 : vector<8x16xf32>
    %97 = arith.truncf %96 : vector<8x16xf32> to vector<8x16xbf16>
    %98 = arith.truncf %83 : vector<16x8xf32> to vector<16x8xbf16>
    %cst_50 = arith.constant dense<0.000000e+00> : vector<8x8xf32>
    %99 = tpu.matmul %97, %98, %cst_50 {dimension_numbers = #tpu.dot_dimension_numbers<[1], [0], [0], [1], [0, 0, 1, 1], [], []>} : vector<8x16xbf16>, vector<16x8xbf16>, vector<8x8xf32> -> vector<8x8xf32>
    %100 = arith.truncf %99 : vector<8x8xf32> to vector<8x8xbf16>
    %c0_51 = arith.constant 0 : index
    %c0_52 = arith.constant 0 : index
    %c0_53 = arith.constant 0 : index
    %101 = vector.load %arg14[%c0_51, %c0_52, %c0_53] : memref<8x8x64xbf16, #tpu.memory_space<vmem>>, vector<1x8x64xbf16>
    %102 = vector.shape_cast %101 : vector<1x8x64xbf16> to vector<8x64xbf16>
    %cst_54 = arith.constant dense<0.000000e+00> : vector<8x64xf32>
    %103 = tpu.matmul %100, %102, %cst_54 {dimension_numbers = #tpu.dot_dimension_numbers<[1], [0], [0], [1], [0, 0, 1, 1], [], []>} : vector<8x8xbf16>, vector<8x64xbf16>, vector<8x64xf32> -> vector<8x64xf32>
    %104 = arith.addf %60, %103 : vector<8x64xf32>
    %c1 = arith.constant 1 : index
    %c0_55 = arith.constant 0 : index
    %c0_56 = arith.constant 0 : index
    %105 = vector.load %arg8[%c1, %c0_55, %c0_56] : memref<8x64x8xbf16, #tpu.memory_space<vmem>>, vector<1x64x8xbf16>
    %106 = vector.shape_cast %105 : vector<1x64x8xbf16> to vector<64x8xbf16>
    %cst_57 = arith.constant dense<0.000000e+00> : vector<8x8xf32>
    %107 = tpu.matmul %36, %106, %cst_57 {dimension_numbers = #tpu.dot_dimension_numbers<[1], [0], [0], [1], [0, 0, 1, 1], [], []>} : vector<8x64xbf16>, vector<64x8xbf16>, vector<8x8xf32> -> vector<8x8xf32>
    %c1_58 = arith.constant 1 : index
    %c0_59 = arith.constant 0 : index
    %c0_60 = arith.constant 0 : index
    %108 = vector.load %arg9[%c1_58, %c0_59, %c0_60] : memref<8x1x8xf32, #tpu.memory_space<vmem>>, vector<1x1x8xf32>
    %109 = vector.shape_cast %108 : vector<1x1x8xf32> to vector<1x8xf32>
    %110 = vector.broadcast %109 : vector<1x8xf32> to vector<8x8xf32>
    %111 = arith.addf %107, %110 : vector<8x8xf32>
    %cst_61 = arith.constant 0.353553385 : f32
    %112 = vector.broadcast %cst_61 : f32 to vector<8x8xf32>
    %113 = arith.mulf %111, %112 : vector<8x8xf32>
    %c1_62 = arith.constant 1 : index
    %c0_63 = arith.constant 0 : index
    %c0_64 = arith.constant 0 : index
    %114 = vector.load %arg10[%c1_62, %c0_63, %c0_64] : memref<8x64x8xbf16, #tpu.memory_space<vmem>>, vector<1x64x8xbf16>
    %115 = vector.shape_cast %114 : vector<1x64x8xbf16> to vector<64x8xbf16>
    %cst_65 = arith.constant dense<0.000000e+00> : vector<16x8xf32>
    %116 = tpu.matmul %59, %115, %cst_65 {dimension_numbers = #tpu.dot_dimension_numbers<[1], [0], [0], [1], [0, 0, 1, 1], [], []>} : vector<16x64xbf16>, vector<64x8xbf16>, vector<16x8xf32> -> vector<16x8xf32>
    %c1_66 = arith.constant 1 : index
    %c0_67 = arith.constant 0 : index
    %c0_68 = arith.constant 0 : index
    %117 = vector.load %arg11[%c1_66, %c0_67, %c0_68] : memref<8x1x8xf32, #tpu.memory_space<vmem>>, vector<1x1x8xf32>
    %118 = vector.shape_cast %117 : vector<1x1x8xf32> to vector<1x8xf32>
    %119 = vector.broadcast %118 : vector<1x8xf32> to vector<16x8xf32>
    %120 = arith.addf %116, %119 : vector<16x8xf32>
    %c1_69 = arith.constant 1 : index
    %c0_70 = arith.constant 0 : index
    %c0_71 = arith.constant 0 : index
    %121 = vector.load %arg12[%c1_69, %c0_70, %c0_71] : memref<8x64x8xbf16, #tpu.memory_space<vmem>>, vector<1x64x8xbf16>
    %122 = vector.shape_cast %121 : vector<1x64x8xbf16> to vector<64x8xbf16>
    %cst_72 = arith.constant dense<0.000000e+00> : vector<16x8xf32>
    %123 = tpu.matmul %59, %122, %cst_72 {dimension_numbers = #tpu.dot_dimension_numbers<[1], [0], [0], [1], [0, 0, 1, 1], [], []>} : vector<16x64xbf16>, vector<64x8xbf16>, vector<16x8xf32> -> vector<16x8xf32>
    %c1_73 = arith.constant 1 : index
    %c0_74 = arith.constant 0 : index
    %c0_75 = arith.constant 0 : index
    %124 = vector.load %arg13[%c1_73, %c0_74, %c0_75] : memref<8x1x8xf32, #tpu.memory_space<vmem>>, vector<1x1x8xf32>
    %125 = vector.shape_cast %124 : vector<1x1x8xf32> to vector<1x8xf32>
    %126 = vector.broadcast %125 : vector<1x8xf32> to vector<16x8xf32>
    %127 = arith.addf %123, %126 : vector<16x8xf32>
    %128 = arith.truncf %113 : vector<8x8xf32> to vector<8x8xbf16>
    %129 = arith.truncf %120 : vector<16x8xf32> to vector<16x8xbf16>
    %cst_76 = arith.constant dense<0.000000e+00> : vector<8x16xf32>
    %130 = tpu.matmul %128, %129, %cst_76 {dimension_numbers = #tpu.dot_dimension_numbers<[1], [1], [0], [0], [0, 0, 1, 0], [], []>} : vector<8x8xbf16>, vector<16x8xbf16>, vector<8x16xf32> -> vector<8x16xf32>
    %cst_77 = arith.constant dense<0xFF800000> : vector<8xf32>
    %131 = vector.multi_reduction <maximumf>, %130, %cst_77 [1] : vector<8x16xf32> to vector<8xf32>
    %132 = vector.shape_cast %131 : vector<8xf32> to vector<8x1xf32>
    %133 = vector.broadcast %132 : vector<8x1xf32> to vector<8x16xf32>
    %134 = arith.subf %130, %133 : vector<8x16xf32>
    %135 = math.exp %134 : vector<8x16xf32>
    %cst_78 = arith.constant dense<0.000000e+00> : vector<8xf32>
    %136 = vector.multi_reduction <add>, %135, %cst_78 [1] : vector<8x16xf32> to vector<8xf32>
    %137 = vector.shape_cast %136 : vector<8xf32> to vector<8x1xf32>
    %138 = tpu.reciprocal %137 {approx = true} : vector<8x1xf32> -> vector<8x1xf32>
    %139 = vector.broadcast %138 : vector<8x1xf32> to vector<8x16xf32>
    %140 = arith.mulf %135, %139 : vector<8x16xf32>
    %141 = arith.truncf %140 : vector<8x16xf32> to vector<8x16xbf16>
    %142 = arith.truncf %127 : vector<16x8xf32> to vector<16x8xbf16>
    %cst_79 = arith.constant dense<0.000000e+00> : vector<8x8xf32>
    %143 = tpu.matmul %141, %142, %cst_79 {dimension_numbers = #tpu.dot_dimension_numbers<[1], [0], [0], [1], [0, 0, 1, 1], [], []>} : vector<8x16xbf16>, vector<16x8xbf16>, vector<8x8xf32> -> vector<8x8xf32>
    %144 = arith.truncf %143 : vector<8x8xf32> to vector<8x8xbf16>
    %c1_80 = arith.constant 1 : index
    %c0_81 = arith.constant 0 : index
    %c0_82 = arith.constant 0 : index
    %145 = vector.load %arg14[%c1_80, %c0_81, %c0_82] : memref<8x8x64xbf16, #tpu.memory_space<vmem>>, vector<1x8x64xbf16>
    %146 = vector.shape_cast %145 : vector<1x8x64xbf16> to vector<8x64xbf16>
    %cst_83 = arith.constant dense<0.000000e+00> : vector<8x64xf32>
    %147 = tpu.matmul %144, %146, %cst_83 {dimension_numbers = #tpu.dot_dimension_numbers<[1], [0], [0], [1], [0, 0, 1, 1], [], []>} : vector<8x8xbf16>, vector<8x64xbf16>, vector<8x64xf32> -> vector<8x64xf32>
    %148 = arith.addf %104, %147 : vector<8x64xf32>
    %c2 = arith.constant 2 : index
    %c0_84 = arith.constant 0 : index
    %c0_85 = arith.constant 0 : index
    %149 = vector.load %arg8[%c2, %c0_84, %c0_85] : memref<8x64x8xbf16, #tpu.memory_space<vmem>>, vector<1x64x8xbf16>
    %150 = vector.shape_cast %149 : vector<1x64x8xbf16> to vector<64x8xbf16>
    %cst_86 = arith.constant dense<0.000000e+00> : vector<8x8xf32>
    %151 = tpu.matmul %36, %150, %cst_86 {dimension_numbers = #tpu.dot_dimension_numbers<[1], [0], [0], [1], [0, 0, 1, 1], [], []>} : vector<8x64xbf16>, vector<64x8xbf16>, vector<8x8xf32> -> vector<8x8xf32>
    %c2_87 = arith.constant 2 : index
    %c0_88 = arith.constant 0 : index
    %c0_89 = arith.constant 0 : index
    %152 = vector.load %arg9[%c2_87, %c0_88, %c0_89] : memref<8x1x8xf32, #tpu.memory_space<vmem>>, vector<1x1x8xf32>
    %153 = vector.shape_cast %152 : vector<1x1x8xf32> to vector<1x8xf32>
    %154 = vector.broadcast %153 : vector<1x8xf32> to vector<8x8xf32>
    %155 = arith.addf %151, %154 : vector<8x8xf32>
    %cst_90 = arith.constant 0.353553385 : f32
    %156 = vector.broadcast %cst_90 : f32 to vector<8x8xf32>
    %157 = arith.mulf %155, %156 : vector<8x8xf32>
    %c2_91 = arith.constant 2 : index
    %c0_92 = arith.constant 0 : index
    %c0_93 = arith.constant 0 : index
    %158 = vector.load %arg10[%c2_91, %c0_92, %c0_93] : memref<8x64x8xbf16, #tpu.memory_space<vmem>>, vector<1x64x8xbf16>
    %159 = vector.shape_cast %158 : vector<1x64x8xbf16> to vector<64x8xbf16>
    %cst_94 = arith.constant dense<0.000000e+00> : vector<16x8xf32>
    %160 = tpu.matmul %59, %159, %cst_94 {dimension_numbers = #tpu.dot_dimension_numbers<[1], [0], [0], [1], [0, 0, 1, 1], [], []>} : vector<16x64xbf16>, vector<64x8xbf16>, vector<16x8xf32> -> vector<16x8xf32>
    %c2_95 = arith.constant 2 : index
    %c0_96 = arith.constant 0 : index
    %c0_97 = arith.constant 0 : index
    %161 = vector.load %arg11[%c2_95, %c0_96, %c0_97] : memref<8x1x8xf32, #tpu.memory_space<vmem>>, vector<1x1x8xf32>
    %162 = vector.shape_cast %161 : vector<1x1x8xf32> to vector<1x8xf32>
    %163 = vector.broadcast %162 : vector<1x8xf32> to vector<16x8xf32>
    %164 = arith.addf %160, %163 : vector<16x8xf32>
    %c2_98 = arith.constant 2 : index
    %c0_99 = arith.constant 0 : index
    %c0_100 = arith.constant 0 : index
    %165 = vector.load %arg12[%c2_98, %c0_99, %c0_100] : memref<8x64x8xbf16, #tpu.memory_space<vmem>>, vector<1x64x8xbf16>
    %166 = vector.shape_cast %165 : vector<1x64x8xbf16> to vector<64x8xbf16>
    %cst_101 = arith.constant dense<0.000000e+00> : vector<16x8xf32>
    %167 = tpu.matmul %59, %166, %cst_101 {dimension_numbers = #tpu.dot_dimension_numbers<[1], [0], [0], [1], [0, 0, 1, 1], [], []>} : vector<16x64xbf16>, vector<64x8xbf16>, vector<16x8xf32> -> vector<16x8xf32>
    %c2_102 = arith.constant 2 : index
    %c0_103 = arith.constant 0 : index
    %c0_104 = arith.constant 0 : index
    %168 = vector.load %arg13[%c2_102, %c0_103, %c0_104] : memref<8x1x8xf32, #tpu.memory_space<vmem>>, vector<1x1x8xf32>
    %169 = vector.shape_cast %168 : vector<1x1x8xf32> to vector<1x8xf32>
    %170 = vector.broadcast %169 : vector<1x8xf32> to vector<16x8xf32>
    %171 = arith.addf %167, %170 : vector<16x8xf32>
    %172 = arith.truncf %157 : vector<8x8xf32> to vector<8x8xbf16>
    %173 = arith.truncf %164 : vector<16x8xf32> to vector<16x8xbf16>
    %cst_105 = arith.constant dense<0.000000e+00> : vector<8x16xf32>
    %174 = tpu.matmul %172, %173, %cst_105 {dimension_numbers = #tpu.dot_dimension_numbers<[1], [1], [0], [0], [0, 0, 1, 0], [], []>} : vector<8x8xbf16>, vector<16x8xbf16>, vector<8x16xf32> -> vector<8x16xf32>
    %cst_106 = arith.constant dense<0xFF800000> : vector<8xf32>
    %175 = vector.multi_reduction <maximumf>, %174, %cst_106 [1] : vector<8x16xf32> to vector<8xf32>
    %176 = vector.shape_cast %175 : vector<8xf32> to vector<8x1xf32>
    %177 = vector.broadcast %176 : vector<8x1xf32> to vector<8x16xf32>
    %178 = arith.subf %174, %177 : vector<8x16xf32>
    %179 = math.exp %178 : vector<8x16xf32>
    %cst_107 = arith.constant dense<0.000000e+00> : vector<8xf32>
    %180 = vector.multi_reduction <add>, %179, %cst_107 [1] : vector<8x16xf32> to vector<8xf32>
    %181 = vector.shape_cast %180 : vector<8xf32> to vector<8x1xf32>
    %182 = tpu.reciprocal %181 {approx = true} : vector<8x1xf32> -> vector<8x1xf32>
    %183 = vector.broadcast %182 : vector<8x1xf32> to vector<8x16xf32>
    %184 = arith.mulf %179, %183 : vector<8x16xf32>
    %185 = arith.truncf %184 : vector<8x16xf32> to vector<8x16xbf16>
    %186 = arith.truncf %171 : vector<16x8xf32> to vector<16x8xbf16>
    %cst_108 = arith.constant dense<0.000000e+00> : vector<8x8xf32>
    %187 = tpu.matmul %185, %186, %cst_108 {dimension_numbers = #tpu.dot_dimension_numbers<[1], [0], [0], [1], [0, 0, 1, 1], [], []>} : vector<8x16xbf16>, vector<16x8xbf16>, vector<8x8xf32> -> vector<8x8xf32>
    %188 = arith.truncf %187 : vector<8x8xf32> to vector<8x8xbf16>
    %c2_109 = arith.constant 2 : index
    %c0_110 = arith.constant 0 : index
    %c0_111 = arith.constant 0 : index
    %189 = vector.load %arg14[%c2_109, %c0_110, %c0_111] : memref<8x8x64xbf16, #tpu.memory_space<vmem>>, vector<1x8x64xbf16>
    %190 = vector.shape_cast %189 : vector<1x8x64xbf16> to vector<8x64xbf16>
    %cst_112 = arith.constant dense<0.000000e+00> : vector<8x64xf32>
    %191 = tpu.matmul %188, %190, %cst_112 {dimension_numbers = #tpu.dot_dimension_numbers<[1], [0], [0], [1], [0, 0, 1, 1], [], []>} : vector<8x8xbf16>, vector<8x64xbf16>, vector<8x64xf32> -> vector<8x64xf32>
    %192 = arith.addf %148, %191 : vector<8x64xf32>
    %c3 = arith.constant 3 : index
    %c0_113 = arith.constant 0 : index
    %c0_114 = arith.constant 0 : index
    %193 = vector.load %arg8[%c3, %c0_113, %c0_114] : memref<8x64x8xbf16, #tpu.memory_space<vmem>>, vector<1x64x8xbf16>
    %194 = vector.shape_cast %193 : vector<1x64x8xbf16> to vector<64x8xbf16>
    %cst_115 = arith.constant dense<0.000000e+00> : vector<8x8xf32>
    %195 = tpu.matmul %36, %194, %cst_115 {dimension_numbers = #tpu.dot_dimension_numbers<[1], [0], [0], [1], [0, 0, 1, 1], [], []>} : vector<8x64xbf16>, vector<64x8xbf16>, vector<8x8xf32> -> vector<8x8xf32>
    %c3_116 = arith.constant 3 : index
    %c0_117 = arith.constant 0 : index
    %c0_118 = arith.constant 0 : index
    %196 = vector.load %arg9[%c3_116, %c0_117, %c0_118] : memref<8x1x8xf32, #tpu.memory_space<vmem>>, vector<1x1x8xf32>
    %197 = vector.shape_cast %196 : vector<1x1x8xf32> to vector<1x8xf32>
    %198 = vector.broadcast %197 : vector<1x8xf32> to vector<8x8xf32>
    %199 = arith.addf %195, %198 : vector<8x8xf32>
    %cst_119 = arith.constant 0.353553385 : f32
    %200 = vector.broadcast %cst_119 : f32 to vector<8x8xf32>
    %201 = arith.mulf %199, %200 : vector<8x8xf32>
    %c3_120 = arith.constant 3 : index
    %c0_121 = arith.constant 0 : index
    %c0_122 = arith.constant 0 : index
    %202 = vector.load %arg10[%c3_120, %c0_121, %c0_122] : memref<8x64x8xbf16, #tpu.memory_space<vmem>>, vector<1x64x8xbf16>
    %203 = vector.shape_cast %202 : vector<1x64x8xbf16> to vector<64x8xbf16>
    %cst_123 = arith.constant dense<0.000000e+00> : vector<16x8xf32>
    %204 = tpu.matmul %59, %203, %cst_123 {dimension_numbers = #tpu.dot_dimension_numbers<[1], [0], [0], [1], [0, 0, 1, 1], [], []>} : vector<16x64xbf16>, vector<64x8xbf16>, vector<16x8xf32> -> vector<16x8xf32>
    %c3_124 = arith.constant 3 : index
    %c0_125 = arith.constant 0 : index
    %c0_126 = arith.constant 0 : index
    %205 = vector.load %arg11[%c3_124, %c0_125, %c0_126] : memref<8x1x8xf32, #tpu.memory_space<vmem>>, vector<1x1x8xf32>
    %206 = vector.shape_cast %205 : vector<1x1x8xf32> to vector<1x8xf32>
    %207 = vector.broadcast %206 : vector<1x8xf32> to vector<16x8xf32>
    %208 = arith.addf %204, %207 : vector<16x8xf32>
    %c3_127 = arith.constant 3 : index
    %c0_128 = arith.constant 0 : index
    %c0_129 = arith.constant 0 : index
    %209 = vector.load %arg12[%c3_127, %c0_128, %c0_129] : memref<8x64x8xbf16, #tpu.memory_space<vmem>>, vector<1x64x8xbf16>
    %210 = vector.shape_cast %209 : vector<1x64x8xbf16> to vector<64x8xbf16>
    %cst_130 = arith.constant dense<0.000000e+00> : vector<16x8xf32>
    %211 = tpu.matmul %59, %210, %cst_130 {dimension_numbers = #tpu.dot_dimension_numbers<[1], [0], [0], [1], [0, 0, 1, 1], [], []>} : vector<16x64xbf16>, vector<64x8xbf16>, vector<16x8xf32> -> vector<16x8xf32>
    %c3_131 = arith.constant 3 : index
    %c0_132 = arith.constant 0 : index
    %c0_133 = arith.constant 0 : index
    %212 = vector.load %arg13[%c3_131, %c0_132, %c0_133] : memref<8x1x8xf32, #tpu.memory_space<vmem>>, vector<1x1x8xf32>
    %213 = vector.shape_cast %212 : vector<1x1x8xf32> to vector<1x8xf32>
    %214 = vector.broadcast %213 : vector<1x8xf32> to vector<16x8xf32>
    %215 = arith.addf %211, %214 : vector<16x8xf32>
    %216 = arith.truncf %201 : vector<8x8xf32> to vector<8x8xbf16>
    %217 = arith.truncf %208 : vector<16x8xf32> to vector<16x8xbf16>
    %cst_134 = arith.constant dense<0.000000e+00> : vector<8x16xf32>
    %218 = tpu.matmul %216, %217, %cst_134 {dimension_numbers = #tpu.dot_dimension_numbers<[1], [1], [0], [0], [0, 0, 1, 0], [], []>} : vector<8x8xbf16>, vector<16x8xbf16>, vector<8x16xf32> -> vector<8x16xf32>
    %cst_135 = arith.constant dense<0xFF800000> : vector<8xf32>
    %219 = vector.multi_reduction <maximumf>, %218, %cst_135 [1] : vector<8x16xf32> to vector<8xf32>
    %220 = vector.shape_cast %219 : vector<8xf32> to vector<8x1xf32>
    %221 = vector.broadcast %220 : vector<8x1xf32> to vector<8x16xf32>
    %222 = arith.subf %218, %221 : vector<8x16xf32>
    %223 = math.exp %222 : vector<8x16xf32>
    %cst_136 = arith.constant dense<0.000000e+00> : vector<8xf32>
    %224 = vector.multi_reduction <add>, %223, %cst_136 [1] : vector<8x16xf32> to vector<8xf32>
    %225 = vector.shape_cast %224 : vector<8xf32> to vector<8x1xf32>
    %226 = tpu.reciprocal %225 {approx = true} : vector<8x1xf32> -> vector<8x1xf32>
    %227 = vector.broadcast %226 : vector<8x1xf32> to vector<8x16xf32>
    %228 = arith.mulf %223, %227 : vector<8x16xf32>
    %229 = arith.truncf %228 : vector<8x16xf32> to vector<8x16xbf16>
    %230 = arith.truncf %215 : vector<16x8xf32> to vector<16x8xbf16>
    %cst_137 = arith.constant dense<0.000000e+00> : vector<8x8xf32>
    %231 = tpu.matmul %229, %230, %cst_137 {dimension_numbers = #tpu.dot_dimension_numbers<[1], [0], [0], [1], [0, 0, 1, 1], [], []>} : vector<8x16xbf16>, vector<16x8xbf16>, vector<8x8xf32> -> vector<8x8xf32>
    %232 = arith.truncf %231 : vector<8x8xf32> to vector<8x8xbf16>
    %c3_138 = arith.constant 3 : index
    %c0_139 = arith.constant 0 : index
    %c0_140 = arith.constant 0 : index
    %233 = vector.load %arg14[%c3_138, %c0_139, %c0_140] : memref<8x8x64xbf16, #tpu.memory_space<vmem>>, vector<1x8x64xbf16>
    %234 = vector.shape_cast %233 : vector<1x8x64xbf16> to vector<8x64xbf16>
    %cst_141 = arith.constant dense<0.000000e+00> : vector<8x64xf32>
    %235 = tpu.matmul %232, %234, %cst_141 {dimension_numbers = #tpu.dot_dimension_numbers<[1], [0], [0], [1], [0, 0, 1, 1], [], []>} : vector<8x8xbf16>, vector<8x64xbf16>, vector<8x64xf32> -> vector<8x64xf32>
    %236 = arith.addf %192, %235 : vector<8x64xf32>
    %c4 = arith.constant 4 : index
    %c0_142 = arith.constant 0 : index
    %c0_143 = arith.constant 0 : index
    %237 = vector.load %arg8[%c4, %c0_142, %c0_143] : memref<8x64x8xbf16, #tpu.memory_space<vmem>>, vector<1x64x8xbf16>
    %238 = vector.shape_cast %237 : vector<1x64x8xbf16> to vector<64x8xbf16>
    %cst_144 = arith.constant dense<0.000000e+00> : vector<8x8xf32>
    %239 = tpu.matmul %36, %238, %cst_144 {dimension_numbers = #tpu.dot_dimension_numbers<[1], [0], [0], [1], [0, 0, 1, 1], [], []>} : vector<8x64xbf16>, vector<64x8xbf16>, vector<8x8xf32> -> vector<8x8xf32>
    %c4_145 = arith.constant 4 : index
    %c0_146 = arith.constant 0 : index
    %c0_147 = arith.constant 0 : index
    %240 = vector.load %arg9[%c4_145, %c0_146, %c0_147] : memref<8x1x8xf32, #tpu.memory_space<vmem>>, vector<1x1x8xf32>
    %241 = vector.shape_cast %240 : vector<1x1x8xf32> to vector<1x8xf32>
    %242 = vector.broadcast %241 : vector<1x8xf32> to vector<8x8xf32>
    %243 = arith.addf %239, %242 : vector<8x8xf32>
    %cst_148 = arith.constant 0.353553385 : f32
    %244 = vector.broadcast %cst_148 : f32 to vector<8x8xf32>
    %245 = arith.mulf %243, %244 : vector<8x8xf32>
    %c4_149 = arith.constant 4 : index
    %c0_150 = arith.constant 0 : index
    %c0_151 = arith.constant 0 : index
    %246 = vector.load %arg10[%c4_149, %c0_150, %c0_151] : memref<8x64x8xbf16, #tpu.memory_space<vmem>>, vector<1x64x8xbf16>
    %247 = vector.shape_cast %246 : vector<1x64x8xbf16> to vector<64x8xbf16>
    %cst_152 = arith.constant dense<0.000000e+00> : vector<16x8xf32>
    %248 = tpu.matmul %59, %247, %cst_152 {dimension_numbers = #tpu.dot_dimension_numbers<[1], [0], [0], [1], [0, 0, 1, 1], [], []>} : vector<16x64xbf16>, vector<64x8xbf16>, vector<16x8xf32> -> vector<16x8xf32>
    %c4_153 = arith.constant 4 : index
    %c0_154 = arith.constant 0 : index
    %c0_155 = arith.constant 0 : index
    %249 = vector.load %arg11[%c4_153, %c0_154, %c0_155] : memref<8x1x8xf32, #tpu.memory_space<vmem>>, vector<1x1x8xf32>
    %250 = vector.shape_cast %249 : vector<1x1x8xf32> to vector<1x8xf32>
    %251 = vector.broadcast %250 : vector<1x8xf32> to vector<16x8xf32>
    %252 = arith.addf %248, %251 : vector<16x8xf32>
    %c4_156 = arith.constant 4 : index
    %c0_157 = arith.constant 0 : index
    %c0_158 = arith.constant 0 : index
    %253 = vector.load %arg12[%c4_156, %c0_157, %c0_158] : memref<8x64x8xbf16, #tpu.memory_space<vmem>>, vector<1x64x8xbf16>
    %254 = vector.shape_cast %253 : vector<1x64x8xbf16> to vector<64x8xbf16>
    %cst_159 = arith.constant dense<0.000000e+00> : vector<16x8xf32>
    %255 = tpu.matmul %59, %254, %cst_159 {dimension_numbers = #tpu.dot_dimension_numbers<[1], [0], [0], [1], [0, 0, 1, 1], [], []>} : vector<16x64xbf16>, vector<64x8xbf16>, vector<16x8xf32> -> vector<16x8xf32>
    %c4_160 = arith.constant 4 : index
    %c0_161 = arith.constant 0 : index
    %c0_162 = arith.constant 0 : index
    %256 = vector.load %arg13[%c4_160, %c0_161, %c0_162] : memref<8x1x8xf32, #tpu.memory_space<vmem>>, vector<1x1x8xf32>
    %257 = vector.shape_cast %256 : vector<1x1x8xf32> to vector<1x8xf32>
    %258 = vector.broadcast %257 : vector<1x8xf32> to vector<16x8xf32>
    %259 = arith.addf %255, %258 : vector<16x8xf32>
    %260 = arith.truncf %245 : vector<8x8xf32> to vector<8x8xbf16>
    %261 = arith.truncf %252 : vector<16x8xf32> to vector<16x8xbf16>
    %cst_163 = arith.constant dense<0.000000e+00> : vector<8x16xf32>
    %262 = tpu.matmul %260, %261, %cst_163 {dimension_numbers = #tpu.dot_dimension_numbers<[1], [1], [0], [0], [0, 0, 1, 0], [], []>} : vector<8x8xbf16>, vector<16x8xbf16>, vector<8x16xf32> -> vector<8x16xf32>
    %cst_164 = arith.constant dense<0xFF800000> : vector<8xf32>
    %263 = vector.multi_reduction <maximumf>, %262, %cst_164 [1] : vector<8x16xf32> to vector<8xf32>
    %264 = vector.shape_cast %263 : vector<8xf32> to vector<8x1xf32>
    %265 = vector.broadcast %264 : vector<8x1xf32> to vector<8x16xf32>
    %266 = arith.subf %262, %265 : vector<8x16xf32>
    %267 = math.exp %266 : vector<8x16xf32>
    %cst_165 = arith.constant dense<0.000000e+00> : vector<8xf32>
    %268 = vector.multi_reduction <add>, %267, %cst_165 [1] : vector<8x16xf32> to vector<8xf32>
    %269 = vector.shape_cast %268 : vector<8xf32> to vector<8x1xf32>
    %270 = tpu.reciprocal %269 {approx = true} : vector<8x1xf32> -> vector<8x1xf32>
    %271 = vector.broadcast %270 : vector<8x1xf32> to vector<8x16xf32>
    %272 = arith.mulf %267, %271 : vector<8x16xf32>
    %273 = arith.truncf %272 : vector<8x16xf32> to vector<8x16xbf16>
    %274 = arith.truncf %259 : vector<16x8xf32> to vector<16x8xbf16>
    %cst_166 = arith.constant dense<0.000000e+00> : vector<8x8xf32>
    %275 = tpu.matmul %273, %274, %cst_166 {dimension_numbers = #tpu.dot_dimension_numbers<[1], [0], [0], [1], [0, 0, 1, 1], [], []>} : vector<8x16xbf16>, vector<16x8xbf16>, vector<8x8xf32> -> vector<8x8xf32>
    %276 = arith.truncf %275 : vector<8x8xf32> to vector<8x8xbf16>
    %c4_167 = arith.constant 4 : index
    %c0_168 = arith.constant 0 : index
    %c0_169 = arith.constant 0 : index
    %277 = vector.load %arg14[%c4_167, %c0_168, %c0_169] : memref<8x8x64xbf16, #tpu.memory_space<vmem>>, vector<1x8x64xbf16>
    %278 = vector.shape_cast %277 : vector<1x8x64xbf16> to vector<8x64xbf16>
    %cst_170 = arith.constant dense<0.000000e+00> : vector<8x64xf32>
    %279 = tpu.matmul %276, %278, %cst_170 {dimension_numbers = #tpu.dot_dimension_numbers<[1], [0], [0], [1], [0, 0, 1, 1], [], []>} : vector<8x8xbf16>, vector<8x64xbf16>, vector<8x64xf32> -> vector<8x64xf32>
    %280 = arith.addf %236, %279 : vector<8x64xf32>
    %c5 = arith.constant 5 : index
    %c0_171 = arith.constant 0 : index
    %c0_172 = arith.constant 0 : index
    %281 = vector.load %arg8[%c5, %c0_171, %c0_172] : memref<8x64x8xbf16, #tpu.memory_space<vmem>>, vector<1x64x8xbf16>
    %282 = vector.shape_cast %281 : vector<1x64x8xbf16> to vector<64x8xbf16>
    %cst_173 = arith.constant dense<0.000000e+00> : vector<8x8xf32>
    %283 = tpu.matmul %36, %282, %cst_173 {dimension_numbers = #tpu.dot_dimension_numbers<[1], [0], [0], [1], [0, 0, 1, 1], [], []>} : vector<8x64xbf16>, vector<64x8xbf16>, vector<8x8xf32> -> vector<8x8xf32>
    %c5_174 = arith.constant 5 : index
    %c0_175 = arith.constant 0 : index
    %c0_176 = arith.constant 0 : index
    %284 = vector.load %arg9[%c5_174, %c0_175, %c0_176] : memref<8x1x8xf32, #tpu.memory_space<vmem>>, vector<1x1x8xf32>
    %285 = vector.shape_cast %284 : vector<1x1x8xf32> to vector<1x8xf32>
    %286 = vector.broadcast %285 : vector<1x8xf32> to vector<8x8xf32>
    %287 = arith.addf %283, %286 : vector<8x8xf32>
    %cst_177 = arith.constant 0.353553385 : f32
    %288 = vector.broadcast %cst_177 : f32 to vector<8x8xf32>
    %289 = arith.mulf %287, %288 : vector<8x8xf32>
    %c5_178 = arith.constant 5 : index
    %c0_179 = arith.constant 0 : index
    %c0_180 = arith.constant 0 : index
    %290 = vector.load %arg10[%c5_178, %c0_179, %c0_180] : memref<8x64x8xbf16, #tpu.memory_space<vmem>>, vector<1x64x8xbf16>
    %291 = vector.shape_cast %290 : vector<1x64x8xbf16> to vector<64x8xbf16>
    %cst_181 = arith.constant dense<0.000000e+00> : vector<16x8xf32>
    %292 = tpu.matmul %59, %291, %cst_181 {dimension_numbers = #tpu.dot_dimension_numbers<[1], [0], [0], [1], [0, 0, 1, 1], [], []>} : vector<16x64xbf16>, vector<64x8xbf16>, vector<16x8xf32> -> vector<16x8xf32>
    %c5_182 = arith.constant 5 : index
    %c0_183 = arith.constant 0 : index
    %c0_184 = arith.constant 0 : index
    %293 = vector.load %arg11[%c5_182, %c0_183, %c0_184] : memref<8x1x8xf32, #tpu.memory_space<vmem>>, vector<1x1x8xf32>
    %294 = vector.shape_cast %293 : vector<1x1x8xf32> to vector<1x8xf32>
    %295 = vector.broadcast %294 : vector<1x8xf32> to vector<16x8xf32>
    %296 = arith.addf %292, %295 : vector<16x8xf32>
    %c5_185 = arith.constant 5 : index
    %c0_186 = arith.constant 0 : index
    %c0_187 = arith.constant 0 : index
    %297 = vector.load %arg12[%c5_185, %c0_186, %c0_187] : memref<8x64x8xbf16, #tpu.memory_space<vmem>>, vector<1x64x8xbf16>
    %298 = vector.shape_cast %297 : vector<1x64x8xbf16> to vector<64x8xbf16>
    %cst_188 = arith.constant dense<0.000000e+00> : vector<16x8xf32>
    %299 = tpu.matmul %59, %298, %cst_188 {dimension_numbers = #tpu.dot_dimension_numbers<[1], [0], [0], [1], [0, 0, 1, 1], [], []>} : vector<16x64xbf16>, vector<64x8xbf16>, vector<16x8xf32> -> vector<16x8xf32>
    %c5_189 = arith.constant 5 : index
    %c0_190 = arith.constant 0 : index
    %c0_191 = arith.constant 0 : index
    %300 = vector.load %arg13[%c5_189, %c0_190, %c0_191] : memref<8x1x8xf32, #tpu.memory_space<vmem>>, vector<1x1x8xf32>
    %301 = vector.shape_cast %300 : vector<1x1x8xf32> to vector<1x8xf32>
    %302 = vector.broadcast %301 : vector<1x8xf32> to vector<16x8xf32>
    %303 = arith.addf %299, %302 : vector<16x8xf32>
    %304 = arith.truncf %289 : vector<8x8xf32> to vector<8x8xbf16>
    %305 = arith.truncf %296 : vector<16x8xf32> to vector<16x8xbf16>
    %cst_192 = arith.constant dense<0.000000e+00> : vector<8x16xf32>
    %306 = tpu.matmul %304, %305, %cst_192 {dimension_numbers = #tpu.dot_dimension_numbers<[1], [1], [0], [0], [0, 0, 1, 0], [], []>} : vector<8x8xbf16>, vector<16x8xbf16>, vector<8x16xf32> -> vector<8x16xf32>
    %cst_193 = arith.constant dense<0xFF800000> : vector<8xf32>
    %307 = vector.multi_reduction <maximumf>, %306, %cst_193 [1] : vector<8x16xf32> to vector<8xf32>
    %308 = vector.shape_cast %307 : vector<8xf32> to vector<8x1xf32>
    %309 = vector.broadcast %308 : vector<8x1xf32> to vector<8x16xf32>
    %310 = arith.subf %306, %309 : vector<8x16xf32>
    %311 = math.exp %310 : vector<8x16xf32>
    %cst_194 = arith.constant dense<0.000000e+00> : vector<8xf32>
    %312 = vector.multi_reduction <add>, %311, %cst_194 [1] : vector<8x16xf32> to vector<8xf32>
    %313 = vector.shape_cast %312 : vector<8xf32> to vector<8x1xf32>
    %314 = tpu.reciprocal %313 {approx = true} : vector<8x1xf32> -> vector<8x1xf32>
    %315 = vector.broadcast %314 : vector<8x1xf32> to vector<8x16xf32>
    %316 = arith.mulf %311, %315 : vector<8x16xf32>
    %317 = arith.truncf %316 : vector<8x16xf32> to vector<8x16xbf16>
    %318 = arith.truncf %303 : vector<16x8xf32> to vector<16x8xbf16>
    %cst_195 = arith.constant dense<0.000000e+00> : vector<8x8xf32>
    %319 = tpu.matmul %317, %318, %cst_195 {dimension_numbers = #tpu.dot_dimension_numbers<[1], [0], [0], [1], [0, 0, 1, 1], [], []>} : vector<8x16xbf16>, vector<16x8xbf16>, vector<8x8xf32> -> vector<8x8xf32>
    %320 = arith.truncf %319 : vector<8x8xf32> to vector<8x8xbf16>
    %c5_196 = arith.constant 5 : index
    %c0_197 = arith.constant 0 : index
    %c0_198 = arith.constant 0 : index
    %321 = vector.load %arg14[%c5_196, %c0_197, %c0_198] : memref<8x8x64xbf16, #tpu.memory_space<vmem>>, vector<1x8x64xbf16>
    %322 = vector.shape_cast %321 : vector<1x8x64xbf16> to vector<8x64xbf16>
    %cst_199 = arith.constant dense<0.000000e+00> : vector<8x64xf32>
    %323 = tpu.matmul %320, %322, %cst_199 {dimension_numbers = #tpu.dot_dimension_numbers<[1], [0], [0], [1], [0, 0, 1, 1], [], []>} : vector<8x8xbf16>, vector<8x64xbf16>, vector<8x64xf32> -> vector<8x64xf32>
    %324 = arith.addf %280, %323 : vector<8x64xf32>
    %c6 = arith.constant 6 : index
    %c0_200 = arith.constant 0 : index
    %c0_201 = arith.constant 0 : index
    %325 = vector.load %arg8[%c6, %c0_200, %c0_201] : memref<8x64x8xbf16, #tpu.memory_space<vmem>>, vector<1x64x8xbf16>
    %326 = vector.shape_cast %325 : vector<1x64x8xbf16> to vector<64x8xbf16>
    %cst_202 = arith.constant dense<0.000000e+00> : vector<8x8xf32>
    %327 = tpu.matmul %36, %326, %cst_202 {dimension_numbers = #tpu.dot_dimension_numbers<[1], [0], [0], [1], [0, 0, 1, 1], [], []>} : vector<8x64xbf16>, vector<64x8xbf16>, vector<8x8xf32> -> vector<8x8xf32>
    %c6_203 = arith.constant 6 : index
    %c0_204 = arith.constant 0 : index
    %c0_205 = arith.constant 0 : index
    %328 = vector.load %arg9[%c6_203, %c0_204, %c0_205] : memref<8x1x8xf32, #tpu.memory_space<vmem>>, vector<1x1x8xf32>
    %329 = vector.shape_cast %328 : vector<1x1x8xf32> to vector<1x8xf32>
    %330 = vector.broadcast %329 : vector<1x8xf32> to vector<8x8xf32>
    %331 = arith.addf %327, %330 : vector<8x8xf32>
    %cst_206 = arith.constant 0.353553385 : f32
    %332 = vector.broadcast %cst_206 : f32 to vector<8x8xf32>
    %333 = arith.mulf %331, %332 : vector<8x8xf32>
    %c6_207 = arith.constant 6 : index
    %c0_208 = arith.constant 0 : index
    %c0_209 = arith.constant 0 : index
    %334 = vector.load %arg10[%c6_207, %c0_208, %c0_209] : memref<8x64x8xbf16, #tpu.memory_space<vmem>>, vector<1x64x8xbf16>
    %335 = vector.shape_cast %334 : vector<1x64x8xbf16> to vector<64x8xbf16>
    %cst_210 = arith.constant dense<0.000000e+00> : vector<16x8xf32>
    %336 = tpu.matmul %59, %335, %cst_210 {dimension_numbers = #tpu.dot_dimension_numbers<[1], [0], [0], [1], [0, 0, 1, 1], [], []>} : vector<16x64xbf16>, vector<64x8xbf16>, vector<16x8xf32> -> vector<16x8xf32>
    %c6_211 = arith.constant 6 : index
    %c0_212 = arith.constant 0 : index
    %c0_213 = arith.constant 0 : index
    %337 = vector.load %arg11[%c6_211, %c0_212, %c0_213] : memref<8x1x8xf32, #tpu.memory_space<vmem>>, vector<1x1x8xf32>
    %338 = vector.shape_cast %337 : vector<1x1x8xf32> to vector<1x8xf32>
    %339 = vector.broadcast %338 : vector<1x8xf32> to vector<16x8xf32>
    %340 = arith.addf %336, %339 : vector<16x8xf32>
    %c6_214 = arith.constant 6 : index
    %c0_215 = arith.constant 0 : index
    %c0_216 = arith.constant 0 : index
    %341 = vector.load %arg12[%c6_214, %c0_215, %c0_216] : memref<8x64x8xbf16, #tpu.memory_space<vmem>>, vector<1x64x8xbf16>
    %342 = vector.shape_cast %341 : vector<1x64x8xbf16> to vector<64x8xbf16>
    %cst_217 = arith.constant dense<0.000000e+00> : vector<16x8xf32>
    %343 = tpu.matmul %59, %342, %cst_217 {dimension_numbers = #tpu.dot_dimension_numbers<[1], [0], [0], [1], [0, 0, 1, 1], [], []>} : vector<16x64xbf16>, vector<64x8xbf16>, vector<16x8xf32> -> vector<16x8xf32>
    %c6_218 = arith.constant 6 : index
    %c0_219 = arith.constant 0 : index
    %c0_220 = arith.constant 0 : index
    %344 = vector.load %arg13[%c6_218, %c0_219, %c0_220] : memref<8x1x8xf32, #tpu.memory_space<vmem>>, vector<1x1x8xf32>
    %345 = vector.shape_cast %344 : vector<1x1x8xf32> to vector<1x8xf32>
    %346 = vector.broadcast %345 : vector<1x8xf32> to vector<16x8xf32>
    %347 = arith.addf %343, %346 : vector<16x8xf32>
    %348 = arith.truncf %333 : vector<8x8xf32> to vector<8x8xbf16>
    %349 = arith.truncf %340 : vector<16x8xf32> to vector<16x8xbf16>
    %cst_221 = arith.constant dense<0.000000e+00> : vector<8x16xf32>
    %350 = tpu.matmul %348, %349, %cst_221 {dimension_numbers = #tpu.dot_dimension_numbers<[1], [1], [0], [0], [0, 0, 1, 0], [], []>} : vector<8x8xbf16>, vector<16x8xbf16>, vector<8x16xf32> -> vector<8x16xf32>
    %cst_222 = arith.constant dense<0xFF800000> : vector<8xf32>
    %351 = vector.multi_reduction <maximumf>, %350, %cst_222 [1] : vector<8x16xf32> to vector<8xf32>
    %352 = vector.shape_cast %351 : vector<8xf32> to vector<8x1xf32>
    %353 = vector.broadcast %352 : vector<8x1xf32> to vector<8x16xf32>
    %354 = arith.subf %350, %353 : vector<8x16xf32>
    %355 = math.exp %354 : vector<8x16xf32>
    %cst_223 = arith.constant dense<0.000000e+00> : vector<8xf32>
    %356 = vector.multi_reduction <add>, %355, %cst_223 [1] : vector<8x16xf32> to vector<8xf32>
    %357 = vector.shape_cast %356 : vector<8xf32> to vector<8x1xf32>
    %358 = tpu.reciprocal %357 {approx = true} : vector<8x1xf32> -> vector<8x1xf32>
    %359 = vector.broadcast %358 : vector<8x1xf32> to vector<8x16xf32>
    %360 = arith.mulf %355, %359 : vector<8x16xf32>
    %361 = arith.truncf %360 : vector<8x16xf32> to vector<8x16xbf16>
    %362 = arith.truncf %347 : vector<16x8xf32> to vector<16x8xbf16>
    %cst_224 = arith.constant dense<0.000000e+00> : vector<8x8xf32>
    %363 = tpu.matmul %361, %362, %cst_224 {dimension_numbers = #tpu.dot_dimension_numbers<[1], [0], [0], [1], [0, 0, 1, 1], [], []>} : vector<8x16xbf16>, vector<16x8xbf16>, vector<8x8xf32> -> vector<8x8xf32>
    %364 = arith.truncf %363 : vector<8x8xf32> to vector<8x8xbf16>
    %c6_225 = arith.constant 6 : index
    %c0_226 = arith.constant 0 : index
    %c0_227 = arith.constant 0 : index
    %365 = vector.load %arg14[%c6_225, %c0_226, %c0_227] : memref<8x8x64xbf16, #tpu.memory_space<vmem>>, vector<1x8x64xbf16>
    %366 = vector.shape_cast %365 : vector<1x8x64xbf16> to vector<8x64xbf16>
    %cst_228 = arith.constant dense<0.000000e+00> : vector<8x64xf32>
    %367 = tpu.matmul %364, %366, %cst_228 {dimension_numbers = #tpu.dot_dimension_numbers<[1], [0], [0], [1], [0, 0, 1, 1], [], []>} : vector<8x8xbf16>, vector<8x64xbf16>, vector<8x64xf32> -> vector<8x64xf32>
    %368 = arith.addf %324, %367 : vector<8x64xf32>
    %c7 = arith.constant 7 : index
    %c0_229 = arith.constant 0 : index
    %c0_230 = arith.constant 0 : index
    %369 = vector.load %arg8[%c7, %c0_229, %c0_230] : memref<8x64x8xbf16, #tpu.memory_space<vmem>>, vector<1x64x8xbf16>
    %370 = vector.shape_cast %369 : vector<1x64x8xbf16> to vector<64x8xbf16>
    %cst_231 = arith.constant dense<0.000000e+00> : vector<8x8xf32>
    %371 = tpu.matmul %36, %370, %cst_231 {dimension_numbers = #tpu.dot_dimension_numbers<[1], [0], [0], [1], [0, 0, 1, 1], [], []>} : vector<8x64xbf16>, vector<64x8xbf16>, vector<8x8xf32> -> vector<8x8xf32>
    %c7_232 = arith.constant 7 : index
    %c0_233 = arith.constant 0 : index
    %c0_234 = arith.constant 0 : index
    %372 = vector.load %arg9[%c7_232, %c0_233, %c0_234] : memref<8x1x8xf32, #tpu.memory_space<vmem>>, vector<1x1x8xf32>
    %373 = vector.shape_cast %372 : vector<1x1x8xf32> to vector<1x8xf32>
    %374 = vector.broadcast %373 : vector<1x8xf32> to vector<8x8xf32>
    %375 = arith.addf %371, %374 : vector<8x8xf32>
    %cst_235 = arith.constant 0.353553385 : f32
    %376 = vector.broadcast %cst_235 : f32 to vector<8x8xf32>
    %377 = arith.mulf %375, %376 : vector<8x8xf32>
    %c7_236 = arith.constant 7 : index
    %c0_237 = arith.constant 0 : index
    %c0_238 = arith.constant 0 : index
    %378 = vector.load %arg10[%c7_236, %c0_237, %c0_238] : memref<8x64x8xbf16, #tpu.memory_space<vmem>>, vector<1x64x8xbf16>
    %379 = vector.shape_cast %378 : vector<1x64x8xbf16> to vector<64x8xbf16>
    %cst_239 = arith.constant dense<0.000000e+00> : vector<16x8xf32>
    %380 = tpu.matmul %59, %379, %cst_239 {dimension_numbers = #tpu.dot_dimension_numbers<[1], [0], [0], [1], [0, 0, 1, 1], [], []>} : vector<16x64xbf16>, vector<64x8xbf16>, vector<16x8xf32> -> vector<16x8xf32>
    %c7_240 = arith.constant 7 : index
    %c0_241 = arith.constant 0 : index
    %c0_242 = arith.constant 0 : index
    %381 = vector.load %arg11[%c7_240, %c0_241, %c0_242] : memref<8x1x8xf32, #tpu.memory_space<vmem>>, vector<1x1x8xf32>
    %382 = vector.shape_cast %381 : vector<1x1x8xf32> to vector<1x8xf32>
    %383 = vector.broadcast %382 : vector<1x8xf32> to vector<16x8xf32>
    %384 = arith.addf %380, %383 : vector<16x8xf32>
    %c7_243 = arith.constant 7 : index
    %c0_244 = arith.constant 0 : index
    %c0_245 = arith.constant 0 : index
    %385 = vector.load %arg12[%c7_243, %c0_244, %c0_245] : memref<8x64x8xbf16, #tpu.memory_space<vmem>>, vector<1x64x8xbf16>
    %386 = vector.shape_cast %385 : vector<1x64x8xbf16> to vector<64x8xbf16>
    %cst_246 = arith.constant dense<0.000000e+00> : vector<16x8xf32>
    %387 = tpu.matmul %59, %386, %cst_246 {dimension_numbers = #tpu.dot_dimension_numbers<[1], [0], [0], [1], [0, 0, 1, 1], [], []>} : vector<16x64xbf16>, vector<64x8xbf16>, vector<16x8xf32> -> vector<16x8xf32>
    %c7_247 = arith.constant 7 : index
    %c0_248 = arith.constant 0 : index
    %c0_249 = arith.constant 0 : index
    %388 = vector.load %arg13[%c7_247, %c0_248, %c0_249] : memref<8x1x8xf32, #tpu.memory_space<vmem>>, vector<1x1x8xf32>
    %389 = vector.shape_cast %388 : vector<1x1x8xf32> to vector<1x8xf32>
    %390 = vector.broadcast %389 : vector<1x8xf32> to vector<16x8xf32>
    %391 = arith.addf %387, %390 : vector<16x8xf32>
    %392 = arith.truncf %377 : vector<8x8xf32> to vector<8x8xbf16>
    %393 = arith.truncf %384 : vector<16x8xf32> to vector<16x8xbf16>
    %cst_250 = arith.constant dense<0.000000e+00> : vector<8x16xf32>
    %394 = tpu.matmul %392, %393, %cst_250 {dimension_numbers = #tpu.dot_dimension_numbers<[1], [1], [0], [0], [0, 0, 1, 0], [], []>} : vector<8x8xbf16>, vector<16x8xbf16>, vector<8x16xf32> -> vector<8x16xf32>
    %cst_251 = arith.constant dense<0xFF800000> : vector<8xf32>
    %395 = vector.multi_reduction <maximumf>, %394, %cst_251 [1] : vector<8x16xf32> to vector<8xf32>
    %396 = vector.shape_cast %395 : vector<8xf32> to vector<8x1xf32>
    %397 = vector.broadcast %396 : vector<8x1xf32> to vector<8x16xf32>
    %398 = arith.subf %394, %397 : vector<8x16xf32>
    %399 = math.exp %398 : vector<8x16xf32>
    %cst_252 = arith.constant dense<0.000000e+00> : vector<8xf32>
    %400 = vector.multi_reduction <add>, %399, %cst_252 [1] : vector<8x16xf32> to vector<8xf32>
    %401 = vector.shape_cast %400 : vector<8xf32> to vector<8x1xf32>
    %402 = tpu.reciprocal %401 {approx = true} : vector<8x1xf32> -> vector<8x1xf32>
    %403 = vector.broadcast %402 : vector<8x1xf32> to vector<8x16xf32>
    %404 = arith.mulf %399, %403 : vector<8x16xf32>
    %405 = arith.truncf %404 : vector<8x16xf32> to vector<8x16xbf16>
    %406 = arith.truncf %391 : vector<16x8xf32> to vector<16x8xbf16>
    %cst_253 = arith.constant dense<0.000000e+00> : vector<8x8xf32>
    %407 = tpu.matmul %405, %406, %cst_253 {dimension_numbers = #tpu.dot_dimension_numbers<[1], [0], [0], [1], [0, 0, 1, 1], [], []>} : vector<8x16xbf16>, vector<16x8xbf16>, vector<8x8xf32> -> vector<8x8xf32>
    %408 = arith.truncf %407 : vector<8x8xf32> to vector<8x8xbf16>
    %c7_254 = arith.constant 7 : index
    %c0_255 = arith.constant 0 : index
    %c0_256 = arith.constant 0 : index
    %409 = vector.load %arg14[%c7_254, %c0_255, %c0_256] : memref<8x8x64xbf16, #tpu.memory_space<vmem>>, vector<1x8x64xbf16>
    %410 = vector.shape_cast %409 : vector<1x8x64xbf16> to vector<8x64xbf16>
    %cst_257 = arith.constant dense<0.000000e+00> : vector<8x64xf32>
    %411 = tpu.matmul %408, %410, %cst_257 {dimension_numbers = #tpu.dot_dimension_numbers<[1], [0], [0], [1], [0, 0, 1, 1], [], []>} : vector<8x8xbf16>, vector<8x64xbf16>, vector<8x64xf32> -> vector<8x64xf32>
    %412 = arith.addf %368, %411 : vector<8x64xf32>
    %413 = arith.addf %5, %412 : vector<8x64xf32>
    %c0_258 = arith.constant 0 : index
    %c0_259 = arith.constant 0 : index
    %414 = vector.load %arg15[%c0_258, %c0_259] : memref<1x64xf32, #tpu.memory_space<vmem>>, vector<1x64xf32>
    %415 = vector.broadcast %414 : vector<1x64xf32> to vector<8x64xf32>
    %416 = arith.addf %413, %415 : vector<8x64xf32>
    %c0_260 = arith.constant 0 : index
    %c0_261 = arith.constant 0 : index
    %417 = vector.load %arg16[%c0_260, %c0_261] : memref<1x64xf32, #tpu.memory_space<vmem>>, vector<1x64xf32>
    %c0_262 = arith.constant 0 : index
    %c0_263 = arith.constant 0 : index
    %418 = vector.load %arg17[%c0_262, %c0_263] : memref<1x64xf32, #tpu.memory_space<vmem>>, vector<1x64xf32>
    %cst_264 = arith.constant dense<0.000000e+00> : vector<8xf32>
    %419 = vector.multi_reduction <add>, %416, %cst_264 [1] : vector<8x64xf32> to vector<8xf32>
    %420 = vector.shape_cast %419 : vector<8xf32> to vector<8x1xf32>
    %cst_265 = arith.constant 6.400000e+01 : f32
    %421 = vector.broadcast %cst_265 : f32 to vector<8x1xf32>
    %422 = arith.divf %420, %421 : vector<8x1xf32>
    %423 = vector.broadcast %422 : vector<8x1xf32> to vector<8x64xf32>
    %424 = arith.subf %416, %423 : vector<8x64xf32>
    %425 = arith.mulf %424, %424 : vector<8x64xf32>
    %cst_266 = arith.constant dense<0.000000e+00> : vector<8xf32>
    %426 = vector.multi_reduction <add>, %425, %cst_266 [1] : vector<8x64xf32> to vector<8xf32>
    %427 = vector.shape_cast %426 : vector<8xf32> to vector<8x1xf32>
    %cst_267 = arith.constant 6.400000e+01 : f32
    %428 = vector.broadcast %cst_267 : f32 to vector<8x1xf32>
    %429 = arith.divf %427, %428 : vector<8x1xf32>
    %430 = vector.broadcast %422 : vector<8x1xf32> to vector<8x64xf32>
    %431 = arith.subf %416, %430 : vector<8x64xf32>
    %cst_268 = arith.constant 9.99999974E-6 : f32
    %432 = vector.broadcast %cst_268 : f32 to vector<8x1xf32>
    %433 = arith.addf %429, %432 : vector<8x1xf32>
    %434 = math.rsqrt %433 : vector<8x1xf32>
    %435 = vector.broadcast %434 : vector<8x1xf32> to vector<8x64xf32>
    %436 = arith.mulf %431, %435 : vector<8x64xf32>
    %437 = vector.broadcast %417 : vector<1x64xf32> to vector<8x64xf32>
    %438 = arith.mulf %436, %437 : vector<8x64xf32>
    %439 = vector.broadcast %418 : vector<1x64xf32> to vector<8x64xf32>
    %440 = arith.addf %438, %439 : vector<8x64xf32>
    %441 = arith.truncf %440 : vector<8x64xf32> to vector<8x64xbf16>
    %c0_269 = arith.constant 0 : index
    %c0_270 = arith.constant 0 : index
    %442 = vector.load %arg18[%c0_269, %c0_270] : memref<64x256xbf16, #tpu.memory_space<vmem>>, vector<64x256xbf16>
    %cst_271 = arith.constant dense<0.000000e+00> : vector<8x256xf32>
    %443 = tpu.matmul %441, %442, %cst_271 {dimension_numbers = #tpu.dot_dimension_numbers<[1], [0], [0], [1], [0, 0, 1, 1], [], []>} : vector<8x64xbf16>, vector<64x256xbf16>, vector<8x256xf32> -> vector<8x256xf32>
    %c0_272 = arith.constant 0 : index
    %c0_273 = arith.constant 0 : index
    %444 = vector.load %arg19[%c0_272, %c0_273] : memref<1x256xf32, #tpu.memory_space<vmem>>, vector<1x256xf32>
    %445 = vector.broadcast %444 : vector<1x256xf32> to vector<8x256xf32>
    %446 = arith.addf %443, %445 : vector<8x256xf32>
    %cst_274 = arith.constant 0.000000e+00 : f32
    %447 = vector.broadcast %cst_274 : f32 to vector<8x256xf32>
    %448 = arith.maximumf %446, %447 : vector<8x256xf32>
    %449 = arith.truncf %448 : vector<8x256xf32> to vector<8x256xbf16>
    %c0_275 = arith.constant 0 : index
    %c0_276 = arith.constant 0 : index
    %450 = vector.load %arg20[%c0_275, %c0_276] : memref<256x64xbf16, #tpu.memory_space<vmem>>, vector<256x64xbf16>
    %cst_277 = arith.constant dense<0.000000e+00> : vector<8x64xf32>
    %451 = tpu.matmul %449, %450, %cst_277 {dimension_numbers = #tpu.dot_dimension_numbers<[1], [0], [0], [1], [0, 0, 1, 1], [], []>} : vector<8x256xbf16>, vector<256x64xbf16>, vector<8x64xf32> -> vector<8x64xf32>
    %c0_278 = arith.constant 0 : index
    %c0_279 = arith.constant 0 : index
    %452 = vector.load %arg21[%c0_278, %c0_279] : memref<1x64xf32, #tpu.memory_space<vmem>>, vector<1x64xf32>
    %453 = vector.broadcast %452 : vector<1x64xf32> to vector<8x64xf32>
    %454 = arith.addf %451, %453 : vector<8x64xf32>
    %455 = arith.addf %416, %454 : vector<8x64xf32>
    %c0_280 = arith.constant 0 : index
    %c0_281 = arith.constant 0 : index
    %456 = vector.load %arg22[%c0_280, %c0_281] : memref<1x64xf32, #tpu.memory_space<vmem>>, vector<1x64xf32>
    %c0_282 = arith.constant 0 : index
    %c0_283 = arith.constant 0 : index
    %457 = vector.load %arg23[%c0_282, %c0_283] : memref<1x64xf32, #tpu.memory_space<vmem>>, vector<1x64xf32>
    %cst_284 = arith.constant dense<0.000000e+00> : vector<8xf32>
    %458 = vector.multi_reduction <add>, %455, %cst_284 [1] : vector<8x64xf32> to vector<8xf32>
    %459 = vector.shape_cast %458 : vector<8xf32> to vector<8x1xf32>
    %cst_285 = arith.constant 6.400000e+01 : f32
    %460 = vector.broadcast %cst_285 : f32 to vector<8x1xf32>
    %461 = arith.divf %459, %460 : vector<8x1xf32>
    %462 = vector.broadcast %461 : vector<8x1xf32> to vector<8x64xf32>
    %463 = arith.subf %455, %462 : vector<8x64xf32>
    %464 = arith.mulf %463, %463 : vector<8x64xf32>
    %cst_286 = arith.constant dense<0.000000e+00> : vector<8xf32>
    %465 = vector.multi_reduction <add>, %464, %cst_286 [1] : vector<8x64xf32> to vector<8xf32>
    %466 = vector.shape_cast %465 : vector<8xf32> to vector<8x1xf32>
    %cst_287 = arith.constant 6.400000e+01 : f32
    %467 = vector.broadcast %cst_287 : f32 to vector<8x1xf32>
    %468 = arith.divf %466, %467 : vector<8x1xf32>
    %469 = vector.broadcast %461 : vector<8x1xf32> to vector<8x64xf32>
    %470 = arith.subf %455, %469 : vector<8x64xf32>
    %cst_288 = arith.constant 9.99999974E-6 : f32
    %471 = vector.broadcast %cst_288 : f32 to vector<8x1xf32>
    %472 = arith.addf %468, %471 : vector<8x1xf32>
    %473 = math.rsqrt %472 : vector<8x1xf32>
    %474 = vector.broadcast %473 : vector<8x1xf32> to vector<8x64xf32>
    %475 = arith.mulf %470, %474 : vector<8x64xf32>
    %476 = vector.broadcast %456 : vector<1x64xf32> to vector<8x64xf32>
    %477 = arith.mulf %475, %476 : vector<8x64xf32>
    %478 = vector.broadcast %457 : vector<1x64xf32> to vector<8x64xf32>
    %479 = arith.addf %477, %478 : vector<8x64xf32>
    %480 = vector.extract_strided_slice %479 {offsets = [0, 0], sizes = [1, 64], strides = [1, 1]} : vector<8x64xf32> to vector<1x64xf32>
    %c0_289 = arith.constant 0 : index
    %c0_290 = arith.constant 0 : index
    %c0_291 = arith.constant 0 : index
    %481 = vector.load %arg24[%c0_289, %c0_290, %c0_291] : memref<1x1x64xf32, #tpu.memory_space<vmem>>, vector<1x1x64xf32>
    %482 = vector.shape_cast %481 : vector<1x1x64xf32> to vector<1x64xf32>
    %483 = vector.shape_cast %480 : vector<1x64xf32> to vector<1x1x64xf32>
    tpu.vector_store %arg24[%c0_289, %c0_290, %c0_291], %483 {strides = array<i32>} : memref<1x1x64xf32, #tpu.memory_space<vmem>>, vector<1x1x64xf32>,
    return
  }
  func.func @transform_0(%arg0: i32, %arg1: i32) -> (i32, i32, i32) {
    %c0_i32 = arith.constant 0 : i32
    %c0_i32_0 = arith.constant 0 : i32
    return %arg0, %arg1, %c0_i32 : i32, i32, i32
  }
  func.func @transform_1(%arg0: i32, %arg1: i32) -> (i32, i32, i32) {
    %c0_i32 = arith.constant 0 : i32
    %c0_i32_0 = arith.constant 0 : i32
    %c0_i32_1 = arith.constant 0 : i32
    return %arg0, %c0_i32, %c0_i32_0 : i32, i32, i32
  }
  func.func @transform_2(%arg0: i32, %arg1: i32) -> (i32, i32) {
    %c0_i32 = arith.constant 0 : i32
    %c0_i32_0 = arith.constant 0 : i32
    return %arg1, %c0_i32 : i32, i32
  }
  func.func @transform_3(%arg0: i32, %arg1: i32) -> (i32, i32) {
    %c0_i32 = arith.constant 0 : i32
    %c0_i32_0 = arith.constant 0 : i32
    %c0_i32_1 = arith.constant 0 : i32
    return %c0_i32, %c0_i32_0 : i32, i32
  }
  func.func @transform_4(%arg0: i32, %arg1: i32) -> (i32, i32) {
    %c0_i32 = arith.constant 0 : i32
    %c0_i32_0 = arith.constant 0 : i32
    %c0_i32_1 = arith.constant 0 : i32
    return %c0_i32, %c0_i32_0 : i32, i32
  }
  func.func @transform_5(%arg0: i32, %arg1: i32) -> (i32, i32) {
    %c0_i32 = arith.constant 0 : i32
    %c0_i32_0 = arith.constant 0 : i32
    %c0_i32_1 = arith.constant 0 : i32
    return %c0_i32, %c0_i32_0 : i32, i32
  }
  func.func @transform_6(%arg0: i32, %arg1: i32) -> (i32, i32, i32) {
    %c0_i32 = arith.constant 0 : i32
    %c0_i32_0 = arith.constant 0 : i32
    %c0_i32_1 = arith.constant 0 : i32
    %c0_i32_2 = arith.constant 0 : i32
    return %c0_i32, %c0_i32_0, %c0_i32_1 : i32, i32, i32
  }
  func.func @transform_7(%arg0: i32, %arg1: i32) -> (i32, i32, i32) {
    %c0_i32 = arith.constant 0 : i32
    %c0_i32_0 = arith.constant 0 : i32
    %c0_i32_1 = arith.constant 0 : i32
    %c0_i32_2 = arith.constant 0 : i32
    return %c0_i32, %c0_i32_0, %c0_i32_1 : i32, i32, i32
  }
  func.func @transform_8(%arg0: i32, %arg1: i32) -> (i32, i32, i32) {
    %c0_i32 = arith.constant 0 : i32
    %c0_i32_0 = arith.constant 0 : i32
    %c0_i32_1 = arith.constant 0 : i32
    %c0_i32_2 = arith.constant 0 : i32
    return %c0_i32, %c0_i32_0, %c0_i32_1 : i32, i32, i32
  }
  func.func @transform_9(%arg0: i32, %arg1: i32) -> (i32, i32, i32) {
    %c0_i32 = arith.constant 0 : i32
    %c0_i32_0 = arith.constant 0 : i32
    %c0_i32_1 = arith.constant 0 : i32
    %c0_i32_2 = arith.constant 0 : i32
    return %c0_i32, %c0_i32_0, %c0_i32_1 : i32, i32, i32
  }
  func.func @transform_10(%arg0: i32, %arg1: i32) -> (i32, i32, i32) {
    %c0_i32 = arith.constant 0 : i32
    %c0_i32_0 = arith.constant 0 : i32
    %c0_i32_1 = arith.constant 0 : i32
    %c0_i32_2 = arith.constant 0 : i32
    return %c0_i32, %c0_i32_0, %c0_i32_1 : i32, i32, i32
  }
  func.func @transform_11(%arg0: i32, %arg1: i32) -> (i32, i32, i32) {
    %c0_i32 = arith.constant 0 : i32
    %c0_i32_0 = arith.constant 0 : i32
    %c0_i32_1 = arith.constant 0 : i32
    %c0_i32_2 = arith.constant 0 : i32
    return %c0_i32, %c0_i32_0, %c0_i32_1 : i32, i32, i32
  }
  func.func @transform_12(%arg0: i32, %arg1: i32) -> (i32, i32, i32) {
    %c0_i32 = arith.constant 0 : i32
    %c0_i32_0 = arith.constant 0 : i32
    %c0_i32_1 = arith.constant 0 : i32
    %c0_i32_2 = arith.constant 0 : i32
    return %c0_i32, %c0_i32_0, %c0_i32_1 : i32, i32, i32
  }
  func.func @transform_13(%arg0: i32, %arg1: i32) -> (i32, i32) {
    %c0_i32 = arith.constant 0 : i32
    %c0_i32_0 = arith.constant 0 : i32
    %c0_i32_1 = arith.constant 0 : i32
    return %c0_i32, %c0_i32_0 : i32, i32
  }
  func.func @transform_14(%arg0: i32, %arg1: i32) -> (i32, i32) {
    %c0_i32 = arith.constant 0 : i32
    %c0_i32_0 = arith.constant 0 : i32
    %c0_i32_1 = arith.constant 0 : i32
    return %c0_i32, %c0_i32_0 : i32, i32
  }
  func.func @transform_15(%arg0: i32, %arg1: i32) -> (i32, i32) {
    %c0_i32 = arith.constant 0 : i32
    %c0_i32_0 = arith.constant 0 : i32
    %c0_i32_1 = arith.constant 0 : i32
    return %c0_i32, %c0_i32_0 : i32, i32
  }
  func.func @transform_16(%arg0: i32, %arg1: i32) -> (i32, i32) {
    %c0_i32 = arith.constant 0 : i32
    %c0_i32_0 = arith.constant 0 : i32
    %c0_i32_1 = arith.constant 0 : i32
    return %c0_i32, %c0_i32_0 : i32, i32
  }
  func.func @transform_17(%arg0: i32, %arg1: i32) -> (i32, i32) {
    %c0_i32 = arith.constant 0 : i32
    %c0_i32_0 = arith.constant 0 : i32
    %c0_i32_1 = arith.constant 0 : i32
    return %c0_i32, %c0_i32_0 : i32, i32
  }
  func.func @transform_18(%arg0: i32, %arg1: i32) -> (i32, i32) {
    %c0_i32 = arith.constant 0 : i32
    %c0_i32_0 = arith.constant 0 : i32
    %c0_i32_1 = arith.constant 0 : i32
    return %c0_i32, %c0_i32_0 : i32, i32
  }
  func.func @transform_19(%arg0: i32, %arg1: i32) -> (i32, i32) {
    %c0_i32 = arith.constant 0 : i32
    %c0_i32_0 = arith.constant 0 : i32
    %c0_i32_1 = arith.constant 0 : i32
    return %c0_i32, %c0_i32_0 : i32, i32
  }
  func.func @transform_20(%arg0: i32, %arg1: i32) -> (i32, i32) {
    %c0_i32 = arith.constant 0 : i32
    %c0_i32_0 = arith.constant 0 : i32
    %c0_i32_1 = arith.constant 0 : i32
    return %c0_i32, %c0_i32_0 : i32, i32
  }
  func.func @transform_21(%arg0: i32, %arg1: i32) -> (i32, i32) {
    %c0_i32 = arith.constant 0 : i32
    %c0_i32_0 = arith.constant 0 : i32
    %c0_i32_1 = arith.constant 0 : i32
    return %c0_i32, %c0_i32_0 : i32, i32
  }
  func.func @transform_22(%arg0: i32, %arg1: i32) -> (i32, i32, i32) {
    %c0_i32 = arith.constant 0 : i32
    %c0_i32_0 = arith.constant 0 : i32
    return %arg0, %arg1, %c0_i32 : i32, i32, i32
  }
}

module attributes {stable_mosaic.version = 11 : i64} {
  func.func @classifier_kernel(%arg0: memref<2x64xf32, #tpu.memory_space<vmem>>, %arg1: memref<2x64xf32, #tpu.memory_space<vmem>>, %arg2: memref<64x512xf32, #tpu.memory_space<vmem>>, %arg3: memref<64x512xf32, #tpu.memory_space<vmem>>, %arg4: memref<1x512xf32, #tpu.memory_space<vmem>>, %arg5: memref<512x128xf32, #tpu.memory_space<vmem>>, %arg6: memref<1x128xf32, #tpu.memory_space<vmem>>, %arg7: memref<2x128xf32, #tpu.memory_space<vmem>>) attributes {dimension_semantics = [], scalar_prefetch = 0 : i64, scratch_operands = 0 : i64, tpu.core_type = #tpu.core_type<tc>} {
    %c0 = arith.constant 0 : index
    %c0_0 = arith.constant 0 : index
    %0 = vector.load %arg0[%c0, %c0_0] : memref<2x64xf32, #tpu.memory_space<vmem>>, vector<2x64xf32>
    %c0_1 = arith.constant 0 : index
    %c0_2 = arith.constant 0 : index
    %1 = vector.load %arg2[%c0_1, %c0_2] : memref<64x512xf32, #tpu.memory_space<vmem>>, vector<64x512xf32>
    %cst = arith.constant dense<0.000000e+00> : vector<2x512xf32>
    %2 = tpu.matmul %0, %1, %cst {dimension_numbers = #tpu.dot_dimension_numbers<[1], [0], [0], [1], [0, 0, 1, 1], [], []>} : vector<2x64xf32>, vector<64x512xf32>, vector<2x512xf32> -> vector<2x512xf32>
    %c0_3 = arith.constant 0 : index
    %c0_4 = arith.constant 0 : index
    %3 = vector.load %arg1[%c0_3, %c0_4] : memref<2x64xf32, #tpu.memory_space<vmem>>, vector<2x64xf32>
    %c0_5 = arith.constant 0 : index
    %c0_6 = arith.constant 0 : index
    %4 = vector.load %arg3[%c0_5, %c0_6] : memref<64x512xf32, #tpu.memory_space<vmem>>, vector<64x512xf32>
    %cst_7 = arith.constant dense<0.000000e+00> : vector<2x512xf32>
    %5 = tpu.matmul %3, %4, %cst_7 {dimension_numbers = #tpu.dot_dimension_numbers<[1], [0], [0], [1], [0, 0, 1, 1], [], []>} : vector<2x64xf32>, vector<64x512xf32>, vector<2x512xf32> -> vector<2x512xf32>
    %6 = arith.addf %2, %5 : vector<2x512xf32>
    %c0_8 = arith.constant 0 : index
    %c0_9 = arith.constant 0 : index
    %7 = vector.load %arg4[%c0_8, %c0_9] : memref<1x512xf32, #tpu.memory_space<vmem>>, vector<1x512xf32>
    %8 = vector.broadcast %7 : vector<1x512xf32> to vector<2x512xf32>
    %9 = arith.addf %6, %8 : vector<2x512xf32>
    %cst_10 = arith.constant 5.000000e-01 : f32
    %10 = vector.broadcast %cst_10 : f32 to vector<2x512xf32>
    %11 = arith.mulf %10, %9 : vector<2x512xf32>
    %cst_11 = arith.constant 0.707106769 : f32
    %12 = vector.broadcast %cst_11 : f32 to vector<2x512xf32>
    %13 = arith.mulf %9, %12 : vector<2x512xf32>
    %cst_12 = arith.constant 0.000000e+00 : f32
    %14 = vector.broadcast %cst_12 : f32 to vector<2x512xf32>
    %15 = arith.cmpf oge, %13, %14 : vector<2x512xf32>
    %cst_13 = arith.constant 1.000000e+00 : f32
    %cst_14 = arith.constant -1.000000e+00 : f32
    %16 = vector.broadcast %cst_13 : f32 to vector<2x512xf32>
    %17 = vector.broadcast %cst_14 : f32 to vector<2x512xf32>
    %18 = arith.select %15, %16, %17 : vector<2x512xi1>, vector<2x512xf32>
    %19 = math.absf %13 : vector<2x512xf32>
    %cst_15 = arith.constant 0.327591091 : f32
    %20 = vector.broadcast %cst_15 : f32 to vector<2x512xf32>
    %21 = arith.mulf %20, %19 : vector<2x512xf32>
    %cst_16 = arith.constant 1.000000e+00 : f32
    %22 = vector.broadcast %cst_16 : f32 to vector<2x512xf32>
    %23 = arith.addf %22, %21 : vector<2x512xf32>
    %cst_17 = arith.constant 1.000000e+00 : f32
    %24 = vector.broadcast %cst_17 : f32 to vector<2x512xf32>
    %25 = arith.divf %24, %23 : vector<2x512xf32>
    %cst_18 = arith.constant 1.06140542 : f32
    %26 = vector.broadcast %cst_18 : f32 to vector<2x512xf32>
    %27 = arith.mulf %26, %25 : vector<2x512xf32>
    %cst_19 = arith.constant -1.45315206 : f32
    %28 = vector.broadcast %cst_19 : f32 to vector<2x512xf32>
    %29 = arith.addf %27, %28 : vector<2x512xf32>
    %30 = arith.mulf %29, %25 : vector<2x512xf32>
    %cst_20 = arith.constant 1.42141378 : f32
    %31 = vector.broadcast %cst_20 : f32 to vector<2x512xf32>
    %32 = arith.addf %30, %31 : vector<2x512xf32>
    %33 = arith.mulf %32, %25 : vector<2x512xf32>
    %cst_21 = arith.constant -0.284496725 : f32
    %34 = vector.broadcast %cst_21 : f32 to vector<2x512xf32>
    %35 = arith.addf %33, %34 : vector<2x512xf32>
    %36 = arith.mulf %35, %25 : vector<2x512xf32>
    %cst_22 = arith.constant 0.254829586 : f32
    %37 = vector.broadcast %cst_22 : f32 to vector<2x512xf32>
    %38 = arith.addf %36, %37 : vector<2x512xf32>
    %39 = arith.mulf %38, %25 : vector<2x512xf32>
    %cst_23 = arith.constant 0.000000e+00 : f32
    %40 = vector.broadcast %cst_23 : f32 to vector<2x512xf32>
    %41 = arith.subf %40, %19 : vector<2x512xf32>
    %42 = arith.mulf %41, %19 : vector<2x512xf32>
    %43 = math.exp %42 : vector<2x512xf32>
    %44 = arith.mulf %39, %43 : vector<2x512xf32>
    %cst_24 = arith.constant 1.000000e+00 : f32
    %45 = vector.broadcast %cst_24 : f32 to vector<2x512xf32>
    %46 = arith.subf %45, %44 : vector<2x512xf32>
    %47 = arith.mulf %18, %46 : vector<2x512xf32>
    %cst_25 = arith.constant 1.000000e+00 : f32
    %48 = vector.broadcast %cst_25 : f32 to vector<2x512xf32>
    %49 = arith.addf %48, %47 : vector<2x512xf32>
    %50 = arith.mulf %11, %49 : vector<2x512xf32>
    %c0_26 = arith.constant 0 : index
    %c0_27 = arith.constant 0 : index
    %51 = vector.load %arg5[%c0_26, %c0_27] : memref<512x128xf32, #tpu.memory_space<vmem>>, vector<512x128xf32>
    %cst_28 = arith.constant dense<0.000000e+00> : vector<2x128xf32>
    %52 = tpu.matmul %50, %51, %cst_28 {dimension_numbers = #tpu.dot_dimension_numbers<[1], [0], [0], [1], [0, 0, 1, 1], [], []>} : vector<2x512xf32>, vector<512x128xf32>, vector<2x128xf32> -> vector<2x128xf32>
    %c0_29 = arith.constant 0 : index
    %c0_30 = arith.constant 0 : index
    %53 = vector.load %arg6[%c0_29, %c0_30] : memref<1x128xf32, #tpu.memory_space<vmem>>, vector<1x128xf32>
    %54 = vector.broadcast %53 : vector<1x128xf32> to vector<2x128xf32>
    %55 = arith.addf %52, %54 : vector<2x128xf32>
    %c0_31 = arith.constant 0 : index
    %c0_32 = arith.constant 0 : index
    %56 = vector.load %arg7[%c0_31, %c0_32] : memref<2x128xf32, #tpu.memory_space<vmem>>, vector<2x128xf32>
    tpu.vector_store %arg7[%c0_31, %c0_32], %55 {strides = array<i32>} : memref<2x128xf32, #tpu.memory_space<vmem>>, vector<2x128xf32>,
    return
  }
}

module attributes {stable_mosaic.version = 11 : i64} {
  func.func @cross_encoder_kernel(%arg0: i32, %arg1: i32, %arg2: memref<1x16x64xf32, #tpu.memory_space<vmem>>, %arg3: memref<1x8x64xf32, #tpu.memory_space<vmem>>, %arg4: memref<16x64xf32, #tpu.memory_space<vmem>>, %arg5: memref<8x64xf32, #tpu.memory_space<vmem>>, %arg6: memref<1x64xf32, #tpu.memory_space<vmem>>, %arg7: memref<1x64xf32, #tpu.memory_space<vmem>>, %arg8: memref<8x64x8xbf16, #tpu.memory_space<vmem>>, %arg9: memref<8x1x8xf32, #tpu.memory_space<vmem>>, %arg10: memref<8x64x8xbf16, #tpu.memory_space<vmem>>, %arg11: memref<8x1x8xf32, #tpu.memory_space<vmem>>, %arg12: memref<8x64x8xbf16, #tpu.memory_space<vmem>>, %arg13: memref<8x1x8xf32, #tpu.memory_space<vmem>>, %arg14: memref<8x8x64xbf16, #tpu.memory_space<vmem>>, %arg15: memref<1x64xf32, #tpu.memory_space<vmem>>, %arg16: memref<1x64xf32, #tpu.memory_space<vmem>>, %arg17: memref<1x64xf32, #tpu.memory_space<vmem>>, %arg18: memref<64x256xbf16, #tpu.memory_space<vmem>>, %arg19: memref<1x256xf32, #tpu.memory_space<vmem>>, %arg20: memref<256x64xbf16, #tpu.memory_space<vmem>>, %arg21: memref<1x64xf32, #tpu.memory_space<vmem>>, %arg22: memref<1x64xf32, #tpu.memory_space<vmem>>, %arg23: memref<1x64xf32, #tpu.memory_space<vmem>>, %arg24: memref<1x1x64xf32, #tpu.memory_space<vmem>>) attributes {dimension_semantics = [#tpu.dimension_semantics<parallel>, #tpu.dimension_semantics<parallel>], iteration_bounds = array<i64: 2, 1>, scalar_prefetch = 0 : i64, scratch_operands = 0 : i64, tpu.core_type = #tpu.core_type<tc>, window_params = [{transform_indices = @transform_0, window_bounds = array<i64: 1, 16, 64>}, {transform_indices = @transform_1, window_bounds = array<i64: 1, 8, 64>}, {transform_indices = @transform_2, window_bounds = array<i64: 16, 64>}, {pipeline_mode = #tpu.pipeline_mode<synchronous>, transform_indices = @transform_3, window_bounds = array<i64: 8, 64>}, {pipeline_mode = #tpu.pipeline_mode<synchronous>, transform_indices = @transform_4, window_bounds = array<i64: 1, 64>}, {pipeline_mode = #tpu.pipeline_mode<synchronous>, transform_indices = @transform_5, window_bounds = array<i64: 1, 64>}, {pipeline_mode = #tpu.pipeline_mode<synchronous>, transform_indices = @transform_6, window_bounds = array<i64: 8, 64, 8>}, {pipeline_mode = #tpu.pipeline_mode<synchronous>, transform_indices = @transform_7, window_bounds = array<i64: 8, 1, 8>}, {pipeline_mode = #tpu.pipeline_mode<synchronous>, transform_indices = @transform_8, window_bounds = array<i64: 8, 64, 8>}, {pipeline_mode = #tpu.pipeline_mode<synchronous>, transform_indices = @transform_9, window_bounds = array<i64: 8, 1, 8>}, {pipeline_mode = #tpu.pipeline_mode<synchronous>, transform_indices = @transform_10, window_bounds = array<i64: 8, 64, 8>}, {pipeline_mode = #tpu.pipeline_mode<synchronous>, transform_indices = @transform_11, window_bounds = array<i64: 8, 1, 8>}, {pipeline_mode = #tpu.pipeline_mode<synchronous>, transform_indices = @transform_12, window_bounds = array<i64: 8, 8, 64>}, {pipeline_mode = #tpu.pipeline_mode<synchronous>, transform_indices = @transform_13, window_bounds = array<i64: 1, 64>}, {pipeline_mode = #tpu.pipeline_mode<synchronous>, transform_indices = @transform_14, window_bounds = array<i64: 1, 64>}, {pipeline_mode = #tpu.pipeline_mode<synchronous>, transform_indices = @transform_15, window_bounds = array<i64: 1, 64>}, {pipeline_mode = #tpu.pipeline_mode<synchronous>, transform_indices = @transform_16, window_bounds = array<i64: 64, 256>}, {pipeline_mode = #tpu.pipeline_mode<synchronous>, transform_indices = @transform_17, window_bounds = array<i64: 1, 256>}, {pipeline_mode = #tpu.pipeline_mode<synchronous>, transform_indices = @transform_18, window_bounds = array<i64: 256, 64>}, {pipeline_mode = #tpu.pipeline_mode<synchronous>, transform_indices = @transform_19, window_bounds = array<i64: 1, 64>}, {pipeline_mode = #tpu.pipeline_mode<synchronous>, transform_indices = @transform_20, window_bounds = array<i64: 1, 64>}, {pipeline_mode = #tpu.pipeline_mode<synchronous>, transform_indices = @transform_21, window_bounds = array<i64: 1, 64>}, {transform_indices = @transform_22, window_bounds = array<i64: 1, 1, 64>}]} {
    %c0 = arith.constant 0 : index
    %c0_0 = arith.constant 0 : index
    %c0_1 = arith.constant 0 : index
    %0 = vector.load %arg2[%c0, %c0_0, %c0_1] : memref<1x16x64xf32, #tpu.memory_space<vmem>>, vector<1x16x64xf32>
    %1 = vector.shape_cast %0 : vector<1x16x64xf32> to vector<16x64xf32>
    %cst = arith.constant 8.000000e+00 : f32
    %2 = vector.broadcast %cst : f32 to vector<16x64xf32>
    %3 = arith.mulf %1, %2 : vector<16x64xf32>
    %c0_2 = arith.constant 0 : index
    %c0_3 = arith.constant 0 : index
    %4 = vector.load %arg4[%c0_2, %c0_3] : memref<16x64xf32, #tpu.memory_space<vmem>>, vector<16x64xf32>
    %5 = arith.addf %3, %4 : vector<16x64xf32>
    %c0_4 = arith.constant 0 : index
    %c0_5 = arith.constant 0 : index
    %c0_6 = arith.constant 0 : index
    %6 = vector.load %arg3[%c0_4, %c0_5, %c0_6] : memref<1x8x64xf32, #tpu.memory_space<vmem>>, vector<1x8x64xf32>
    %7 = vector.shape_cast %6 : vector<1x8x64xf32> to vector<8x64xf32>
    %cst_7 = arith.constant 8.000000e+00 : f32
    %8 = vector.broadcast %cst_7 : f32 to vector<8x64xf32>
    %9 = arith.mulf %7, %8 : vector<8x64xf32>
    %c0_8 = arith.constant 0 : index
    %c0_9 = arith.constant 0 : index
    %10 = vector.load %arg5[%c0_8, %c0_9] : memref<8x64xf32, #tpu.memory_space<vmem>>, vector<8x64xf32>
    %11 = arith.addf %9, %10 : vector<8x64xf32>
    %c0_10 = arith.constant 0 : index
    %c0_11 = arith.constant 0 : index
    %12 = vector.load %arg6[%c0_10, %c0_11] : memref<1x64xf32, #tpu.memory_space<vmem>>, vector<1x64xf32>
    %c0_12 = arith.constant 0 : index
    %c0_13 = arith.constant 0 : index
    %13 = vector.load %arg7[%c0_12, %c0_13] : memref<1x64xf32, #tpu.memory_space<vmem>>, vector<1x64xf32>
    %cst_14 = arith.constant dense<0.000000e+00> : vector<16xf32>
    %14 = vector.multi_reduction <add>, %5, %cst_14 [1] : vector<16x64xf32> to vector<16xf32>
    %15 = vector.shape_cast %14 : vector<16xf32> to vector<16x1xf32>
    %cst_15 = arith.constant 6.400000e+01 : f32
    %16 = vector.broadcast %cst_15 : f32 to vector<16x1xf32>
    %17 = arith.divf %15, %16 : vector<16x1xf32>
    %18 = vector.broadcast %17 : vector<16x1xf32> to vector<16x64xf32>
    %19 = arith.subf %5, %18 : vector<16x64xf32>
    %20 = arith.mulf %19, %19 : vector<16x64xf32>
    %cst_16 = arith.constant dense<0.000000e+00> : vector<16xf32>
    %21 = vector.multi_reduction <add>, %20, %cst_16 [1] : vector<16x64xf32> to vector<16xf32>
    %22 = vector.shape_cast %21 : vector<16xf32> to vector<16x1xf32>
    %cst_17 = arith.constant 6.400000e+01 : f32
    %23 = vector.broadcast %cst_17 : f32 to vector<16x1xf32>
    %24 = arith.divf %22, %23 : vector<16x1xf32>
    %25 = vector.broadcast %17 : vector<16x1xf32> to vector<16x64xf32>
    %26 = arith.subf %5, %25 : vector<16x64xf32>
    %cst_18 = arith.constant 9.99999974E-6 : f32
    %27 = vector.broadcast %cst_18 : f32 to vector<16x1xf32>
    %28 = arith.addf %24, %27 : vector<16x1xf32>
    %29 = math.rsqrt %28 : vector<16x1xf32>
    %30 = vector.broadcast %29 : vector<16x1xf32> to vector<16x64xf32>
    %31 = arith.mulf %26, %30 : vector<16x64xf32>
    %32 = vector.broadcast %12 : vector<1x64xf32> to vector<16x64xf32>
    %33 = arith.mulf %31, %32 : vector<16x64xf32>
    %34 = vector.broadcast %13 : vector<1x64xf32> to vector<16x64xf32>
    %35 = arith.addf %33, %34 : vector<16x64xf32>
    %36 = arith.truncf %35 : vector<16x64xf32> to vector<16x64xbf16>
    %cst_19 = arith.constant dense<0.000000e+00> : vector<8xf32>
    %37 = vector.multi_reduction <add>, %11, %cst_19 [1] : vector<8x64xf32> to vector<8xf32>
    %38 = vector.shape_cast %37 : vector<8xf32> to vector<8x1xf32>
    %cst_20 = arith.constant 6.400000e+01 : f32
    %39 = vector.broadcast %cst_20 : f32 to vector<8x1xf32>
    %40 = arith.divf %38, %39 : vector<8x1xf32>
    %41 = vector.broadcast %40 : vector<8x1xf32> to vector<8x64xf32>
    %42 = arith.subf %11, %41 : vector<8x64xf32>
    %43 = arith.mulf %42, %42 : vector<8x64xf32>
    %cst_21 = arith.constant dense<0.000000e+00> : vector<8xf32>
    %44 = vector.multi_reduction <add>, %43, %cst_21 [1] : vector<8x64xf32> to vector<8xf32>
    %45 = vector.shape_cast %44 : vector<8xf32> to vector<8x1xf32>
    %cst_22 = arith.constant 6.400000e+01 : f32
    %46 = vector.broadcast %cst_22 : f32 to vector<8x1xf32>
    %47 = arith.divf %45, %46 : vector<8x1xf32>
    %48 = vector.broadcast %40 : vector<8x1xf32> to vector<8x64xf32>
    %49 = arith.subf %11, %48 : vector<8x64xf32>
    %cst_23 = arith.constant 9.99999974E-6 : f32
    %50 = vector.broadcast %cst_23 : f32 to vector<8x1xf32>
    %51 = arith.addf %47, %50 : vector<8x1xf32>
    %52 = math.rsqrt %51 : vector<8x1xf32>
    %53 = vector.broadcast %52 : vector<8x1xf32> to vector<8x64xf32>
    %54 = arith.mulf %49, %53 : vector<8x64xf32>
    %55 = vector.broadcast %12 : vector<1x64xf32> to vector<8x64xf32>
    %56 = arith.mulf %54, %55 : vector<8x64xf32>
    %57 = vector.broadcast %13 : vector<1x64xf32> to vector<8x64xf32>
    %58 = arith.addf %56, %57 : vector<8x64xf32>
    %59 = arith.truncf %58 : vector<8x64xf32> to vector<8x64xbf16>
    %cst_24 = arith.constant 0.000000e+00 : f32
    %60 = vector.broadcast %cst_24 : f32 to vector<16x64xf32>
    %c0_25 = arith.constant 0 : index
    %c0_26 = arith.constant 0 : index
    %c0_27 = arith.constant 0 : index
    %61 = vector.load %arg8[%c0_25, %c0_26, %c0_27] : memref<8x64x8xbf16, #tpu.memory_space<vmem>>, vector<1x64x8xbf16>
    %62 = vector.shape_cast %61 : vector<1x64x8xbf16> to vector<64x8xbf16>
    %cst_28 = arith.constant dense<0.000000e+00> : vector<16x8xf32>
    %63 = tpu.matmul %36, %62, %cst_28 {dimension_numbers = #tpu.dot_dimension_numbers<[1], [0], [0], [1], [0, 0, 1, 1], [], []>} : vector<16x64xbf16>, vector<64x8xbf16>, vector<16x8xf32> -> vector<16x8xf32>
    %c0_29 = arith.constant 0 : index
    %c0_30 = arith.constant 0 : index
    %c0_31 = arith.constant 0 : index
    %64 = vector.load %arg9[%c0_29, %c0_30, %c0_31] : memref<8x1x8xf32, #tpu.memory_space<vmem>>, vector<1x1x8xf32>
    %65 = vector.shape_cast %64 : vector<1x1x8xf32> to vector<1x8xf32>
    %66 = vector.broadcast %65 : vector<1x8xf32> to vector<16x8xf32>
    %67 = arith.addf %63, %66 : vector<16x8xf32>
    %cst_32 = arith.constant 0.353553385 : f32
    %68 = vector.broadcast %cst_32 : f32 to vector<16x8xf32>
    %69 = arith.mulf %67, %68 : vector<16x8xf32>
    %c0_33 = arith.constant 0 : index
    %c0_34 = arith.constant 0 : index
    %c0_35 = arith.constant 0 : index
    %70 = vector.load %arg10[%c0_33, %c0_34, %c0_35] : memref<8x64x8xbf16, #tpu.memory_space<vmem>>, vector<1x64x8xbf16>
    %71 = vector.shape_cast %70 : vector<1x64x8xbf16> to vector<64x8xbf16>
    %cst_36 = arith.constant dense<0.000000e+00> : vector<8x8xf32>
    %72 = tpu.matmul %59, %71, %cst_36 {dimension_numbers = #tpu.dot_dimension_numbers<[1], [0], [0], [1], [0, 0, 1, 1], [], []>} : vector<8x64xbf16>, vector<64x8xbf16>, vector<8x8xf32> -> vector<8x8xf32>
    %c0_37 = arith.constant 0 : index
    %c0_38 = arith.constant 0 : index
    %c0_39 = arith.constant 0 : index
    %73 = vector.load %arg11[%c0_37, %c0_38, %c0_39] : memref<8x1x8xf32, #tpu.memory_space<vmem>>, vector<1x1x8xf32>
    %74 = vector.shape_cast %73 : vector<1x1x8xf32> to vector<1x8xf32>
    %75 = vector.broadcast %74 : vector<1x8xf32> to vector<8x8xf32>
    %76 = arith.addf %72, %75 : vector<8x8xf32>
    %c0_40 = arith.constant 0 : index
    %c0_41 = arith.constant 0 : index
    %c0_42 = arith.constant 0 : index
    %77 = vector.load %arg12[%c0_40, %c0_41, %c0_42] : memref<8x64x8xbf16, #tpu.memory_space<vmem>>, vector<1x64x8xbf16>
    %78 = vector.shape_cast %77 : vector<1x64x8xbf16> to vector<64x8xbf16>
    %cst_43 = arith.constant dense<0.000000e+00> : vector<8x8xf32>
    %79 = tpu.matmul %59, %78, %cst_43 {dimension_numbers = #tpu.dot_dimension_numbers<[1], [0], [0], [1], [0, 0, 1, 1], [], []>} : vector<8x64xbf16>, vector<64x8xbf16>, vector<8x8xf32> -> vector<8x8xf32>
    %c0_44 = arith.constant 0 : index
    %c0_45 = arith.constant 0 : index
    %c0_46 = arith.constant 0 : index
    %80 = vector.load %arg13[%c0_44, %c0_45, %c0_46] : memref<8x1x8xf32, #tpu.memory_space<vmem>>, vector<1x1x8xf32>
    %81 = vector.shape_cast %80 : vector<1x1x8xf32> to vector<1x8xf32>
    %82 = vector.broadcast %81 : vector<1x8xf32> to vector<8x8xf32>
    %83 = arith.addf %79, %82 : vector<8x8xf32>
    %84 = arith.truncf %69 : vector<16x8xf32> to vector<16x8xbf16>
    %85 = arith.truncf %76 : vector<8x8xf32> to vector<8x8xbf16>
    %cst_47 = arith.constant dense<0.000000e+00> : vector<16x8xf32>
    %86 = tpu.matmul %84, %85, %cst_47 {dimension_numbers = #tpu.dot_dimension_numbers<[1], [1], [0], [0], [0, 0, 1, 0], [], []>} : vector<16x8xbf16>, vector<8x8xbf16>, vector<16x8xf32> -> vector<16x8xf32>
    %cst_48 = arith.constant dense<0xFF800000> : vector<16xf32>
    %87 = vector.multi_reduction <maximumf>, %86, %cst_48 [1] : vector<16x8xf32> to vector<16xf32>
    %88 = vector.shape_cast %87 : vector<16xf32> to vector<16x1xf32>
    %89 = vector.broadcast %88 : vector<16x1xf32> to vector<16x8xf32>
    %90 = arith.subf %86, %89 : vector<16x8xf32>
    %91 = math.exp %90 : vector<16x8xf32>
    %cst_49 = arith.constant dense<0.000000e+00> : vector<16xf32>
    %92 = vector.multi_reduction <add>, %91, %cst_49 [1] : vector<16x8xf32> to vector<16xf32>
    %93 = vector.shape_cast %92 : vector<16xf32> to vector<16x1xf32>
    %94 = tpu.reciprocal %93 {approx = true} : vector<16x1xf32> -> vector<16x1xf32>
    %95 = vector.broadcast %94 : vector<16x1xf32> to vector<16x8xf32>
    %96 = arith.mulf %91, %95 : vector<16x8xf32>
    %97 = arith.truncf %96 : vector<16x8xf32> to vector<16x8xbf16>
    %98 = arith.truncf %83 : vector<8x8xf32> to vector<8x8xbf16>
    %cst_50 = arith.constant dense<0.000000e+00> : vector<16x8xf32>
    %99 = tpu.matmul %97, %98, %cst_50 {dimension_numbers = #tpu.dot_dimension_numbers<[1], [0], [0], [1], [0, 0, 1, 1], [], []>} : vector<16x8xbf16>, vector<8x8xbf16>, vector<16x8xf32> -> vector<16x8xf32>
    %100 = arith.truncf %99 : vector<16x8xf32> to vector<16x8xbf16>
    %c0_51 = arith.constant 0 : index
    %c0_52 = arith.constant 0 : index
    %c0_53 = arith.constant 0 : index
    %101 = vector.load %arg14[%c0_51, %c0_52, %c0_53] : memref<8x8x64xbf16, #tpu.memory_space<vmem>>, vector<1x8x64xbf16>
    %102 = vector.shape_cast %101 : vector<1x8x64xbf16> to vector<8x64xbf16>
    %cst_54 = arith.constant dense<0.000000e+00> : vector<16x64xf32>
    %103 = tpu.matmul %100, %102, %cst_54 {dimension_numbers = #tpu.dot_dimension_numbers<[1], [0], [0], [1], [0, 0, 1, 1], [], []>} : vector<16x8xbf16>, vector<8x64xbf16>, vector<16x64xf32> -> vector<16x64xf32>
    %104 = arith.addf %60, %103 : vector<16x64xf32>
    %c1 = arith.constant 1 : index
    %c0_55 = arith.constant 0 : index
    %c0_56 = arith.constant 0 : index
    %105 = vector.load %arg8[%c1, %c0_55, %c0_56] : memref<8x64x8xbf16, #tpu.memory_space<vmem>>, vector<1x64x8xbf16>
    %106 = vector.shape_cast %105 : vector<1x64x8xbf16> to vector<64x8xbf16>
    %cst_57 = arith.constant dense<0.000000e+00> : vector<16x8xf32>
    %107 = tpu.matmul %36, %106, %cst_57 {dimension_numbers = #tpu.dot_dimension_numbers<[1], [0], [0], [1], [0, 0, 1, 1], [], []>} : vector<16x64xbf16>, vector<64x8xbf16>, vector<16x8xf32> -> vector<16x8xf32>
    %c1_58 = arith.constant 1 : index
    %c0_59 = arith.constant 0 : index
    %c0_60 = arith.constant 0 : index
    %108 = vector.load %arg9[%c1_58, %c0_59, %c0_60] : memref<8x1x8xf32, #tpu.memory_space<vmem>>, vector<1x1x8xf32>
    %109 = vector.shape_cast %108 : vector<1x1x8xf32> to vector<1x8xf32>
    %110 = vector.broadcast %109 : vector<1x8xf32> to vector<16x8xf32>
    %111 = arith.addf %107, %110 : vector<16x8xf32>
    %cst_61 = arith.constant 0.353553385 : f32
    %112 = vector.broadcast %cst_61 : f32 to vector<16x8xf32>
    %113 = arith.mulf %111, %112 : vector<16x8xf32>
    %c1_62 = arith.constant 1 : index
    %c0_63 = arith.constant 0 : index
    %c0_64 = arith.constant 0 : index
    %114 = vector.load %arg10[%c1_62, %c0_63, %c0_64] : memref<8x64x8xbf16, #tpu.memory_space<vmem>>, vector<1x64x8xbf16>
    %115 = vector.shape_cast %114 : vector<1x64x8xbf16> to vector<64x8xbf16>
    %cst_65 = arith.constant dense<0.000000e+00> : vector<8x8xf32>
    %116 = tpu.matmul %59, %115, %cst_65 {dimension_numbers = #tpu.dot_dimension_numbers<[1], [0], [0], [1], [0, 0, 1, 1], [], []>} : vector<8x64xbf16>, vector<64x8xbf16>, vector<8x8xf32> -> vector<8x8xf32>
    %c1_66 = arith.constant 1 : index
    %c0_67 = arith.constant 0 : index
    %c0_68 = arith.constant 0 : index
    %117 = vector.load %arg11[%c1_66, %c0_67, %c0_68] : memref<8x1x8xf32, #tpu.memory_space<vmem>>, vector<1x1x8xf32>
    %118 = vector.shape_cast %117 : vector<1x1x8xf32> to vector<1x8xf32>
    %119 = vector.broadcast %118 : vector<1x8xf32> to vector<8x8xf32>
    %120 = arith.addf %116, %119 : vector<8x8xf32>
    %c1_69 = arith.constant 1 : index
    %c0_70 = arith.constant 0 : index
    %c0_71 = arith.constant 0 : index
    %121 = vector.load %arg12[%c1_69, %c0_70, %c0_71] : memref<8x64x8xbf16, #tpu.memory_space<vmem>>, vector<1x64x8xbf16>
    %122 = vector.shape_cast %121 : vector<1x64x8xbf16> to vector<64x8xbf16>
    %cst_72 = arith.constant dense<0.000000e+00> : vector<8x8xf32>
    %123 = tpu.matmul %59, %122, %cst_72 {dimension_numbers = #tpu.dot_dimension_numbers<[1], [0], [0], [1], [0, 0, 1, 1], [], []>} : vector<8x64xbf16>, vector<64x8xbf16>, vector<8x8xf32> -> vector<8x8xf32>
    %c1_73 = arith.constant 1 : index
    %c0_74 = arith.constant 0 : index
    %c0_75 = arith.constant 0 : index
    %124 = vector.load %arg13[%c1_73, %c0_74, %c0_75] : memref<8x1x8xf32, #tpu.memory_space<vmem>>, vector<1x1x8xf32>
    %125 = vector.shape_cast %124 : vector<1x1x8xf32> to vector<1x8xf32>
    %126 = vector.broadcast %125 : vector<1x8xf32> to vector<8x8xf32>
    %127 = arith.addf %123, %126 : vector<8x8xf32>
    %128 = arith.truncf %113 : vector<16x8xf32> to vector<16x8xbf16>
    %129 = arith.truncf %120 : vector<8x8xf32> to vector<8x8xbf16>
    %cst_76 = arith.constant dense<0.000000e+00> : vector<16x8xf32>
    %130 = tpu.matmul %128, %129, %cst_76 {dimension_numbers = #tpu.dot_dimension_numbers<[1], [1], [0], [0], [0, 0, 1, 0], [], []>} : vector<16x8xbf16>, vector<8x8xbf16>, vector<16x8xf32> -> vector<16x8xf32>
    %cst_77 = arith.constant dense<0xFF800000> : vector<16xf32>
    %131 = vector.multi_reduction <maximumf>, %130, %cst_77 [1] : vector<16x8xf32> to vector<16xf32>
    %132 = vector.shape_cast %131 : vector<16xf32> to vector<16x1xf32>
    %133 = vector.broadcast %132 : vector<16x1xf32> to vector<16x8xf32>
    %134 = arith.subf %130, %133 : vector<16x8xf32>
    %135 = math.exp %134 : vector<16x8xf32>
    %cst_78 = arith.constant dense<0.000000e+00> : vector<16xf32>
    %136 = vector.multi_reduction <add>, %135, %cst_78 [1] : vector<16x8xf32> to vector<16xf32>
    %137 = vector.shape_cast %136 : vector<16xf32> to vector<16x1xf32>
    %138 = tpu.reciprocal %137 {approx = true} : vector<16x1xf32> -> vector<16x1xf32>
    %139 = vector.broadcast %138 : vector<16x1xf32> to vector<16x8xf32>
    %140 = arith.mulf %135, %139 : vector<16x8xf32>
    %141 = arith.truncf %140 : vector<16x8xf32> to vector<16x8xbf16>
    %142 = arith.truncf %127 : vector<8x8xf32> to vector<8x8xbf16>
    %cst_79 = arith.constant dense<0.000000e+00> : vector<16x8xf32>
    %143 = tpu.matmul %141, %142, %cst_79 {dimension_numbers = #tpu.dot_dimension_numbers<[1], [0], [0], [1], [0, 0, 1, 1], [], []>} : vector<16x8xbf16>, vector<8x8xbf16>, vector<16x8xf32> -> vector<16x8xf32>
    %144 = arith.truncf %143 : vector<16x8xf32> to vector<16x8xbf16>
    %c1_80 = arith.constant 1 : index
    %c0_81 = arith.constant 0 : index
    %c0_82 = arith.constant 0 : index
    %145 = vector.load %arg14[%c1_80, %c0_81, %c0_82] : memref<8x8x64xbf16, #tpu.memory_space<vmem>>, vector<1x8x64xbf16>
    %146 = vector.shape_cast %145 : vector<1x8x64xbf16> to vector<8x64xbf16>
    %cst_83 = arith.constant dense<0.000000e+00> : vector<16x64xf32>
    %147 = tpu.matmul %144, %146, %cst_83 {dimension_numbers = #tpu.dot_dimension_numbers<[1], [0], [0], [1], [0, 0, 1, 1], [], []>} : vector<16x8xbf16>, vector<8x64xbf16>, vector<16x64xf32> -> vector<16x64xf32>
    %148 = arith.addf %104, %147 : vector<16x64xf32>
    %c2 = arith.constant 2 : index
    %c0_84 = arith.constant 0 : index
    %c0_85 = arith.constant 0 : index
    %149 = vector.load %arg8[%c2, %c0_84, %c0_85] : memref<8x64x8xbf16, #tpu.memory_space<vmem>>, vector<1x64x8xbf16>
    %150 = vector.shape_cast %149 : vector<1x64x8xbf16> to vector<64x8xbf16>
    %cst_86 = arith.constant dense<0.000000e+00> : vector<16x8xf32>
    %151 = tpu.matmul %36, %150, %cst_86 {dimension_numbers = #tpu.dot_dimension_numbers<[1], [0], [0], [1], [0, 0, 1, 1], [], []>} : vector<16x64xbf16>, vector<64x8xbf16>, vector<16x8xf32> -> vector<16x8xf32>
    %c2_87 = arith.constant 2 : index
    %c0_88 = arith.constant 0 : index
    %c0_89 = arith.constant 0 : index
    %152 = vector.load %arg9[%c2_87, %c0_88, %c0_89] : memref<8x1x8xf32, #tpu.memory_space<vmem>>, vector<1x1x8xf32>
    %153 = vector.shape_cast %152 : vector<1x1x8xf32> to vector<1x8xf32>
    %154 = vector.broadcast %153 : vector<1x8xf32> to vector<16x8xf32>
    %155 = arith.addf %151, %154 : vector<16x8xf32>
    %cst_90 = arith.constant 0.353553385 : f32
    %156 = vector.broadcast %cst_90 : f32 to vector<16x8xf32>
    %157 = arith.mulf %155, %156 : vector<16x8xf32>
    %c2_91 = arith.constant 2 : index
    %c0_92 = arith.constant 0 : index
    %c0_93 = arith.constant 0 : index
    %158 = vector.load %arg10[%c2_91, %c0_92, %c0_93] : memref<8x64x8xbf16, #tpu.memory_space<vmem>>, vector<1x64x8xbf16>
    %159 = vector.shape_cast %158 : vector<1x64x8xbf16> to vector<64x8xbf16>
    %cst_94 = arith.constant dense<0.000000e+00> : vector<8x8xf32>
    %160 = tpu.matmul %59, %159, %cst_94 {dimension_numbers = #tpu.dot_dimension_numbers<[1], [0], [0], [1], [0, 0, 1, 1], [], []>} : vector<8x64xbf16>, vector<64x8xbf16>, vector<8x8xf32> -> vector<8x8xf32>
    %c2_95 = arith.constant 2 : index
    %c0_96 = arith.constant 0 : index
    %c0_97 = arith.constant 0 : index
    %161 = vector.load %arg11[%c2_95, %c0_96, %c0_97] : memref<8x1x8xf32, #tpu.memory_space<vmem>>, vector<1x1x8xf32>
    %162 = vector.shape_cast %161 : vector<1x1x8xf32> to vector<1x8xf32>
    %163 = vector.broadcast %162 : vector<1x8xf32> to vector<8x8xf32>
    %164 = arith.addf %160, %163 : vector<8x8xf32>
    %c2_98 = arith.constant 2 : index
    %c0_99 = arith.constant 0 : index
    %c0_100 = arith.constant 0 : index
    %165 = vector.load %arg12[%c2_98, %c0_99, %c0_100] : memref<8x64x8xbf16, #tpu.memory_space<vmem>>, vector<1x64x8xbf16>
    %166 = vector.shape_cast %165 : vector<1x64x8xbf16> to vector<64x8xbf16>
    %cst_101 = arith.constant dense<0.000000e+00> : vector<8x8xf32>
    %167 = tpu.matmul %59, %166, %cst_101 {dimension_numbers = #tpu.dot_dimension_numbers<[1], [0], [0], [1], [0, 0, 1, 1], [], []>} : vector<8x64xbf16>, vector<64x8xbf16>, vector<8x8xf32> -> vector<8x8xf32>
    %c2_102 = arith.constant 2 : index
    %c0_103 = arith.constant 0 : index
    %c0_104 = arith.constant 0 : index
    %168 = vector.load %arg13[%c2_102, %c0_103, %c0_104] : memref<8x1x8xf32, #tpu.memory_space<vmem>>, vector<1x1x8xf32>
    %169 = vector.shape_cast %168 : vector<1x1x8xf32> to vector<1x8xf32>
    %170 = vector.broadcast %169 : vector<1x8xf32> to vector<8x8xf32>
    %171 = arith.addf %167, %170 : vector<8x8xf32>
    %172 = arith.truncf %157 : vector<16x8xf32> to vector<16x8xbf16>
    %173 = arith.truncf %164 : vector<8x8xf32> to vector<8x8xbf16>
    %cst_105 = arith.constant dense<0.000000e+00> : vector<16x8xf32>
    %174 = tpu.matmul %172, %173, %cst_105 {dimension_numbers = #tpu.dot_dimension_numbers<[1], [1], [0], [0], [0, 0, 1, 0], [], []>} : vector<16x8xbf16>, vector<8x8xbf16>, vector<16x8xf32> -> vector<16x8xf32>
    %cst_106 = arith.constant dense<0xFF800000> : vector<16xf32>
    %175 = vector.multi_reduction <maximumf>, %174, %cst_106 [1] : vector<16x8xf32> to vector<16xf32>
    %176 = vector.shape_cast %175 : vector<16xf32> to vector<16x1xf32>
    %177 = vector.broadcast %176 : vector<16x1xf32> to vector<16x8xf32>
    %178 = arith.subf %174, %177 : vector<16x8xf32>
    %179 = math.exp %178 : vector<16x8xf32>
    %cst_107 = arith.constant dense<0.000000e+00> : vector<16xf32>
    %180 = vector.multi_reduction <add>, %179, %cst_107 [1] : vector<16x8xf32> to vector<16xf32>
    %181 = vector.shape_cast %180 : vector<16xf32> to vector<16x1xf32>
    %182 = tpu.reciprocal %181 {approx = true} : vector<16x1xf32> -> vector<16x1xf32>
    %183 = vector.broadcast %182 : vector<16x1xf32> to vector<16x8xf32>
    %184 = arith.mulf %179, %183 : vector<16x8xf32>
    %185 = arith.truncf %184 : vector<16x8xf32> to vector<16x8xbf16>
    %186 = arith.truncf %171 : vector<8x8xf32> to vector<8x8xbf16>
    %cst_108 = arith.constant dense<0.000000e+00> : vector<16x8xf32>
    %187 = tpu.matmul %185, %186, %cst_108 {dimension_numbers = #tpu.dot_dimension_numbers<[1], [0], [0], [1], [0, 0, 1, 1], [], []>} : vector<16x8xbf16>, vector<8x8xbf16>, vector<16x8xf32> -> vector<16x8xf32>
    %188 = arith.truncf %187 : vector<16x8xf32> to vector<16x8xbf16>
    %c2_109 = arith.constant 2 : index
    %c0_110 = arith.constant 0 : index
    %c0_111 = arith.constant 0 : index
    %189 = vector.load %arg14[%c2_109, %c0_110, %c0_111] : memref<8x8x64xbf16, #tpu.memory_space<vmem>>, vector<1x8x64xbf16>
    %190 = vector.shape_cast %189 : vector<1x8x64xbf16> to vector<8x64xbf16>
    %cst_112 = arith.constant dense<0.000000e+00> : vector<16x64xf32>
    %191 = tpu.matmul %188, %190, %cst_112 {dimension_numbers = #tpu.dot_dimension_numbers<[1], [0], [0], [1], [0, 0, 1, 1], [], []>} : vector<16x8xbf16>, vector<8x64xbf16>, vector<16x64xf32> -> vector<16x64xf32>
    %192 = arith.addf %148, %191 : vector<16x64xf32>
    %c3 = arith.constant 3 : index
    %c0_113 = arith.constant 0 : index
    %c0_114 = arith.constant 0 : index
    %193 = vector.load %arg8[%c3, %c0_113, %c0_114] : memref<8x64x8xbf16, #tpu.memory_space<vmem>>, vector<1x64x8xbf16>
    %194 = vector.shape_cast %193 : vector<1x64x8xbf16> to vector<64x8xbf16>
    %cst_115 = arith.constant dense<0.000000e+00> : vector<16x8xf32>
    %195 = tpu.matmul %36, %194, %cst_115 {dimension_numbers = #tpu.dot_dimension_numbers<[1], [0], [0], [1], [0, 0, 1, 1], [], []>} : vector<16x64xbf16>, vector<64x8xbf16>, vector<16x8xf32> -> vector<16x8xf32>
    %c3_116 = arith.constant 3 : index
    %c0_117 = arith.constant 0 : index
    %c0_118 = arith.constant 0 : index
    %196 = vector.load %arg9[%c3_116, %c0_117, %c0_118] : memref<8x1x8xf32, #tpu.memory_space<vmem>>, vector<1x1x8xf32>
    %197 = vector.shape_cast %196 : vector<1x1x8xf32> to vector<1x8xf32>
    %198 = vector.broadcast %197 : vector<1x8xf32> to vector<16x8xf32>
    %199 = arith.addf %195, %198 : vector<16x8xf32>
    %cst_119 = arith.constant 0.353553385 : f32
    %200 = vector.broadcast %cst_119 : f32 to vector<16x8xf32>
    %201 = arith.mulf %199, %200 : vector<16x8xf32>
    %c3_120 = arith.constant 3 : index
    %c0_121 = arith.constant 0 : index
    %c0_122 = arith.constant 0 : index
    %202 = vector.load %arg10[%c3_120, %c0_121, %c0_122] : memref<8x64x8xbf16, #tpu.memory_space<vmem>>, vector<1x64x8xbf16>
    %203 = vector.shape_cast %202 : vector<1x64x8xbf16> to vector<64x8xbf16>
    %cst_123 = arith.constant dense<0.000000e+00> : vector<8x8xf32>
    %204 = tpu.matmul %59, %203, %cst_123 {dimension_numbers = #tpu.dot_dimension_numbers<[1], [0], [0], [1], [0, 0, 1, 1], [], []>} : vector<8x64xbf16>, vector<64x8xbf16>, vector<8x8xf32> -> vector<8x8xf32>
    %c3_124 = arith.constant 3 : index
    %c0_125 = arith.constant 0 : index
    %c0_126 = arith.constant 0 : index
    %205 = vector.load %arg11[%c3_124, %c0_125, %c0_126] : memref<8x1x8xf32, #tpu.memory_space<vmem>>, vector<1x1x8xf32>
    %206 = vector.shape_cast %205 : vector<1x1x8xf32> to vector<1x8xf32>
    %207 = vector.broadcast %206 : vector<1x8xf32> to vector<8x8xf32>
    %208 = arith.addf %204, %207 : vector<8x8xf32>
    %c3_127 = arith.constant 3 : index
    %c0_128 = arith.constant 0 : index
    %c0_129 = arith.constant 0 : index
    %209 = vector.load %arg12[%c3_127, %c0_128, %c0_129] : memref<8x64x8xbf16, #tpu.memory_space<vmem>>, vector<1x64x8xbf16>
    %210 = vector.shape_cast %209 : vector<1x64x8xbf16> to vector<64x8xbf16>
    %cst_130 = arith.constant dense<0.000000e+00> : vector<8x8xf32>
    %211 = tpu.matmul %59, %210, %cst_130 {dimension_numbers = #tpu.dot_dimension_numbers<[1], [0], [0], [1], [0, 0, 1, 1], [], []>} : vector<8x64xbf16>, vector<64x8xbf16>, vector<8x8xf32> -> vector<8x8xf32>
    %c3_131 = arith.constant 3 : index
    %c0_132 = arith.constant 0 : index
    %c0_133 = arith.constant 0 : index
    %212 = vector.load %arg13[%c3_131, %c0_132, %c0_133] : memref<8x1x8xf32, #tpu.memory_space<vmem>>, vector<1x1x8xf32>
    %213 = vector.shape_cast %212 : vector<1x1x8xf32> to vector<1x8xf32>
    %214 = vector.broadcast %213 : vector<1x8xf32> to vector<8x8xf32>
    %215 = arith.addf %211, %214 : vector<8x8xf32>
    %216 = arith.truncf %201 : vector<16x8xf32> to vector<16x8xbf16>
    %217 = arith.truncf %208 : vector<8x8xf32> to vector<8x8xbf16>
    %cst_134 = arith.constant dense<0.000000e+00> : vector<16x8xf32>
    %218 = tpu.matmul %216, %217, %cst_134 {dimension_numbers = #tpu.dot_dimension_numbers<[1], [1], [0], [0], [0, 0, 1, 0], [], []>} : vector<16x8xbf16>, vector<8x8xbf16>, vector<16x8xf32> -> vector<16x8xf32>
    %cst_135 = arith.constant dense<0xFF800000> : vector<16xf32>
    %219 = vector.multi_reduction <maximumf>, %218, %cst_135 [1] : vector<16x8xf32> to vector<16xf32>
    %220 = vector.shape_cast %219 : vector<16xf32> to vector<16x1xf32>
    %221 = vector.broadcast %220 : vector<16x1xf32> to vector<16x8xf32>
    %222 = arith.subf %218, %221 : vector<16x8xf32>
    %223 = math.exp %222 : vector<16x8xf32>
    %cst_136 = arith.constant dense<0.000000e+00> : vector<16xf32>
    %224 = vector.multi_reduction <add>, %223, %cst_136 [1] : vector<16x8xf32> to vector<16xf32>
    %225 = vector.shape_cast %224 : vector<16xf32> to vector<16x1xf32>
    %226 = tpu.reciprocal %225 {approx = true} : vector<16x1xf32> -> vector<16x1xf32>
    %227 = vector.broadcast %226 : vector<16x1xf32> to vector<16x8xf32>
    %228 = arith.mulf %223, %227 : vector<16x8xf32>
    %229 = arith.truncf %228 : vector<16x8xf32> to vector<16x8xbf16>
    %230 = arith.truncf %215 : vector<8x8xf32> to vector<8x8xbf16>
    %cst_137 = arith.constant dense<0.000000e+00> : vector<16x8xf32>
    %231 = tpu.matmul %229, %230, %cst_137 {dimension_numbers = #tpu.dot_dimension_numbers<[1], [0], [0], [1], [0, 0, 1, 1], [], []>} : vector<16x8xbf16>, vector<8x8xbf16>, vector<16x8xf32> -> vector<16x8xf32>
    %232 = arith.truncf %231 : vector<16x8xf32> to vector<16x8xbf16>
    %c3_138 = arith.constant 3 : index
    %c0_139 = arith.constant 0 : index
    %c0_140 = arith.constant 0 : index
    %233 = vector.load %arg14[%c3_138, %c0_139, %c0_140] : memref<8x8x64xbf16, #tpu.memory_space<vmem>>, vector<1x8x64xbf16>
    %234 = vector.shape_cast %233 : vector<1x8x64xbf16> to vector<8x64xbf16>
    %cst_141 = arith.constant dense<0.000000e+00> : vector<16x64xf32>
    %235 = tpu.matmul %232, %234, %cst_141 {dimension_numbers = #tpu.dot_dimension_numbers<[1], [0], [0], [1], [0, 0, 1, 1], [], []>} : vector<16x8xbf16>, vector<8x64xbf16>, vector<16x64xf32> -> vector<16x64xf32>
    %236 = arith.addf %192, %235 : vector<16x64xf32>
    %c4 = arith.constant 4 : index
    %c0_142 = arith.constant 0 : index
    %c0_143 = arith.constant 0 : index
    %237 = vector.load %arg8[%c4, %c0_142, %c0_143] : memref<8x64x8xbf16, #tpu.memory_space<vmem>>, vector<1x64x8xbf16>
    %238 = vector.shape_cast %237 : vector<1x64x8xbf16> to vector<64x8xbf16>
    %cst_144 = arith.constant dense<0.000000e+00> : vector<16x8xf32>
    %239 = tpu.matmul %36, %238, %cst_144 {dimension_numbers = #tpu.dot_dimension_numbers<[1], [0], [0], [1], [0, 0, 1, 1], [], []>} : vector<16x64xbf16>, vector<64x8xbf16>, vector<16x8xf32> -> vector<16x8xf32>
    %c4_145 = arith.constant 4 : index
    %c0_146 = arith.constant 0 : index
    %c0_147 = arith.constant 0 : index
    %240 = vector.load %arg9[%c4_145, %c0_146, %c0_147] : memref<8x1x8xf32, #tpu.memory_space<vmem>>, vector<1x1x8xf32>
    %241 = vector.shape_cast %240 : vector<1x1x8xf32> to vector<1x8xf32>
    %242 = vector.broadcast %241 : vector<1x8xf32> to vector<16x8xf32>
    %243 = arith.addf %239, %242 : vector<16x8xf32>
    %cst_148 = arith.constant 0.353553385 : f32
    %244 = vector.broadcast %cst_148 : f32 to vector<16x8xf32>
    %245 = arith.mulf %243, %244 : vector<16x8xf32>
    %c4_149 = arith.constant 4 : index
    %c0_150 = arith.constant 0 : index
    %c0_151 = arith.constant 0 : index
    %246 = vector.load %arg10[%c4_149, %c0_150, %c0_151] : memref<8x64x8xbf16, #tpu.memory_space<vmem>>, vector<1x64x8xbf16>
    %247 = vector.shape_cast %246 : vector<1x64x8xbf16> to vector<64x8xbf16>
    %cst_152 = arith.constant dense<0.000000e+00> : vector<8x8xf32>
    %248 = tpu.matmul %59, %247, %cst_152 {dimension_numbers = #tpu.dot_dimension_numbers<[1], [0], [0], [1], [0, 0, 1, 1], [], []>} : vector<8x64xbf16>, vector<64x8xbf16>, vector<8x8xf32> -> vector<8x8xf32>
    %c4_153 = arith.constant 4 : index
    %c0_154 = arith.constant 0 : index
    %c0_155 = arith.constant 0 : index
    %249 = vector.load %arg11[%c4_153, %c0_154, %c0_155] : memref<8x1x8xf32, #tpu.memory_space<vmem>>, vector<1x1x8xf32>
    %250 = vector.shape_cast %249 : vector<1x1x8xf32> to vector<1x8xf32>
    %251 = vector.broadcast %250 : vector<1x8xf32> to vector<8x8xf32>
    %252 = arith.addf %248, %251 : vector<8x8xf32>
    %c4_156 = arith.constant 4 : index
    %c0_157 = arith.constant 0 : index
    %c0_158 = arith.constant 0 : index
    %253 = vector.load %arg12[%c4_156, %c0_157, %c0_158] : memref<8x64x8xbf16, #tpu.memory_space<vmem>>, vector<1x64x8xbf16>
    %254 = vector.shape_cast %253 : vector<1x64x8xbf16> to vector<64x8xbf16>
    %cst_159 = arith.constant dense<0.000000e+00> : vector<8x8xf32>
    %255 = tpu.matmul %59, %254, %cst_159 {dimension_numbers = #tpu.dot_dimension_numbers<[1], [0], [0], [1], [0, 0, 1, 1], [], []>} : vector<8x64xbf16>, vector<64x8xbf16>, vector<8x8xf32> -> vector<8x8xf32>
    %c4_160 = arith.constant 4 : index
    %c0_161 = arith.constant 0 : index
    %c0_162 = arith.constant 0 : index
    %256 = vector.load %arg13[%c4_160, %c0_161, %c0_162] : memref<8x1x8xf32, #tpu.memory_space<vmem>>, vector<1x1x8xf32>
    %257 = vector.shape_cast %256 : vector<1x1x8xf32> to vector<1x8xf32>
    %258 = vector.broadcast %257 : vector<1x8xf32> to vector<8x8xf32>
    %259 = arith.addf %255, %258 : vector<8x8xf32>
    %260 = arith.truncf %245 : vector<16x8xf32> to vector<16x8xbf16>
    %261 = arith.truncf %252 : vector<8x8xf32> to vector<8x8xbf16>
    %cst_163 = arith.constant dense<0.000000e+00> : vector<16x8xf32>
    %262 = tpu.matmul %260, %261, %cst_163 {dimension_numbers = #tpu.dot_dimension_numbers<[1], [1], [0], [0], [0, 0, 1, 0], [], []>} : vector<16x8xbf16>, vector<8x8xbf16>, vector<16x8xf32> -> vector<16x8xf32>
    %cst_164 = arith.constant dense<0xFF800000> : vector<16xf32>
    %263 = vector.multi_reduction <maximumf>, %262, %cst_164 [1] : vector<16x8xf32> to vector<16xf32>
    %264 = vector.shape_cast %263 : vector<16xf32> to vector<16x1xf32>
    %265 = vector.broadcast %264 : vector<16x1xf32> to vector<16x8xf32>
    %266 = arith.subf %262, %265 : vector<16x8xf32>
    %267 = math.exp %266 : vector<16x8xf32>
    %cst_165 = arith.constant dense<0.000000e+00> : vector<16xf32>
    %268 = vector.multi_reduction <add>, %267, %cst_165 [1] : vector<16x8xf32> to vector<16xf32>
    %269 = vector.shape_cast %268 : vector<16xf32> to vector<16x1xf32>
    %270 = tpu.reciprocal %269 {approx = true} : vector<16x1xf32> -> vector<16x1xf32>
    %271 = vector.broadcast %270 : vector<16x1xf32> to vector<16x8xf32>
    %272 = arith.mulf %267, %271 : vector<16x8xf32>
    %273 = arith.truncf %272 : vector<16x8xf32> to vector<16x8xbf16>
    %274 = arith.truncf %259 : vector<8x8xf32> to vector<8x8xbf16>
    %cst_166 = arith.constant dense<0.000000e+00> : vector<16x8xf32>
    %275 = tpu.matmul %273, %274, %cst_166 {dimension_numbers = #tpu.dot_dimension_numbers<[1], [0], [0], [1], [0, 0, 1, 1], [], []>} : vector<16x8xbf16>, vector<8x8xbf16>, vector<16x8xf32> -> vector<16x8xf32>
    %276 = arith.truncf %275 : vector<16x8xf32> to vector<16x8xbf16>
    %c4_167 = arith.constant 4 : index
    %c0_168 = arith.constant 0 : index
    %c0_169 = arith.constant 0 : index
    %277 = vector.load %arg14[%c4_167, %c0_168, %c0_169] : memref<8x8x64xbf16, #tpu.memory_space<vmem>>, vector<1x8x64xbf16>
    %278 = vector.shape_cast %277 : vector<1x8x64xbf16> to vector<8x64xbf16>
    %cst_170 = arith.constant dense<0.000000e+00> : vector<16x64xf32>
    %279 = tpu.matmul %276, %278, %cst_170 {dimension_numbers = #tpu.dot_dimension_numbers<[1], [0], [0], [1], [0, 0, 1, 1], [], []>} : vector<16x8xbf16>, vector<8x64xbf16>, vector<16x64xf32> -> vector<16x64xf32>
    %280 = arith.addf %236, %279 : vector<16x64xf32>
    %c5 = arith.constant 5 : index
    %c0_171 = arith.constant 0 : index
    %c0_172 = arith.constant 0 : index
    %281 = vector.load %arg8[%c5, %c0_171, %c0_172] : memref<8x64x8xbf16, #tpu.memory_space<vmem>>, vector<1x64x8xbf16>
    %282 = vector.shape_cast %281 : vector<1x64x8xbf16> to vector<64x8xbf16>
    %cst_173 = arith.constant dense<0.000000e+00> : vector<16x8xf32>
    %283 = tpu.matmul %36, %282, %cst_173 {dimension_numbers = #tpu.dot_dimension_numbers<[1], [0], [0], [1], [0, 0, 1, 1], [], []>} : vector<16x64xbf16>, vector<64x8xbf16>, vector<16x8xf32> -> vector<16x8xf32>
    %c5_174 = arith.constant 5 : index
    %c0_175 = arith.constant 0 : index
    %c0_176 = arith.constant 0 : index
    %284 = vector.load %arg9[%c5_174, %c0_175, %c0_176] : memref<8x1x8xf32, #tpu.memory_space<vmem>>, vector<1x1x8xf32>
    %285 = vector.shape_cast %284 : vector<1x1x8xf32> to vector<1x8xf32>
    %286 = vector.broadcast %285 : vector<1x8xf32> to vector<16x8xf32>
    %287 = arith.addf %283, %286 : vector<16x8xf32>
    %cst_177 = arith.constant 0.353553385 : f32
    %288 = vector.broadcast %cst_177 : f32 to vector<16x8xf32>
    %289 = arith.mulf %287, %288 : vector<16x8xf32>
    %c5_178 = arith.constant 5 : index
    %c0_179 = arith.constant 0 : index
    %c0_180 = arith.constant 0 : index
    %290 = vector.load %arg10[%c5_178, %c0_179, %c0_180] : memref<8x64x8xbf16, #tpu.memory_space<vmem>>, vector<1x64x8xbf16>
    %291 = vector.shape_cast %290 : vector<1x64x8xbf16> to vector<64x8xbf16>
    %cst_181 = arith.constant dense<0.000000e+00> : vector<8x8xf32>
    %292 = tpu.matmul %59, %291, %cst_181 {dimension_numbers = #tpu.dot_dimension_numbers<[1], [0], [0], [1], [0, 0, 1, 1], [], []>} : vector<8x64xbf16>, vector<64x8xbf16>, vector<8x8xf32> -> vector<8x8xf32>
    %c5_182 = arith.constant 5 : index
    %c0_183 = arith.constant 0 : index
    %c0_184 = arith.constant 0 : index
    %293 = vector.load %arg11[%c5_182, %c0_183, %c0_184] : memref<8x1x8xf32, #tpu.memory_space<vmem>>, vector<1x1x8xf32>
    %294 = vector.shape_cast %293 : vector<1x1x8xf32> to vector<1x8xf32>
    %295 = vector.broadcast %294 : vector<1x8xf32> to vector<8x8xf32>
    %296 = arith.addf %292, %295 : vector<8x8xf32>
    %c5_185 = arith.constant 5 : index
    %c0_186 = arith.constant 0 : index
    %c0_187 = arith.constant 0 : index
    %297 = vector.load %arg12[%c5_185, %c0_186, %c0_187] : memref<8x64x8xbf16, #tpu.memory_space<vmem>>, vector<1x64x8xbf16>
    %298 = vector.shape_cast %297 : vector<1x64x8xbf16> to vector<64x8xbf16>
    %cst_188 = arith.constant dense<0.000000e+00> : vector<8x8xf32>
    %299 = tpu.matmul %59, %298, %cst_188 {dimension_numbers = #tpu.dot_dimension_numbers<[1], [0], [0], [1], [0, 0, 1, 1], [], []>} : vector<8x64xbf16>, vector<64x8xbf16>, vector<8x8xf32> -> vector<8x8xf32>
    %c5_189 = arith.constant 5 : index
    %c0_190 = arith.constant 0 : index
    %c0_191 = arith.constant 0 : index
    %300 = vector.load %arg13[%c5_189, %c0_190, %c0_191] : memref<8x1x8xf32, #tpu.memory_space<vmem>>, vector<1x1x8xf32>
    %301 = vector.shape_cast %300 : vector<1x1x8xf32> to vector<1x8xf32>
    %302 = vector.broadcast %301 : vector<1x8xf32> to vector<8x8xf32>
    %303 = arith.addf %299, %302 : vector<8x8xf32>
    %304 = arith.truncf %289 : vector<16x8xf32> to vector<16x8xbf16>
    %305 = arith.truncf %296 : vector<8x8xf32> to vector<8x8xbf16>
    %cst_192 = arith.constant dense<0.000000e+00> : vector<16x8xf32>
    %306 = tpu.matmul %304, %305, %cst_192 {dimension_numbers = #tpu.dot_dimension_numbers<[1], [1], [0], [0], [0, 0, 1, 0], [], []>} : vector<16x8xbf16>, vector<8x8xbf16>, vector<16x8xf32> -> vector<16x8xf32>
    %cst_193 = arith.constant dense<0xFF800000> : vector<16xf32>
    %307 = vector.multi_reduction <maximumf>, %306, %cst_193 [1] : vector<16x8xf32> to vector<16xf32>
    %308 = vector.shape_cast %307 : vector<16xf32> to vector<16x1xf32>
    %309 = vector.broadcast %308 : vector<16x1xf32> to vector<16x8xf32>
    %310 = arith.subf %306, %309 : vector<16x8xf32>
    %311 = math.exp %310 : vector<16x8xf32>
    %cst_194 = arith.constant dense<0.000000e+00> : vector<16xf32>
    %312 = vector.multi_reduction <add>, %311, %cst_194 [1] : vector<16x8xf32> to vector<16xf32>
    %313 = vector.shape_cast %312 : vector<16xf32> to vector<16x1xf32>
    %314 = tpu.reciprocal %313 {approx = true} : vector<16x1xf32> -> vector<16x1xf32>
    %315 = vector.broadcast %314 : vector<16x1xf32> to vector<16x8xf32>
    %316 = arith.mulf %311, %315 : vector<16x8xf32>
    %317 = arith.truncf %316 : vector<16x8xf32> to vector<16x8xbf16>
    %318 = arith.truncf %303 : vector<8x8xf32> to vector<8x8xbf16>
    %cst_195 = arith.constant dense<0.000000e+00> : vector<16x8xf32>
    %319 = tpu.matmul %317, %318, %cst_195 {dimension_numbers = #tpu.dot_dimension_numbers<[1], [0], [0], [1], [0, 0, 1, 1], [], []>} : vector<16x8xbf16>, vector<8x8xbf16>, vector<16x8xf32> -> vector<16x8xf32>
    %320 = arith.truncf %319 : vector<16x8xf32> to vector<16x8xbf16>
    %c5_196 = arith.constant 5 : index
    %c0_197 = arith.constant 0 : index
    %c0_198 = arith.constant 0 : index
    %321 = vector.load %arg14[%c5_196, %c0_197, %c0_198] : memref<8x8x64xbf16, #tpu.memory_space<vmem>>, vector<1x8x64xbf16>
    %322 = vector.shape_cast %321 : vector<1x8x64xbf16> to vector<8x64xbf16>
    %cst_199 = arith.constant dense<0.000000e+00> : vector<16x64xf32>
    %323 = tpu.matmul %320, %322, %cst_199 {dimension_numbers = #tpu.dot_dimension_numbers<[1], [0], [0], [1], [0, 0, 1, 1], [], []>} : vector<16x8xbf16>, vector<8x64xbf16>, vector<16x64xf32> -> vector<16x64xf32>
    %324 = arith.addf %280, %323 : vector<16x64xf32>
    %c6 = arith.constant 6 : index
    %c0_200 = arith.constant 0 : index
    %c0_201 = arith.constant 0 : index
    %325 = vector.load %arg8[%c6, %c0_200, %c0_201] : memref<8x64x8xbf16, #tpu.memory_space<vmem>>, vector<1x64x8xbf16>
    %326 = vector.shape_cast %325 : vector<1x64x8xbf16> to vector<64x8xbf16>
    %cst_202 = arith.constant dense<0.000000e+00> : vector<16x8xf32>
    %327 = tpu.matmul %36, %326, %cst_202 {dimension_numbers = #tpu.dot_dimension_numbers<[1], [0], [0], [1], [0, 0, 1, 1], [], []>} : vector<16x64xbf16>, vector<64x8xbf16>, vector<16x8xf32> -> vector<16x8xf32>
    %c6_203 = arith.constant 6 : index
    %c0_204 = arith.constant 0 : index
    %c0_205 = arith.constant 0 : index
    %328 = vector.load %arg9[%c6_203, %c0_204, %c0_205] : memref<8x1x8xf32, #tpu.memory_space<vmem>>, vector<1x1x8xf32>
    %329 = vector.shape_cast %328 : vector<1x1x8xf32> to vector<1x8xf32>
    %330 = vector.broadcast %329 : vector<1x8xf32> to vector<16x8xf32>
    %331 = arith.addf %327, %330 : vector<16x8xf32>
    %cst_206 = arith.constant 0.353553385 : f32
    %332 = vector.broadcast %cst_206 : f32 to vector<16x8xf32>
    %333 = arith.mulf %331, %332 : vector<16x8xf32>
    %c6_207 = arith.constant 6 : index
    %c0_208 = arith.constant 0 : index
    %c0_209 = arith.constant 0 : index
    %334 = vector.load %arg10[%c6_207, %c0_208, %c0_209] : memref<8x64x8xbf16, #tpu.memory_space<vmem>>, vector<1x64x8xbf16>
    %335 = vector.shape_cast %334 : vector<1x64x8xbf16> to vector<64x8xbf16>
    %cst_210 = arith.constant dense<0.000000e+00> : vector<8x8xf32>
    %336 = tpu.matmul %59, %335, %cst_210 {dimension_numbers = #tpu.dot_dimension_numbers<[1], [0], [0], [1], [0, 0, 1, 1], [], []>} : vector<8x64xbf16>, vector<64x8xbf16>, vector<8x8xf32> -> vector<8x8xf32>
    %c6_211 = arith.constant 6 : index
    %c0_212 = arith.constant 0 : index
    %c0_213 = arith.constant 0 : index
    %337 = vector.load %arg11[%c6_211, %c0_212, %c0_213] : memref<8x1x8xf32, #tpu.memory_space<vmem>>, vector<1x1x8xf32>
    %338 = vector.shape_cast %337 : vector<1x1x8xf32> to vector<1x8xf32>
    %339 = vector.broadcast %338 : vector<1x8xf32> to vector<8x8xf32>
    %340 = arith.addf %336, %339 : vector<8x8xf32>
    %c6_214 = arith.constant 6 : index
    %c0_215 = arith.constant 0 : index
    %c0_216 = arith.constant 0 : index
    %341 = vector.load %arg12[%c6_214, %c0_215, %c0_216] : memref<8x64x8xbf16, #tpu.memory_space<vmem>>, vector<1x64x8xbf16>
    %342 = vector.shape_cast %341 : vector<1x64x8xbf16> to vector<64x8xbf16>
    %cst_217 = arith.constant dense<0.000000e+00> : vector<8x8xf32>
    %343 = tpu.matmul %59, %342, %cst_217 {dimension_numbers = #tpu.dot_dimension_numbers<[1], [0], [0], [1], [0, 0, 1, 1], [], []>} : vector<8x64xbf16>, vector<64x8xbf16>, vector<8x8xf32> -> vector<8x8xf32>
    %c6_218 = arith.constant 6 : index
    %c0_219 = arith.constant 0 : index
    %c0_220 = arith.constant 0 : index
    %344 = vector.load %arg13[%c6_218, %c0_219, %c0_220] : memref<8x1x8xf32, #tpu.memory_space<vmem>>, vector<1x1x8xf32>
    %345 = vector.shape_cast %344 : vector<1x1x8xf32> to vector<1x8xf32>
    %346 = vector.broadcast %345 : vector<1x8xf32> to vector<8x8xf32>
    %347 = arith.addf %343, %346 : vector<8x8xf32>
    %348 = arith.truncf %333 : vector<16x8xf32> to vector<16x8xbf16>
    %349 = arith.truncf %340 : vector<8x8xf32> to vector<8x8xbf16>
    %cst_221 = arith.constant dense<0.000000e+00> : vector<16x8xf32>
    %350 = tpu.matmul %348, %349, %cst_221 {dimension_numbers = #tpu.dot_dimension_numbers<[1], [1], [0], [0], [0, 0, 1, 0], [], []>} : vector<16x8xbf16>, vector<8x8xbf16>, vector<16x8xf32> -> vector<16x8xf32>
    %cst_222 = arith.constant dense<0xFF800000> : vector<16xf32>
    %351 = vector.multi_reduction <maximumf>, %350, %cst_222 [1] : vector<16x8xf32> to vector<16xf32>
    %352 = vector.shape_cast %351 : vector<16xf32> to vector<16x1xf32>
    %353 = vector.broadcast %352 : vector<16x1xf32> to vector<16x8xf32>
    %354 = arith.subf %350, %353 : vector<16x8xf32>
    %355 = math.exp %354 : vector<16x8xf32>
    %cst_223 = arith.constant dense<0.000000e+00> : vector<16xf32>
    %356 = vector.multi_reduction <add>, %355, %cst_223 [1] : vector<16x8xf32> to vector<16xf32>
    %357 = vector.shape_cast %356 : vector<16xf32> to vector<16x1xf32>
    %358 = tpu.reciprocal %357 {approx = true} : vector<16x1xf32> -> vector<16x1xf32>
    %359 = vector.broadcast %358 : vector<16x1xf32> to vector<16x8xf32>
    %360 = arith.mulf %355, %359 : vector<16x8xf32>
    %361 = arith.truncf %360 : vector<16x8xf32> to vector<16x8xbf16>
    %362 = arith.truncf %347 : vector<8x8xf32> to vector<8x8xbf16>
    %cst_224 = arith.constant dense<0.000000e+00> : vector<16x8xf32>
    %363 = tpu.matmul %361, %362, %cst_224 {dimension_numbers = #tpu.dot_dimension_numbers<[1], [0], [0], [1], [0, 0, 1, 1], [], []>} : vector<16x8xbf16>, vector<8x8xbf16>, vector<16x8xf32> -> vector<16x8xf32>
    %364 = arith.truncf %363 : vector<16x8xf32> to vector<16x8xbf16>
    %c6_225 = arith.constant 6 : index
    %c0_226 = arith.constant 0 : index
    %c0_227 = arith.constant 0 : index
    %365 = vector.load %arg14[%c6_225, %c0_226, %c0_227] : memref<8x8x64xbf16, #tpu.memory_space<vmem>>, vector<1x8x64xbf16>
    %366 = vector.shape_cast %365 : vector<1x8x64xbf16> to vector<8x64xbf16>
    %cst_228 = arith.constant dense<0.000000e+00> : vector<16x64xf32>
    %367 = tpu.matmul %364, %366, %cst_228 {dimension_numbers = #tpu.dot_dimension_numbers<[1], [0], [0], [1], [0, 0, 1, 1], [], []>} : vector<16x8xbf16>, vector<8x64xbf16>, vector<16x64xf32> -> vector<16x64xf32>
    %368 = arith.addf %324, %367 : vector<16x64xf32>
    %c7 = arith.constant 7 : index
    %c0_229 = arith.constant 0 : index
    %c0_230 = arith.constant 0 : index
    %369 = vector.load %arg8[%c7, %c0_229, %c0_230] : memref<8x64x8xbf16, #tpu.memory_space<vmem>>, vector<1x64x8xbf16>
    %370 = vector.shape_cast %369 : vector<1x64x8xbf16> to vector<64x8xbf16>
    %cst_231 = arith.constant dense<0.000000e+00> : vector<16x8xf32>
    %371 = tpu.matmul %36, %370, %cst_231 {dimension_numbers = #tpu.dot_dimension_numbers<[1], [0], [0], [1], [0, 0, 1, 1], [], []>} : vector<16x64xbf16>, vector<64x8xbf16>, vector<16x8xf32> -> vector<16x8xf32>
    %c7_232 = arith.constant 7 : index
    %c0_233 = arith.constant 0 : index
    %c0_234 = arith.constant 0 : index
    %372 = vector.load %arg9[%c7_232, %c0_233, %c0_234] : memref<8x1x8xf32, #tpu.memory_space<vmem>>, vector<1x1x8xf32>
    %373 = vector.shape_cast %372 : vector<1x1x8xf32> to vector<1x8xf32>
    %374 = vector.broadcast %373 : vector<1x8xf32> to vector<16x8xf32>
    %375 = arith.addf %371, %374 : vector<16x8xf32>
    %cst_235 = arith.constant 0.353553385 : f32
    %376 = vector.broadcast %cst_235 : f32 to vector<16x8xf32>
    %377 = arith.mulf %375, %376 : vector<16x8xf32>
    %c7_236 = arith.constant 7 : index
    %c0_237 = arith.constant 0 : index
    %c0_238 = arith.constant 0 : index
    %378 = vector.load %arg10[%c7_236, %c0_237, %c0_238] : memref<8x64x8xbf16, #tpu.memory_space<vmem>>, vector<1x64x8xbf16>
    %379 = vector.shape_cast %378 : vector<1x64x8xbf16> to vector<64x8xbf16>
    %cst_239 = arith.constant dense<0.000000e+00> : vector<8x8xf32>
    %380 = tpu.matmul %59, %379, %cst_239 {dimension_numbers = #tpu.dot_dimension_numbers<[1], [0], [0], [1], [0, 0, 1, 1], [], []>} : vector<8x64xbf16>, vector<64x8xbf16>, vector<8x8xf32> -> vector<8x8xf32>
    %c7_240 = arith.constant 7 : index
    %c0_241 = arith.constant 0 : index
    %c0_242 = arith.constant 0 : index
    %381 = vector.load %arg11[%c7_240, %c0_241, %c0_242] : memref<8x1x8xf32, #tpu.memory_space<vmem>>, vector<1x1x8xf32>
    %382 = vector.shape_cast %381 : vector<1x1x8xf32> to vector<1x8xf32>
    %383 = vector.broadcast %382 : vector<1x8xf32> to vector<8x8xf32>
    %384 = arith.addf %380, %383 : vector<8x8xf32>
    %c7_243 = arith.constant 7 : index
    %c0_244 = arith.constant 0 : index
    %c0_245 = arith.constant 0 : index
    %385 = vector.load %arg12[%c7_243, %c0_244, %c0_245] : memref<8x64x8xbf16, #tpu.memory_space<vmem>>, vector<1x64x8xbf16>
    %386 = vector.shape_cast %385 : vector<1x64x8xbf16> to vector<64x8xbf16>
    %cst_246 = arith.constant dense<0.000000e+00> : vector<8x8xf32>
    %387 = tpu.matmul %59, %386, %cst_246 {dimension_numbers = #tpu.dot_dimension_numbers<[1], [0], [0], [1], [0, 0, 1, 1], [], []>} : vector<8x64xbf16>, vector<64x8xbf16>, vector<8x8xf32> -> vector<8x8xf32>
    %c7_247 = arith.constant 7 : index
    %c0_248 = arith.constant 0 : index
    %c0_249 = arith.constant 0 : index
    %388 = vector.load %arg13[%c7_247, %c0_248, %c0_249] : memref<8x1x8xf32, #tpu.memory_space<vmem>>, vector<1x1x8xf32>
    %389 = vector.shape_cast %388 : vector<1x1x8xf32> to vector<1x8xf32>
    %390 = vector.broadcast %389 : vector<1x8xf32> to vector<8x8xf32>
    %391 = arith.addf %387, %390 : vector<8x8xf32>
    %392 = arith.truncf %377 : vector<16x8xf32> to vector<16x8xbf16>
    %393 = arith.truncf %384 : vector<8x8xf32> to vector<8x8xbf16>
    %cst_250 = arith.constant dense<0.000000e+00> : vector<16x8xf32>
    %394 = tpu.matmul %392, %393, %cst_250 {dimension_numbers = #tpu.dot_dimension_numbers<[1], [1], [0], [0], [0, 0, 1, 0], [], []>} : vector<16x8xbf16>, vector<8x8xbf16>, vector<16x8xf32> -> vector<16x8xf32>
    %cst_251 = arith.constant dense<0xFF800000> : vector<16xf32>
    %395 = vector.multi_reduction <maximumf>, %394, %cst_251 [1] : vector<16x8xf32> to vector<16xf32>
    %396 = vector.shape_cast %395 : vector<16xf32> to vector<16x1xf32>
    %397 = vector.broadcast %396 : vector<16x1xf32> to vector<16x8xf32>
    %398 = arith.subf %394, %397 : vector<16x8xf32>
    %399 = math.exp %398 : vector<16x8xf32>
    %cst_252 = arith.constant dense<0.000000e+00> : vector<16xf32>
    %400 = vector.multi_reduction <add>, %399, %cst_252 [1] : vector<16x8xf32> to vector<16xf32>
    %401 = vector.shape_cast %400 : vector<16xf32> to vector<16x1xf32>
    %402 = tpu.reciprocal %401 {approx = true} : vector<16x1xf32> -> vector<16x1xf32>
    %403 = vector.broadcast %402 : vector<16x1xf32> to vector<16x8xf32>
    %404 = arith.mulf %399, %403 : vector<16x8xf32>
    %405 = arith.truncf %404 : vector<16x8xf32> to vector<16x8xbf16>
    %406 = arith.truncf %391 : vector<8x8xf32> to vector<8x8xbf16>
    %cst_253 = arith.constant dense<0.000000e+00> : vector<16x8xf32>
    %407 = tpu.matmul %405, %406, %cst_253 {dimension_numbers = #tpu.dot_dimension_numbers<[1], [0], [0], [1], [0, 0, 1, 1], [], []>} : vector<16x8xbf16>, vector<8x8xbf16>, vector<16x8xf32> -> vector<16x8xf32>
    %408 = arith.truncf %407 : vector<16x8xf32> to vector<16x8xbf16>
    %c7_254 = arith.constant 7 : index
    %c0_255 = arith.constant 0 : index
    %c0_256 = arith.constant 0 : index
    %409 = vector.load %arg14[%c7_254, %c0_255, %c0_256] : memref<8x8x64xbf16, #tpu.memory_space<vmem>>, vector<1x8x64xbf16>
    %410 = vector.shape_cast %409 : vector<1x8x64xbf16> to vector<8x64xbf16>
    %cst_257 = arith.constant dense<0.000000e+00> : vector<16x64xf32>
    %411 = tpu.matmul %408, %410, %cst_257 {dimension_numbers = #tpu.dot_dimension_numbers<[1], [0], [0], [1], [0, 0, 1, 1], [], []>} : vector<16x8xbf16>, vector<8x64xbf16>, vector<16x64xf32> -> vector<16x64xf32>
    %412 = arith.addf %368, %411 : vector<16x64xf32>
    %413 = arith.addf %5, %412 : vector<16x64xf32>
    %c0_258 = arith.constant 0 : index
    %c0_259 = arith.constant 0 : index
    %414 = vector.load %arg15[%c0_258, %c0_259] : memref<1x64xf32, #tpu.memory_space<vmem>>, vector<1x64xf32>
    %415 = vector.broadcast %414 : vector<1x64xf32> to vector<16x64xf32>
    %416 = arith.addf %413, %415 : vector<16x64xf32>
    %c0_260 = arith.constant 0 : index
    %c0_261 = arith.constant 0 : index
    %417 = vector.load %arg16[%c0_260, %c0_261] : memref<1x64xf32, #tpu.memory_space<vmem>>, vector<1x64xf32>
    %c0_262 = arith.constant 0 : index
    %c0_263 = arith.constant 0 : index
    %418 = vector.load %arg17[%c0_262, %c0_263] : memref<1x64xf32, #tpu.memory_space<vmem>>, vector<1x64xf32>
    %cst_264 = arith.constant dense<0.000000e+00> : vector<16xf32>
    %419 = vector.multi_reduction <add>, %416, %cst_264 [1] : vector<16x64xf32> to vector<16xf32>
    %420 = vector.shape_cast %419 : vector<16xf32> to vector<16x1xf32>
    %cst_265 = arith.constant 6.400000e+01 : f32
    %421 = vector.broadcast %cst_265 : f32 to vector<16x1xf32>
    %422 = arith.divf %420, %421 : vector<16x1xf32>
    %423 = vector.broadcast %422 : vector<16x1xf32> to vector<16x64xf32>
    %424 = arith.subf %416, %423 : vector<16x64xf32>
    %425 = arith.mulf %424, %424 : vector<16x64xf32>
    %cst_266 = arith.constant dense<0.000000e+00> : vector<16xf32>
    %426 = vector.multi_reduction <add>, %425, %cst_266 [1] : vector<16x64xf32> to vector<16xf32>
    %427 = vector.shape_cast %426 : vector<16xf32> to vector<16x1xf32>
    %cst_267 = arith.constant 6.400000e+01 : f32
    %428 = vector.broadcast %cst_267 : f32 to vector<16x1xf32>
    %429 = arith.divf %427, %428 : vector<16x1xf32>
    %430 = vector.broadcast %422 : vector<16x1xf32> to vector<16x64xf32>
    %431 = arith.subf %416, %430 : vector<16x64xf32>
    %cst_268 = arith.constant 9.99999974E-6 : f32
    %432 = vector.broadcast %cst_268 : f32 to vector<16x1xf32>
    %433 = arith.addf %429, %432 : vector<16x1xf32>
    %434 = math.rsqrt %433 : vector<16x1xf32>
    %435 = vector.broadcast %434 : vector<16x1xf32> to vector<16x64xf32>
    %436 = arith.mulf %431, %435 : vector<16x64xf32>
    %437 = vector.broadcast %417 : vector<1x64xf32> to vector<16x64xf32>
    %438 = arith.mulf %436, %437 : vector<16x64xf32>
    %439 = vector.broadcast %418 : vector<1x64xf32> to vector<16x64xf32>
    %440 = arith.addf %438, %439 : vector<16x64xf32>
    %441 = arith.truncf %440 : vector<16x64xf32> to vector<16x64xbf16>
    %c0_269 = arith.constant 0 : index
    %c0_270 = arith.constant 0 : index
    %442 = vector.load %arg18[%c0_269, %c0_270] : memref<64x256xbf16, #tpu.memory_space<vmem>>, vector<64x256xbf16>
    %cst_271 = arith.constant dense<0.000000e+00> : vector<16x256xf32>
    %443 = tpu.matmul %441, %442, %cst_271 {dimension_numbers = #tpu.dot_dimension_numbers<[1], [0], [0], [1], [0, 0, 1, 1], [], []>} : vector<16x64xbf16>, vector<64x256xbf16>, vector<16x256xf32> -> vector<16x256xf32>
    %c0_272 = arith.constant 0 : index
    %c0_273 = arith.constant 0 : index
    %444 = vector.load %arg19[%c0_272, %c0_273] : memref<1x256xf32, #tpu.memory_space<vmem>>, vector<1x256xf32>
    %445 = vector.broadcast %444 : vector<1x256xf32> to vector<16x256xf32>
    %446 = arith.addf %443, %445 : vector<16x256xf32>
    %cst_274 = arith.constant 0.000000e+00 : f32
    %447 = vector.broadcast %cst_274 : f32 to vector<16x256xf32>
    %448 = arith.maximumf %446, %447 : vector<16x256xf32>
    %449 = arith.truncf %448 : vector<16x256xf32> to vector<16x256xbf16>
    %c0_275 = arith.constant 0 : index
    %c0_276 = arith.constant 0 : index
    %450 = vector.load %arg20[%c0_275, %c0_276] : memref<256x64xbf16, #tpu.memory_space<vmem>>, vector<256x64xbf16>
    %cst_277 = arith.constant dense<0.000000e+00> : vector<16x64xf32>
    %451 = tpu.matmul %449, %450, %cst_277 {dimension_numbers = #tpu.dot_dimension_numbers<[1], [0], [0], [1], [0, 0, 1, 1], [], []>} : vector<16x256xbf16>, vector<256x64xbf16>, vector<16x64xf32> -> vector<16x64xf32>
    %c0_278 = arith.constant 0 : index
    %c0_279 = arith.constant 0 : index
    %452 = vector.load %arg21[%c0_278, %c0_279] : memref<1x64xf32, #tpu.memory_space<vmem>>, vector<1x64xf32>
    %453 = vector.broadcast %452 : vector<1x64xf32> to vector<16x64xf32>
    %454 = arith.addf %451, %453 : vector<16x64xf32>
    %455 = arith.addf %416, %454 : vector<16x64xf32>
    %c0_280 = arith.constant 0 : index
    %c0_281 = arith.constant 0 : index
    %456 = vector.load %arg22[%c0_280, %c0_281] : memref<1x64xf32, #tpu.memory_space<vmem>>, vector<1x64xf32>
    %c0_282 = arith.constant 0 : index
    %c0_283 = arith.constant 0 : index
    %457 = vector.load %arg23[%c0_282, %c0_283] : memref<1x64xf32, #tpu.memory_space<vmem>>, vector<1x64xf32>
    %cst_284 = arith.constant dense<0.000000e+00> : vector<16xf32>
    %458 = vector.multi_reduction <add>, %455, %cst_284 [1] : vector<16x64xf32> to vector<16xf32>
    %459 = vector.shape_cast %458 : vector<16xf32> to vector<16x1xf32>
    %cst_285 = arith.constant 6.400000e+01 : f32
    %460 = vector.broadcast %cst_285 : f32 to vector<16x1xf32>
    %461 = arith.divf %459, %460 : vector<16x1xf32>
    %462 = vector.broadcast %461 : vector<16x1xf32> to vector<16x64xf32>
    %463 = arith.subf %455, %462 : vector<16x64xf32>
    %464 = arith.mulf %463, %463 : vector<16x64xf32>
    %cst_286 = arith.constant dense<0.000000e+00> : vector<16xf32>
    %465 = vector.multi_reduction <add>, %464, %cst_286 [1] : vector<16x64xf32> to vector<16xf32>
    %466 = vector.shape_cast %465 : vector<16xf32> to vector<16x1xf32>
    %cst_287 = arith.constant 6.400000e+01 : f32
    %467 = vector.broadcast %cst_287 : f32 to vector<16x1xf32>
    %468 = arith.divf %466, %467 : vector<16x1xf32>
    %469 = vector.broadcast %461 : vector<16x1xf32> to vector<16x64xf32>
    %470 = arith.subf %455, %469 : vector<16x64xf32>
    %cst_288 = arith.constant 9.99999974E-6 : f32
    %471 = vector.broadcast %cst_288 : f32 to vector<16x1xf32>
    %472 = arith.addf %468, %471 : vector<16x1xf32>
    %473 = math.rsqrt %472 : vector<16x1xf32>
    %474 = vector.broadcast %473 : vector<16x1xf32> to vector<16x64xf32>
    %475 = arith.mulf %470, %474 : vector<16x64xf32>
    %476 = vector.broadcast %456 : vector<1x64xf32> to vector<16x64xf32>
    %477 = arith.mulf %475, %476 : vector<16x64xf32>
    %478 = vector.broadcast %457 : vector<1x64xf32> to vector<16x64xf32>
    %479 = arith.addf %477, %478 : vector<16x64xf32>
    %cst_289 = arith.constant dense<0.000000e+00> : vector<64xf32>
    %480 = vector.multi_reduction <add>, %479, %cst_289 [0] : vector<16x64xf32> to vector<64xf32>
    %481 = vector.shape_cast %480 : vector<64xf32> to vector<1x64xf32>
    %c0_290 = arith.constant 0 : index
    %c0_291 = arith.constant 0 : index
    %c0_292 = arith.constant 0 : index
    %482 = vector.load %arg24[%c0_290, %c0_291, %c0_292] : memref<1x1x64xf32, #tpu.memory_space<vmem>>, vector<1x1x64xf32>
    %483 = vector.shape_cast %482 : vector<1x1x64xf32> to vector<1x64xf32>
    %484 = vector.shape_cast %481 : vector<1x64xf32> to vector<1x1x64xf32>
    tpu.vector_store %arg24[%c0_290, %c0_291, %c0_292], %484 {strides = array<i32>} : memref<1x1x64xf32, #tpu.memory_space<vmem>>, vector<1x1x64xf32>,
    return
  }
  func.func @transform_0(%arg0: i32, %arg1: i32) -> (i32, i32, i32) {
    %c0_i32 = arith.constant 0 : i32
    %c0_i32_0 = arith.constant 0 : i32
    return %arg0, %arg1, %c0_i32 : i32, i32, i32
  }
  func.func @transform_1(%arg0: i32, %arg1: i32) -> (i32, i32, i32) {
    %c0_i32 = arith.constant 0 : i32
    %c0_i32_0 = arith.constant 0 : i32
    %c0_i32_1 = arith.constant 0 : i32
    return %arg0, %c0_i32, %c0_i32_0 : i32, i32, i32
  }
  func.func @transform_2(%arg0: i32, %arg1: i32) -> (i32, i32) {
    %c0_i32 = arith.constant 0 : i32
    %c0_i32_0 = arith.constant 0 : i32
    return %arg1, %c0_i32 : i32, i32
  }
  func.func @transform_3(%arg0: i32, %arg1: i32) -> (i32, i32) {
    %c0_i32 = arith.constant 0 : i32
    %c0_i32_0 = arith.constant 0 : i32
    %c0_i32_1 = arith.constant 0 : i32
    return %c0_i32, %c0_i32_0 : i32, i32
  }
  func.func @transform_4(%arg0: i32, %arg1: i32) -> (i32, i32) {
    %c0_i32 = arith.constant 0 : i32
    %c0_i32_0 = arith.constant 0 : i32
    %c0_i32_1 = arith.constant 0 : i32
    return %c0_i32, %c0_i32_0 : i32, i32
  }
  func.func @transform_5(%arg0: i32, %arg1: i32) -> (i32, i32) {
    %c0_i32 = arith.constant 0 : i32
    %c0_i32_0 = arith.constant 0 : i32
    %c0_i32_1 = arith.constant 0 : i32
    return %c0_i32, %c0_i32_0 : i32, i32
  }
  func.func @transform_6(%arg0: i32, %arg1: i32) -> (i32, i32, i32) {
    %c0_i32 = arith.constant 0 : i32
    %c0_i32_0 = arith.constant 0 : i32
    %c0_i32_1 = arith.constant 0 : i32
    %c0_i32_2 = arith.constant 0 : i32
    return %c0_i32, %c0_i32_0, %c0_i32_1 : i32, i32, i32
  }
  func.func @transform_7(%arg0: i32, %arg1: i32) -> (i32, i32, i32) {
    %c0_i32 = arith.constant 0 : i32
    %c0_i32_0 = arith.constant 0 : i32
    %c0_i32_1 = arith.constant 0 : i32
    %c0_i32_2 = arith.constant 0 : i32
    return %c0_i32, %c0_i32_0, %c0_i32_1 : i32, i32, i32
  }
  func.func @transform_8(%arg0: i32, %arg1: i32) -> (i32, i32, i32) {
    %c0_i32 = arith.constant 0 : i32
    %c0_i32_0 = arith.constant 0 : i32
    %c0_i32_1 = arith.constant 0 : i32
    %c0_i32_2 = arith.constant 0 : i32
    return %c0_i32, %c0_i32_0, %c0_i32_1 : i32, i32, i32
  }
  func.func @transform_9(%arg0: i32, %arg1: i32) -> (i32, i32, i32) {
    %c0_i32 = arith.constant 0 : i32
    %c0_i32_0 = arith.constant 0 : i32
    %c0_i32_1 = arith.constant 0 : i32
    %c0_i32_2 = arith.constant 0 : i32
    return %c0_i32, %c0_i32_0, %c0_i32_1 : i32, i32, i32
  }
  func.func @transform_10(%arg0: i32, %arg1: i32) -> (i32, i32, i32) {
    %c0_i32 = arith.constant 0 : i32
    %c0_i32_0 = arith.constant 0 : i32
    %c0_i32_1 = arith.constant 0 : i32
    %c0_i32_2 = arith.constant 0 : i32
    return %c0_i32, %c0_i32_0, %c0_i32_1 : i32, i32, i32
  }
  func.func @transform_11(%arg0: i32, %arg1: i32) -> (i32, i32, i32) {
    %c0_i32 = arith.constant 0 : i32
    %c0_i32_0 = arith.constant 0 : i32
    %c0_i32_1 = arith.constant 0 : i32
    %c0_i32_2 = arith.constant 0 : i32
    return %c0_i32, %c0_i32_0, %c0_i32_1 : i32, i32, i32
  }
  func.func @transform_12(%arg0: i32, %arg1: i32) -> (i32, i32, i32) {
    %c0_i32 = arith.constant 0 : i32
    %c0_i32_0 = arith.constant 0 : i32
    %c0_i32_1 = arith.constant 0 : i32
    %c0_i32_2 = arith.constant 0 : i32
    return %c0_i32, %c0_i32_0, %c0_i32_1 : i32, i32, i32
  }
  func.func @transform_13(%arg0: i32, %arg1: i32) -> (i32, i32) {
    %c0_i32 = arith.constant 0 : i32
    %c0_i32_0 = arith.constant 0 : i32
    %c0_i32_1 = arith.constant 0 : i32
    return %c0_i32, %c0_i32_0 : i32, i32
  }
  func.func @transform_14(%arg0: i32, %arg1: i32) -> (i32, i32) {
    %c0_i32 = arith.constant 0 : i32
    %c0_i32_0 = arith.constant 0 : i32
    %c0_i32_1 = arith.constant 0 : i32
    return %c0_i32, %c0_i32_0 : i32, i32
  }
  func.func @transform_15(%arg0: i32, %arg1: i32) -> (i32, i32) {
    %c0_i32 = arith.constant 0 : i32
    %c0_i32_0 = arith.constant 0 : i32
    %c0_i32_1 = arith.constant 0 : i32
    return %c0_i32, %c0_i32_0 : i32, i32
  }
  func.func @transform_16(%arg0: i32, %arg1: i32) -> (i32, i32) {
    %c0_i32 = arith.constant 0 : i32
    %c0_i32_0 = arith.constant 0 : i32
    %c0_i32_1 = arith.constant 0 : i32
    return %c0_i32, %c0_i32_0 : i32, i32
  }
  func.func @transform_17(%arg0: i32, %arg1: i32) -> (i32, i32) {
    %c0_i32 = arith.constant 0 : i32
    %c0_i32_0 = arith.constant 0 : i32
    %c0_i32_1 = arith.constant 0 : i32
    return %c0_i32, %c0_i32_0 : i32, i32
  }
  func.func @transform_18(%arg0: i32, %arg1: i32) -> (i32, i32) {
    %c0_i32 = arith.constant 0 : i32
    %c0_i32_0 = arith.constant 0 : i32
    %c0_i32_1 = arith.constant 0 : i32
    return %c0_i32, %c0_i32_0 : i32, i32
  }
  func.func @transform_19(%arg0: i32, %arg1: i32) -> (i32, i32) {
    %c0_i32 = arith.constant 0 : i32
    %c0_i32_0 = arith.constant 0 : i32
    %c0_i32_1 = arith.constant 0 : i32
    return %c0_i32, %c0_i32_0 : i32, i32
  }
  func.func @transform_20(%arg0: i32, %arg1: i32) -> (i32, i32) {
    %c0_i32 = arith.constant 0 : i32
    %c0_i32_0 = arith.constant 0 : i32
    %c0_i32_1 = arith.constant 0 : i32
    return %c0_i32, %c0_i32_0 : i32, i32
  }
  func.func @transform_21(%arg0: i32, %arg1: i32) -> (i32, i32) {
    %c0_i32 = arith.constant 0 : i32
    %c0_i32_0 = arith.constant 0 : i32
    %c0_i32_1 = arith.constant 0 : i32
    return %c0_i32, %c0_i32_0 : i32, i32
  }
  func.func @transform_22(%arg0: i32, %arg1: i32) -> (i32, i32, i32) {
    %c0_i32 = arith.constant 0 : i32
    %c0_i32_0 = arith.constant 0 : i32
    return %arg0, %arg1, %c0_i32 : i32, i32, i32
  }
}

</mosaic_0001>

<bundles_post_ra>
// kernel: model_forward.5
= control target key start
LH: loop header
LB: loop body
LE: loop exit
PB: predicated region body
PF: predicated region fallthrough
CT: control target
= control target key end

     0   :  { %v826_v3 = vmov 0.0   ;;  %vm92_vm0 = vcmask 523264   ;;  %s1307_s3 = inlined_call_operand.vmem [shape: f32[64,512], index: 3, kind: input, shape index: {}]   ;;  %s1308_s1 = inlined_call_operand.vmem [shape: f32[2,64], index: 1, kind: input, shape index: {}]   ;;  %s1309_s2 = inlined_call_operand.vmem [shape: f32[64,512], index: 2, kind: input, shape index: {}]   ;;  %s1310_s0 = inlined_call_operand.vmem [shape: f32[2,64], index: 0, kind: input, shape index: {}]   ;;  %s1311_s5 = inlined_call_operand.vmem [shape: f32[512,128], index: 5, kind: input, shape index: {}]   ;;  %s1312_s4 = inlined_call_operand.vmem [shape: f32[1,512], index: 4, kind: input, shape index: {}]   ;;  %s1313_s6 = inlined_call_operand.vmem [shape: f32[1,128], index: 6, kind: input, shape index: {}]   ;;  %s1314_s7 = inlined_call_operand.vmem [shape: f32[2,128], index: 7, kind: output, shape index: {}]  }
   0x1   :  { %v89_v0 = vld [vmem:[%s1307_s3 + $0xe8] sm:$0xff]  ;;  %v91_v1 = vld [vmem:[%s1307_s3 + $0xf8] sm:$0xff]  ;;  %v88_v2 = vld [vmem:[%s1307_s3 + $0xe0] sm:$0xff]  ;;  %160 = vmatprep.mubr.f32.mxu0 %v826_v3  ;;  %231 = vmatprep.mubr.f32.mxu1 %v826_v3 }
   0x2   :  { %112 = vmatprep.subr.mxu0 %v89_v0  ;;  %183 = vmatprep.subr.mxu1 %v91_v1  ;;  %v90_v4 = vld [vmem:[%s1307_s3 + $0xf0] sm:$0xff]  ;;  %v85_v5 = vld [vmem:[%s1307_s3 + $0xc8] sm:$0xff]  ;;  %v87_v6 = vld [vmem:[%s1307_s3 + $0xd8] sm:$0xff] }
   0x3   :  { %113 = vmatpush1.msra.mxu0 %v88_v2  ;;  %184 = vmatpush1.msra.mxu1 %v90_v4  ;;  %v84_v7 = vld [vmem:[%s1307_s3 + $0xc0] sm:$0xff]  ;;  %v86_v8 = vld [vmem:[%s1307_s3 + $0xd0] sm:$0xff]  ;;  %v81_v9 = vld [vmem:[%s1307_s3 + $0xa8] sm:$0xff] }
   0x4   :  { %114 = vmatprep.subr.mxu0 %v85_v5  ;;  %185 = vmatprep.subr.mxu1 %v87_v6  ;;  %v83_v10 = vld [vmem:[%s1307_s3 + $0xb8] sm:$0xff]  ;;  %v80_v11 = vld [vmem:[%s1307_s3 + $0xa0] sm:$0xff]  ;;  %v82_v12 = vld [vmem:[%s1307_s3 + $0xb0] sm:$0xff] }
   0x5   :  { %115 = vmatpush1.msra.mxu0 %v84_v7  ;;  %186 = vmatpush1.msra.mxu1 %v86_v8  ;;  %v77_v13 = vld [vmem:[%s1307_s3 + $0x88] sm:$0xff]  ;;  %v79_v14 = vld [vmem:[%s1307_s3 + $0x98] sm:$0xff]  ;;  %v76_v15 = vld [vmem:[%s1307_s3 + $0x80] sm:$0xff] }
   0x6   :  { %116 = vmatprep.subr.mxu0 %v81_v9  ;;  %187 = vmatprep.subr.mxu1 %v83_v10  ;;  %v78_v16 = vld [vmem:[%s1307_s3 + $0x90] sm:$0xff]  ;;  %v73_v17 = vld [vmem:[%s1307_s3 + $0x68] sm:$0xff]  ;;  %v75_v18 = vld [vmem:[%s1307_s3 + $0x78] sm:$0xff] }
   0x7   :  { %117 = vmatpush1.msra.mxu0 %v80_v11  ;;  %188 = vmatpush1.msra.mxu1 %v82_v12  ;;  %v72_v19 = vld [vmem:[%s1307_s3 + $0x60] sm:$0xff]  ;;  %v74_v20 = vld [vmem:[%s1307_s3 + $0x70] sm:$0xff]  ;;  %v69_v21 = vld [vmem:[%s1307_s3 + $0x48] sm:$0xff] }
   0x8   :  { %118 = vmatprep.subr.mxu0 %v77_v13  ;;  %189 = vmatprep.subr.mxu1 %v79_v14  ;;  %v71_v22 = vld [vmem:[%s1307_s3 + $0x58] sm:$0xff]  ;;  %v68_v23 = vld [vmem:[%s1307_s3 + $0x40] sm:$0xff]  ;;  %v70_v24 = vld [vmem:[%s1307_s3 + $0x50] sm:$0xff] }
   0x9   :  { %119 = vmatpush1.msra.mxu0 %v76_v15  ;;  %190 = vmatpush1.msra.mxu1 %v78_v16  ;;  %v65_v25 = vld [vmem:[%s1307_s3 + $0x28] sm:$0xff]  ;;  %v67_v26 = vld [vmem:[%s1307_s3 + $0x38] sm:$0xff]  ;;  %v64_v27 = vld [vmem:[%s1307_s3 + $0x20] sm:$0xff] }
   0xa   :  { %120 = vmatprep.subr.mxu0 %v73_v17  ;;  %191 = vmatprep.subr.mxu1 %v75_v18  ;;  %v66_v28 = vld [vmem:[%s1307_s3 + $0x30] sm:$0xff]  ;;  %v61_v29 = vld [vmem:[%s1307_s3 + $0x8] sm:$0xff]  ;;  %v63_v30 = vld [vmem:[%s1307_s3 + $0x18] sm:$0xff] }
   0xb   :  { %121 = vmatpush1.msra.mxu0 %v72_v19  ;;  %192 = vmatpush1.msra.mxu1 %v74_v20  ;;  %v60_v31 = vld [vmem:[%s1307_s3] sm:$0xff]  ;;  %v62_v32 = vld [vmem:[%s1307_s3 + $0x10] sm:$0xff]  ;;  %v56_v34 = vld [vmem:[%s1309_s2 + $0xe8] sm:$0xff] }
   0xc   :  { %122 = vmatprep.subr.mxu0 %v69_v21  ;;  %193 = vmatprep.subr.mxu1 %v71_v22  ;;  %v59_v33 = vld [vmem:[%s1308_s1] sm:$0x3]  ;;  %v58_v35 = vld [vmem:[%s1309_s2 + $0xf8] sm:$0xff]  ;;  %v57_v37 = vld [vmem:[%s1309_s2 + $0xf0] sm:$0xff] }
   0xd   :  { %123 = vmatpush1.msra.mxu0 %v68_v23  ;;  %194 = vmatpush1.msra.mxu1 %v70_v24  ;;  %v55_v36 = vld [vmem:[%s1309_s2 + $0xe0] sm:$0xff]  ;;  %v52_v38 = vld [vmem:[%s1309_s2 + $0xc8] sm:$0xff]  ;;  %v54_v39 = vld [vmem:[%s1309_s2 + $0xd8] sm:$0xff] }
   0xe   :  { %124 = vmatprep.subr.mxu0 %v65_v25  ;;  %195 = vmatprep.subr.mxu1 %v67_v26  ;;  %v51_v40 = vld [vmem:[%s1309_s2 + $0xc0] sm:$0xff]  ;;  %v53_v41 = vld [vmem:[%s1309_s2 + $0xd0] sm:$0xff]  ;;  %v48_v42 = vld [vmem:[%s1309_s2 + $0xa8] sm:$0xff] }
   0xf   :  { %125 = vmatpush1.msra.mxu0 %v64_v27  ;;  %196 = vmatpush1.msra.mxu1 %v66_v28  ;;  %v50_v43 = vld [vmem:[%s1309_s2 + $0xb8] sm:$0xff]  ;;  %v47_v44 = vld [vmem:[%s1309_s2 + $0xa0] sm:$0xff]  ;;  %v49_v45 = vld [vmem:[%s1309_s2 + $0xb0] sm:$0xff] }
  0x10   :  { %126 = vmatprep.subr.mxu0 %v61_v29  ;;  %197 = vmatprep.subr.mxu1 %v63_v30  ;;  %v44_v46 = vld [vmem:[%s1309_s2 + $0x88] sm:$0xff]  ;;  %v46_v47 = vld [vmem:[%s1309_s2 + $0x98] sm:$0xff]  ;;  %v43_v48 = vld [vmem:[%s1309_s2 + $0x80] sm:$0xff] }
  0x11   :  { %127 = vmatpush1.msra.mxu0 %v60_v31  ;;  %198 = vmatpush1.msra.mxu1 %v62_v32  ;;  %v45_v49 = vld [vmem:[%s1309_s2 + $0x90] sm:$0xff]  ;;  %v40_v50 = vld [vmem:[%s1309_s2 + $0x68] sm:$0xff]  ;;  %v42_v51 = vld [vmem:[%s1309_s2 + $0x78] sm:$0xff] }
  0x12   :  { %733 = vmatmul.mubr.msk.f32.vlgmr.msra.gmra.mxu0 %vm92_vm0, %v59_v33  ;;  %257 = vmatprep.subr.mxu0 %v56_v34  ;;  %v39_v52 = vld [vmem:[%s1309_s2 + $0x60] sm:$0xff]  ;;  %v41_v53 = vld [vmem:[%s1309_s2 + $0x70] sm:$0xff]  ;;  %v36_v54 = vld [vmem:[%s1309_s2 + $0x48] sm:$0xff] }
  0x13   :  { %328 = vmatprep.subr.mxu1 %v58_v35  ;;  %734 = vmatmul.mubr.msk.f32.vlgmr.msra.gmra.mxu1 %vm92_vm0, %v59_v33  ;;  %v38_v55 = vld [vmem:[%s1309_s2 + $0x58] sm:$0xff]  ;;  %v35_v56 = vld [vmem:[%s1309_s2 + $0x40] sm:$0xff]  ;;  %v37_v57 = vld [vmem:[%s1309_s2 + $0x50] sm:$0xff] }
  0x14   :  { %258 = vmatpush1.msra.mxu0 %v55_v36  ;;  %329 = vmatpush1.msra.mxu1 %v57_v37  ;;  %v32_v58 = vld [vmem:[%s1309_s2 + $0x28] sm:$0xff]  ;;  %v34_v59 = vld [vmem:[%s1309_s2 + $0x38] sm:$0xff]  ;;  %v31_v60 = vld [vmem:[%s1309_s2 + $0x20] sm:$0xff] }
  0x15   :  { %259 = vmatprep.subr.mxu0 %v52_v38  ;;  %330 = vmatprep.subr.mxu1 %v54_v39  ;;  %v33_v61 = vld [vmem:[%s1309_s2 + $0x30] sm:$0xff]  ;;  %v28_v62 = vld [vmem:[%s1309_s2 + $0x8] sm:$0xff]  ;;  %v30_v63 = vld [vmem:[%s1309_s2 + $0x18] sm:$0xff] }
  0x16   :  { %260 = vmatpush1.msra.mxu0 %v51_v40  ;;  %331 = vmatpush1.msra.mxu1 %v53_v41  ;;  %v27_v0 = vld [vmem:[%s1309_s2] sm:$0xff]  ;;  %v29_v1 = vld [vmem:[%s1309_s2 + $0x10] sm:$0xff]  ;;  %v548_v4 = vld [vmem:[%s1311_s5 + $0xf8] sm:$0xff] }
  0x17   :  { %261 = vmatprep.subr.mxu0 %v48_v42  ;;  %332 = vmatprep.subr.mxu1 %v50_v43  ;;  %v26_v2 = vld [vmem:[%s1310_s0] sm:$0x3]  ;;  %v580_v5 = vld [vmem:[%s1311_s5 + $0x1f8] sm:$0xff]  ;;  %v547_v7 = vld [vmem:[%s1311_s5 + $0xf0] sm:$0xff] }
  0x18   :  { %262 = vmatpush1.msra.mxu0 %v47_v44  ;;  %333 = vmatpush1.msra.mxu1 %v49_v45  ;;  %v532_v6 = vld [vmem:[%s1311_s5 + $0x78] sm:$0xff]  ;;  %v579_v8 = vld [vmem:[%s1311_s5 + $0x1f0] sm:$0xff]  ;;  %v546_v11 = vld [vmem:[%s1311_s5 + $0xe8] sm:$0xff] }
  0x19   :  { %263 = vmatprep.subr.mxu0 %v44_v46  ;;  %334 = vmatprep.subr.mxu1 %v46_v47  ;;  %v531_v9 = vld [vmem:[%s1311_s5 + $0x70] sm:$0xff]  ;;  %v578_v12 = vld [vmem:[%s1311_s5 + $0x1e8] sm:$0xff]  ;;  %v545_v15 = vld [vmem:[%s1311_s5 + $0xe0] sm:$0xff] }
  0x1a   :  { %264 = vmatpush1.msra.mxu0 %v43_v48  ;;  %335 = vmatpush1.msra.mxu1 %v45_v49  ;;  %v563_v10 = vld [vmem:[%s1311_s5 + $0x170] sm:$0xff]  ;;  %v530_v13 = vld [vmem:[%s1311_s5 + $0x68] sm:$0xff]  ;;  %v577_v16 = vld [vmem:[%s1311_s5 + $0x1e0] sm:$0xff] }
  0x1b   :  { %265 = vmatprep.subr.mxu0 %v40_v50  ;;  %336 = vmatprep.subr.mxu1 %v42_v51  ;;  %v562_v14 = vld [vmem:[%s1311_s5 + $0x168] sm:$0xff]  ;;  %v529_v17 = vld [vmem:[%s1311_s5 + $0x60] sm:$0xff]  ;;  %v544_v19 = vld [vmem:[%s1311_s5 + $0xd8] sm:$0xff] }
  0x1c   :  { %266 = vmatpush1.msra.mxu0 %v39_v52  ;;  %337 = vmatpush1.msra.mxu1 %v41_v53  ;;  %v561_v18 = vld [vmem:[%s1311_s5 + $0x160] sm:$0xff]  ;;  %v576_v20 = vld [vmem:[%s1311_s5 + $0x1d8] sm:$0xff]  ;;  %v543_v23 = vld [vmem:[%s1311_s5 + $0xd0] sm:$0xff] }
  0x1d   :  { %267 = vmatprep.subr.mxu0 %v36_v54  ;;  %338 = vmatprep.subr.mxu1 %v38_v55  ;;  %v528_v21 = vld [vmem:[%s1311_s5 + $0x58] sm:$0xff]  ;;  %v575_v24 = vld [vmem:[%s1311_s5 + $0x1d0] sm:$0xff]  ;;  %v542_v27 = vld [vmem:[%s1311_s5 + $0xc8] sm:$0xff] }
  0x1e   :  { %268 = vmatpush1.msra.mxu0 %v35_v56  ;;  %339 = vmatpush1.msra.mxu1 %v37_v57  ;;  %v560_v22 = vld [vmem:[%s1311_s5 + $0x158] sm:$0xff]  ;;  %v527_v25 = vld [vmem:[%s1311_s5 + $0x50] sm:$0xff]  ;;  %v574_v28 = vld [vmem:[%s1311_s5 + $0x1c8] sm:$0xff] }
  0x1f   :  { %269 = vmatprep.subr.mxu0 %v32_v58  ;;  %340 = vmatprep.subr.mxu1 %v34_v59  ;;  %v559_v26 = vld [vmem:[%s1311_s5 + $0x150] sm:$0xff]  ;;  %v526_v29 = vld [vmem:[%s1311_s5 + $0x48] sm:$0xff]  ;;  %v541_v31 = vld [vmem:[%s1311_s5 + $0xc0] sm:$0xff] }
  0x20   :  { %270 = vmatpush1.msra.mxu0 %v31_v60  ;;  %341 = vmatpush1.msra.mxu1 %v33_v61  ;;  %v558_v30 = vld [vmem:[%s1311_s5 + $0x148] sm:$0xff]  ;;  %v573_v32 = vld [vmem:[%s1311_s5 + $0x1c0] sm:$0xff]  ;;  %v540_v35 = vld [vmem:[%s1311_s5 + $0xb8] sm:$0xff] }
  0x21   :  { %271 = vmatprep.subr.mxu0 %v28_v62  ;;  %342 = vmatprep.subr.mxu1 %v30_v63  ;;  %v525_v33 = vld [vmem:[%s1311_s5 + $0x40] sm:$0xff]  ;;  %v572_v36 = vld [vmem:[%s1311_s5 + $0x1b8] sm:$0xff]  ;;  %v539_v39 = vld [vmem:[%s1311_s5 + $0xb0] sm:$0xff] }
  0x22   :  { %272 = vmatpush1.msra.mxu0 %v27_v0  ;;  %305 = vmatprep.mubr.f32.mxu0 %v826_v3  ;;  %v557_v34 = vld [vmem:[%s1311_s5 + $0x140] sm:$0xff]  ;;  %v524_v37 = vld [vmem:[%s1311_s5 + $0x38] sm:$0xff]  ;;  %v571_v40 = vld [vmem:[%s1311_s5 + $0x1b0] sm:$0xff] }
  0x23   :  { %343 = vmatpush1.msra.mxu1 %v29_v1  ;;  %376 = vmatprep.mubr.f32.mxu1 %v826_v3  ;;  %v564_v3 = vld [vmem:[%s1311_s5 + $0x178] sm:$0xff]  ;;  %v523_v41 = vld [vmem:[%s1311_s5 + $0x30] sm:$0xff]  ;;  %v538_v43 = vld [vmem:[%s1311_s5 + $0xa8] sm:$0xff] }
  0x24   :  { %735 = vmatmul.mubr.msk.f32.vlgmr.msra.gmra.mxu0 %vm92_vm0, %v26_v2  ;;  %736 = vmatmul.mubr.msk.f32.vlgmr.msra.gmra.mxu1 %vm92_vm0, %v26_v2  ;;  %v556_v38 = vld [vmem:[%s1311_s5 + $0x138] sm:$0xff]  ;;  %v555_v42 = vld [vmem:[%s1311_s5 + $0x130] sm:$0xff]  ;;  %v570_v44 = vld [vmem:[%s1311_s5 + $0x1a8] sm:$0xff] }
  0x25   :  { %738 = vmatprep.subr.mxu0 %v548_v4  ;;  %773 = vmatprep.subr.mxu1 %v580_v5  ;;  %v522_v45 = vld [vmem:[%s1311_s5 + $0x28] sm:$0xff]  ;;  %v537_v47 = vld [vmem:[%s1311_s5 + $0xa0] sm:$0xff]  ;;  %v536_v51 = vld [vmem:[%s1311_s5 + $0x98] sm:$0xff]  ;;  %v385_v4 = vlaneseq }
  0x26   :  { %739 = vmatpush3.msra.mxu0 %v532_v6  ;;  %774 = vmatpush3.msra.mxu1 %v564_v3  ;;  %v554_v46 = vld [vmem:[%s1311_s5 + $0x128] sm:$0xff]  ;;  %v569_v48 = vld [vmem:[%s1311_s5 + $0x1a0] sm:$0xff]  ;;  %v568_v52 = vld [vmem:[%s1311_s5 + $0x198] sm:$0xff] }
  0x27   :  { %740 = vmatprep.subr.mxu0 %v547_v7  ;;  %775 = vmatprep.subr.mxu1 %v579_v8  ;;  %v521_v49 = vld [vmem:[%s1311_s5 + $0x20] sm:$0xff]  ;;  %v520_v53 = vld [vmem:[%s1311_s5 + $0x18] sm:$0xff]  ;;  %v535_v55 = vld [vmem:[%s1311_s5 + $0x90] sm:$0xff]  ;;  %v386_v5 = vshrl.u32 %v385_v4, 7 }
  0x28   :  { %741 = vmatpush3.msra.mxu0 %v531_v9  ;;  %776 = vmatpush3.msra.mxu1 %v563_v10  ;;  %v553_v50 = vld [vmem:[%s1311_s5 + $0x120] sm:$0xff]  ;;  %v552_v54 = vld [vmem:[%s1311_s5 + $0x118] sm:$0xff]  ;;  %v567_v56 = vld [vmem:[%s1311_s5 + $0x190] sm:$0xff] }
  0x29   :  { %742 = vmatprep.subr.mxu0 %v546_v11  ;;  %777 = vmatprep.subr.mxu1 %v578_v12  ;;  %v519_v57 = vld [vmem:[%s1311_s5 + $0x10] sm:$0xff]  ;;  %v534_v59 = vld [vmem:[%s1311_s5 + $0x88] sm:$0xff]  ;;  %v533_v63 = vld [vmem:[%s1311_s5 + $0x80] sm:$0xff]  ;;  %v387_v7 = vsub.s32 0, %v386_v5  ;;  %v395_v8 = vsub.s32 2, %v386_v5  ;;  %v391_v12 = vsub.s32 1, %v386_v5 }
  0x2a   :  { %743 = vmatpush3.msra.mxu0 %v530_v13  ;;  %778 = vmatpush3.msra.mxu1 %v562_v14  ;;  %v551_v58 = vld [vmem:[%s1311_s5 + $0x110] sm:$0xff]  ;;  %v566_v60 = vld [vmem:[%s1311_s5 + $0x188] sm:$0xff]  ;;  %v565_v0 = vld [vmem:[%s1311_s5 + $0x180] sm:$0xff]  ;;  %v399_v13 = vsub.s32 3, %v386_v5 }
  0x2b   :  { %744 = vmatprep.subr.mxu0 %v545_v15  ;;  %779 = vmatprep.subr.mxu1 %v577_v16  ;;  %v518_v61 = vld [vmem:[%s1311_s5 + $0x8] sm:$0xff]  ;;  %v517_v1 = vld [vmem:[%s1311_s5] sm:$0xff] }
  0x2c   :  { %745 = vmatpush3.msra.mxu0 %v529_v17  ;;  %780 = vmatpush3.msra.mxu1 %v561_v18  ;;  %v550_v62 = vld [vmem:[%s1311_s5 + $0x108] sm:$0xff]  ;;  %v549_v2 = vld [vmem:[%s1311_s5 + $0x100] sm:$0xff] }
  0x2d   :  { %746 = vmatprep.subr.mxu0 %v544_v19  ;;  %781 = vmatprep.subr.mxu1 %v576_v20  ;;  %v383_v9 = vld [vmem:[%s1312_s4] sm:$0xf] }
  0x2e   :  { %747 = vmatpush3.msra.mxu0 %v528_v21  ;;  %782 = vmatpush3.msra.mxu1 %v560_v22  ;;  %v388_v14 = vrot.slane %v383_v9, %v387_v7  ;;  %v396_v15 = vrot.slane %v383_v9, %v395_v8  ;;  %v392_v21 = vrot.slane %v383_v9, %v391_v12 }
  0x2f   :  { %748 = vmatprep.subr.mxu0 %v543_v23  ;;  %783 = vmatprep.subr.mxu1 %v575_v24  ;;  %v400_v23 = vrot.slane %v383_v9, %v399_v13 }
  0x30   :  { %749 = vmatpush3.msra.mxu0 %v527_v25  ;;  %784 = vmatpush3.msra.mxu1 %v559_v26 }
  0x31   :  { %750 = vmatprep.subr.mxu0 %v542_v27  ;;  %785 = vmatprep.subr.mxu1 %v574_v28 }
  0x32   :  { %751 = vmatpush3.msra.mxu0 %v526_v29  ;;  %786 = vmatpush3.msra.mxu1 %v558_v30 }
  0x33   :  { %752 = vmatprep.subr.mxu0 %v541_v31  ;;  %787 = vmatprep.subr.mxu1 %v573_v32 }
  0x34   :  { %753 = vmatpush3.msra.mxu0 %v525_v33  ;;  %788 = vmatpush3.msra.mxu1 %v557_v34 }
  0x35   :  { %754 = vmatprep.subr.mxu0 %v540_v35  ;;  %789 = vmatprep.subr.mxu1 %v572_v36 }
  0x36   :  { %755 = vmatpush3.msra.mxu0 %v524_v37  ;;  %790 = vmatpush3.msra.mxu1 %v556_v38 }
  0x37   :  { %756 = vmatprep.subr.mxu0 %v539_v39  ;;  %791 = vmatprep.subr.mxu1 %v571_v40 }
  0x38   :  { %757 = vmatpush3.msra.mxu0 %v523_v41  ;;  %792 = vmatpush3.msra.mxu1 %v555_v42 }
  0x39   :  { %758 = vmatprep.subr.mxu0 %v538_v43  ;;  %793 = vmatprep.subr.mxu1 %v570_v44 }
  0x3a   :  { %759 = vmatpush3.msra.mxu0 %v522_v45  ;;  %794 = vmatpush3.msra.mxu1 %v554_v46 }
  0x3b   :  { %760 = vmatprep.subr.mxu0 %v537_v47  ;;  %795 = vmatprep.subr.mxu1 %v569_v48 }
  0x3c   :  { %761 = vmatpush3.msra.mxu0 %v521_v49  ;;  %796 = vmatpush3.msra.mxu1 %v553_v50 }
  0x3d   :  { %762 = vmatprep.subr.mxu0 %v536_v51  ;;  %797 = vmatprep.subr.mxu1 %v568_v52 }
  0x3e   :  { %763 = vmatpush3.msra.mxu0 %v520_v53  ;;  %798 = vmatpush3.msra.mxu1 %v552_v54 }
  0x3f   :  { %764 = vmatprep.subr.mxu0 %v535_v55  ;;  %799 = vmatprep.subr.mxu1 %v567_v56 }
  0x40   :  { %765 = vmatpush3.msra.mxu0 %v519_v57  ;;  %800 = vmatpush3.msra.mxu1 %v551_v58 }
  0x41   :  { %766 = vmatprep.subr.mxu0 %v534_v59  ;;  %801 = vmatprep.subr.mxu1 %v566_v60 }
  0x42   :  { %767 = vmatpush3.msra.mxu0 %v518_v61  ;;  %802 = vmatpush3.msra.mxu1 %v550_v62 }
  0x43   :  { %768 = vmatprep.subr.mxu0 %v533_v63  ;;  %803 = vmatprep.subr.mxu1 %v565_v0 }
  0x44   :  { %769 = vmatpush3.msra.mxu0 %v517_v1  ;;  %804 = vmatpush3.msra.mxu1 %v549_v2 }
  0xd2   :  { %v162_v6 = vpop.f32.mrf.mxu0 }
  0xd3   :  { %v233_v3 = vpop.f32.mrf.mxu1 }
  0xd4   :  { %v164_v10 = vpop.f32.mrf.mxu0 }
  0xd5   :  { %v235_v11 = vpop.f32.mrf.mxu1 }
  0xe4   :  { %v307_v16 = vpop.f32.mrf.mxu0  ;;  %v378_v17 = vpop.f32.mrf.mxu1 }
  0xe5   :  { %v308_v18 = vadd.f32 %v307_v16, %v162_v6  ;;  %v379_v19 = vadd.f32 %v378_v17, %v233_v3 }
  0xe6   :  { %v309_v20 = vpop.f32.mrf.mxu0  ;;  %v380_v22 = vpop.f32.mrf.mxu1 }
  0xe7   :  { %v1269_v24 = vadd.f32 %v388_v14, %v308_v18  ;;  %v1271_v25 = vadd.f32 %v396_v15, %v379_v19  ;;  %v310_v26 = vadd.f32 %v309_v20, %v164_v10  ;;  %v381_v27 = vadd.f32 %v380_v22, %v235_v11 }
  0xe9   :  { %v1274_v28 = vmul.f32 0.70710677, %v1269_v24  ;;  %v1277_v29 = vmul.f32 0.70710677, %v1271_v25  ;;  %v1279_v30 = vadd.f32 %v392_v21, %v310_v26  ;;  %v1281_v31 = vadd.f32 %v400_v23, %v381_v27 }
  0xeb   :  { %v425_v32 = vand.u32 2147483647, %v1274_v28  ;;  %v427_v33 = vand.u32 2147483647, %v1277_v29  ;;  %v1286_v34 = vmul.f32 0.70710677, %v1279_v30 }
  0xec   :  { %v1290_v38 = vmul.f32 0.70710677, %v1281_v31  ;;  %vm417_vm1 = vcmp.ge.f32.partialorder %v1274_v28, 0.0  ;;  %vm419_vm2 = vcmp.ge.f32.partialorder %v1277_v29, 0.0 }
  0xed   :  { %v429_v35 = vmul.f32 0.3275911, %v425_v32  ;;  %v431_v36 = vmul.f32 0.3275911, %v427_v33  ;;  %v426_v37 = vand.u32 2147483647, %v1286_v34 }
  0xee   :  { %v428_v42 = vand.u32 2147483647, %v1290_v38  ;;  %v481_v46 = vsub.f32 0.0, %v425_v32  ;;  %v483_v47 = vsub.f32 0.0, %v427_v33  ;;  %vm418_vm3 = vcmp.ge.f32.partialorder %v1286_v34, 0.0 }
  0xef   :  { %v433_v39 = vadd.f32 1.0, %v429_v35  ;;  %v435_v40 = vadd.f32 1.0, %v431_v36  ;;  %v430_v41 = vmul.f32 0.3275911, %v426_v37  ;;  %v482_v49 = vsub.f32 0.0, %v426_v37 }
  0xf0   :  { %v432_v44 = vmul.f32 0.3275911, %v428_v42  ;;  %v485_v48 = vmul.f32 %v481_v46, %v425_v32  ;;  %v487_v50 = vmul.f32 %v483_v47, %v427_v33  ;;  %v484_v51 = vsub.f32 0.0, %v428_v42 }
  0xf1   :  { %810 = vrcp.f32 %v433_v39  ;;  %v434_v43 = vadd.f32 1.0, %v430_v41  ;;  %v486_v56 = vmul.f32 %v482_v49, %v426_v37  ;;  %vm420_vm4 = vcmp.ge.f32.partialorder %v1290_v38, 0.0 }
  0xf2   :  { %812 = vrcp.f32 %v435_v40  ;;  %v436_v45 = vadd.f32 1.0, %v432_v44  ;;  %v489_v55 = vmul.f32 1.442695, %v485_v48  ;;  %v493_v58 = vmul.f32 1.442695, %v487_v50 }
  0xf3   :  { %814 = vrcp.f32 %v434_v43  ;;  %v488_v59 = vmul.f32 %v484_v51, %v428_v42  ;;  %v491_v0 = vmul.f32 1.442695, %v486_v56  ;;  %v827_v48 = vmov -1.0  }
  0xf4   :  { %816 = vrcp.f32 %v436_v45  ;;  %v421_v49 = vsel %vm417_vm1, 1.0, %v827_v48  ;;  %v424_v29 = vsel %vm420_vm4, 1.0, %v827_v48  ;;  %v409_v34 = vmul.f32 0.5, %v1269_v24  ;;  %v737_v24 = vld [vmem:[%s1313_s6] ss:$0 sm:$0xff] }
  0xf5   :  { %818 = vpow2.f32 %v489_v55  ;;  %v495_v5 = vmul.f32 1.442695, %v488_v59 }
  0xf6   :  { %820 = vpow2.f32 %v493_v58 }
  0xf7   :  { %822 = vpow2.f32 %v491_v0 }
  0xf8   :  { %824 = vpow2.f32 %v495_v5  ;;  %v411_v5 = vmul.f32 0.5, %v1271_v25 }
  0xfe   :  { %v811_v52 = vpop.eup %810 }
  0xff   :  { %v813_v53 = vpop.eup %812  ;;  %v445_v54 = vmul.f32 1.0614054, %v811_v52 }
 0x100   :  { %v447_v57 = vmul.f32 1.0614054, %v813_v53  ;;  %v815_v61 = vpop.eup %814 }
 0x101   :  { %v449_v60 = vadd.f32 -1.4531521, %v445_v54  ;;  %v446_v1 = vmul.f32 1.0614054, %v815_v61  ;;  %v817_v2 = vpop.eup %816  ;;  %v423_v54 = vsel %vm419_vm2, 1.0, %v827_v48 }
 0x102   :  { %v451_v62 = vadd.f32 -1.4531521, %v447_v57  ;;  %v448_v7 = vmul.f32 1.0614054, %v817_v2  ;;  %v819_v35 = vpop.eup %818  ;;  %v422_v57 = vsel %vm418_vm3, 1.0, %v827_v48 }
 0x103   :  { %v453_v63 = vmul.f32 %v811_v52, %v449_v60  ;;  %v450_v3 = vadd.f32 -1.4531521, %v446_v1  ;;  %v821_v37 = vpop.eup %820  ;;  %v412_v1 = vmul.f32 0.5, %v1281_v31 }
 0x104   :  { %v455_v4 = vmul.f32 %v813_v53, %v451_v62  ;;  %v452_v11 = vadd.f32 -1.4531521, %v448_v7  ;;  %v823_v46 = vpop.eup %822 }
 0x105   :  { %v457_v6 = vadd.f32 1.4214138, %v453_v63  ;;  %v454_v10 = vmul.f32 %v815_v61, %v450_v3 }
 0x106   :  { %v459_v8 = vadd.f32 1.4214138, %v455_v4  ;;  %v456_v15 = vmul.f32 %v817_v2, %v452_v11 }
 0x107   :  { %v461_v9 = vmul.f32 %v811_v52, %v457_v6  ;;  %v458_v14 = vadd.f32 1.4214138, %v454_v10 }
 0x108   :  { %v463_v12 = vmul.f32 %v813_v53, %v459_v8  ;;  %v460_v19 = vadd.f32 1.4214138, %v456_v15 }
 0x109   :  { %v465_v13 = vadd.f32 -0.28449672, %v461_v9  ;;  %v462_v18 = vmul.f32 %v815_v61, %v458_v14 }
 0x10a   :  { %v467_v16 = vadd.f32 -0.28449672, %v463_v12  ;;  %v464_v23 = vmul.f32 %v817_v2, %v460_v19 }
 0x10b   :  { %v469_v17 = vmul.f32 %v811_v52, %v465_v13  ;;  %v466_v22 = vadd.f32 -0.28449672, %v462_v18 }
 0x10c   :  { %v471_v20 = vmul.f32 %v813_v53, %v467_v16  ;;  %v468_v33 = vadd.f32 -0.28449672, %v464_v23 }
 0x10d   :  { %v473_v21 = vadd.f32 0.2548296, %v469_v17  ;;  %v470_v32 = vmul.f32 %v815_v61, %v466_v22 }
 0x10e   :  { %v475_v26 = vadd.f32 0.2548296, %v471_v20  ;;  %v472_v41 = vmul.f32 %v817_v2, %v468_v33 }
 0x10f   :  { %v477_v27 = vmul.f32 %v811_v52, %v473_v21  ;;  %v474_v40 = vadd.f32 0.2548296, %v470_v32  ;;  %v825_v52 = vpop.eup %824 }
 0x110   :  { %v479_v36 = vmul.f32 %v813_v53, %v475_v26  ;;  %v476_v45 = vadd.f32 0.2548296, %v472_v41 }
 0x111   :  { %v497_v39 = vmul.f32 %v819_v35, %v477_v27  ;;  %v478_v44 = vmul.f32 %v815_v61, %v474_v40  ;;  %v410_v61 = vmul.f32 0.5, %v1279_v30 }
 0x112   :  { %v499_v42 = vmul.f32 %v821_v37, %v479_v36  ;;  %v480_v51 = vmul.f32 %v817_v2, %v476_v45 }
 0x113   :  { %v501_v43 = vsub.f32 1.0, %v497_v39  ;;  %v498_v50 = vmul.f32 %v823_v46, %v478_v44 }
 0x114   :  { %v503_v47 = vsub.f32 1.0, %v499_v42  ;;  %v500_v55 = vmul.f32 %v825_v52, %v480_v51 }
 0x115   :  { %v505_v53 = vmul.f32 %v501_v43, %v421_v49  ;;  %v502_v28 = vsub.f32 1.0, %v498_v50 }
 0x116   :  { %v507_v56 = vmul.f32 %v503_v47, %v423_v54  ;;  %v504_v59 = vsub.f32 1.0, %v500_v55 }
 0x117   :  { %v506_v58 = vmul.f32 %v502_v28, %v422_v57  ;;  %v509_v60 = vadd.f32 1.0, %v505_v53 }
 0x118   :  { %v508_v63 = vmul.f32 %v504_v59, %v424_v29  ;;  %v511_v0 = vadd.f32 1.0, %v507_v56 }
 0x119   :  { %v510_v62 = vadd.f32 1.0, %v506_v58  ;;  %v513_v38 = vmul.f32 %v509_v60, %v409_v34 }
 0x11a   :  { %v512_v4 = vadd.f32 1.0, %v508_v63  ;;  %v515_v3 = vmul.f32 %v511_v0, %v411_v5 }
 0x11b   :  { %v514_v2 = vmul.f32 %v510_v62, %v410_v61 }
 0x11c   :  { %v516_v6 = vmul.f32 %v512_v4, %v412_v1 }
 0x11d   :  { %652 = vmatprep.mubr.f32.mxu0 %v514_v2 }
 0x11e   :  { %653 = vmatmul.mubr.f32.vlgmr.msra.gmra.mxu0 %v513_v38  ;;  %722 = vmatprep.mubr.f32.mxu1 %v516_v6 }
 0x11f   :  { %723 = vmatmul.mubr.f32.vlgmr.msra.gmra.mxu1 %v515_v3 }
 0x1de   :  { %v770_v7 = vpop.f32.mrf.mxu0 }
 0x1df   :  { %v805_v30 = vpop.f32.mrf.mxu1 }
 0x1e0   :  { %v771_v8 = vpop.f32.mrf.mxu0 }
 0x1e1   :  { %v772_v9 = vadd.f32 %v771_v8, %v770_v7  ;;  %v806_v31 = vpop.f32.mrf.mxu1 }
 0x1e2   :  { %v807_v11 = vadd.f32 %v806_v31, %v805_v30 }
 0x1e3   :  { %v655_v10 = vadd.f32 %v772_v9, %v737_v24 }
 0x1e5   :  { %v725_v12 = vadd.f32 %v807_v11, %v655_v10 }
 0x1e7   :  { %728 = vst [vmem:[%s1314_s7] sm:$0x3] %v725_v12 }

// kernel: model_forward.3
= control target key start
LH: loop header
LB: loop body
LE: loop exit
PB: predicated region body
PF: predicated region fallthrough
CT: control target
= control target key end

     0   :  { %s6076_s28 = smov 0   ;;  %s6078_s29 = smov 0   ;;  %s7048_s0 = inlined_call_operand.vmem [shape: f32[2,16,64], index: 0, kind: input, shape index: {}]   ;;  %s7049_s1 = inlined_call_operand.vmem [shape: f32[2,8,64], index: 1, kind: input, shape index: {}]   ;;  %s7050_s2 = inlined_call_operand.vmem [shape: f32[16,64], index: 2, kind: input, shape index: {}]   ;;  %s7051_s3 = inlined_call_operand.vmem [shape: f32[8,64], index: 3, kind: input, shape index: {}]   ;;  %s7052_s4 = inlined_call_operand.vmem [shape: f32[1,64], index: 4, kind: input, shape index: {}]   ;;  %s7053_s5 = inlined_call_operand.vmem [shape: f32[1,64], index: 5, kind: input, shape index: {}]   ;;  %s7054_s6 = inlined_call_operand.vmem [shape: bf16[8,64,8], index: 6, kind: input, shape index: {}]   ;;  %s7055_s7 = inlined_call_operand.vmem [shape: f32[8,1,8], index: 7, kind: input, shape index: {}]   ;;  %s7056_s8 = inlined_call_operand.vmem [shape: bf16[8,64,8], index: 8, kind: input, shape index: {}]   ;;  %s7057_s9 = inlined_call_operand.vmem [shape: f32[8,1,8], index: 9, kind: input, shape index: {}]   ;;  %s7058_s10 = inlined_call_operand.vmem [shape: bf16[8,64,8], index: 10, kind: input, shape index: {}]   ;;  %s7059_s11 = inlined_call_operand.vmem [shape: f32[8,1,8], index: 11, kind: input, shape index: {}]   ;;  %s7060_s12 = inlined_call_operand.vmem [shape: bf16[8,8,64], index: 12, kind: input, shape index: {}]   ;;  %s7061_s13 = inlined_call_operand.vmem [shape: f32[1,64], index: 13, kind: input, shape index: {}]   ;;  %s7062_s14 = inlined_call_operand.vmem [shape: f32[1,64], index: 14, kind: input, shape index: {}]   ;;  %s7063_s15 = inlined_call_operand.vmem [shape: f32[1,64], index: 15, kind: input, shape index: {}]   ;;  %s7064_s16 = inlined_call_operand.vmem [shape: bf16[64,256], index: 16, kind: input, shape index: {}]   ;;  %s7065_s17 = inlined_call_operand.vmem [shape: f32[1,256], index: 17, kind: input, shape index: {}]   ;;  %s7066_s18 = inlined_call_operand.vmem [shape: bf16[256,64], index: 18, kind: input, shape index: {}]   ;;  %s7067_s19 = inlined_call_operand.vmem [shape: f32[1,64], index: 19, kind: input, shape index: {}]   ;;  %s7068_s20 = inlined_call_operand.vmem [shape: f32[1,64], index: 20, kind: input, shape index: {}]   ;;  %s7069_s21 = inlined_call_operand.vmem [shape: f32[1,64], index: 21, kind: input, shape index: {}]   ;;  %s7070_s22 = inlined_call_operand.vmem [shape: f32[2,1,64], index: 22, kind: output, shape index: {}]  }
   0x1   :  { %7075 = sst [smem:[#allocation5_spill]] %s7048_s0 }
   0x2   :  { %7076 = sst [smem:[#allocation6_spill]] %s7049_s1 }
   0x3   :  { %7077 = sst [smem:[#allocation7_spill]] %s7050_s2 }
   0x4   :  { %7078 = sst [smem:[#allocation8_spill]] %s7051_s3  ;;  %s6074_s3 = smov 0  }
   0x5   :  { %7079 = sst [smem:[#allocation9_spill]] %s7052_s4 }
   0x6   :  { %7080 = sst [smem:[#allocation10_spill]] %s7053_s5 }
   0x7   :  { %7081 = sst [smem:[#allocation11_spill]] %s7054_s6 }
   0x8   :  { %7082 = sst [smem:[#allocation12_spill]] %s7067_s19 }
   0x9   :  { %7083 = sst [smem:[#allocation13_spill]] %s7068_s20 }
   0xa   :  { %7084 = sst [smem:[#allocation14_spill]] %s7069_s21 }
   0xb   :  { %7085 = sst [smem:[#allocation15_spill]] %s7070_s22 }
   0xc LB: > { %7086 = sst [smem:[#allocation2_spill]] %s5950_s28  ;;  %s44_s30 = sadd.s32 1, %s5950_s28  ;;  %s5954_s29 = sphi %s6078_s29, %s32_s29   ;;  %s5950_s28 = sphi %s6076_s28, %s7103_s28   ;;  %s5946_s3 = sphi %s6074_s3, %s7102_s3  }
   0xd   : > { %7087 = sst [smem:[#allocation3_spill]] %s5954_s29  ;;  %p4677_p0 = scmp.ge.s32.totalorder %s5954_s29, 1 }
   0xe   : > { %p46_p1 = scmp.ge.s32.totalorder %s44_s30, 2  ;;  %p653_p2 = scmp.lt.s32.totalorder %s5954_s29, 3 }
  0x10   : > { %s7105_s30 = smov (%p46_p1, %s44_s30), 0  ;;  %p654_p3 = pnand %p4677_p0, %p653_p2 }
  0x11   : > { %7088 = sst [smem:[#allocation4_spill]] %s7105_s30  ;;  %p730_p4 = scmp.lt.s32.totalorder (!%p654_p3), %s5946_s3, 1 }
  0x12   : > { %657 = sbr.rel (%p654_p3) target bundleno = 8824 (0x2278), region = 108  ;;  %s7089_s1 = sld [smem:[#allocation8_spill]] (!%p654_p3) }
  0x13   : > { %s7090_s6 = sld [smem:[#allocation6_spill]] (!%p654_p3) }
  0x14   : > { %s7091_s30 = sld [smem:[#allocation7_spill]] (!%p654_p3) }
  0x15   : > { %s7092_s20 = sld [smem:[#allocation5_spill]] (!%p654_p3) }
  0x16   : > { %s7093_s28 = sld [smem:[#allocation11_spill]] (!%p654_p3) }
  0x17   : > { %s7107_s3 = smov (!%p730_p4, %s5946_s3), 1  ;;  %vm770_vm0 = vcmask 523264   ;;  %v5730_v30 = vld [vmem:[%s7056_s8 + $0x18] sm:$0xff]   ;;  %v5956_v31 = vmov 0.0   ;;  %v5732_v33 = vld [vmem:[%s7056_s8 + $0x10] sm:$0xff]   ;;  %v5734_v35 = vld [vmem:[%s7056_s8 + $0x8] sm:$0xff]  }
  0x18   : > { %s4680_s4 = sshll.u32 %s7107_s3, 3  ;;  %v766_v0 = vld [vmem:[%s7089_s1] sm:$0xff]  ;;  %s5080_s26 = sshll.u32 %s7107_s3, 4  ;;  %5283 = vmatprep.subr.bf16.mxu1 %v5956_v31  ;;  %5271 = vmatprep.subr.bf16.mxu0 %v5956_v31  ;;  %vm5957_vm1 = vmmov 0   ;;  %v5738_v63 = vld [vmem:[%s7058_s10 + $0x18] sm:$0xff]   ;;  %vm1079_vm2 = vcmask 64512  }
  0x19   : > { %s742_s25 = scalar_lea.vmem %s7090_s6, %s4680_s4  ;;  %5284 = vmatpush3.bf16.msra.mxu1 %v5730_v30  ;;  %v5736_v37 = vld [vmem:[%s7056_s8] sm:$0xff]   ;;  %5291 = vmatprep.mubr.msk.bf16.mxu1 %vm5957_vm1, %v5956_v31  ;;  %s7095_s22 = sld [smem:[#allocation9_spill]]  ;;  %vm1154_vm3 = vcmask 1043456   ;;  %vm4571_vm4 = vcmask 516096  }
  0x1a   : > { %v761_v1 = vld [vmem:[%s7091_s30 + $0x8] sm:$0xff]  ;;  %v760_v2 = vld [vmem:[%s7091_s30] sm:$0xff]  ;;  %5285 = vmatprep.subr.bf16.mxu1 %v5956_v31  ;;  %5279 = vmatprep.mubr.msk.bf16.mxu0 %vm5957_vm1, %v5956_v31  ;;  %s7096_s0 = sld [smem:[#allocation10_spill]] }
  0x1b   : > { %v764_v3 = vld [vmem:[%s742_s25] sm:$0xff]  ;;  %s737_s19 = scalar_lea.vmem %s7092_s20, %s5080_s26  ;;  %s7097_s20 = sld [smem:[#allocation12_spill]] }
  0x1c   : > { %v765_v4 = vmul.f32 8.0, %v764_v3  ;;  %v757_v5 = vld [vmem:[%s737_s19 + $0x8] sm:$0xff]  ;;  %v756_v6 = vld [vmem:[%s737_s19] sm:$0xff]  ;;  %s7094_s4 = smov %s7093_s28  ;;  %v5731_v32 = vld [vmem:[%s7093_s28 + $0x18] sm:$0xff]   ;;  %s7098_s28 = sld [smem:[#allocation13_spill]] }
  0x1d   : > { %v759_v7 = vmul.f32 8.0, %v757_v5  ;;  %v758_v8 = vmul.f32 8.0, %v756_v6  ;;  %5272 = vmatpush3.bf16.msra.mxu0 %v5731_v32  ;;  %5286 = vmatpush3.bf16.msra.mxu1 %v5732_v33  ;;  %v5733_v34 = vld [vmem:[%s7094_s4 + $0x10] sm:$0xff]   ;;  %v5735_v36 = vld [vmem:[%s7094_s4 + $0x8] sm:$0xff]   ;;  %v5737_v38 = vld [vmem:[%s7094_s4] sm:$0xff]   ;;  %s7099_s23 = sld [smem:[#allocation14_spill]] }
  0x1e   : > { %v767_v9 = vadd.f32 %v766_v0, %v765_v4  ;;  %5273 = vmatprep.subr.bf16.mxu0 %v5956_v31  ;;  %5287 = vmatprep.subr.bf16.mxu1 %v5956_v31  ;;  %v5741_v3 = vld [vmem:[%s7058_s10] sm:$0xff]   ;;  %s7100_s24 = sld [smem:[#allocation15_spill]] }
  0x1f   : > { %v6111_v10 = vadd.f32 %v761_v1, %v759_v7  ;;  %v6113_v11 = vadd.f32 %v760_v2, %v758_v8  ;;  %v4681_v49 = vld [vmem:[%s7095_s22] ss:$0 sm:$0xff]  ;;  %v5739_v1 = vld [vmem:[%s7058_s10 + $0x10] sm:$0xff]   ;;  %v5740_v2 = vld [vmem:[%s7058_s10 + $0x8] sm:$0xff]  }
  0x20   : > { %v815_v12 = vsel %vm770_vm0, %v767_v9, 0.0  ;;  %v4682_v51 = vld [vmem:[%s7096_s0] ss:$0 sm:$0xff] }
  0x21   : > { %816 = vadd.xlane.f32.xlu0 %v815_v12  ;;  %v774_v13 = vsel %vm770_vm0, %v6111_v10, 0.0  ;;  %v771_v14 = vsel %vm770_vm0, %v6113_v11, 0.0  ;;  %5274 = vmatpush3.bf16.msra.mxu0 %v5733_v34  ;;  %v4689_v4 = vld [vmem:[%s7057_s9] ss:$0 sm:$0xff] }
  0x22   : > { %775 = vadd.xlane.f32.xlu1 %v774_v13  ;;  %5288 = vmatpush3.bf16.msra.mxu1 %v5734_v35  ;;  %v4683_v13 = vld [vmem:[%s7055_s7] ss:$0 sm:$0xff] }
  0x23   : > { %5275 = vmatprep.subr.bf16.mxu0 %v5956_v31  ;;  %5289 = vmatprep.subr.bf16.mxu1 %v5956_v31  ;;  %v5745_v34 = vld [vmem:[%s7094_s4 + $0x20] sm:$0xff]  }
  0x24   : > { %s754_s6 = scalar_lea.vmem %s7100_s24, %s7107_s3 }
  0x25   : > { %772 = vadd.xlane.f32.xlu0 %v771_v14  ;;  %5276 = vmatpush3.bf16.msra.mxu0 %v5735_v36 }
  0x26   : > { %5290 = vmatpush3.bf16.msra.mxu1 %v5736_v37  ;;  %5277 = vmatprep.subr.bf16.mxu0 %v5956_v31  ;;  %v5746_v37 = vld [vmem:[%s7058_s10 + $0x38] sm:$0xff]  }
  0x27   : > { %5313 = vmatprep.subr.bf16.mxu1 %v5956_v31 }
  0x29   : > { %5278 = vmatpush3.bf16.msra.mxu0 %v5737_v38  ;;  %v5747_v38 = vld [vmem:[%s7058_s10 + $0x30] sm:$0xff]  }
  0x2a   : > { %5295 = vmatprep.subr.bf16.mxu0 %v5956_v31 }
  0xaa   : > { %v817_v15 = vpop.xlane.xlu0 %816 }
  0xab   : > { %v818_v16 = vmul.f32 0.015625, %v817_v15  ;;  %v776_v17 = vpop.xlane.xlu1 %775 }
  0xac   : > { %v779_v18 = vmul.f32 0.015625, %v776_v17 }
  0xad   : > { %v819_v19 = vsub.f32 %v767_v9, %v818_v16 }
  0xae   : > { %v6121_v20 = vsub.f32 %v6111_v10, %v779_v18  ;;  %v773_v21 = vpop.xlane.xlu0 %772 }
  0xaf   : > { %v778_v22 = vmul.f32 0.015625, %v773_v21  ;;  %v820_v23 = vmul.f32 %v819_v19, %v819_v19 }
  0xb0   : > { %v783_v24 = vmul.f32 %v6121_v20, %v6121_v20 }
  0xb1   : > { %v780_v25 = vsub.f32 %v6113_v11, %v778_v22  ;;  %v821_v26 = vsel %vm770_vm0, %v820_v23, 0.0  ;;  %v5742_v23 = vld [vmem:[%s7094_s4 + $0x38] sm:$0xff]  }
  0xb2   : > { %822 = vadd.xlane.f32.xlu1 %v821_v26  ;;  %v787_v27 = vsel %vm770_vm0, %v783_v24, 0.0  ;;  %v4695_v26 = vld [vmem:[%s7059_s11] ss:$0 sm:$0xff] }
  0xb3   : > { %v782_v28 = vmul.f32 %v780_v25, %v780_v25 }
  0xb5   : > { %v784_v29 = vsel %vm770_vm0, %v782_v28, 0.0  ;;  %v5744_v28 = vld [vmem:[%s7094_s4 + $0x28] sm:$0xff]  }
  0xb6   : > { %788 = vadd.xlane.f32.xlu1 %v787_v27  ;;  %785 = vadd.xlane.f32.xlu0 %v784_v29 }
 0x13b   : > { %v823_v39 = vpop.xlane.xlu1 %822 }
 0x13c   : > { %v824_v40 = vmul.f32 0.015625, %v823_v39  ;;  %v5748_v39 = vld [vmem:[%s7058_s10 + $0x28] sm:$0xff]  }
 0x13e   : > { %v825_v41 = vadd.f32 1e-05, %v824_v40  ;;  %v5749_v40 = vld [vmem:[%s7058_s10 + $0x20] sm:$0xff]  }
 0x13f   : > { %v789_v42 = vpop.xlane.xlu1 %788  ;;  %v786_v43 = vpop.xlane.xlu0 %785 }
 0x140   : > { %5854 = vrsqrt.f32 %v825_v41  ;;  %v791_v44 = vmul.f32 0.015625, %v789_v42  ;;  %v790_v45 = vmul.f32 0.015625, %v786_v43 }
 0x142   : > { %v793_v46 = vadd.f32 1e-05, %v791_v44  ;;  %v792_v47 = vadd.f32 1e-05, %v790_v45 }
 0x144   : > { %5856 = vrsqrt.f32 %v793_v46 }
 0x145   : > { %5858 = vrsqrt.f32 %v792_v47  ;;  %v4712_v47 = vld [vmem:[%s7055_s7 + $0x1] ss:$0 sm:$0xff] }
 0x14d   : > { %v5855_v48 = vpop.eup %5854 }
 0x14e   : > { %v827_v50 = vmul.f32 %v5855_v48, %v819_v19 }
 0x150   : > { %v828_v52 = vmul.f32 %v4681_v49, %v827_v50 }
 0x151   : > { %v5857_v53 = vpop.eup %5856 }
 0x152   : > { %v5859_v54 = vpop.eup %5858  ;;  %v829_v55 = vadd.f32 %v4682_v51, %v828_v52  ;;  %v797_v56 = vmul.f32 %v5857_v53, %v6121_v20 }
 0x153   : > { %v796_v57 = vmul.f32 %v5859_v54, %v780_v25  ;;  %v5743_v25 = vld [vmem:[%s7094_s4 + $0x30] sm:$0xff]  }
 0x154   : > { %v6174_v58 = vpack.c.bf16 %v829_v55, %v829_v55  ;;  %v805_v59 = vmul.f32 %v4681_v49, %v797_v56 }
 0x155   : > { %v804_v60 = vmul.f32 %v4681_v49, %v796_v57 }
 0x156   : > { %v813_v61 = vadd.f32 %v4682_v51, %v805_v59  ;;  %5292 = vmatmul.mubr.msk.bf16.vlgmr.msra.gmra.mxu1 %vm770_vm0, %v6174_v58 }
 0x157   : > { %v812_v62 = vadd.f32 %v4682_v51, %v804_v60  ;;  %5315 = vmatprep.mubr.msk.bf16.mxu1 %vm5957_vm1, %v5956_v31 }
 0x159   : > { %v6183_v0 = vpack.c.bf16 %v813_v61, %v812_v62 }
 0x15b   : > { %5280 = vmatmul.mubr.msk.bf16.vlgmr.msra.gmra.mxu0 %vm770_vm0, %v6183_v0 }
 0x15c   : > { %5296 = vmatpush3.bf16.msra.mxu0 %v5738_v63  ;;  %5303 = vmatprep.mubr.msk.bf16.mxu0 %vm5957_vm1, %v5956_v31 }
 0x15d   : > { %5297 = vmatprep.subr.bf16.mxu0 %v5956_v31 }
 0x160   : > { %5298 = vmatpush3.bf16.msra.mxu0 %v5739_v1 }
 0x161   : > { %5299 = vmatprep.subr.bf16.mxu0 %v5956_v31 }
 0x164   : > { %5300 = vmatpush3.bf16.msra.mxu0 %v5740_v2 }
 0x165   : > { %5301 = vmatprep.subr.bf16.mxu0 %v5956_v31 }
 0x168   : > { %5302 = vmatpush3.bf16.msra.mxu0 %v5741_v3 }
 0x169   : > { %5307 = vmatprep.subr.bf16.mxu0 %v5956_v31 }
 0x16b   : > { %5304 = vmatmul.mubr.msk.bf16.vlgmr.msra.gmra.mxu0 %vm770_vm0, %v6174_v58 }
 0x16c   : > { %5309 = vmatprep.mubr.msk.bf16.mxu0 %vm5957_vm1, %v5956_v31 }
 0x216   : > { %v992_v5 = vpop.f32.mrf.mxu1 }
 0x217   : > { %v993_v6 = vadd.f32 %v4689_v4, %v992_v5 }
 0x218   : > { %v5293_v7 = vpop.f32.mrf.mxu1 }
 0x219   : > { %v1078_v8 = vpack.c.bf16 %v993_v6, %v993_v6 }
 0x21a   : > { %v995_v9 = vpop.f32.mrf.mxu1 }
 0x21b   : > { %v1084_v12 = vsel %vm1079_vm2, %v1078_v8, 0  ;;  %v907_v14 = vpop.f32.mrf.mxu0 }
 0x21c   : > { %v5294_v15 = vpop.f32.mrf.mxu1  ;;  %5308 = vmatpush3.bf16.xpose.msra.mxu0 %v1084_v12  ;;  %v908_v17 = vadd.f32 %v4683_v13, %v907_v14 }
 0x21d   : > { %v5281_v16 = vpop.f32.mrf.mxu0  ;;  %5319 = vmatprep.subr.bf16.mxu0 %v5956_v31 }
 0x21e   : > { %v914_v21 = vmul.f32 0.35355338, %v908_v17  ;;  %v5750_v17 = vld [vmem:[%s7056_s8 + $0x38] sm:$0xff]  }
 0x21f   : > { %v910_v18 = vpop.f32.mrf.mxu0 }
 0x220   : > { %v911_v19 = vadd.f32 %v4683_v13, %v910_v18 }
 0x221   : > { %v5282_v20 = vpop.f32.mrf.mxu0 }
 0x222   : > { %v915_v22 = vmul.f32 0.35355338, %v911_v19  ;;  %v5751_v19 = vld [vmem:[%s7056_s8 + $0x30] sm:$0xff]   ;;  %v5752_v20 = vld [vmem:[%s7056_s8 + $0x28] sm:$0xff]  }
 0x224   : > { %v1077_v24 = vpack.c.bf16 %v915_v22, %v914_v21  ;;  %v5753_v21 = vld [vmem:[%s7056_s8 + $0x20] sm:$0xff]  }
 0x226   : > { %5310 = vmatmul.mubr.msk.bf16.vlgmr.msra.gmra.mxu0 %vm1079_vm2, %v1077_v24 }
 0x227   : > { %5320 = vmatpush3.bf16.msra.mxu0 %v5742_v23  ;;  %5327 = vmatprep.mubr.msk.bf16.mxu0 %vm5957_vm1, %v5956_v31 }
 0x228   : > { %5321 = vmatprep.subr.bf16.mxu0 %v5956_v31 }
 0x22b   : > { %v1071_v27 = vpop.f32.mrf.mxu0  ;;  %5322 = vmatpush3.bf16.msra.mxu0 %v5743_v25 }
 0x22c   : > { %v1072_v29 = vadd.f32 %v4695_v26, %v1071_v27  ;;  %5323 = vmatprep.subr.bf16.mxu0 %v5956_v31  ;;  %v4727_v27 = vld [vmem:[%s7057_s9 + $0x1] ss:$0 sm:$0xff] }
 0x22d   : > { %v5305_v30 = vpop.f32.mrf.mxu0 }
 0x22e   : > { %v1150_v32 = vpack.c.bf16 %v1072_v29, %v1072_v29  ;;  %v4742_v30 = vld [vmem:[%s7059_s11 + $0x1] ss:$0 sm:$0xff] }
 0x22f   : > { %v1074_v33 = vpop.f32.mrf.mxu0  ;;  %5324 = vmatpush3.bf16.msra.mxu0 %v5744_v28 }
 0x230   : > { %v1156_v35 = vsel %vm1154_vm3, %v1150_v32, 0  ;;  %5325 = vmatprep.subr.bf16.mxu0 %v5956_v31 }
 0x231   : > { %v5306_v36 = vpop.f32.mrf.mxu0  ;;  %5314 = vmatpush3.bf16.msra.mxu1 %v1156_v35 }
 0x232   : > { %5331 = vmatprep.subr.bf16.mxu1 %v5956_v31 }
 0x233   : > { %5326 = vmatpush3.bf16.msra.mxu0 %v5745_v34 }
 0x234   : > { %5343 = vmatprep.subr.bf16.mxu0 %v5956_v31 }
 0x236   : > { %5328 = vmatmul.mubr.msk.bf16.vlgmr.msra.gmra.mxu0 %vm770_vm0, %v6183_v0 }
 0x237   : > { %5344 = vmatpush3.bf16.msra.mxu0 %v5746_v37  ;;  %5351 = vmatprep.mubr.msk.bf16.mxu0 %vm5957_vm1, %v5956_v31 }
 0x238   : > { %5345 = vmatprep.subr.bf16.mxu0 %v5956_v31 }
 0x23b   : > { %5346 = vmatpush3.bf16.msra.mxu0 %v5747_v38 }
 0x23c   : > { %5347 = vmatprep.subr.bf16.mxu0 %v5956_v31 }
 0x23f   : > { %5348 = vmatpush3.bf16.msra.mxu0 %v5748_v39 }
 0x240   : > { %5349 = vmatprep.subr.bf16.mxu0 %v5956_v31 }
 0x243   : > { %5350 = vmatpush3.bf16.msra.mxu0 %v5749_v40 }
 0x244   : > { %5367 = vmatprep.subr.bf16.mxu0 %v5956_v31 }
 0x246   : > { %5352 = vmatmul.mubr.msk.bf16.vlgmr.msra.gmra.mxu0 %vm770_vm0, %v6174_v58 }
 0x247   : > { %5369 = vmatprep.mubr.msk.bf16.mxu0 %vm5957_vm1, %v5956_v31 }
 0x2e6   : > { %v1120_v41 = vpop.f32.mrf.mxu0 }
 0x2e7   : > { %v1127_v42 = vsel %vm1079_vm2, %v1120_v41, -inf }
 0x2e8   : > { %1128 = vmax.xlane.f32.xlu0 %v1127_v42  ;;  %v5311_v43 = vpop.f32.mrf.mxu0 }
 0x2ea   : > { %v1123_v44 = vpop.f32.mrf.mxu0 }
 0x2eb   : > { %v1130_v45 = vsel %vm1079_vm2, %v1123_v44, -inf }
 0x2ec   : > { %1131 = vmax.xlane.f32.xlu1 %v1130_v45  ;;  %v5312_v46 = vpop.f32.mrf.mxu0 }
 0x2f6   : > { %v1276_v48 = vpop.f32.mrf.mxu0 }
 0x2f7   : > { %v1277_v50 = vadd.f32 %v4712_v47, %v1276_v48 }
 0x2f8   : > { %v5329_v49 = vpop.f32.mrf.mxu0 }
 0x2f9   : > { %v6267_v54 = vmul.f32 0.35355338, %v1277_v50 }
 0x2fa   : > { %v1279_v51 = vpop.f32.mrf.mxu0 }
 0x2fb   : > { %v1280_v52 = vadd.f32 %v4712_v47, %v1279_v51 }
 0x2fc   : > { %v5330_v53 = vpop.f32.mrf.mxu0 }
 0x2fd   : > { %v6269_v55 = vmul.f32 0.35355338, %v1280_v52 }
 0x2ff   : > { %v1447_v56 = vpack.c.bf16 %v6269_v55, %v6267_v54 }
 0x306   : > { %v1441_v57 = vpop.f32.mrf.mxu0 }
 0x307   : > { %v1442_v35 = vadd.f32 %v4742_v30, %v1441_v57 }
 0x308   : > { %v5353_v59 = vpop.f32.mrf.mxu0 }
 0x309   : > { %v1519_v38 = vpack.c.bf16 %v1442_v35, %v1442_v35 }
 0x30a   : > { %v1444_v60 = vpop.f32.mrf.mxu0 }
 0x30b   : > { %v1524_v39 = vsel %vm1154_vm3, %v1519_v38, 0 }
 0x30c   : > { %v5354_v61 = vpop.f32.mrf.mxu0 }
 0x30d   : > { %v1200_v61 = vld [vmem:[%s7060_s12] sm:$0xf] }
 0x371   : > { %v1129_v62 = vpop.xlane.xlu0 %1128 }
 0x372   : > { %v1133_v63 = vsub.f32 %v1120_v41, %v1129_v62 }
 0x374   : > { %v1135_v1 = vmul.f32 1.442695, %v1133_v63 }
 0x375   : > { %v1132_v2 = vpop.xlane.xlu1 %1131 }
 0x376   : > { %5860 = vpow2.f32 %v1135_v1  ;;  %v1134_v3 = vsub.f32 %v1123_v44, %v1132_v2  ;;  %v1621_v2 = vsel %vm1154_vm3, %v1200_v61, 0 }
 0x378   : > { %v1137_v4 = vmul.f32 1.442695, %v1134_v3  ;;  %v5754_v3 = vld [vmem:[%s7056_s8 + $0x58] sm:$0xff]  }
 0x37a   : > { %5862 = vpow2.f32 %v1137_v4  ;;  %v5755_v4 = vld [vmem:[%s7056_s8 + $0x50] sm:$0xff]  }
 0x383   : > { %v5861_v5 = vpop.eup %5860 }
 0x384   : > { %v1139_v6 = vsel %vm1079_vm2, %v5861_v5, 0.0 }
 0x385   : > { %1140 = vadd.xlane.f32.xlu0 %v1139_v6  ;;  %v5757_v6 = vld [vmem:[%s7056_s8 + $0x40] sm:$0xff]  }
 0x387   : > { %v5863_v7 = vpop.eup %5862 }
 0x388   : > { %v1142_v8 = vsel %vm1079_vm2, %v5863_v7, 0.0 }
 0x389   : > { %1143 = vadd.xlane.f32.xlu1 %v1142_v8 }
 0x40e   : > { %v1141_v9 = vpop.xlane.xlu0 %1140 }
 0x40f   : > { %5864 = vrcp.f32 %v1141_v9 }
 0x412   : > { %v1144_v12 = vpop.xlane.xlu1 %1143 }
 0x413   : > { %5866 = vrcp.f32 %v1144_v12 }
 0x41c   : > { %v5865_v13 = vpop.eup %5864 }
 0x41d   : > { %v1147_v15 = vmul.f32 %v5865_v13, %v5861_v5  ;;  %v5756_v5 = vld [vmem:[%s7056_s8 + $0x48] sm:$0xff]  }
 0x420   : > { %v5867_v14 = vpop.eup %5866 }
 0x421   : > { %v1148_v16 = vmul.f32 %v5867_v14, %v5863_v7  ;;  %v4750_v7 = vld [vmem:[%s7060_s12 + $0x4] sm:$0xf]  ;;  %v5758_v14 = vld [vmem:[%s7094_s4 + $0x58] sm:$0xff]  }
 0x422   : > { %v1574_v8 = vsel %vm1154_vm3, %v4750_v7, 0 }
 0x423   : > { %v1149_v18 = vpack.c.bf16 %v1148_v16, %v1147_v15  ;;  %5368 = vmatpush3.bf16.msra.mxu0 %v1574_v8 }
 0x424   : > { %5379 = vmatprep.subr.bf16.mxu0 %v5956_v31 }
 0x425   : > { %5316 = vmatmul.mubr.msk.bf16.vlgmr.msra.gmra.mxu1 %vm1079_vm2, %v1149_v18  ;;  %v5759_v18 = vld [vmem:[%s7094_s4 + $0x50] sm:$0xff]  }
 0x426   : > { %5332 = vmatpush3.bf16.msra.mxu1 %v5750_v17  ;;  %5339 = vmatprep.mubr.msk.bf16.mxu1 %vm5957_vm1, %v5956_v31 }
 0x427   : > { %5333 = vmatprep.subr.bf16.mxu1 %v5956_v31 }
 0x42a   : > { %5334 = vmatpush3.bf16.msra.mxu1 %v5751_v19 }
 0x42b   : > { %5335 = vmatprep.subr.bf16.mxu1 %v5956_v31 }
 0x42e   : > { %5336 = vmatpush3.bf16.msra.mxu1 %v5752_v20 }
 0x42f   : > { %5337 = vmatprep.subr.bf16.mxu1 %v5956_v31 }
 0x432   : > { %5338 = vmatpush3.bf16.msra.mxu1 %v5753_v21  ;;  %v5760_v21 = vld [vmem:[%s7094_s4 + $0x48] sm:$0xff]  }
 0x433   : > { %5355 = vmatprep.subr.bf16.mxu1 %v5956_v31 }
 0x435   : > { %5340 = vmatmul.mubr.msk.bf16.vlgmr.msra.gmra.mxu1 %vm770_vm0, %v6174_v58 }
 0x436   : > { %5357 = vmatprep.mubr.msk.bf16.mxu1 %vm5957_vm1, %v5956_v31 }
 0x4e5   : > { %v1192_v22 = vpop.f32.mrf.mxu1 }
 0x4e7   : > { %v5317_v23 = vpop.f32.mrf.mxu1 }
 0x4e8   : > { %v5761_v23 = vld [vmem:[%s7094_s4 + $0x40] sm:$0xff]  }
 0x4e9   : > { %v1195_v24 = vpop.f32.mrf.mxu1 }
 0x4ea   : > { %v1199_v25 = vpack.c.bf16 %v1195_v24, %v1192_v22  ;;  %v5762_v24 = vld [vmem:[%s7058_s10 + $0x58] sm:$0xff]  }
 0x4eb   : > { %v5318_v26 = vpop.f32.mrf.mxu1 }
 0x4f5   : > { %v1360_v28 = vpop.f32.mrf.mxu1 }
 0x4f6   : > { %v1361_v29 = vadd.f32 %v4727_v27, %v1360_v28  ;;  %v5763_v27 = vld [vmem:[%s7058_s10 + $0x50] sm:$0xff]  }
 0x4f7   : > { %v5341_v32 = vpop.f32.mrf.mxu1 }
 0x4f8   : > { %v1448_v33 = vpack.c.bf16 %v1361_v29, %v1361_v29 }
 0x4f9   : > { %v1363_v34 = vpop.f32.mrf.mxu1 }
 0x4fa   : > { %v1453_v36 = vsel %vm1079_vm2, %v1448_v33, 0  ;;  %v5764_v33 = vld [vmem:[%s7058_s10 + $0x48] sm:$0xff]  }
 0x4fb   : > { %v5342_v37 = vpop.f32.mrf.mxu1  ;;  %5356 = vmatpush3.bf16.xpose.msra.mxu1 %v1453_v36  ;;  %v5765_v36 = vld [vmem:[%s7058_s10 + $0x40] sm:$0xff]  }
 0x4fc   : > { %5361 = vmatprep.subr.bf16.mxu1 %v5956_v31 }
 0x502   : > { %5358 = vmatmul.mubr.msk.bf16.vlgmr.msra.gmra.mxu1 %vm1079_vm2, %v1447_v56 }
 0x503   : > { %5362 = vmatpush3.bf16.msra.mxu1 %v1524_v39  ;;  %5363 = vmatprep.mubr.msk.bf16.mxu1 %vm5957_vm1, %v5956_v31 }
 0x504   : > { %5373 = vmatprep.subr.bf16.mxu1 %v5956_v31 }
 0x5c2   : > { %v1489_v40 = vpop.f32.mrf.mxu1 }
 0x5c3   : > { %v1496_v41 = vsel %vm1079_vm2, %v1489_v40, -inf }
 0x5c4   : > { %1497 = vmax.xlane.f32.xlu0 %v1496_v41  ;;  %v5359_v42 = vpop.f32.mrf.mxu1  ;;  %v4762_v41 = vld [vmem:[%s7055_s7 + $0x2] ss:$0 sm:$0xff] }
 0x5c6   : > { %v1492_v43 = vpop.f32.mrf.mxu1 }
 0x5c7   : > { %v1499_v44 = vsel %vm1079_vm2, %v1492_v43, -inf }
 0x5c8   : > { %1500 = vmax.xlane.f32.xlu1 %v1499_v44  ;;  %v5360_v45 = vpop.f32.mrf.mxu1 }
 0x64d   : > { %v1498_v46 = vpop.xlane.xlu0 %1497 }
 0x64e   : > { %v1502_v47 = vsub.f32 %v1489_v40, %v1498_v46 }
 0x650   : > { %v1504_v48 = vmul.f32 1.442695, %v1502_v47 }
 0x651   : > { %v1501_v49 = vpop.xlane.xlu1 %1500 }
 0x652   : > { %5868 = vpow2.f32 %v1504_v48  ;;  %v1503_v50 = vsub.f32 %v1492_v43, %v1501_v49 }
 0x654   : > { %v1506_v51 = vmul.f32 1.442695, %v1503_v50 }
 0x656   : > { %5870 = vpow2.f32 %v1506_v51  ;;  %v4792_v51 = vld [vmem:[%s7059_s11 + $0x2] ss:$0 sm:$0xff] }
 0x65f   : > { %v5869_v52 = vpop.eup %5868 }
 0x660   : > { %v1508_v53 = vsel %vm1079_vm2, %v5869_v52, 0.0 }
 0x661   : > { %1509 = vadd.xlane.f32.xlu0 %v1508_v53 }
 0x663   : > { %v5871_v54 = vpop.eup %5870 }
 0x664   : > { %v1511_v55 = vsel %vm1079_vm2, %v5871_v54, 0.0 }
 0x665   : > { %1512 = vadd.xlane.f32.xlu1 %v1511_v55 }
 0x6ea   : > { %v1510_v56 = vpop.xlane.xlu0 %1509 }
 0x6eb   : > { %5872 = vrcp.f32 %v1510_v56 }
 0x6ee   : > { %v1513_v57 = vpop.xlane.xlu1 %1512 }
 0x6ef   : > { %5874 = vrcp.f32 %v1513_v57 }
 0x6f8   : > { %v5873_v59 = vpop.eup %5872 }
 0x6f9   : > { %v1516_v62 = vmul.f32 %v5873_v59, %v5869_v52 }
 0x6fc   : > { %v5875_v60 = vpop.eup %5874 }
 0x6fd   : > { %v1517_v63 = vmul.f32 %v5875_v60, %v5871_v54 }
 0x6ff   : > { %v1518_v1 = vpack.c.bf16 %v1517_v63, %v1516_v62 }
 0x701   : > { %5364 = vmatmul.mubr.msk.bf16.vlgmr.msra.gmra.mxu1 %vm1079_vm2, %v1518_v1 }
 0x702   : > { %5374 = vmatpush3.bf16.msra.mxu1 %v1621_v2  ;;  %5375 = vmatprep.mubr.msk.bf16.mxu1 %vm5957_vm1, %v5956_v31 }
 0x703   : > { %5391 = vmatprep.subr.bf16.mxu1 %v5956_v31 }
 0x709   : > { %5376 = vmatmul.mubr.msk.bf16.vlgmr.msra.gmra.mxu1 %vm1079_vm2, %v1199_v25  ;;  %v4777_v25 = vld [vmem:[%s7057_s9 + $0x2] ss:$0 sm:$0xff] }
 0x70a   : > { %5392 = vmatpush3.bf16.msra.mxu1 %v5754_v3  ;;  %5399 = vmatprep.mubr.msk.bf16.mxu1 %vm5957_vm1, %v5956_v31 }
 0x70b   : > { %5393 = vmatprep.subr.bf16.mxu1 %v5956_v31 }
 0x70e   : > { %5394 = vmatpush3.bf16.msra.mxu1 %v5755_v4 }
 0x70f   : > { %5395 = vmatprep.subr.bf16.mxu1 %v5956_v31 }
 0x712   : > { %5396 = vmatpush3.bf16.msra.mxu1 %v5756_v5 }
 0x713   : > { %5397 = vmatprep.subr.bf16.mxu1 %v5956_v31 }
 0x716   : > { %5398 = vmatpush3.bf16.msra.mxu1 %v5757_v6 }
 0x717   : > { %5415 = vmatprep.subr.bf16.mxu1 %v5956_v31 }
 0x719   : > { %5400 = vmatmul.mubr.msk.bf16.vlgmr.msra.gmra.mxu1 %vm770_vm0, %v6174_v58 }
 0x71a   : > { %5417 = vmatprep.mubr.msk.bf16.mxu1 %vm5957_vm1, %v5956_v31 }
 0x7c1   : > { %v1560_v9 = vpop.f32.mrf.mxu1 }
 0x7c3   : > { %v5365_v12 = vpop.f32.mrf.mxu1 }
 0x7c5   : > { %v1563_v13 = vpop.f32.mrf.mxu1 }
 0x7c6   : > { %v1567_v15 = vpack.c.bf16 %v1563_v13, %v1560_v9 }
 0x7c7   : > { %v5366_v16 = vpop.f32.mrf.mxu1 }
 0x7c8   : > { %5370 = vmatmul.mubr.msk.bf16.vlgmr.msra.gmra.mxu0 %vm1079_vm2, %v1567_v15 }
 0x7c9   : > { %5380 = vmatpush3.bf16.msra.mxu0 %v5758_v14  ;;  %v6358_v17 = vpop.f32.mrf.mxu1  ;;  %5387 = vmatprep.mubr.msk.bf16.mxu0 %vm5957_vm1, %v5956_v31 }
 0x7ca   : > { %5381 = vmatprep.subr.bf16.mxu0 %v5956_v31 }
 0x7cb   : > { %v5377_v19 = vpop.f32.mrf.mxu1 }
 0x7cd   : > { %5382 = vmatpush3.bf16.msra.mxu0 %v5759_v18  ;;  %v6366_v20 = vpop.f32.mrf.mxu1 }
 0x7ce   : > { %5383 = vmatprep.subr.bf16.mxu0 %v5956_v31 }
 0x7cf   : > { %v5378_v22 = vpop.f32.mrf.mxu1 }
 0x7d1   : > { %5384 = vmatpush3.bf16.msra.mxu0 %v5760_v21 }
 0x7d2   : > { %5385 = vmatprep.subr.bf16.mxu0 %v5956_v31 }
 0x7d5   : > { %5386 = vmatpush3.bf16.msra.mxu0 %v5761_v23  ;;  %v5766_v23 = vld [vmem:[%s7094_s4 + $0x78] sm:$0xff]  }
 0x7d6   : > { %5403 = vmatprep.subr.bf16.mxu0 %v5956_v31 }
 0x7d8   : > { %5388 = vmatmul.mubr.msk.bf16.vlgmr.msra.gmra.mxu0 %vm770_vm0, %v6183_v0 }
 0x7d9   : > { %v1823_v26 = vpop.f32.mrf.mxu1  ;;  %5404 = vmatpush3.bf16.msra.mxu0 %v5762_v24  ;;  %5411 = vmatprep.mubr.msk.bf16.mxu0 %vm5957_vm1, %v5956_v31 }
 0x7da   : > { %v1824_v28 = vadd.f32 %v4777_v25, %v1823_v26  ;;  %5405 = vmatprep.subr.bf16.mxu0 %v5956_v31  ;;  %v5767_v25 = vld [vmem:[%s7094_s4 + $0x70] sm:$0xff]   ;;  %v5768_v26 = vld [vmem:[%s7094_s4 + $0x68] sm:$0xff]  }
 0x7db   : > { %v5401_v29 = vpop.f32.mrf.mxu1 }
 0x7dc   : > { %v1911_v30 = vpack.c.bf16 %v1824_v28, %v1824_v28  ;;  %v5770_v28 = vld [vmem:[%s7058_s10 + $0x78] sm:$0xff]   ;;  %v5771_v29 = vld [vmem:[%s7058_s10 + $0x70] sm:$0xff]  }
 0x7dd   : > { %v1826_v32 = vpop.f32.mrf.mxu1  ;;  %5406 = vmatpush3.bf16.msra.mxu0 %v5763_v27  ;;  %v5769_v27 = vld [vmem:[%s7094_s4 + $0x60] sm:$0xff]  }
 0x7de   : > { %v1916_v34 = vsel %vm1079_vm2, %v1911_v30, 0  ;;  %5407 = vmatprep.subr.bf16.mxu0 %v5956_v31  ;;  %v5772_v30 = vld [vmem:[%s7058_s10 + $0x68] sm:$0xff]   ;;  %v5773_v32 = vld [vmem:[%s7058_s10 + $0x60] sm:$0xff]  }
 0x7df   : > { %v5402_v35 = vpop.f32.mrf.mxu1  ;;  %5416 = vmatpush3.bf16.xpose.msra.mxu1 %v1916_v34 }
 0x7e0   : > { %5421 = vmatprep.subr.bf16.mxu1 %v5956_v31 }
 0x7e1   : > { %5408 = vmatpush3.bf16.msra.mxu0 %v5764_v33  ;;  %v4800_v33 = vld [vmem:[%s7060_s12 + $0x8] sm:$0xf] }
 0x7e2   : > { %5409 = vmatprep.subr.bf16.mxu0 %v5956_v31  ;;  %v2037_v34 = vsel %vm1154_vm3, %v4800_v33, 0 }
 0x7e5   : > { %5410 = vmatpush3.bf16.msra.mxu0 %v5765_v36 }
 0x7e6   : > { %5427 = vmatprep.subr.bf16.mxu0 %v5956_v31 }
 0x7e8   : > { %5412 = vmatmul.mubr.msk.bf16.vlgmr.msra.gmra.mxu0 %vm770_vm0, %v6174_v58 }
 0x7e9   : > { %5429 = vmatprep.mubr.msk.bf16.mxu0 %vm5957_vm1, %v5956_v31  ;;  %5428 = vmatpush3.bf16.msra.mxu0 %v2037_v34 }
 0x7ea   : > { %5445 = vmatprep.subr.bf16.mxu0 %v5956_v31 }
 0x888   : > { %v6406_v37 = vpop.f32.mrf.mxu0 }
 0x88a   : > { %v5371_v38 = vpop.f32.mrf.mxu0 }
 0x88c   : > { %v6408_v39 = vpop.f32.mrf.mxu0 }
 0x88e   : > { %v5372_v40 = vpop.f32.mrf.mxu0 }
 0x88f   : > { %v5774_v40 = vld [vmem:[%s7056_s8 + $0x78] sm:$0xff]  }
 0x898   : > { %v1739_v42 = vpop.f32.mrf.mxu0 }
 0x899   : > { %v1740_v44 = vadd.f32 %v4762_v41, %v1739_v42 }
 0x89a   : > { %v5389_v43 = vpop.f32.mrf.mxu0 }
 0x89b   : > { %v1746_v48 = vmul.f32 0.35355338, %v1740_v44  ;;  %v5775_v43 = vld [vmem:[%s7056_s8 + $0x70] sm:$0xff]   ;;  %v5776_v44 = vld [vmem:[%s7056_s8 + $0x68] sm:$0xff]  }
 0x89c   : > { %v1742_v45 = vpop.f32.mrf.mxu0 }
 0x89d   : > { %v1743_v46 = vadd.f32 %v4762_v41, %v1742_v45  ;;  %v4811_v45 = vld [vmem:[%s7055_s7 + $0x3] ss:$0 sm:$0xff] }
 0x89e   : > { %v5390_v47 = vpop.f32.mrf.mxu0 }
 0x89f   : > { %v1747_v49 = vmul.f32 0.35355338, %v1743_v46  ;;  %v5777_v47 = vld [vmem:[%s7056_s8 + $0x60] sm:$0xff]  }
 0x8a1   : > { %v1910_v50 = vpack.c.bf16 %v1747_v49, %v1746_v48 }
 0x8a3   : > { %5418 = vmatmul.mubr.msk.bf16.vlgmr.msra.gmra.mxu1 %vm1079_vm2, %v1910_v50 }
 0x8a4   : > { %5423 = vmatprep.mubr.msk.bf16.mxu1 %vm5957_vm1, %v5956_v31 }
 0x8a8   : > { %v1904_v52 = vpop.f32.mrf.mxu0 }
 0x8a9   : > { %v1905_v53 = vadd.f32 %v4792_v51, %v1904_v52 }
 0x8aa   : > { %v5413_v54 = vpop.f32.mrf.mxu0 }
 0x8ab   : > { %v1982_v55 = vpack.c.bf16 %v1905_v53, %v1905_v53 }
 0x8ac   : > { %v1907_v56 = vpop.f32.mrf.mxu0 }
 0x8ad   : > { %v1987_v57 = vsel %vm1154_vm3, %v1982_v55, 0 }
 0x8ae   : > { %v5414_v59 = vpop.f32.mrf.mxu0  ;;  %5422 = vmatpush3.bf16.msra.mxu1 %v1987_v57 }
 0x8af   : > { %5433 = vmatprep.subr.bf16.mxu1 %v5956_v31 }
 0x963   : > { %v1952_v60 = vpop.f32.mrf.mxu1 }
 0x964   : > { %v1959_v61 = vsel %vm1079_vm2, %v1952_v60, -inf }
 0x965   : > { %1960 = vmax.xlane.f32.xlu0 %v1959_v61  ;;  %v5419_v62 = vpop.f32.mrf.mxu1  ;;  %v1658_v61 = vadd.f32 %v6358_v17, %v6406_v37  ;;  %v4841_v17 = vld [vmem:[%s7059_s11 + $0x3] ss:$0 sm:$0xff] }
 0x967   : > { %v1955_v63 = vpop.f32.mrf.mxu1 }
 0x968   : > { %v1962_v1 = vsel %vm1079_vm2, %v1955_v63, -inf }
 0x969   : > { %1963 = vmax.xlane.f32.xlu1 %v1962_v1  ;;  %v5420_v2 = vpop.f32.mrf.mxu1 }
 0x96a   : > { %v1661_v2 = vadd.f32 %v6366_v20, %v6408_v39 }
 0x9ee   : > { %v1961_v3 = vpop.xlane.xlu0 %1960 }
 0x9ef   : > { %v1965_v4 = vsub.f32 %v1952_v60, %v1961_v3 }
 0x9f1   : > { %v1967_v5 = vmul.f32 1.442695, %v1965_v4 }
 0x9f2   : > { %v1964_v6 = vpop.xlane.xlu1 %1963 }
 0x9f3   : > { %5876 = vpow2.f32 %v1967_v5  ;;  %v1966_v7 = vsub.f32 %v1955_v63, %v1964_v6  ;;  %v4826_v6 = vld [vmem:[%s7057_s9 + $0x3] ss:$0 sm:$0xff] }
 0x9f5   : > { %v1969_v8 = vmul.f32 1.442695, %v1966_v7 }
 0x9f7   : > { %5878 = vpow2.f32 %v1969_v8 }
 0xa00   : > { %v5877_v9 = vpop.eup %5876 }
 0xa01   : > { %v1971_v12 = vsel %vm1079_vm2, %v5877_v9, 0.0 }
 0xa02   : > { %1972 = vadd.xlane.f32.xlu0 %v1971_v12 }
 0xa04   : > { %v5879_v13 = vpop.eup %5878 }
 0xa05   : > { %v1974_v14 = vsel %vm1079_vm2, %v5879_v13, 0.0 }
 0xa06   : > { %1975 = vadd.xlane.f32.xlu1 %v1974_v14 }
 0xa8b   : > { %v1973_v15 = vpop.xlane.xlu0 %1972 }
 0xa8c   : > { %5880 = vrcp.f32 %v1973_v15 }
 0xa8f   : > { %v1976_v16 = vpop.xlane.xlu1 %1975 }
 0xa90   : > { %5882 = vrcp.f32 %v1976_v16 }
 0xa99   : > { %v5881_v18 = vpop.eup %5880 }
 0xa9a   : > { %v1979_v21 = vmul.f32 %v5881_v18, %v5877_v9 }
 0xa9d   : > { %v5883_v19 = vpop.eup %5882 }
 0xa9e   : > { %v1980_v22 = vmul.f32 %v5883_v19, %v5879_v13 }
 0xaa0   : > { %v1981_v24 = vpack.c.bf16 %v1980_v22, %v1979_v21 }
 0xaa2   : > { %5424 = vmatmul.mubr.msk.bf16.vlgmr.msra.gmra.mxu1 %vm1079_vm2, %v1981_v24 }
 0xaa3   : > { %5434 = vmatpush3.bf16.msra.mxu1 %v5766_v23  ;;  %5441 = vmatprep.mubr.msk.bf16.mxu1 %vm5957_vm1, %v5956_v31 }
 0xaa4   : > { %5435 = vmatprep.subr.bf16.mxu1 %v5956_v31 }
 0xaa7   : > { %5436 = vmatpush3.bf16.msra.mxu1 %v5767_v25 }
 0xaa8   : > { %5437 = vmatprep.subr.bf16.mxu1 %v5956_v31 }
 0xaab   : > { %5438 = vmatpush3.bf16.msra.mxu1 %v5768_v26 }
 0xaac   : > { %5439 = vmatprep.subr.bf16.mxu1 %v5956_v31 }
 0xaaf   : > { %5440 = vmatpush3.bf16.msra.mxu1 %v5769_v27 }
 0xab0   : > { %5457 = vmatprep.subr.bf16.mxu1 %v5956_v31 }
 0xab2   : > { %5442 = vmatmul.mubr.msk.bf16.vlgmr.msra.gmra.mxu1 %vm770_vm0, %v6183_v0 }
 0xab3   : > { %5458 = vmatpush3.bf16.msra.mxu1 %v5770_v28  ;;  %5465 = vmatprep.mubr.msk.bf16.mxu1 %vm5957_vm1, %v5956_v31 }
 0xab4   : > { %5459 = vmatprep.subr.bf16.mxu1 %v5956_v31 }
 0xab7   : > { %5460 = vmatpush3.bf16.msra.mxu1 %v5771_v29 }
 0xab8   : > { %5461 = vmatprep.subr.bf16.mxu1 %v5956_v31 }
 0xabb   : > { %5462 = vmatpush3.bf16.msra.mxu1 %v5772_v30 }
 0xabc   : > { %5463 = vmatprep.subr.bf16.mxu1 %v5956_v31 }
 0xabf   : > { %5464 = vmatpush3.bf16.msra.mxu1 %v5773_v32 }
 0xac0   : > { %5481 = vmatprep.subr.bf16.mxu1 %v5956_v31 }
 0xac2   : > { %5466 = vmatmul.mubr.msk.bf16.vlgmr.msra.gmra.mxu1 %vm770_vm0, %v6174_v58 }
 0xac3   : > { %5483 = vmatprep.mubr.msk.bf16.mxu1 %vm5957_vm1, %v5956_v31 }
 0xb62   : > { %v2023_v35 = vpop.f32.mrf.mxu1 }
 0xb64   : > { %v5425_v36 = vpop.f32.mrf.mxu1 }
 0xb66   : > { %v2026_v38 = vpop.f32.mrf.mxu1 }
 0xb67   : > { %v2030_v41 = vpack.c.bf16 %v2026_v38, %v2023_v35 }
 0xb68   : > { %v5426_v42 = vpop.f32.mrf.mxu1 }
 0xb69   : > { %5430 = vmatmul.mubr.msk.bf16.vlgmr.msra.gmra.mxu0 %vm1079_vm2, %v2030_v41 }
 0xb6a   : > { %5446 = vmatpush3.bf16.msra.mxu0 %v5774_v40  ;;  %5453 = vmatprep.mubr.msk.bf16.mxu0 %vm5957_vm1, %v5956_v31 }
 0xb6b   : > { %5447 = vmatprep.subr.bf16.mxu0 %v5956_v31 }
 0xb6e   : > { %5448 = vmatpush3.bf16.msra.mxu0 %v5775_v43  ;;  %v5778_v43 = vld [vmem:[%s7094_s4 + $0x98] sm:$0xff]  }
 0xb6f   : > { %5449 = vmatprep.subr.bf16.mxu0 %v5956_v31 }
 0xb72   : > { %v2157_v46 = vpop.f32.mrf.mxu1  ;;  %5450 = vmatpush3.bf16.msra.mxu0 %v5776_v44 }
 0xb73   : > { %5451 = vmatprep.subr.bf16.mxu0 %v5956_v31  ;;  %v2158_v49 = vadd.f32 %v4811_v45, %v2157_v46  ;;  %v5780_v46 = vld [vmem:[%s7094_s4 + $0x88] sm:$0xff]  }
 0xb74   : > { %v5443_v48 = vpop.f32.mrf.mxu1 }
 0xb75   : > { %v2164_v53 = vmul.f32 0.35355338, %v2158_v49  ;;  %v5782_v48 = vld [vmem:[%s7058_s10 + $0x98] sm:$0xff]   ;;  %v5783_v49 = vld [vmem:[%s7058_s10 + $0x90] sm:$0xff]  }
 0xb76   : > { %v2160_v50 = vpop.f32.mrf.mxu1  ;;  %5452 = vmatpush3.bf16.msra.mxu0 %v5777_v47  ;;  %v5781_v47 = vld [vmem:[%s7094_s4 + $0x80] sm:$0xff]  }
 0xb77   : > { %v2161_v51 = vadd.f32 %v4811_v45, %v2160_v50  ;;  %5469 = vmatprep.subr.bf16.mxu0 %v5956_v31  ;;  %v5779_v45 = vld [vmem:[%s7094_s4 + $0x90] sm:$0xff]   ;;  %v5784_v50 = vld [vmem:[%s7058_s10 + $0x88] sm:$0xff]  }
 0xb78   : > { %v5444_v52 = vpop.f32.mrf.mxu1 }
 0xb79   : > { %v2165_v54 = vmul.f32 0.35355338, %v2161_v51  ;;  %5454 = vmatmul.mubr.msk.bf16.vlgmr.msra.gmra.mxu0 %vm770_vm0, %v6174_v58  ;;  %v5785_v51 = vld [vmem:[%s7058_s10 + $0x80] sm:$0xff]   ;;  %v4849_v52 = vld [vmem:[%s7060_s12 + $0xc] sm:$0xf] }
 0xb7a   : > { %5471 = vmatprep.mubr.msk.bf16.mxu0 %vm5957_vm1, %v5956_v31 }
 0xb7b   : > { %v2328_v55 = vpack.c.bf16 %v2165_v54, %v2164_v53  ;;  %v2455_v53 = vsel %vm1154_vm3, %v4849_v52, 0 }
 0xb7c   : > { %5482 = vmatpush3.bf16.msra.mxu1 %v2455_v53 }
 0xb7d   : > { %5499 = vmatprep.subr.bf16.mxu1 %v5956_v31 }
 0xb82   : > { %v2322_v56 = vpop.f32.mrf.mxu1 }
 0xb83   : > { %v2323_v13 = vadd.f32 %v4841_v17, %v2322_v56 }
 0xb84   : > { %v5467_v57 = vpop.f32.mrf.mxu1 }
 0xb85   : > { %v2400_v14 = vpack.c.bf16 %v2323_v13, %v2323_v13  ;;  %v5786_v57 = vld [vmem:[%s7056_s8 + $0x98] sm:$0xff]  }
 0xb86   : > { %v2325_v59 = vpop.f32.mrf.mxu1 }
 0xb87   : > { %v2405_v15 = vsel %vm1154_vm3, %v2400_v14, 0 }
 0xb88   : > { %v5468_v60 = vpop.f32.mrf.mxu1 }
 0xc29   : > { %v2073_v62 = vpop.f32.mrf.mxu0 }
 0xc2a   : > { %v6501_v63 = vadd.f32 %v2073_v62, %v1658_v61  ;;  %v5787_v61 = vld [vmem:[%s7056_s8 + $0x90] sm:$0xff]   ;;  %v5788_v62 = vld [vmem:[%s7056_s8 + $0x88] sm:$0xff]  }
 0xc2b   : > { %v5431_v1 = vpop.f32.mrf.mxu0 }
 0xc2c   : > { %v4860_v1 = vld [vmem:[%s7055_s7 + $0x4] ss:$0 sm:$0xff] }
 0xc2d   : > { %v2076_v3 = vpop.f32.mrf.mxu0 }
 0xc2e   : > { %v6505_v4 = vadd.f32 %v2076_v3, %v1661_v2  ;;  %v5789_v3 = vld [vmem:[%s7056_s8 + $0x80] sm:$0xff]  }
 0xc2f   : > { %v5432_v5 = vpop.f32.mrf.mxu0 }
 0xc39   : > { %v2241_v7 = vpop.f32.mrf.mxu0 }
 0xc3a   : > { %v2242_v8 = vadd.f32 %v4826_v6, %v2241_v7 }
 0xc3b   : > { %v5455_v37 = vpop.f32.mrf.mxu0 }
 0xc3c   : > { %v2329_v9 = vpack.c.bf16 %v2242_v8, %v2242_v8 }
 0xc3d   : > { %v2244_v12 = vpop.f32.mrf.mxu0 }
 0xc3e   : > { %v2334_v20 = vsel %vm1079_vm2, %v2329_v9, 0 }
 0xc3f   : > { %v5456_v39 = vpop.f32.mrf.mxu0  ;;  %5470 = vmatpush3.bf16.xpose.msra.mxu0 %v2334_v20 }
 0xc40   : > { %5475 = vmatprep.subr.bf16.mxu0 %v5956_v31 }
 0xc46   : > { %5472 = vmatmul.mubr.msk.bf16.vlgmr.msra.gmra.mxu0 %vm1079_vm2, %v2328_v55 }
 0xc47   : > { %5476 = vmatpush3.bf16.msra.mxu0 %v2405_v15  ;;  %5477 = vmatprep.mubr.msk.bf16.mxu0 %vm5957_vm1, %v5956_v31 }
 0xc48   : > { %5487 = vmatprep.subr.bf16.mxu0 %v5956_v31 }
 0xd06   : > { %v2370_v16 = vpop.f32.mrf.mxu0 }
 0xd07   : > { %v2377_v18 = vsel %vm1079_vm2, %v2370_v16, -inf }
 0xd08   : > { %2378 = vmax.xlane.f32.xlu0 %v2377_v18  ;;  %v5473_v19 = vpop.f32.mrf.mxu0 }
 0xd0a   : > { %v2373_v21 = vpop.f32.mrf.mxu0 }
 0xd0b   : > { %v2380_v22 = vsel %vm1079_vm2, %v2373_v21, -inf }
 0xd0c   : > { %2381 = vmax.xlane.f32.xlu1 %v2380_v22  ;;  %v5474_v23 = vpop.f32.mrf.mxu0 }
 0xd0d   : > { %v4875_v23 = vld [vmem:[%s7057_s9 + $0x4] ss:$0 sm:$0xff] }
 0xd91   : > { %v2379_v24 = vpop.xlane.xlu0 %2378 }
 0xd92   : > { %v2383_v25 = vsub.f32 %v2370_v16, %v2379_v24 }
 0xd94   : > { %v2385_v26 = vmul.f32 1.442695, %v2383_v25 }
 0xd95   : > { %v2382_v27 = vpop.xlane.xlu1 %2381 }
 0xd96   : > { %5884 = vpow2.f32 %v2385_v26  ;;  %v2384_v28 = vsub.f32 %v2373_v21, %v2382_v27  ;;  %v4890_v26 = vld [vmem:[%s7059_s11 + $0x4] ss:$0 sm:$0xff] }
 0xd98   : > { %v2387_v29 = vmul.f32 1.442695, %v2384_v28 }
 0xd9a   : > { %5886 = vpow2.f32 %v2387_v29 }
 0xda3   : > { %v5885_v30 = vpop.eup %5884 }
 0xda4   : > { %v2389_v32 = vsel %vm1079_vm2, %v5885_v30, 0.0 }
 0xda5   : > { %2390 = vadd.xlane.f32.xlu0 %v2389_v32 }
 0xda7   : > { %v5887_v33 = vpop.eup %5886 }
 0xda8   : > { %v2392_v34 = vsel %vm1079_vm2, %v5887_v33, 0.0 }
 0xda9   : > { %2393 = vadd.xlane.f32.xlu1 %v2392_v34 }
 0xe2e   : > { %v2391_v35 = vpop.xlane.xlu0 %2390 }
 0xe2f   : > { %5888 = vrcp.f32 %v2391_v35 }
 0xe32   : > { %v2394_v36 = vpop.xlane.xlu1 %2393 }
 0xe33   : > { %5890 = vrcp.f32 %v2394_v36 }
 0xe3c   : > { %v5889_v38 = vpop.eup %5888 }
 0xe3d   : > { %v2397_v41 = vmul.f32 %v5889_v38, %v5885_v30 }
 0xe40   : > { %v5891_v40 = vpop.eup %5890 }
 0xe41   : > { %v2398_v42 = vmul.f32 %v5891_v40, %v5887_v33 }
 0xe43   : > { %v2399_v44 = vpack.c.bf16 %v2398_v42, %v2397_v41 }
 0xe45   : > { %5478 = vmatmul.mubr.msk.bf16.vlgmr.msra.gmra.mxu0 %vm1079_vm2, %v2399_v44 }
 0xe46   : > { %5488 = vmatpush3.bf16.msra.mxu0 %v5778_v43  ;;  %5495 = vmatprep.mubr.msk.bf16.mxu0 %vm5957_vm1, %v5956_v31 }
 0xe47   : > { %5489 = vmatprep.subr.bf16.mxu0 %v5956_v31 }
 0xe4a   : > { %5490 = vmatpush3.bf16.msra.mxu0 %v5779_v45 }
 0xe4b   : > { %5491 = vmatprep.subr.bf16.mxu0 %v5956_v31 }
 0xe4e   : > { %5492 = vmatpush3.bf16.msra.mxu0 %v5780_v46 }
 0xe4f   : > { %5493 = vmatprep.subr.bf16.mxu0 %v5956_v31 }
 0xe52   : > { %5494 = vmatpush3.bf16.msra.mxu0 %v5781_v47 }
 0xe53   : > { %5511 = vmatprep.subr.bf16.mxu0 %v5956_v31 }
 0xe55   : > { %5496 = vmatmul.mubr.msk.bf16.vlgmr.msra.gmra.mxu0 %vm770_vm0, %v6183_v0 }
 0xe56   : > { %5512 = vmatpush3.bf16.msra.mxu0 %v5782_v48  ;;  %5519 = vmatprep.mubr.msk.bf16.mxu0 %vm5957_vm1, %v5956_v31 }
 0xe57   : > { %5513 = vmatprep.subr.bf16.mxu0 %v5956_v31 }
 0xe5a   : > { %5514 = vmatpush3.bf16.msra.mxu0 %v5783_v49 }
 0xe5b   : > { %5515 = vmatprep.subr.bf16.mxu0 %v5956_v31 }
 0xe5e   : > { %5516 = vmatpush3.bf16.msra.mxu0 %v5784_v50 }
 0xe5f   : > { %5517 = vmatprep.subr.bf16.mxu0 %v5956_v31 }
 0xe62   : > { %5518 = vmatpush3.bf16.msra.mxu0 %v5785_v51 }
 0xe63   : > { %5535 = vmatprep.subr.bf16.mxu0 %v5956_v31 }
 0xe65   : > { %5520 = vmatmul.mubr.msk.bf16.vlgmr.msra.gmra.mxu0 %vm770_vm0, %v6174_v58 }
 0xe66   : > { %5537 = vmatprep.mubr.msk.bf16.mxu0 %vm5957_vm1, %v5956_v31 }
 0xf05   : > { %v2441_v54 = vpop.f32.mrf.mxu0 }
 0xf07   : > { %v5479_v55 = vpop.f32.mrf.mxu0 }
 0xf09   : > { %v2444_v56 = vpop.f32.mrf.mxu0 }
 0xf0a   : > { %v2448_v59 = vpack.c.bf16 %v2444_v56, %v2441_v54 }
 0xf0b   : > { %v5480_v60 = vpop.f32.mrf.mxu0 }
 0xf0c   : > { %5484 = vmatmul.mubr.msk.bf16.vlgmr.msra.gmra.mxu1 %vm1079_vm2, %v2448_v59  ;;  %v5790_v59 = vld [vmem:[%s7094_s4 + $0xb8] sm:$0xff]  }
 0xf0d   : > { %5500 = vmatpush3.bf16.msra.mxu1 %v5786_v57  ;;  %5507 = vmatprep.mubr.msk.bf16.mxu1 %vm5957_vm1, %v5956_v31 }
 0xf0e   : > { %5501 = vmatprep.subr.bf16.mxu1 %v5956_v31 }
 0xf11   : > { %5502 = vmatpush3.bf16.msra.mxu1 %v5787_v61  ;;  %v5791_v61 = vld [vmem:[%s7094_s4 + $0xb0] sm:$0xff]  }
 0xf12   : > { %5503 = vmatprep.subr.bf16.mxu1 %v5956_v31 }
 0xf15   : > { %v2575_v2 = vpop.f32.mrf.mxu0  ;;  %5504 = vmatpush3.bf16.msra.mxu1 %v5788_v62  ;;  %v5792_v62 = vld [vmem:[%s7094_s4 + $0xa8] sm:$0xff]  }
 0xf16   : > { %5505 = vmatprep.subr.bf16.mxu1 %v5956_v31  ;;  %v2576_v6 = vadd.f32 %v4860_v1, %v2575_v2  ;;  %v5794_v2 = vld [vmem:[%s7058_s10 + $0xb8] sm:$0xff]  }
 0xf17   : > { %v5497_v5 = vpop.f32.mrf.mxu0 }
 0xf18   : > { %v2582_v37 = vmul.f32 0.35355338, %v2576_v6  ;;  %v5796_v5 = vld [vmem:[%s7058_s10 + $0xa8] sm:$0xff]   ;;  %v5797_v6 = vld [vmem:[%s7058_s10 + $0xa0] sm:$0xff]  }
 0xf19   : > { %v2578_v7 = vpop.f32.mrf.mxu0  ;;  %5506 = vmatpush3.bf16.msra.mxu1 %v5789_v3  ;;  %v5795_v3 = vld [vmem:[%s7058_s10 + $0xb0] sm:$0xff]  }
 0xf1a   : > { %v2579_v8 = vadd.f32 %v4860_v1, %v2578_v7  ;;  %5523 = vmatprep.subr.bf16.mxu1 %v5956_v31  ;;  %v5793_v1 = vld [vmem:[%s7094_s4 + $0xa0] sm:$0xff]   ;;  %v4898_v7 = vld [vmem:[%s7060_s12 + $0x10] sm:$0xf] }
 0xf1b   : > { %v5498_v17 = vpop.f32.mrf.mxu0 }
 0xf1c   : > { %v2583_v9 = vmul.f32 0.35355338, %v2579_v8  ;;  %5508 = vmatmul.mubr.msk.bf16.vlgmr.msra.gmra.mxu1 %vm770_vm0, %v6174_v58  ;;  %v2873_v8 = vsel %vm1154_vm3, %v4898_v7, 0 }
 0xf1d   : > { %5525 = vmatprep.mubr.msk.bf16.mxu1 %vm5957_vm1, %v5956_v31  ;;  %5536 = vmatpush3.bf16.msra.mxu0 %v2873_v8 }
 0xf1e   : > { %v2746_v12 = vpack.c.bf16 %v2583_v9, %v2582_v37  ;;  %5553 = vmatprep.subr.bf16.mxu0 %v5956_v31 }
 0xf25   : > { %v2740_v13 = vpop.f32.mrf.mxu0 }
 0xf26   : > { %v2741_v29 = vadd.f32 %v4890_v26, %v2740_v13 }
 0xf27   : > { %v5521_v20 = vpop.f32.mrf.mxu0 }
 0xf29   : > { %v2743_v39 = vpop.f32.mrf.mxu0 }
 0xf2a   : > { %v5799_v39 = vld [vmem:[%s7056_s8 + $0xb0] sm:$0xff]  }
 0xf2b   : > { %v5522_v14 = vpop.f32.mrf.mxu0 }
 0xf2c   : > { %v5800_v14 = vld [vmem:[%s7056_s8 + $0xa8] sm:$0xff]  }
 0xfcc   : > { %v2491_v15 = vpop.f32.mrf.mxu1 }
 0xfcd   : > { %v6599_v16 = vadd.f32 %v2491_v15, %v6501_v63  ;;  %v4909_v15 = vld [vmem:[%s7055_s7 + $0x5] ss:$0 sm:$0xff] }
 0xfce   : > { %v5485_v18 = vpop.f32.mrf.mxu1 }
 0xfd0   : > { %v2494_v19 = vpop.f32.mrf.mxu1 }
 0xfd1   : > { %v6602_v21 = vadd.f32 %v2494_v19, %v6505_v4  ;;  %v2818_v4 = vpack.c.bf16 %v2741_v29, %v2741_v29  ;;  %v5801_v19 = vld [vmem:[%s7056_s8 + $0xa0] sm:$0xff]  }
 0xfd2   : > { %v5486_v22 = vpop.f32.mrf.mxu1 }
 0xfd3   : > { %v2823_v33 = vsel %vm1154_vm3, %v2818_v4, 0 }
 0xfdc   : > { %v2659_v24 = vpop.f32.mrf.mxu1 }
 0xfdd   : > { %v2660_v25 = vadd.f32 %v4875_v23, %v2659_v24 }
 0xfde   : > { %v5509_v27 = vpop.f32.mrf.mxu1 }
 0xfdf   : > { %v2747_v28 = vpack.c.bf16 %v2660_v25, %v2660_v25 }
 0xfe0   : > { %v2662_v63 = vpop.f32.mrf.mxu1 }
 0xfe1   : > { %v2752_v30 = vsel %vm1079_vm2, %v2747_v28, 0 }
 0xfe2   : > { %v5510_v32 = vpop.f32.mrf.mxu1  ;;  %5524 = vmatpush3.bf16.xpose.msra.mxu1 %v2752_v30 }
 0xfe3   : > { %5529 = vmatprep.subr.bf16.mxu1 %v5956_v31 }
 0xfe9   : > { %5526 = vmatmul.mubr.msk.bf16.vlgmr.msra.gmra.mxu1 %vm1079_vm2, %v2746_v12  ;;  %v5798_v12 = vld [vmem:[%s7056_s8 + $0xb8] sm:$0xff]  }
 0xfea   : > { %5530 = vmatpush3.bf16.msra.mxu1 %v2823_v33  ;;  %5531 = vmatprep.mubr.msk.bf16.mxu1 %vm5957_vm1, %v5956_v31 }
 0xfeb   : > { %5541 = vmatprep.subr.bf16.mxu1 %v5956_v31 }
0x10a9   : > { %v2788_v34 = vpop.f32.mrf.mxu1 }
0x10aa   : > { %v2795_v35 = vsel %vm1079_vm2, %v2788_v34, -inf }
0x10ab   : > { %2796 = vmax.xlane.f32.xlu0 %v2795_v35  ;;  %v5527_v36 = vpop.f32.mrf.mxu1 }
0x10ad   : > { %v2791_v38 = vpop.f32.mrf.mxu1 }
0x10ae   : > { %v2798_v40 = vsel %vm1079_vm2, %v2791_v38, -inf }
0x10af   : > { %2799 = vmax.xlane.f32.xlu1 %v2798_v40  ;;  %v5528_v41 = vpop.f32.mrf.mxu1 }
0x10b0   : > { %v4924_v41 = vld [vmem:[%s7057_s9 + $0x5] ss:$0 sm:$0xff] }
0x1134   : > { %v2797_v42 = vpop.xlane.xlu0 %2796 }
0x1135   : > { %v2801_v43 = vsub.f32 %v2788_v34, %v2797_v42 }
0x1137   : > { %v2803_v44 = vmul.f32 1.442695, %v2801_v43 }
0x1138   : > { %v2800_v45 = vpop.xlane.xlu1 %2799 }
0x1139   : > { %5892 = vpow2.f32 %v2803_v44  ;;  %v2802_v46 = vsub.f32 %v2791_v38, %v2800_v45  ;;  %v4939_v44 = vld [vmem:[%s7059_s11 + $0x5] ss:$0 sm:$0xff] }
0x113b   : > { %v2805_v47 = vmul.f32 1.442695, %v2802_v46 }
0x113d   : > { %5894 = vpow2.f32 %v2805_v47 }
0x1146   : > { %v5893_v48 = vpop.eup %5892 }
0x1147   : > { %v2807_v49 = vsel %vm1079_vm2, %v5893_v48, 0.0 }
0x1148   : > { %2808 = vadd.xlane.f32.xlu0 %v2807_v49 }
0x114a   : > { %v5895_v50 = vpop.eup %5894 }
0x114b   : > { %v2810_v51 = vsel %vm1079_vm2, %v5895_v50, 0.0 }
0x114c   : > { %2811 = vadd.xlane.f32.xlu1 %v2810_v51 }
0x11d1   : > { %v2809_v52 = vpop.xlane.xlu0 %2808 }
0x11d2   : > { %5896 = vrcp.f32 %v2809_v52 }
0x11d5   : > { %v2812_v53 = vpop.xlane.xlu1 %2811 }
0x11d6   : > { %5898 = vrcp.f32 %v2812_v53 }
0x11df   : > { %v5897_v54 = vpop.eup %5896 }
0x11e0   : > { %v2815_v56 = vmul.f32 %v5897_v54, %v5893_v48 }
0x11e3   : > { %v5899_v55 = vpop.eup %5898 }
0x11e4   : > { %v2816_v57 = vmul.f32 %v5899_v55, %v5895_v50 }
0x11e6   : > { %v2817_v60 = vpack.c.bf16 %v2816_v57, %v2815_v56 }
0x11e8   : > { %5532 = vmatmul.mubr.msk.bf16.vlgmr.msra.gmra.mxu1 %vm1079_vm2, %v2817_v60 }
0x11e9   : > { %5542 = vmatpush3.bf16.msra.mxu1 %v5790_v59  ;;  %5549 = vmatprep.mubr.msk.bf16.mxu1 %vm5957_vm1, %v5956_v31 }
0x11ea   : > { %5543 = vmatprep.subr.bf16.mxu1 %v5956_v31 }
0x11ed   : > { %5544 = vmatpush3.bf16.msra.mxu1 %v5791_v61 }
0x11ee   : > { %5545 = vmatprep.subr.bf16.mxu1 %v5956_v31 }
0x11f1   : > { %5546 = vmatpush3.bf16.msra.mxu1 %v5792_v62 }
0x11f2   : > { %5547 = vmatprep.subr.bf16.mxu1 %v5956_v31 }
0x11f5   : > { %5548 = vmatpush3.bf16.msra.mxu1 %v5793_v1 }
0x11f6   : > { %5565 = vmatprep.subr.bf16.mxu1 %v5956_v31 }
0x11f8   : > { %5550 = vmatmul.mubr.msk.bf16.vlgmr.msra.gmra.mxu1 %vm770_vm0, %v6183_v0 }
0x11f9   : > { %5566 = vmatpush3.bf16.msra.mxu1 %v5794_v2  ;;  %5573 = vmatprep.mubr.msk.bf16.mxu1 %vm5957_vm1, %v5956_v31 }
0x11fa   : > { %5567 = vmatprep.subr.bf16.mxu1 %v5956_v31 }
0x11fd   : > { %5568 = vmatpush3.bf16.msra.mxu1 %v5795_v3 }
0x11fe   : > { %5569 = vmatprep.subr.bf16.mxu1 %v5956_v31 }
0x1201   : > { %5570 = vmatpush3.bf16.msra.mxu1 %v5796_v5 }
0x1202   : > { %5571 = vmatprep.subr.bf16.mxu1 %v5956_v31 }
0x1205   : > { %5572 = vmatpush3.bf16.msra.mxu1 %v5797_v6 }
0x1206   : > { %5589 = vmatprep.subr.bf16.mxu1 %v5956_v31 }
0x1208   : > { %5574 = vmatmul.mubr.msk.bf16.vlgmr.msra.gmra.mxu1 %vm770_vm0, %v6174_v58 }
0x1209   : > { %5591 = vmatprep.mubr.msk.bf16.mxu1 %vm5957_vm1, %v5956_v31 }
0x12a8   : > { %v2859_v17 = vpop.f32.mrf.mxu1 }
0x12aa   : > { %v5533_v37 = vpop.f32.mrf.mxu1 }
0x12ac   : > { %v2862_v9 = vpop.f32.mrf.mxu1 }
0x12ad   : > { %v2866_v13 = vpack.c.bf16 %v2862_v9, %v2859_v17 }
0x12ae   : > { %v5534_v20 = vpop.f32.mrf.mxu1 }
0x12af   : > { %5538 = vmatmul.mubr.msk.bf16.vlgmr.msra.gmra.mxu0 %vm1079_vm2, %v2866_v13  ;;  %v5802_v13 = vld [vmem:[%s7094_s4 + $0xd8] sm:$0xff]  }
0x12b0   : > { %5554 = vmatpush3.bf16.msra.mxu0 %v5798_v12  ;;  %5561 = vmatprep.mubr.msk.bf16.mxu0 %vm5957_vm1, %v5956_v31 }
0x12b1   : > { %5555 = vmatprep.subr.bf16.mxu0 %v5956_v31 }
0x12b4   : > { %5556 = vmatpush3.bf16.msra.mxu0 %v5799_v39  ;;  %v5803_v39 = vld [vmem:[%s7094_s4 + $0xd0] sm:$0xff]  }
0x12b5   : > { %5557 = vmatprep.subr.bf16.mxu0 %v5956_v31 }
0x12b8   : > { %v2993_v18 = vpop.f32.mrf.mxu1  ;;  %5558 = vmatpush3.bf16.msra.mxu0 %v5800_v14  ;;  %v5804_v14 = vld [vmem:[%s7094_s4 + $0xc8] sm:$0xff]  }
0x12b9   : > { %5559 = vmatprep.subr.bf16.mxu0 %v5956_v31  ;;  %v2994_v23 = vadd.f32 %v4909_v15, %v2993_v18  ;;  %v5806_v18 = vld [vmem:[%s7058_s10 + $0xd8] sm:$0xff]  }
0x12ba   : > { %v5551_v22 = vpop.f32.mrf.mxu1 }
0x12bb   : > { %v3000_v27 = vmul.f32 0.35355338, %v2994_v23  ;;  %v5808_v22 = vld [vmem:[%s7058_s10 + $0xc8] sm:$0xff]   ;;  %v5809_v23 = vld [vmem:[%s7058_s10 + $0xc0] sm:$0xff]  }
0x12bc   : > { %v2996_v24 = vpop.f32.mrf.mxu1  ;;  %5560 = vmatpush3.bf16.msra.mxu0 %v5801_v19  ;;  %v5807_v19 = vld [vmem:[%s7058_s10 + $0xd0] sm:$0xff]  }
0x12bd   : > { %v2997_v25 = vadd.f32 %v4909_v15, %v2996_v24  ;;  %5577 = vmatprep.subr.bf16.mxu0 %v5956_v31  ;;  %v5805_v15 = vld [vmem:[%s7094_s4 + $0xc0] sm:$0xff]   ;;  %v4947_v24 = vld [vmem:[%s7060_s12 + $0x14] sm:$0xf] }
0x12be   : > { %v5552_v26 = vpop.f32.mrf.mxu1 }
0x12bf   : > { %v3001_v28 = vmul.f32 0.35355338, %v2997_v25  ;;  %5562 = vmatmul.mubr.msk.bf16.vlgmr.msra.gmra.mxu0 %vm770_vm0, %v6174_v58  ;;  %v3291_v25 = vsel %vm1154_vm3, %v4947_v24, 0 }
0x12c0   : > { %5579 = vmatprep.mubr.msk.bf16.mxu0 %vm5957_vm1, %v5956_v31  ;;  %5590 = vmatpush3.bf16.msra.mxu1 %v3291_v25 }
0x12c1   : > { %v3164_v63 = vpack.c.bf16 %v3001_v28, %v3000_v27  ;;  %5607 = vmatprep.subr.bf16.mxu1 %v5956_v31 }
0x12c8   : > { %v3158_v29 = vpop.f32.mrf.mxu1 }
0x12c9   : > { %v3159_v47 = vadd.f32 %v4939_v44, %v3158_v29 }
0x12ca   : > { %v5575_v30 = vpop.f32.mrf.mxu1 }
0x12cc   : > { %v3161_v32 = vpop.f32.mrf.mxu1 }
0x12cd   : > { %v5811_v32 = vld [vmem:[%s7056_s8 + $0xd0] sm:$0xff]  }
0x12ce   : > { %v5576_v4 = vpop.f32.mrf.mxu1 }
0x12cf   : > { %v5812_v4 = vld [vmem:[%s7056_s8 + $0xc8] sm:$0xff]  }
0x136f   : > { %v2909_v33 = vpop.f32.mrf.mxu0 }
0x1370   : > { %v6696_v34 = vadd.f32 %v2909_v33, %v6599_v16  ;;  %v4958_v33 = vld [vmem:[%s7055_s7 + $0x6] ss:$0 sm:$0xff] }
0x1371   : > { %v5539_v35 = vpop.f32.mrf.mxu0 }
0x1373   : > { %v2912_v36 = vpop.f32.mrf.mxu0 }
0x1374   : > { %v6699_v38 = vadd.f32 %v2912_v36, %v6602_v21  ;;  %v3236_v21 = vpack.c.bf16 %v3159_v47, %v3159_v47  ;;  %v5813_v36 = vld [vmem:[%s7056_s8 + $0xc0] sm:$0xff]  }
0x1375   : > { %v5540_v40 = vpop.f32.mrf.mxu0 }
0x1376   : > { %v3241_v50 = vsel %vm1154_vm3, %v3236_v21, 0 }
0x137f   : > { %v3077_v42 = vpop.f32.mrf.mxu0 }
0x1380   : > { %v3078_v43 = vadd.f32 %v4924_v41, %v3077_v42 }
0x1381   : > { %v5563_v45 = vpop.f32.mrf.mxu0 }
0x1382   : > { %v3165_v46 = vpack.c.bf16 %v3078_v43, %v3078_v43 }
0x1383   : > { %v3080_v16 = vpop.f32.mrf.mxu0 }
0x1384   : > { %v3170_v48 = vsel %vm1079_vm2, %v3165_v46, 0 }
0x1385   : > { %v5564_v49 = vpop.f32.mrf.mxu0  ;;  %5578 = vmatpush3.bf16.xpose.msra.mxu0 %v3170_v48 }
0x1386   : > { %5583 = vmatprep.subr.bf16.mxu0 %v5956_v31 }
0x138c   : > { %5580 = vmatmul.mubr.msk.bf16.vlgmr.msra.gmra.mxu0 %vm1079_vm2, %v3164_v63  ;;  %v5810_v63 = vld [vmem:[%s7056_s8 + $0xd8] sm:$0xff]  }
0x138d   : > { %5584 = vmatpush3.bf16.msra.mxu0 %v3241_v50  ;;  %5585 = vmatprep.mubr.msk.bf16.mxu0 %vm5957_vm1, %v5956_v31 }
0x138e   : > { %5595 = vmatprep.subr.bf16.mxu0 %v5956_v31 }
0x144c   : > { %v3206_v51 = vpop.f32.mrf.mxu0 }
0x144d   : > { %v3213_v52 = vsel %vm1079_vm2, %v3206_v51, -inf }
0x144e   : > { %3214 = vmax.xlane.f32.xlu0 %v3213_v52  ;;  %v5581_v53 = vpop.f32.mrf.mxu0 }
0x1450   : > { %v3209_v54 = vpop.f32.mrf.mxu0 }
0x1451   : > { %v3216_v55 = vsel %vm1079_vm2, %v3209_v54, -inf }
0x1452   : > { %3217 = vmax.xlane.f32.xlu1 %v3216_v55  ;;  %v5582_v56 = vpop.f32.mrf.mxu0 }
0x1453   : > { %v4973_v56 = vld [vmem:[%s7057_s9 + $0x6] ss:$0 sm:$0xff] }
0x14d7   : > { %v3215_v57 = vpop.xlane.xlu0 %3214 }
0x14d8   : > { %v3219_v59 = vsub.f32 %v3206_v51, %v3215_v57 }
0x14da   : > { %v3221_v60 = vmul.f32 1.442695, %v3219_v59 }
0x14db   : > { %v3218_v61 = vpop.xlane.xlu1 %3217 }
0x14dc   : > { %5900 = vpow2.f32 %v3221_v60  ;;  %v3220_v62 = vsub.f32 %v3209_v54, %v3218_v61  ;;  %v4988_v60 = vld [vmem:[%s7059_s11 + $0x6] ss:$0 sm:$0xff] }
0x14de   : > { %v3223_v1 = vmul.f32 1.442695, %v3220_v62 }
0x14e0   : > { %5902 = vpow2.f32 %v3223_v1 }
0x14e9   : > { %v5901_v2 = vpop.eup %5900 }
0x14ea   : > { %v3225_v3 = vsel %vm1079_vm2, %v5901_v2, 0.0 }
0x14eb   : > { %3226 = vadd.xlane.f32.xlu0 %v3225_v3 }
0x14ed   : > { %v5903_v5 = vpop.eup %5902 }
0x14ee   : > { %v3228_v6 = vsel %vm1079_vm2, %v5903_v5, 0.0 }
0x14ef   : > { %3229 = vadd.xlane.f32.xlu1 %v3228_v6 }
0x1574   : > { %v3227_v7 = vpop.xlane.xlu0 %3226 }
0x1575   : > { %5904 = vrcp.f32 %v3227_v7 }
0x1578   : > { %v3230_v8 = vpop.xlane.xlu1 %3229 }
0x1579   : > { %5906 = vrcp.f32 %v3230_v8 }
0x1582   : > { %v5905_v17 = vpop.eup %5904 }
0x1583   : > { %v3233_v9 = vmul.f32 %v5905_v17, %v5901_v2 }
0x1586   : > { %v5907_v37 = vpop.eup %5906 }
0x1587   : > { %v3234_v12 = vmul.f32 %v5907_v37, %v5903_v5 }
0x1589   : > { %v3235_v20 = vpack.c.bf16 %v3234_v12, %v3233_v9 }
0x158b   : > { %5586 = vmatmul.mubr.msk.bf16.vlgmr.msra.gmra.mxu0 %vm1079_vm2, %v3235_v20 }
0x158c   : > { %5596 = vmatpush3.bf16.msra.mxu0 %v5802_v13  ;;  %5603 = vmatprep.mubr.msk.bf16.mxu0 %vm5957_vm1, %v5956_v31 }
0x158d   : > { %5597 = vmatprep.subr.bf16.mxu0 %v5956_v31 }
0x1590   : > { %5598 = vmatpush3.bf16.msra.mxu0 %v5803_v39 }
0x1591   : > { %5599 = vmatprep.subr.bf16.mxu0 %v5956_v31 }
0x1594   : > { %5600 = vmatpush3.bf16.msra.mxu0 %v5804_v14 }
0x1595   : > { %5601 = vmatprep.subr.bf16.mxu0 %v5956_v31 }
0x1598   : > { %5602 = vmatpush3.bf16.msra.mxu0 %v5805_v15 }
0x1599   : > { %5619 = vmatprep.subr.bf16.mxu0 %v5956_v31 }
0x159b   : > { %5604 = vmatmul.mubr.msk.bf16.vlgmr.msra.gmra.mxu0 %vm770_vm0, %v6183_v0 }
0x159c   : > { %5620 = vmatpush3.bf16.msra.mxu0 %v5806_v18  ;;  %5627 = vmatprep.mubr.msk.bf16.mxu0 %vm5957_vm1, %v5956_v31 }
0x159d   : > { %5621 = vmatprep.subr.bf16.mxu0 %v5956_v31 }
0x15a0   : > { %5622 = vmatpush3.bf16.msra.mxu0 %v5807_v19 }
0x15a1   : > { %5623 = vmatprep.subr.bf16.mxu0 %v5956_v31 }
0x15a4   : > { %5624 = vmatpush3.bf16.msra.mxu0 %v5808_v22 }
0x15a5   : > { %5625 = vmatprep.subr.bf16.mxu0 %v5956_v31 }
0x15a8   : > { %5626 = vmatpush3.bf16.msra.mxu0 %v5809_v23 }
0x15a9   : > { %5643 = vmatprep.subr.bf16.mxu0 %v5956_v31 }
0x15ab   : > { %5628 = vmatmul.mubr.msk.bf16.vlgmr.msra.gmra.mxu0 %vm770_vm0, %v6174_v58 }
0x15ac   : > { %5645 = vmatprep.mubr.msk.bf16.mxu0 %vm5957_vm1, %v5956_v31 }
0x164b   : > { %v3277_v26 = vpop.f32.mrf.mxu0 }
0x164d   : > { %v5587_v27 = vpop.f32.mrf.mxu0 }
0x164f   : > { %v3280_v28 = vpop.f32.mrf.mxu0 }
0x1650   : > { %v3284_v29 = vpack.c.bf16 %v3280_v28, %v3277_v26 }
0x1651   : > { %v5588_v30 = vpop.f32.mrf.mxu0 }
0x1652   : > { %5592 = vmatmul.mubr.msk.bf16.vlgmr.msra.gmra.mxu1 %vm1079_vm2, %v3284_v29  ;;  %v5814_v29 = vld [vmem:[%s7094_s4 + $0xf8] sm:$0xff]  }
0x1653   : > { %5608 = vmatpush3.bf16.msra.mxu1 %v5810_v63  ;;  %5615 = vmatprep.mubr.msk.bf16.mxu1 %vm5957_vm1, %v5956_v31 }
0x1654   : > { %5609 = vmatprep.subr.bf16.mxu1 %v5956_v31 }
0x1657   : > { %5610 = vmatpush3.bf16.msra.mxu1 %v5811_v32  ;;  %v5815_v32 = vld [vmem:[%s7094_s4 + $0xf0] sm:$0xff]  }
0x1658   : > { %5611 = vmatprep.subr.bf16.mxu1 %v5956_v31 }
0x165b   : > { %v3411_v35 = vpop.f32.mrf.mxu0  ;;  %5612 = vmatpush3.bf16.msra.mxu1 %v5812_v4  ;;  %v5816_v4 = vld [vmem:[%s7094_s4 + $0xe8] sm:$0xff]  }
0x165c   : > { %5613 = vmatprep.subr.bf16.mxu1 %v5956_v31  ;;  %v3412_v41 = vadd.f32 %v4958_v33, %v3411_v35  ;;  %v5818_v35 = vld [vmem:[%s7058_s10 + $0xf8] sm:$0xff]  }
0x165d   : > { %v5605_v40 = vpop.f32.mrf.mxu0 }
0x165e   : > { %v3418_v45 = vmul.f32 0.35355338, %v3412_v41  ;;  %v5820_v40 = vld [vmem:[%s7058_s10 + $0xe8] sm:$0xff]   ;;  %v4996_v41 = vld [vmem:[%s7060_s12 + $0x18] sm:$0xf] }
0x165f   : > { %v3414_v42 = vpop.f32.mrf.mxu0  ;;  %5614 = vmatpush3.bf16.msra.mxu1 %v5813_v36  ;;  %v5819_v36 = vld [vmem:[%s7058_s10 + $0xf0] sm:$0xff]  }
0x1660   : > { %v3415_v43 = vadd.f32 %v4958_v33, %v3414_v42  ;;  %5631 = vmatprep.subr.bf16.mxu1 %v5956_v31  ;;  %v5817_v33 = vld [vmem:[%s7094_s4 + $0xe0] sm:$0xff]   ;;  %v3709_v42 = vsel %vm1154_vm3, %v4996_v41, 0 }
0x1661   : > { %v5606_v44 = vpop.f32.mrf.mxu0  ;;  %5644 = vmatpush3.bf16.msra.mxu0 %v3709_v42 }
0x1662   : > { %v3419_v46 = vmul.f32 0.35355338, %v3415_v43  ;;  %5616 = vmatmul.mubr.msk.bf16.vlgmr.msra.gmra.mxu1 %vm770_vm0, %v6174_v58  ;;  %5661 = vmatprep.subr.bf16.mxu0 %v5956_v31 }
0x1663   : > { %5633 = vmatprep.mubr.msk.bf16.mxu1 %vm5957_vm1, %v5956_v31 }
0x1664   : > { %v3582_v16 = vpack.c.bf16 %v3419_v46, %v3418_v45  ;;  %v5822_v46 = vld [vmem:[%s7056_s8 + $0xf8] sm:$0xff]  }
0x166b   : > { %v3576_v47 = vpop.f32.mrf.mxu0 }
0x166c   : > { %v3577_v1 = vadd.f32 %v4988_v60, %v3576_v47 }
0x166d   : > { %v5629_v48 = vpop.f32.mrf.mxu0 }
0x166e   : > { %v5823_v48 = vld [vmem:[%s7056_s8 + $0xf0] sm:$0xff]  }
0x166f   : > { %v3579_v49 = vpop.f32.mrf.mxu0 }
0x1670   : > { %v5824_v49 = vld [vmem:[%s7056_s8 + $0xe8] sm:$0xff]  }
0x1671   : > { %v5630_v21 = vpop.f32.mrf.mxu0 }
0x1672   : > { %v5007_v21 = vld [vmem:[%s7055_s7 + $0x7] ss:$0 sm:$0xff] }
0x1712   : > { %v3327_v50 = vpop.f32.mrf.mxu1 }
0x1713   : > { %v6793_v51 = vadd.f32 %v3327_v50, %v6696_v34 }
0x1714   : > { %v5593_v52 = vpop.f32.mrf.mxu1 }
0x1715   : > { %v5825_v52 = vld [vmem:[%s7056_s8 + $0xe0] sm:$0xff]  }
0x1716   : > { %v3330_v53 = vpop.f32.mrf.mxu1 }
0x1717   : > { %v6796_v54 = vadd.f32 %v3330_v53, %v6699_v38  ;;  %v3654_v38 = vpack.c.bf16 %v3577_v1, %v3577_v1 }
0x1718   : > { %v5594_v55 = vpop.f32.mrf.mxu1 }
0x1719   : > { %v3659_v5 = vsel %vm1154_vm3, %v3654_v38, 0 }
0x1722   : > { %v3495_v57 = vpop.f32.mrf.mxu1 }
0x1723   : > { %v3496_v59 = vadd.f32 %v4973_v56, %v3495_v57 }
0x1724   : > { %v5617_v61 = vpop.f32.mrf.mxu1 }
0x1725   : > { %v3583_v62 = vpack.c.bf16 %v3496_v59, %v3496_v59 }
0x1726   : > { %v3498_v34 = vpop.f32.mrf.mxu1 }
0x1727   : > { %v3588_v2 = vsel %vm1079_vm2, %v3583_v62, 0 }
0x1728   : > { %v5618_v3 = vpop.f32.mrf.mxu1  ;;  %5632 = vmatpush3.bf16.xpose.msra.mxu1 %v3588_v2 }
0x1729   : > { %5637 = vmatprep.subr.bf16.mxu1 %v5956_v31 }
0x172f   : > { %5634 = vmatmul.mubr.msk.bf16.vlgmr.msra.gmra.mxu1 %vm1079_vm2, %v3582_v16 }
0x1730   : > { %5638 = vmatpush3.bf16.msra.mxu1 %v3659_v5  ;;  %5639 = vmatprep.mubr.msk.bf16.mxu1 %vm5957_vm1, %v5956_v31 }
0x1731   : > { %5649 = vmatprep.subr.bf16.mxu1 %v5956_v31 }
0x17ef   : > { %v3624_v6 = vpop.f32.mrf.mxu1 }
0x17f0   : > { %v3631_v7 = vsel %vm1079_vm2, %v3624_v6, -inf }
0x17f1   : > { %3632 = vmax.xlane.f32.xlu0 %v3631_v7  ;;  %v5635_v8 = vpop.f32.mrf.mxu1 }
0x17f3   : > { %v3627_v17 = vpop.f32.mrf.mxu1 }
0x17f4   : > { %v3634_v37 = vsel %vm1079_vm2, %v3627_v17, -inf }
0x17f5   : > { %3635 = vmax.xlane.f32.xlu1 %v3634_v37  ;;  %v5636_v9 = vpop.f32.mrf.mxu1 }
0x187a   : > { %v3633_v12 = vpop.xlane.xlu0 %3632 }
0x187b   : > { %v3637_v13 = vsub.f32 %v3624_v6, %v3633_v12  ;;  %v5037_v12 = vld [vmem:[%s7059_s11 + $0x7] ss:$0 sm:$0xff] }
0x187d   : > { %v3639_v20 = vmul.f32 1.442695, %v3637_v13 }
0x187e   : > { %v3636_v39 = vpop.xlane.xlu1 %3635 }
0x187f   : > { %5908 = vpow2.f32 %v3639_v20  ;;  %v3638_v14 = vsub.f32 %v3627_v17, %v3636_v39 }
0x1881   : > { %v3641_v15 = vmul.f32 1.442695, %v3638_v14 }
0x1883   : > { %5910 = vpow2.f32 %v3641_v15 }
0x188c   : > { %v5909_v18 = vpop.eup %5908 }
0x188d   : > { %v3643_v19 = vsel %vm1079_vm2, %v5909_v18, 0.0 }
0x188e   : > { %3644 = vadd.xlane.f32.xlu0 %v3643_v19 }
0x1890   : > { %v5911_v22 = vpop.eup %5910 }
0x1891   : > { %v3646_v23 = vsel %vm1079_vm2, %v5911_v22, 0.0 }
0x1892   : > { %3647 = vadd.xlane.f32.xlu1 %v3646_v23 }
0x1917   : > { %v3645_v24 = vpop.xlane.xlu0 %3644 }
0x1918   : > { %5912 = vrcp.f32 %v3645_v24 }
0x191b   : > { %v3648_v25 = vpop.xlane.xlu1 %3647 }
0x191c   : > { %5914 = vrcp.f32 %v3648_v25 }
0x1925   : > { %v5913_v26 = vpop.eup %5912 }
0x1926   : > { %v3651_v28 = vmul.f32 %v5913_v26, %v5909_v18 }
0x1929   : > { %v5915_v27 = vpop.eup %5914 }
0x192a   : > { %v3652_v63 = vmul.f32 %v5915_v27, %v5911_v22 }
0x192c   : > { %v3653_v30 = vpack.c.bf16 %v3652_v63, %v3651_v28 }
0x192e   : > { %5640 = vmatmul.mubr.msk.bf16.vlgmr.msra.gmra.mxu1 %vm1079_vm2, %v3653_v30 }
0x192f   : > { %5650 = vmatpush3.bf16.msra.mxu1 %v5814_v29  ;;  %5657 = vmatprep.mubr.msk.bf16.mxu1 %vm5957_vm1, %v5956_v31 }
0x1930   : > { %5651 = vmatprep.subr.bf16.mxu1 %v5956_v31 }
0x1933   : > { %5652 = vmatpush3.bf16.msra.mxu1 %v5815_v32 }
0x1934   : > { %5653 = vmatprep.subr.bf16.mxu1 %v5956_v31 }
0x1937   : > { %5654 = vmatpush3.bf16.msra.mxu1 %v5816_v4 }
0x1938   : > { %5655 = vmatprep.subr.bf16.mxu1 %v5956_v31 }
0x193b   : > { %5656 = vmatpush3.bf16.msra.mxu1 %v5817_v33 }
0x193c   : > { %5673 = vmatprep.subr.bf16.mxu1 %v5956_v31 }
0x193e   : > { %5658 = vmatmul.mubr.msk.bf16.vlgmr.msra.gmra.mxu1 %vm770_vm0, %v6183_v0  ;;  %v5821_v0 = vld [vmem:[%s7058_s10 + $0xe0] sm:$0xff]  }
0x193f   : > { %5674 = vmatpush3.bf16.msra.mxu1 %v5818_v35  ;;  %5681 = vmatprep.mubr.msk.bf16.mxu1 %vm5957_vm1, %v5956_v31 }
0x1940   : > { %5675 = vmatprep.subr.bf16.mxu1 %v5956_v31 }
0x1943   : > { %5676 = vmatpush3.bf16.msra.mxu1 %v5819_v36 }
0x1944   : > { %5677 = vmatprep.subr.bf16.mxu1 %v5956_v31 }
0x1947   : > { %5678 = vmatpush3.bf16.msra.mxu1 %v5820_v40 }
0x1948   : > { %5679 = vmatprep.subr.bf16.mxu1 %v5956_v31 }
0x194b   : > { %5680 = vmatpush3.bf16.msra.mxu1 %v5821_v0 }
0x194c   : > { %5697 = vmatprep.subr.bf16.mxu1 %v5956_v31 }
0x194e   : > { %5682 = vmatmul.mubr.msk.bf16.vlgmr.msra.gmra.mxu1 %vm770_vm0, %v6174_v58 }
0x194f   : > { %5699 = vmatprep.mubr.msk.bf16.mxu1 %vm5957_vm1, %v5956_v31 }
0x19ee   : > { %v3695_v43 = vpop.f32.mrf.mxu1 }
0x19f0   : > { %v5641_v44 = vpop.f32.mrf.mxu1 }
0x19f2   : > { %v3698_v45 = vpop.f32.mrf.mxu1 }
0x19f3   : > { %v3702_v16 = vpack.c.bf16 %v3698_v45, %v3695_v43  ;;  %v5045_v45 = vld [vmem:[%s7060_s12 + $0x1c] sm:$0xf] }
0x19f4   : > { %v5642_v47 = vpop.f32.mrf.mxu1 }
0x19f5   : > { %5646 = vmatmul.mubr.msk.bf16.vlgmr.msra.gmra.mxu0 %vm1079_vm2, %v3702_v16 }
0x19f6   : > { %5662 = vmatpush3.bf16.msra.mxu0 %v5822_v46  ;;  %5669 = vmatprep.mubr.msk.bf16.mxu0 %vm5957_vm1, %v5956_v31  ;;  %v4127_v46 = vsel %vm1154_vm3, %v5045_v45, 0 }
0x19f7   : > { %5663 = vmatprep.subr.bf16.mxu0 %v5956_v31  ;;  %5698 = vmatpush3.bf16.msra.mxu1 %v4127_v46 }
0x19fa   : > { %5664 = vmatpush3.bf16.msra.mxu0 %v5823_v48 }
0x19fb   : > { %5665 = vmatprep.subr.bf16.mxu0 %v5956_v31 }
0x19fe   : > { %v3829_v50 = vpop.f32.mrf.mxu1  ;;  %5666 = vmatpush3.bf16.msra.mxu0 %v5824_v49 }
0x19ff   : > { %5667 = vmatprep.subr.bf16.mxu0 %v5956_v31  ;;  %v3830_v55 = vadd.f32 %v5007_v21, %v3829_v50 }
0x1a00   : > { %v5659_v53 = vpop.f32.mrf.mxu1 }
0x1a01   : > { %v3836_v60 = vmul.f32 0.35355338, %v3830_v55  ;;  %v5047_v53 = vld [vmem:[%s7061_s13] ss:$0 sm:$0xff] }
0x1a02   : > { %v3832_v56 = vpop.f32.mrf.mxu1  ;;  %5668 = vmatpush3.bf16.msra.mxu0 %v5825_v52 }
0x1a03   : > { %v3833_v57 = vadd.f32 %v5007_v21, %v3832_v56  ;;  %5685 = vmatprep.subr.bf16.mxu0 %v5956_v31 }
0x1a04   : > { %v5660_v59 = vpop.f32.mrf.mxu1 }
0x1a05   : > { %v3837_v61 = vmul.f32 0.35355338, %v3833_v57  ;;  %5670 = vmatmul.mubr.msk.bf16.vlgmr.msra.gmra.mxu0 %vm770_vm0, %v6174_v58  ;;  %v5022_v58 = vld [vmem:[%s7057_s9 + $0x7] ss:$0 sm:$0xff] }
0x1a06   : > { %5687 = vmatprep.mubr.msk.bf16.mxu0 %vm5957_vm1, %v5956_v31 }
0x1a07   : > { %v4000_v62 = vpack.c.bf16 %v3837_v61, %v3836_v60 }
0x1a0e   : > { %v3994_v34 = vpop.f32.mrf.mxu1 }
0x1a0f   : > { %v3995_v39 = vadd.f32 %v5037_v12, %v3994_v34  ;;  %v5831_v12 = vld [vmem:[%s7064_s16 + $0x24] ss:$8 sps:$4 sm:$0xff]  }
0x1a10   : > { %v5683_v1 = vpop.f32.mrf.mxu1 }
0x1a12   : > { %v3997_v2 = vpop.f32.mrf.mxu1 }
0x1a14   : > { %v5684_v3 = vpop.f32.mrf.mxu1 }
0x1ab5   : > { %v3745_v38 = vpop.f32.mrf.mxu0 }
0x1ab6   : > { %v6890_v5 = vadd.f32 %v3745_v38, %v6793_v51 }
0x1ab7   : > { %v5647_v6 = vpop.f32.mrf.mxu0 }
0x1ab9   : > { %v3748_v7 = vpop.f32.mrf.mxu0 }
0x1aba   : > { %v6893_v8 = vadd.f32 %v3748_v7, %v6796_v54  ;;  %v4072_v54 = vpack.c.bf16 %v3995_v39, %v3995_v39  ;;  %v5837_v39 = vld [vmem:[%s7064_s16 + $0x4] ss:$8 sps:$4 sm:$0xff]  }
0x1abb   : > { %v5648_v17 = vpop.f32.mrf.mxu0 }
0x1abc   : > { %v4077_v18 = vsel %vm1154_vm3, %v4072_v54, 0  ;;  %v5838_v54 = vld [vmem:[%s7066_s18 + $0x78] sm:$0xff]  }
0x1abd   : > { %5249 = vmatprep.subr.bf16.mxu1 %v5838_v54 }
0x1ac5   : > { %v3913_v37 = vpop.f32.mrf.mxu0 }
0x1ac6   : > { %v3914_v9 = vadd.f32 %v5022_v58, %v3913_v37  ;;  %v5828_v37 = vld [vmem:[%s7064_s16 + $0x34] ss:$8 sps:$4 sm:$0xff]  }
0x1ac7   : > { %v5671_v13 = vpop.f32.mrf.mxu0 }
0x1ac8   : > { %v4001_v20 = vpack.c.bf16 %v3914_v9, %v3914_v9  ;;  %v5826_v9 = vld [vmem:[%s7064_s16 + $0x30] ss:$8 sps:$4 sm:$0xff]   ;;  %v5829_v13 = vld [vmem:[%s7064_s16 + $0x20] ss:$8 sps:$4 sm:$0xff]  }
0x1ac9   : > { %v3916_v51 = vpop.f32.mrf.mxu0 }
0x1aca   : > { %v4006_v14 = vsel %vm1079_vm2, %v4001_v20, 0  ;;  %v5834_v20 = vld [vmem:[%s7064_s16 + $0x14] ss:$8 sps:$4 sm:$0xff]   ;;  %v5832_v51 = vld [vmem:[%s7064_s16 + $0x10] ss:$8 sps:$4 sm:$0xff]  }
0x1acb   : > { %v5672_v15 = vpop.f32.mrf.mxu0  ;;  %5686 = vmatpush3.bf16.xpose.msra.mxu0 %v4006_v14  ;;  %v5835_v14 = vld [vmem:[%s7064_s16] ss:$8 sps:$4 sm:$0xff]  }
0x1acc   : > { %5691 = vmatprep.subr.bf16.mxu0 %v5956_v31  ;;  %v5958_v15 = vmov 0  }
0x1ad2   : > { %5688 = vmatmul.mubr.msk.bf16.vlgmr.msra.gmra.mxu0 %vm1079_vm2, %v4000_v62 }
0x1ad3   : > { %5692 = vmatpush3.bf16.msra.mxu0 %v4077_v18  ;;  %5693 = vmatprep.mubr.msk.bf16.mxu0 %vm5957_vm1, %v5956_v31  ;;  %v5839_v18 = vld [vmem:[%s7066_s18 + $0x38] sm:$0xff]  }
0x1ad4   : > { %4299 = vmatprep.subr.bf16.mxu0 %v5828_v37 }
0x1b92   : > { %v4042_v19 = vpop.f32.mrf.mxu0 }
0x1b93   : > { %v4049_v22 = vsel %vm1079_vm2, %v4042_v19, -inf }
0x1b94   : > { %4050 = vmax.xlane.f32.xlu0 %v4049_v22  ;;  %v5689_v23 = vpop.f32.mrf.mxu0  ;;  %v5841_v22 = vld [vmem:[%s7066_s18 + $0x30] sm:$0xff]  }
0x1b95   : > { %v5842_v23 = vld [vmem:[%s7066_s18 + $0x68] sm:$0xff]  }
0x1b96   : > { %v4045_v24 = vpop.f32.mrf.mxu0 }
0x1b97   : > { %v4052_v25 = vsel %vm1079_vm2, %v4045_v24, -inf }
0x1b98   : > { %4053 = vmax.xlane.f32.xlu1 %v4052_v25  ;;  %v5690_v26 = vpop.f32.mrf.mxu0  ;;  %v5844_v25 = vld [vmem:[%s7066_s18 + $0x60] sm:$0xff]  }
0x1b99   : > { %v5845_v26 = vld [vmem:[%s7066_s18 + $0x20] sm:$0xff]  }
0x1c1d   : > { %v4051_v27 = vpop.xlane.xlu0 %4050 }
0x1c1e   : > { %v4055_v28 = vsub.f32 %v4042_v19, %v4051_v27  ;;  %v5840_v19 = vld [vmem:[%s7066_s18 + $0x70] sm:$0xff]   ;;  %v5846_v27 = vld [vmem:[%s7066_s18 + $0x58] sm:$0xff]  }
0x1c20   : > { %v4057_v63 = vmul.f32 1.442695, %v4055_v28  ;;  %v5847_v28 = vld [vmem:[%s7066_s18 + $0x18] sm:$0xff]  }
0x1c21   : > { %v4054_v29 = vpop.xlane.xlu1 %4053 }
0x1c22   : > { %5916 = vpow2.f32 %v4057_v63  ;;  %v4056_v30 = vsub.f32 %v4045_v24, %v4054_v29  ;;  %v5843_v24 = vld [vmem:[%s7066_s18 + $0x28] sm:$0xff]  }
0x1c24   : > { %v4059_v32 = vmul.f32 1.442695, %v4056_v30 }
0x1c26   : > { %5918 = vpow2.f32 %v4059_v32 }
0x1c2f   : > { %v5917_v4 = vpop.eup %5916 }
0x1c30   : > { %v4061_v31 = vsel %vm1079_vm2, %v5917_v4, 0.0 }
0x1c31   : > { %4062 = vadd.xlane.f32.xlu0 %v4061_v31 }
0x1c33   : > { %v5919_v33 = vpop.eup %5918 }
0x1c34   : > { %v4064_v35 = vsel %vm1079_vm2, %v5919_v33, 0.0 }
0x1c35   : > { %4065 = vadd.xlane.f32.xlu1 %v4064_v35 }
0x1cba   : > { %v4063_v36 = vpop.xlane.xlu0 %4062 }
0x1cbb   : > { %5920 = vrcp.f32 %v4063_v36  ;;  %v5048_v36 = vld [vmem:[%s7062_s14] ss:$0 sm:$0xff] }
0x1cbe   : > { %v4066_v40 = vpop.xlane.xlu1 %4065 }
0x1cbf   : > { %5922 = vrcp.f32 %v4066_v40 }
0x1cc8   : > { %v5921_v0 = vpop.eup %5920 }
0x1cc9   : > { %v4069_v42 = vmul.f32 %v5921_v0, %v5917_v4 }
0x1ccc   : > { %v5923_v41 = vpop.eup %5922 }
0x1ccd   : > { %v4070_v43 = vmul.f32 %v5923_v41, %v5919_v33 }
0x1ccf   : > { %v4071_v44 = vpack.c.bf16 %v4070_v43, %v4069_v42  ;;  %v5049_v42 = vld [vmem:[%s7063_s15] ss:$0 sm:$0xff] }
0x1cd1   : > { %5694 = vmatmul.mubr.msk.bf16.vlgmr.msra.gmra.mxu0 %vm1079_vm2, %v4071_v44 }
0x1cd2   : > { %4300 = vmatpush1.bf16.msra.mxu0 %v5826_v9  ;;  %4323 = vmatprep.mubr.bf16.mxu0 %v5958_v15 }
0x1cd3   : > { %4301 = vmatprep.subr.bf16.mxu0 %v5831_v12  ;;  %v5059_v12 = vld [vmem:[%s7097_s20] ss:$0 sm:$0xff] }
0x1cd6   : > { %4302 = vmatpush1.bf16.msra.mxu0 %v5829_v13 }
0x1cd7   : > { %4303 = vmatprep.subr.bf16.mxu0 %v5834_v20 }
0x1cda   : > { %4304 = vmatpush1.bf16.msra.mxu0 %v5832_v51 }
0x1cdb   : > { %4305 = vmatprep.subr.bf16.mxu0 %v5837_v39 }
0x1cde   : > { %4306 = vmatpush1.bf16.msra.mxu0 %v5835_v14 }
0x1d91   : > { %v4113_v16 = vpop.f32.mrf.mxu0 }
0x1d93   : > { %v5695_v47 = vpop.f32.mrf.mxu0 }
0x1d94   : > { %v5849_v47 = vld [vmem:[%s7066_s18 + $0x10] sm:$0xff]  }
0x1d95   : > { %v4116_v48 = vpop.f32.mrf.mxu0 }
0x1d96   : > { %v4120_v49 = vpack.c.bf16 %v4116_v48, %v4113_v16  ;;  %v5848_v16 = vld [vmem:[%s7066_s18 + $0x50] sm:$0xff]   ;;  %v5850_v48 = vld [vmem:[%s7066_s18 + $0x48] sm:$0xff]  }
0x1d97   : > { %v5696_v21 = vpop.f32.mrf.mxu0 }
0x1d98   : > { %5700 = vmatmul.mubr.msk.bf16.vlgmr.msra.gmra.mxu1 %vm1079_vm2, %v4120_v49  ;;  %v5851_v49 = vld [vmem:[%s7066_s18 + $0x8] sm:$0xff]   ;;  %v5852_v21 = vld [vmem:[%s7066_s18 + $0x40] sm:$0xff]  }
0x1d99   : > { %5250 = vmatpush3.bf16.msra.mxu1 %v5839_v18 }
0x1d9a   : > { %5251 = vmatprep.subr.bf16.mxu1 %v5840_v19 }
0x1d9d   : > { %5252 = vmatpush3.bf16.msra.mxu1 %v5841_v22 }
0x1d9e   : > { %5253 = vmatprep.subr.bf16.mxu1 %v5842_v23 }
0x1da1   : > { %5254 = vmatpush3.bf16.msra.mxu1 %v5843_v24 }
0x1da2   : > { %5255 = vmatprep.subr.bf16.mxu1 %v5844_v25 }
0x1da5   : > { %5256 = vmatpush3.bf16.msra.mxu1 %v5845_v26 }
0x1da6   : > { %5257 = vmatprep.subr.bf16.mxu1 %v5846_v27 }
0x1da9   : > { %5258 = vmatpush3.bf16.msra.mxu1 %v5847_v28 }
0x1daa   : > { %5259 = vmatprep.subr.bf16.mxu1 %v5848_v16 }
0x1dad   : > { %5260 = vmatpush3.bf16.msra.mxu1 %v5849_v47 }
0x1dae   : > { %5261 = vmatprep.subr.bf16.mxu1 %v5850_v48 }
0x1db1   : > { %5262 = vmatpush3.bf16.msra.mxu1 %v5851_v49 }
0x1db2   : > { %5263 = vmatprep.subr.bf16.mxu1 %v5852_v21 }
0x1e58   : > { %v4163_v50 = vpop.f32.mrf.mxu1 }
0x1e59   : > { %v4170_v52 = vadd.f32 %v4163_v50, %v6890_v5  ;;  %v5853_v50 = vld [vmem:[%s7066_s18] sm:$0xff]  }
0x1e5a   : > { %v5701_v55 = vpop.f32.mrf.mxu1  ;;  %5264 = vmatpush3.bf16.msra.mxu1 %v5853_v50 }
0x1e5b   : > { %v4172_v56 = vadd.f32 %v4170_v52, %v6113_v11  ;;  %v4238_v52 = vlaneseq }
0x1e5c   : > { %v4166_v57 = vpop.f32.mrf.mxu1 }
0x1e5d   : > { %v6922_v59 = vadd.f32 %v5047_v53, %v4172_v56  ;;  %v4171_v60 = vadd.f32 %v4166_v57, %v6893_v8  ;;  %v4236_v57 = vld [vmem:[%s7065_s17] sm:$0x3] }
0x1e5e   : > { %v5702_v61 = vpop.f32.mrf.mxu1 }
0x1e5f   : > { %v4173_v62 = vadd.f32 %v4171_v60, %v6111_v10  ;;  %v4185_v34 = vsel %vm770_vm0, %v6922_v59, 0.0 }
0x1e60   : > { %4186 = vadd.xlane.f32.xlu0 %v4185_v34 }
0x1e61   : > { %v6928_v1 = vadd.f32 %v5047_v53, %v4173_v62  ;;  %v4239_v53 = vshrl.u32 %v4238_v52, 7 }
0x1e63   : > { %v4188_v2 = vsel %vm770_vm0, %v6928_v1, 0.0  ;;  %v4244_v55 = vsub.s32 1, %v4239_v53  ;;  %v4240_v56 = vsub.s32 0, %v4239_v53 }
0x1e64   : > { %4189 = vadd.xlane.f32.xlu1 %v4188_v2 }
0x1e65   : > { %v4245_v61 = vrot.slane %v4236_v57, %v4244_v55  ;;  %v4241_v62 = vrot.slane %v4236_v57, %v4240_v56 }
0x1ee9   : > { %v4187_v3 = vpop.xlane.xlu0 %4186 }
0x1eea   : > { %v4191_v11 = vmul.f32 0.015625, %v4187_v3 }
0x1eec   : > { %v4193_v38 = vsub.f32 %v6922_v59, %v4191_v11 }
0x1eed   : > { %v4190_v5 = vpop.xlane.xlu1 %4189 }
0x1eee   : > { %v4192_v6 = vmul.f32 0.015625, %v4190_v5  ;;  %v4195_v7 = vmul.f32 %v4193_v38, %v4193_v38 }
0x1ef0   : > { %v4194_v8 = vsub.f32 %v6928_v1, %v4192_v6  ;;  %v4197_v10 = vsel %vm770_vm0, %v4195_v7, 0.0 }
0x1ef1   : > { %4198 = vadd.xlane.f32.xlu0 %v4197_v10 }
0x1ef2   : > { %v4196_v17 = vmul.f32 %v4194_v8, %v4194_v8 }
0x1ef4   : > { %v4200_v58 = vsel %vm770_vm0, %v4196_v17, 0.0 }
0x1ef5   : > { %4201 = vadd.xlane.f32.xlu1 %v4200_v58 }
0x1f7a   : > { %v4199_v63 = vpop.xlane.xlu0 %4198 }
0x1f7b   : > { %v4203_v29 = vmul.f32 0.015625, %v4199_v63 }
0x1f7d   : > { %v4205_v30 = vadd.f32 1e-05, %v4203_v29 }
0x1f7e   : > { %v4202_v32 = vpop.xlane.xlu1 %4201 }
0x1f7f   : > { %5924 = vrsqrt.f32 %v4205_v30  ;;  %v4204_v4 = vmul.f32 0.015625, %v4202_v32 }
0x1f81   : > { %v4206_v31 = vadd.f32 1e-05, %v4204_v4 }
0x1f83   : > { %5926 = vrsqrt.f32 %v4206_v31 }
0x1f8c   : > { %v5925_v33 = vpop.eup %5924 }
0x1f8d   : > { %v4209_v35 = vmul.f32 %v5925_v33, %v4193_v38 }
0x1f8f   : > { %v4217_v41 = vmul.f32 %v5048_v36, %v4209_v35 }
0x1f90   : > { %v5927_v40 = vpop.eup %5926 }
0x1f91   : > { %v4210_v0 = vmul.f32 %v5927_v40, %v4194_v8  ;;  %v4225_v44 = vadd.f32 %v5049_v42, %v4217_v41 }
0x1f93   : > { %v4218_v43 = vmul.f32 %v5048_v36, %v4210_v0  ;;  %v5076_v0 = vld [vmem:[%s7098_s28] ss:$0 sm:$0xff] }
0x1f95   : > { %v4226_v45 = vadd.f32 %v5049_v42, %v4218_v43 }
0x1f97   : > { %v4227_v46 = vpack.c.bf16 %v4226_v45, %v4225_v44  ;;  %v5077_v44 = vld [vmem:[%s7099_s23] ss:$0 sm:$0xff] }
0x1f99   : > { %5058 = vmatmul.mubr.msk.bf16.vlgmr.msra.gmra.mxu0 %vm770_vm0, %v4227_v46 }
0x2059   : > { %v4325_v60 = vpop.f32.mrf.mxu0 }
0x205a   : > { %v4326_v38 = vadd.f32 %v4325_v60, %v4241_v62 }
0x205b   : > { %v4327_v34 = vpop.f32.mrf.mxu0 }
0x205c   : > { %v4328_v3 = vadd.f32 %v4327_v34, %v4245_v61  ;;  %v4334_v17 = vmax.f32 %v4326_v38, 0.0 }
0x205d   : > { %v4329_v2 = vpop.f32.mrf.mxu0 }
0x205e   : > { %v4330_v11 = vadd.f32 %v4329_v2, %v4241_v62  ;;  %v4335_v8 = vmax.f32 %v4328_v3, 0.0 }
0x205f   : > { %v4331_v5 = vpop.f32.mrf.mxu0 }
0x2060   : > { %v4332_v6 = vadd.f32 %v4331_v5, %v4245_v61  ;;  %v4336_v7 = vmax.f32 %v4330_v11, 0.0 }
0x2062   : > { %v4337_v10 = vmax.f32 %v4332_v6, 0.0  ;;  %v4338_v37 = vpack.c.bf16 %v4336_v7, %v4334_v17 }
0x2064   : > { %v4339_v58 = vpack.c.bf16 %v4337_v10, %v4335_v8 }
0x2066   : > { %4507 = vmatprep.mubr.bf16.mxu1 %v4339_v58 }
0x2067   : > { %4508 = vmatmul.mubr.bf16.vlgmr.msra.gmra.mxu1 %v4338_v37 }
0x2127   : > { %v5265_v9 = vpop.f32.mrf.mxu1 }
0x2129   : > { %v5266_v13 = vpop.f32.mrf.mxu1 }
0x212a   : > { %v5267_v20 = vadd.f32 %v5266_v13, %v5265_v9 }
0x212b   : > { %v5268_v51 = vpop.f32.mrf.mxu1 }
0x212c   : > { %v4510_v39 = vadd.f32 %v5267_v20, %v5059_v12 }
0x212d   : > { %v5269_v14 = vpop.f32.mrf.mxu1 }
0x212e   : > { %v5270_v15 = vadd.f32 %v5269_v14, %v5268_v51  ;;  %v4516_v54 = vadd.f32 %v4510_v39, %v6922_v59 }
0x2130   : > { %v4513_v18 = vadd.f32 %v5270_v15, %v5059_v12  ;;  %v4520_v19 = vsel %vm770_vm0, %v4516_v54, 0.0 }
0x2131   : > { %4521 = vadd.xlane.f32.xlu0 %v4520_v19 }
0x2132   : > { %v4517_v22 = vadd.f32 %v4513_v18, %v6928_v1 }
0x2134   : > { %v4523_v23 = vsel %vm770_vm0, %v4517_v22, 0.0 }
0x2135   : > { %4524 = vadd.xlane.f32.xlu1 %v4523_v23 }
0x21ba   : > { %v4522_v24 = vpop.xlane.xlu0 %4521 }
0x21bb   : > { %v4526_v25 = vmul.f32 0.015625, %v4522_v24 }
0x21bd   : > { %v4528_v26 = vsub.f32 %v4516_v54, %v4526_v25 }
0x21be   : > { %v4525_v27 = vpop.xlane.xlu1 %4524 }
0x21bf   : > { %v4527_v28 = vmul.f32 0.015625, %v4525_v27  ;;  %v4530_v63 = vmul.f32 %v4528_v26, %v4528_v26 }
0x21c1   : > { %v4529_v29 = vsub.f32 %v4517_v22, %v4527_v28  ;;  %v4532_v30 = vsel %vm770_vm0, %v4530_v63, 0.0 }
0x21c2   : > { %4533 = vadd.xlane.f32.xlu0 %v4532_v30 }
0x21c3   : > { %v4531_v59 = vmul.f32 %v4529_v29, %v4529_v29 }
0x21c5   : > { %v4535_v32 = vsel %vm770_vm0, %v4531_v59, 0.0 }
0x21c6   : > { %4536 = vadd.xlane.f32.xlu1 %v4535_v32 }
0x224b   : > { %v4534_v4 = vpop.xlane.xlu0 %4533 }
0x224c   : > { %v4538_v31 = vmul.f32 0.015625, %v4534_v4 }
0x224e   : > { %v4540_v1 = vadd.f32 1e-05, %v4538_v31 }
0x224f   : > { %v4537_v33 = vpop.xlane.xlu1 %4536 }
0x2250   : > { %5928 = vrsqrt.f32 %v4540_v1  ;;  %v4539_v35 = vmul.f32 0.015625, %v4537_v33 }
0x2252   : > { %v4541_v36 = vadd.f32 1e-05, %v4539_v35 }
0x2254   : > { %5930 = vrsqrt.f32 %v4541_v36 }
0x225d   : > { %v5929_v40 = vpop.eup %5928 }
0x225e   : > { %v4544_v41 = vmul.f32 %v5929_v40, %v4528_v26 }
0x2260   : > { %v4552_v42 = vmul.f32 %v5076_v0, %v4544_v41 }
0x2261   : > { %v5931_v43 = vpop.eup %5930 }
0x2262   : > { %v4545_v45 = vmul.f32 %v5931_v43, %v4529_v29  ;;  %v4560_v46 = vadd.f32 %v5077_v44, %v4552_v42 }
0x2264   : > { %v4553_v16 = vmul.f32 %v5076_v0, %v4545_v45  ;;  %v4562_v48 = vsel %vm770_vm0, %v4560_v46, 0.0 }
0x2266   : > { %v4561_v47 = vadd.f32 %v5077_v44, %v4553_v16 }
0x2268   : > { %v4563_v49 = vsel %vm770_vm0, %v4561_v47, 0.0 }
0x2269   : > { %v4564_v21 = vadd.f32 %v4563_v49, %v4562_v48 }
0x226b   : > { %v4565_v50 = vrot.slane %v4564_v21, 4 }
0x226d   : > { %v4566_v52 = vadd.f32 %v4565_v50, %v4564_v21 }
0x226f   : > { %v4567_v53 = vrot.slane %v4566_v52, 2 }
0x2271   : > { %v4568_v55 = vadd.f32 %v4567_v53, %v4566_v52 }
0x2273   : > { %v4569_v56 = vrot.slane %v4568_v55, 1 }
0x2275   : > { %v4570_v57 = vadd.f32 %v4569_v56, %v4568_v55 }
0x2277   : > { %4572 = vst.msk [vmem:[%s754_s6] sm:$0x1] %vm4571_vm4, %v4570_v57 }
0x2278 PF: > { %s7101_s25 = sld [smem:[#allocation3_spill]] }
0x2279   : > { %s7102_s3 = sld [smem:[#allocation2_spill]] }
0x227a   : > { %s7103_s28 = sld [smem:[#allocation4_spill]] }
0x227e   : > { %s32_s29 = sadd.s32 1, %s7101_s25  }
0x227f   : > { %p29_p5 = scmp.ge.s32.totalorder %s32_s29, 4  }
0x2281   :  { %31 = sbr.rel (!%p29_p5) target bundleno = 12 (0xc), region = 193 }

// kernel: model_forward.4
= control target key start
LH: loop header
LB: loop body
LE: loop exit
PB: predicated region body
PF: predicated region fallthrough
CT: control target
= control target key end

     0   :  { %s5839_s28 = smov 0   ;;  %s5841_s29 = smov 0   ;;  %s6733_s0 = inlined_call_operand.vmem [shape: f32[2,8,64], index: 0, kind: input, shape index: {}]   ;;  %s6734_s1 = inlined_call_operand.vmem [shape: f32[2,16,64], index: 1, kind: input, shape index: {}]   ;;  %s6735_s2 = inlined_call_operand.vmem [shape: f32[8,64], index: 2, kind: input, shape index: {}]   ;;  %s6736_s3 = inlined_call_operand.vmem [shape: f32[16,64], index: 3, kind: input, shape index: {}]   ;;  %s6737_s4 = inlined_call_operand.vmem [shape: f32[1,64], index: 4, kind: input, shape index: {}]   ;;  %s6738_s5 = inlined_call_operand.vmem [shape: f32[1,64], index: 5, kind: input, shape index: {}]   ;;  %s6739_s6 = inlined_call_operand.vmem [shape: bf16[8,64,8], index: 6, kind: input, shape index: {}]   ;;  %s6740_s7 = inlined_call_operand.vmem [shape: f32[8,1,8], index: 7, kind: input, shape index: {}]   ;;  %s6741_s8 = inlined_call_operand.vmem [shape: bf16[8,64,8], index: 8, kind: input, shape index: {}]   ;;  %s6742_s9 = inlined_call_operand.vmem [shape: f32[8,1,8], index: 9, kind: input, shape index: {}]   ;;  %s6743_s10 = inlined_call_operand.vmem [shape: bf16[8,64,8], index: 10, kind: input, shape index: {}]   ;;  %s6744_s11 = inlined_call_operand.vmem [shape: f32[8,1,8], index: 11, kind: input, shape index: {}]   ;;  %s6745_s12 = inlined_call_operand.vmem [shape: bf16[8,8,64], index: 12, kind: input, shape index: {}]   ;;  %s6746_s13 = inlined_call_operand.vmem [shape: f32[1,64], index: 13, kind: input, shape index: {}]   ;;  %s6747_s14 = inlined_call_operand.vmem [shape: f32[1,64], index: 14, kind: input, shape index: {}]   ;;  %s6748_s15 = inlined_call_operand.vmem [shape: f32[1,64], index: 15, kind: input, shape index: {}]   ;;  %s6749_s16 = inlined_call_operand.vmem [shape: bf16[64,256], index: 16, kind: input, shape index: {}]   ;;  %s6750_s17 = inlined_call_operand.vmem [shape: f32[1,256], index: 17, kind: input, shape index: {}]   ;;  %s6751_s18 = inlined_call_operand.vmem [shape: bf16[256,64], index: 18, kind: input, shape index: {}]   ;;  %s6752_s19 = inlined_call_operand.vmem [shape: f32[1,64], index: 19, kind: input, shape index: {}]   ;;  %s6753_s20 = inlined_call_operand.vmem [shape: f32[1,64], index: 20, kind: input, shape index: {}]   ;;  %s6754_s21 = inlined_call_operand.vmem [shape: f32[1,64], index: 21, kind: input, shape index: {}]   ;;  %s6755_s22 = inlined_call_operand.vmem [shape: f32[2,1,64], index: 22, kind: output, shape index: {}]  }
   0x1   :  { %6760 = sst [smem:[#allocation5_spill]] %s6733_s0 }
   0x2   :  { %6761 = sst [smem:[#allocation6_spill]] %s6734_s1 }
   0x3   :  { %6762 = sst [smem:[#allocation7_spill]] %s6735_s2 }
   0x4   :  { %6763 = sst [smem:[#allocation8_spill]] %s6736_s3  ;;  %s5837_s3 = smov 0  }
   0x5   :  { %6764 = sst [smem:[#allocation9_spill]] %s6737_s4 }
   0x6   :  { %6765 = sst [smem:[#allocation10_spill]] %s6738_s5 }
   0x7   :  { %6766 = sst [smem:[#allocation11_spill]] %s6739_s6 }
   0x8   :  { %6767 = sst [smem:[#allocation12_spill]] %s6754_s21 }
   0x9   :  { %6768 = sst [smem:[#allocation13_spill]] %s6755_s22 }
   0xa LB: > { %6769 = sst [smem:[#allocation2_spill]] %s5713_s28  ;;  %s44_s30 = sadd.s32 1, %s5713_s28  ;;  %s5717_s29 = sphi %s5841_s29, %s32_s29   ;;  %s5713_s28 = sphi %s5839_s28, %s6784_s28   ;;  %s5709_s3 = sphi %s5837_s3, %s6783_s3  }
   0xb   : > { %6770 = sst [smem:[#allocation3_spill]] %s5717_s29  ;;  %p4476_p0 = scmp.ge.s32.totalorder %s5717_s29, 1 }
   0xc   : > { %p46_p1 = scmp.ge.s32.totalorder %s44_s30, 2  ;;  %p649_p2 = scmp.lt.s32.totalorder %s5717_s29, 3 }
   0xe   : > { %s6786_s30 = smov (%p46_p1, %s44_s30), 0  ;;  %p650_p3 = pnand %p4476_p0, %p649_p2 }
   0xf   : > { %6771 = sst [smem:[#allocation4_spill]] %s6786_s30  ;;  %p723_p4 = scmp.lt.s32.totalorder (!%p650_p3), %s5709_s3, 1 }
  0x10   : > { %653 = sbr.rel (%p650_p3) target bundleno = 8760 (0x2238), region = 108  ;;  %s6772_s1 = sld [smem:[#allocation8_spill]] (!%p650_p3) }
  0x11   : > { %s6773_s26 = sld [smem:[#allocation6_spill]] (!%p650_p3) }
  0x12   : > { %s6774_s29 = sld [smem:[#allocation7_spill]] (!%p650_p3) }
  0x13   : > { %s6775_s0 = sld [smem:[#allocation5_spill]] (!%p650_p3) }
  0x14   : > { %s6776_s28 = sld [smem:[#allocation11_spill]] (!%p650_p3) }
  0x15   : > { %s6788_s3 = smov (!%p723_p4, %s5709_s3), 1  ;;  %vm760_vm0 = vcmask 523264   ;;  %v5719_v31 = vmov 0.0   ;;  %v5530_v32 = vld [vmem:[%s6741_s8 + $0x18] sm:$0xff]   ;;  %v5532_v34 = vld [vmem:[%s6741_s8 + $0x10] sm:$0xff]   ;;  %v5534_v36 = vld [vmem:[%s6741_s8 + $0x8] sm:$0xff]  }
  0x16   : > { %s4879_s4 = sshll.u32 %s6788_s3, 4  ;;  %v754_v0 = vld [vmem:[%s6772_s1] sm:$0xff]  ;;  %v755_v1 = vld [vmem:[%s6772_s1 + $0x8] sm:$0xff]  ;;  %s4477_s27 = sshll.u32 %s6788_s3, 3  ;;  %5070 = vmatprep.subr.bf16.mxu0 %v5719_v31  ;;  %5082 = vmatprep.subr.bf16.mxu1 %v5719_v31  ;;  %vm5720_vm1 = vmmov 0   ;;  %v5537_v63 = vld [vmem:[%s6743_s10 + $0x18] sm:$0xff]  }
  0x17   : > { %s734_s2 = scalar_lea.vmem %s6773_s26, %s4879_s4  ;;  %5083 = vmatpush3.bf16.msra.mxu1 %v5530_v32  ;;  %v5536_v38 = vld [vmem:[%s6741_s8] sm:$0xff]   ;;  %5078 = vmatprep.mubr.msk.bf16.mxu0 %vm5720_vm1, %v5719_v31  ;;  %s6778_s5 = sld [smem:[#allocation9_spill]]  ;;  %vm1069_vm2 = vcmask 64512   ;;  %vm1116_vm3 = vcmask 130048   ;;  %vm1531_vm4 = vcmask 1043456   ;;  %vm4373_vm5 = vcmask 516096  }
  0x18   : > { %v748_v2 = vld [vmem:[%s6774_s29] sm:$0xff]  ;;  %v751_v4 = vld [vmem:[%s734_s2 + $0x8] sm:$0xff]  ;;  %5084 = vmatprep.subr.bf16.mxu1 %v5719_v31  ;;  %5090 = vmatprep.mubr.msk.bf16.mxu1 %vm5720_vm1, %v5719_v31  ;;  %s6779_s25 = sld [smem:[#allocation10_spill]] }
  0x19   : > { %v750_v3 = vld [vmem:[%s734_s2] sm:$0xff]  ;;  %s729_s23 = scalar_lea.vmem %s6775_s0, %s4477_s27  ;;  %v753_v6 = vmul.f32 8.0, %v751_v4  ;;  %s6780_s29 = sld [smem:[#allocation12_spill]] }
  0x1a   : > { %v752_v5 = vmul.f32 8.0, %v750_v3  ;;  %v746_v7 = vld [vmem:[%s729_s23] sm:$0xff]  ;;  %s6777_s30 = smov %s6776_s28  ;;  %v5529_v30 = vld [vmem:[%s6776_s28 + $0x18] sm:$0xff]   ;;  %s6781_s24 = sld [smem:[#allocation13_spill]] }
  0x1b   : > { %v747_v8 = vmul.f32 8.0, %v746_v7  ;;  %v757_v10 = vadd.f32 %v755_v1, %v753_v6  ;;  %5071 = vmatpush3.bf16.msra.mxu0 %v5529_v30  ;;  %v5531_v33 = vld [vmem:[%s6777_s30 + $0x10] sm:$0xff]   ;;  %5085 = vmatpush3.bf16.msra.mxu1 %v5532_v34  ;;  %v5533_v35 = vld [vmem:[%s6777_s30 + $0x8] sm:$0xff]   ;;  %v5535_v37 = vld [vmem:[%s6777_s30] sm:$0xff]  }
  0x1c   : > { %v756_v9 = vadd.f32 %v754_v0, %v752_v5  ;;  %5072 = vmatprep.subr.bf16.mxu0 %v5719_v31  ;;  %5086 = vmatprep.subr.bf16.mxu1 %v5719_v31  ;;  %v5538_v1 = vld [vmem:[%s6743_s10 + $0x10] sm:$0xff]   ;;  %v5540_v3 = vld [vmem:[%s6743_s10] sm:$0xff]   ;;  %v5543_v30 = vld [vmem:[%s6777_s30 + $0x28] sm:$0xff]  }
  0x1d   : > { %v5874_v11 = vadd.f32 %v748_v2, %v747_v8  ;;  %v793_v13 = vsel %vm760_vm0, %v757_v10, 0.0  ;;  %v4480_v50 = vld [vmem:[%s6778_s5] ss:$0 sm:$0xff]  ;;  %v5539_v2 = vld [vmem:[%s6743_s10 + $0x8] sm:$0xff]  }
  0x1e   : > { %v790_v12 = vsel %vm760_vm0, %v756_v9, 0.0  ;;  %v4481_v55 = vld [vmem:[%s6779_s25] ss:$0 sm:$0xff] }
  0x1f   : > { %791 = vadd.xlane.f32.xlu0 %v790_v12  ;;  %v761_v14 = vsel %vm760_vm0, %v5874_v11, 0.0  ;;  %5073 = vmatpush3.bf16.msra.mxu0 %v5531_v33  ;;  %v4488_v6 = vld [vmem:[%s6742_s9] ss:$0 sm:$0xff] }
  0x20   : > { %762 = vadd.xlane.f32.xlu1 %v761_v14  ;;  %5074 = vmatprep.subr.bf16.mxu0 %v5719_v31  ;;  %v5544_v34 = vld [vmem:[%s6777_s30 + $0x20] sm:$0xff]   ;;  %s744_s6 = scalar_lea.vmem %s6781_s24, %s6788_s3 }
  0x21   : > { %5087 = vmatpush3.bf16.msra.mxu1 %v5534_v36  ;;  %v5546_v36 = vld [vmem:[%s6743_s10 + $0x30] sm:$0xff]  }
  0x22   : > { %5088 = vmatprep.subr.bf16.mxu1 %v5719_v31 }
  0x23   : > { %794 = vadd.xlane.f32.xlu0 %v793_v13  ;;  %5075 = vmatpush3.bf16.msra.mxu0 %v5533_v35  ;;  %v5545_v35 = vld [vmem:[%s6743_s10 + $0x38] sm:$0xff]  }
  0x24   : > { %5076 = vmatprep.subr.bf16.mxu0 %v5719_v31 }
  0x25   : > { %5089 = vmatpush3.bf16.msra.mxu1 %v5536_v38  ;;  %v5548_v38 = vld [vmem:[%s6743_s10 + $0x20] sm:$0xff]  }
  0x26   : > { %5112 = vmatprep.subr.bf16.mxu1 %v5719_v31 }
  0x27   : > { %5077 = vmatpush3.bf16.msra.mxu0 %v5535_v37  ;;  %v5547_v37 = vld [vmem:[%s6743_s10 + $0x28] sm:$0xff]  }
  0x28   : > { %5094 = vmatprep.subr.bf16.mxu0 %v5719_v31 }
  0xa8   : > { %v792_v15 = vpop.xlane.xlu0 %791 }
  0xa9   : > { %v796_v16 = vmul.f32 0.015625, %v792_v15  ;;  %v763_v17 = vpop.xlane.xlu1 %762 }
  0xaa   : > { %v765_v18 = vmul.f32 0.015625, %v763_v17 }
  0xab   : > { %v798_v19 = vsub.f32 %v756_v9, %v796_v16  ;;  %v4482_v9 = vld [vmem:[%s6740_s7] ss:$0 sm:$0xff] }
  0xac   : > { %v795_v20 = vpop.xlane.xlu0 %794  ;;  %v766_v21 = vsub.f32 %v5874_v11, %v765_v18 }
  0xad   : > { %v797_v22 = vmul.f32 0.015625, %v795_v20  ;;  %v800_v23 = vmul.f32 %v798_v19, %v798_v19 }
  0xae   : > { %v767_v24 = vmul.f32 %v766_v21, %v766_v21 }
  0xaf   : > { %v799_v25 = vsub.f32 %v757_v10, %v797_v22  ;;  %v802_v26 = vsel %vm760_vm0, %v800_v23, 0.0 }
  0xb0   : > { %803 = vadd.xlane.f32.xlu1 %v802_v26  ;;  %v768_v28 = vsel %vm760_vm0, %v767_v24, 0.0  ;;  %v5542_v24 = vld [vmem:[%s6777_s30 + $0x30] sm:$0xff]  }
  0xb1   : > { %v801_v27 = vmul.f32 %v799_v25, %v799_v25 }
  0xb3   : > { %v805_v29 = vsel %vm760_vm0, %v801_v27, 0.0 }
  0xb4   : > { %806 = vadd.xlane.f32.xlu0 %v805_v29  ;;  %769 = vadd.xlane.f32.xlu1 %v768_v28 }
 0x139   : > { %v804_v39 = vpop.xlane.xlu1 %803 }
 0x13a   : > { %v808_v40 = vmul.f32 0.015625, %v804_v39 }
 0x13c   : > { %v810_v41 = vadd.f32 1e-05, %v808_v40 }
 0x13d   : > { %v807_v42 = vpop.xlane.xlu0 %806  ;;  %v770_v43 = vpop.xlane.xlu1 %769 }
 0x13e   : > { %5653 = vrsqrt.f32 %v810_v41  ;;  %v809_v44 = vmul.f32 0.015625, %v807_v42  ;;  %v771_v45 = vmul.f32 0.015625, %v770_v43 }
 0x140   : > { %v811_v46 = vadd.f32 1e-05, %v809_v44  ;;  %v772_v47 = vadd.f32 1e-05, %v771_v45 }
 0x142   : > { %5655 = vrsqrt.f32 %v811_v46 }
 0x143   : > { %5657 = vrsqrt.f32 %v772_v47 }
 0x14b   : > { %v5654_v48 = vpop.eup %5653 }
 0x14c   : > { %v814_v49 = vmul.f32 %v5654_v48, %v798_v19 }
 0x14e   : > { %v816_v53 = vmul.f32 %v4480_v50, %v814_v49  ;;  %v4541_v49 = vld [vmem:[%s6744_s11 + $0x1] ss:$0 sm:$0xff] }
 0x14f   : > { %v5656_v51 = vpop.eup %5655 }
 0x150   : > { %v5658_v52 = vpop.eup %5657  ;;  %v815_v54 = vmul.f32 %v5656_v51, %v799_v25  ;;  %v818_v59 = vadd.f32 %v4481_v55, %v816_v53  ;;  %v4494_v25 = vld [vmem:[%s6744_s11] ss:$0 sm:$0xff] }
 0x151   : > { %v774_v56 = vmul.f32 %v5658_v52, %v766_v21  ;;  %v5541_v21 = vld [vmem:[%s6777_s30 + $0x38] sm:$0xff]  }
 0x152   : > { %v817_v57 = vmul.f32 %v4480_v50, %v815_v54 }
 0x153   : > { %v781_v58 = vmul.f32 %v4480_v50, %v774_v56 }
 0x154   : > { %v819_v60 = vadd.f32 %v4481_v55, %v817_v57 }
 0x155   : > { %v788_v61 = vadd.f32 %v4481_v55, %v781_v58 }
 0x156   : > { %v5928_v62 = vpack.c.bf16 %v819_v60, %v818_v59 }
 0x157   : > { %v5933_v0 = vpack.c.bf16 %v788_v61, %v788_v61 }
 0x158   : > { %5091 = vmatmul.mubr.msk.bf16.vlgmr.msra.gmra.mxu1 %vm760_vm0, %v5928_v62 }
 0x159   : > { %5079 = vmatmul.mubr.msk.bf16.vlgmr.msra.gmra.mxu0 %vm760_vm0, %v5933_v0  ;;  %5114 = vmatprep.mubr.msk.bf16.mxu1 %vm5720_vm1, %v5719_v31 }
 0x15a   : > { %5095 = vmatpush3.bf16.msra.mxu0 %v5537_v63  ;;  %5102 = vmatprep.mubr.msk.bf16.mxu0 %vm5720_vm1, %v5719_v31 }
 0x15b   : > { %5096 = vmatprep.subr.bf16.mxu0 %v5719_v31 }
 0x15e   : > { %5097 = vmatpush3.bf16.msra.mxu0 %v5538_v1 }
 0x15f   : > { %5098 = vmatprep.subr.bf16.mxu0 %v5719_v31 }
 0x162   : > { %5099 = vmatpush3.bf16.msra.mxu0 %v5539_v2  ;;  %v5549_v2 = vld [vmem:[%s6741_s8 + $0x38] sm:$0xff]  }
 0x163   : > { %5100 = vmatprep.subr.bf16.mxu0 %v5719_v31 }
 0x166   : > { %5101 = vmatpush3.bf16.msra.mxu0 %v5540_v3 }
 0x167   : > { %5106 = vmatprep.subr.bf16.mxu0 %v5719_v31 }
 0x169   : > { %5103 = vmatmul.mubr.msk.bf16.vlgmr.msra.gmra.mxu0 %vm760_vm0, %v5928_v62 }
 0x16a   : > { %5108 = vmatprep.mubr.msk.bf16.mxu0 %vm5720_vm1, %v5719_v31 }
 0x218   : > { %v980_v4 = vpop.f32.mrf.mxu1 }
 0x219   : > { %v897_v5 = vpop.f32.mrf.mxu0  ;;  %v981_v12 = vadd.f32 %v4488_v6, %v980_v4  ;;  %v5550_v4 = vld [vmem:[%s6741_s8 + $0x30] sm:$0xff]  }
 0x21a   : > { %v5092_v7 = vpop.f32.mrf.mxu1  ;;  %v898_v16 = vadd.f32 %v4482_v9, %v897_v5  ;;  %v5551_v5 = vld [vmem:[%s6741_s8 + $0x28] sm:$0xff]  }
 0x21b   : > { %v5080_v8 = vpop.f32.mrf.mxu0 }
 0x21c   : > { %v983_v10 = vpop.f32.mrf.mxu1  ;;  %v903_v20 = vmul.f32 0.35355338, %v898_v16 }
 0x21d   : > { %v900_v13 = vpop.f32.mrf.mxu0  ;;  %v984_v14 = vadd.f32 %v4488_v6, %v983_v10  ;;  %v5552_v6 = vld [vmem:[%s6741_s8 + $0x20] sm:$0xff]  }
 0x21e   : > { %v5093_v15 = vpop.f32.mrf.mxu1  ;;  %v1067_v22 = vpack.c.bf16 %v903_v20, %v903_v20  ;;  %v4526_v13 = vld [vmem:[%s6742_s9 + $0x1] ss:$0 sm:$0xff] }
 0x21f   : > { %v1068_v17 = vpack.c.bf16 %v984_v14, %v981_v12  ;;  %v5081_v18 = vpop.f32.mrf.mxu0  ;;  %v4511_v15 = vld [vmem:[%s6740_s7 + $0x1] ss:$0 sm:$0xff] }
 0x221   : > { %v1074_v19 = vsel %vm1069_vm2, %v1068_v17, 0 }
 0x222   : > { %5107 = vmatpush3.bf16.xpose.msra.mxu0 %v1074_v19 }
 0x223   : > { %5118 = vmatprep.subr.bf16.mxu0 %v5719_v31 }
 0x229   : > { %v1060_v23 = vpop.f32.mrf.mxu0  ;;  %5109 = vmatmul.mubr.msk.bf16.vlgmr.msra.gmra.mxu0 %vm1069_vm2, %v1067_v22 }
 0x22a   : > { %5119 = vmatpush3.bf16.msra.mxu0 %v5541_v21  ;;  %5126 = vmatprep.mubr.msk.bf16.mxu0 %vm5720_vm1, %v5719_v31  ;;  %v1061_v28 = vadd.f32 %v4494_v25, %v1060_v23 }
 0x22b   : > { %v5104_v26 = vpop.f32.mrf.mxu0  ;;  %5120 = vmatprep.subr.bf16.mxu0 %v5719_v31 }
 0x22d   : > { %v1063_v27 = vpop.f32.mrf.mxu0 }
 0x22e   : > { %v1064_v29 = vadd.f32 %v4494_v25, %v1063_v27  ;;  %5121 = vmatpush3.bf16.msra.mxu0 %v5542_v24 }
 0x22f   : > { %v5105_v32 = vpop.f32.mrf.mxu0  ;;  %5122 = vmatprep.subr.bf16.mxu0 %v5719_v31 }
 0x230   : > { %v1129_v33 = vpack.c.bf16 %v1064_v29, %v1061_v28 }
 0x232   : > { %5113 = vmatpush3.bf16.msra.mxu1 %v1129_v33  ;;  %5123 = vmatpush3.bf16.msra.mxu0 %v5543_v30 }
 0x233   : > { %5124 = vmatprep.subr.bf16.mxu0 %v5719_v31  ;;  %5130 = vmatprep.subr.bf16.mxu1 %v5719_v31 }
 0x236   : > { %5125 = vmatpush3.bf16.msra.mxu0 %v5544_v34 }
 0x237   : > { %5142 = vmatprep.subr.bf16.mxu0 %v5719_v31 }
 0x239   : > { %5127 = vmatmul.mubr.msk.bf16.vlgmr.msra.gmra.mxu0 %vm760_vm0, %v5933_v0 }
 0x23a   : > { %5143 = vmatpush3.bf16.msra.mxu0 %v5545_v35  ;;  %5150 = vmatprep.mubr.msk.bf16.mxu0 %vm5720_vm1, %v5719_v31 }
 0x23b   : > { %5144 = vmatprep.subr.bf16.mxu0 %v5719_v31 }
 0x23e   : > { %5145 = vmatpush3.bf16.msra.mxu0 %v5546_v36  ;;  %v4549_v36 = vld [vmem:[%s6745_s12 + $0x4] sm:$0xf] }
 0x23f   : > { %5146 = vmatprep.subr.bf16.mxu0 %v5719_v31 }
 0x242   : > { %5147 = vmatpush3.bf16.msra.mxu0 %v5547_v37  ;;  %v1533_v37 = vsel %vm1531_vm4, %v4549_v36, 0 }
 0x243   : > { %5148 = vmatprep.subr.bf16.mxu0 %v5719_v31 }
 0x246   : > { %5149 = vmatpush3.bf16.msra.mxu0 %v5548_v38 }
 0x247   : > { %5166 = vmatprep.subr.bf16.mxu0 %v5719_v31 }
 0x249   : > { %5151 = vmatmul.mubr.msk.bf16.vlgmr.msra.gmra.mxu0 %vm760_vm0, %v5928_v62 }
 0x24a   : > { %5168 = vmatprep.mubr.msk.bf16.mxu0 %vm5720_vm1, %v5719_v31  ;;  %5167 = vmatpush3.bf16.msra.mxu0 %v1533_v37 }
 0x24b   : > { %5178 = vmatprep.subr.bf16.mxu0 %v5719_v31 }
 0x2e9   : > { %v1110_v39 = vpop.f32.mrf.mxu0 }
 0x2ea   : > { %v1117_v40 = vsel %vm1116_vm3, %v1110_v39, -inf }
 0x2eb   : > { %1118 = vmax.xlane.f32.xlu0 %v1117_v40  ;;  %v5110_v41 = vpop.f32.mrf.mxu0  ;;  %v1174_v40 = vld [vmem:[%s6745_s12] sm:$0xf] }
 0x2ed   : > { %v1113_v42 = vpop.f32.mrf.mxu0 }
 0x2ef   : > { %v5111_v43 = vpop.f32.mrf.mxu0 }
 0x2f0   : > { %v1579_v43 = vsel %vm1531_vm4, %v1174_v40, 0 }
 0x2f9   : > { %v1250_v44 = vpop.f32.mrf.mxu0 }
 0x2fa   : > { %v1251_v20 = vadd.f32 %v4511_v15, %v1250_v44  ;;  %v5553_v44 = vld [vmem:[%s6741_s8 + $0x58] sm:$0xff]  }
 0x2fb   : > { %v5128_v45 = vpop.f32.mrf.mxu0 }
 0x2fc   : > { %v1256_v23 = vmul.f32 0.35355338, %v1251_v20 }
 0x2fd   : > { %v1253_v46 = vpop.f32.mrf.mxu0 }
 0x2fe   : > { %v1421_v24 = vpack.c.bf16 %v1256_v23, %v1256_v23  ;;  %v5554_v46 = vld [vmem:[%s6741_s8 + $0x50] sm:$0xff]  }
 0x2ff   : > { %v5129_v47 = vpop.f32.mrf.mxu0 }
 0x300   : > { %v5555_v47 = vld [vmem:[%s6741_s8 + $0x48] sm:$0xff]  }
 0x309   : > { %v1414_v48 = vpop.f32.mrf.mxu0 }
 0x30a   : > { %v1415_v52 = vadd.f32 %v4541_v49, %v1414_v48  ;;  %v5556_v48 = vld [vmem:[%s6741_s8 + $0x40] sm:$0xff]  }
 0x30b   : > { %v5152_v50 = vpop.f32.mrf.mxu0 }
 0x30c   : > { %v5557_v50 = vld [vmem:[%s6777_s30 + $0x58] sm:$0xff]  }
 0x30d   : > { %v1417_v51 = vpop.f32.mrf.mxu0 }
 0x30e   : > { %v1418_v53 = vadd.f32 %v4541_v49, %v1417_v51 }
 0x30f   : > { %v5153_v54 = vpop.f32.mrf.mxu0 }
 0x310   : > { %v1481_v55 = vpack.c.bf16 %v1418_v53, %v1415_v52  ;;  %v5558_v54 = vld [vmem:[%s6777_s30 + $0x50] sm:$0xff]  }
 0x374   : > { %v1119_v56 = vpop.xlane.xlu0 %1118 }
 0x375   : > { %v1120_v57 = vsub.f32 %v1110_v39, %v1119_v56 }
 0x377   : > { %v1121_v58 = vmul.f32 1.442695, %v1120_v57  ;;  %v5559_v57 = vld [vmem:[%s6777_s30 + $0x48] sm:$0xff]  }
 0x379   : > { %5659 = vpow2.f32 %v1121_v58 }
 0x386   : > { %v5660_v59 = vpop.eup %5659 }
 0x387   : > { %v1123_v60 = vsel %vm1116_vm3, %v5660_v59, 0.0 }
 0x388   : > { %1124 = vadd.xlane.f32.xlu1 %v1123_v60  ;;  %v5560_v60 = vld [vmem:[%s6777_s30 + $0x40] sm:$0xff]  }
 0x411   : > { %v1125_v61 = vpop.xlane.xlu1 %1124 }
 0x412   : > { %5661 = vrcp.f32 %v1125_v61 }
 0x41f   : > { %v5662_v63 = vpop.eup %5661 }
 0x420   : > { %v1127_v1 = vmul.f32 %v5662_v63, %v5660_v59  ;;  %v5561_v63 = vld [vmem:[%s6743_s10 + $0x58] sm:$0xff]  }
 0x422   : > { %v1128_v3 = vpack.c.bf16 %v1127_v1, %v1127_v1  ;;  %v5562_v1 = vld [vmem:[%s6743_s10 + $0x50] sm:$0xff]  }
 0x424   : > { %5115 = vmatmul.mubr.msk.bf16.vlgmr.msra.gmra.mxu1 %vm1116_vm3, %v1128_v3  ;;  %v5563_v3 = vld [vmem:[%s6743_s10 + $0x48] sm:$0xff]  }
 0x425   : > { %5131 = vmatpush3.bf16.msra.mxu1 %v5549_v2  ;;  %5138 = vmatprep.mubr.msk.bf16.mxu1 %vm5720_vm1, %v5719_v31 }
 0x426   : > { %5132 = vmatprep.subr.bf16.mxu1 %v5719_v31 }
 0x429   : > { %5133 = vmatpush3.bf16.msra.mxu1 %v5550_v4  ;;  %v4576_v4 = vld [vmem:[%s6742_s9 + $0x2] ss:$0 sm:$0xff] }
 0x42a   : > { %5134 = vmatprep.subr.bf16.mxu1 %v5719_v31 }
 0x42d   : > { %5135 = vmatpush3.bf16.msra.mxu1 %v5551_v5 }
 0x42e   : > { %5136 = vmatprep.subr.bf16.mxu1 %v5719_v31 }
 0x431   : > { %5137 = vmatpush3.bf16.msra.mxu1 %v5552_v6 }
 0x432   : > { %5154 = vmatprep.subr.bf16.mxu1 %v5719_v31 }
 0x434   : > { %5139 = vmatmul.mubr.msk.bf16.vlgmr.msra.gmra.mxu1 %vm760_vm0, %v5928_v62 }
 0x435   : > { %5156 = vmatprep.mubr.msk.bf16.mxu1 %vm5720_vm1, %v5719_v31 }
 0x4e4   : > { %v1167_v7 = vpop.f32.mrf.mxu1 }
 0x4e5   : > { %v1173_v45 = vpack.c.bf16 %v1167_v7, %v1167_v7  ;;  %v5564_v7 = vld [vmem:[%s6743_s10 + $0x40] sm:$0xff]  }
 0x4e6   : > { %v5116_v8 = vpop.f32.mrf.mxu1 }
 0x4e8   : > { %v1170_v9 = vpop.f32.mrf.mxu1 }
 0x4ea   : > { %v5117_v10 = vpop.f32.mrf.mxu1 }
 0x4f4   : > { %v1332_v12 = vpop.f32.mrf.mxu1 }
 0x4f5   : > { %v1333_v17 = vadd.f32 %v4526_v13, %v1332_v12 }
 0x4f6   : > { %v5140_v14 = vpop.f32.mrf.mxu1 }
 0x4f8   : > { %v1335_v16 = vpop.f32.mrf.mxu1 }
 0x4f9   : > { %v1336_v18 = vadd.f32 %v4526_v13, %v1335_v16 }
 0x4fa   : > { %v5141_v19 = vpop.f32.mrf.mxu1 }
 0x4fb   : > { %v1422_v21 = vpack.c.bf16 %v1336_v18, %v1333_v17  ;;  %v4561_v18 = vld [vmem:[%s6740_s7 + $0x2] ss:$0 sm:$0xff] }
 0x4fd   : > { %v1427_v22 = vsel %vm1069_vm2, %v1422_v21, 0 }
 0x4fe   : > { %5155 = vmatpush3.bf16.xpose.msra.mxu1 %v1427_v22 }
 0x4ff   : > { %5160 = vmatprep.subr.bf16.mxu1 %v5719_v31 }
 0x505   : > { %5157 = vmatmul.mubr.msk.bf16.vlgmr.msra.gmra.mxu1 %vm1069_vm2, %v1421_v24 }
 0x506   : > { %5161 = vmatpush3.bf16.msra.mxu1 %v1481_v55  ;;  %5162 = vmatprep.mubr.msk.bf16.mxu1 %vm5720_vm1, %v5719_v31 }
 0x507   : > { %5172 = vmatprep.subr.bf16.mxu1 %v5719_v31 }
 0x5c5   : > { %v1463_v25 = vpop.f32.mrf.mxu1 }
 0x5c6   : > { %v1469_v26 = vsel %vm1116_vm3, %v1463_v25, -inf }
 0x5c7   : > { %1470 = vmax.xlane.f32.xlu0 %v1469_v26  ;;  %v5158_v27 = vpop.f32.mrf.mxu1 }
 0x5c8   : > { %v4591_v27 = vld [vmem:[%s6744_s11 + $0x2] ss:$0 sm:$0xff] }
 0x5c9   : > { %v1466_v28 = vpop.f32.mrf.mxu1 }
 0x5cb   : > { %v5159_v29 = vpop.f32.mrf.mxu1 }
 0x650   : > { %v1471_v30 = vpop.xlane.xlu0 %1470 }
 0x651   : > { %v1472_v32 = vsub.f32 %v1463_v25, %v1471_v30 }
 0x653   : > { %v1473_v33 = vmul.f32 1.442695, %v1472_v32 }
 0x655   : > { %5663 = vpow2.f32 %v1473_v33 }
 0x662   : > { %v5664_v34 = vpop.eup %5663 }
 0x663   : > { %v1475_v35 = vsel %vm1116_vm3, %v5664_v34, 0.0 }
 0x664   : > { %1476 = vadd.xlane.f32.xlu1 %v1475_v35 }
 0x6ed   : > { %v1477_v38 = vpop.xlane.xlu1 %1476 }
 0x6ee   : > { %5665 = vrcp.f32 %v1477_v38 }
 0x6fb   : > { %v5666_v39 = vpop.eup %5665 }
 0x6fc   : > { %v1479_v41 = vmul.f32 %v5666_v39, %v5664_v34 }
 0x6fe   : > { %v1480_v42 = vpack.c.bf16 %v1479_v41, %v1479_v41 }
 0x700   : > { %5163 = vmatmul.mubr.msk.bf16.vlgmr.msra.gmra.mxu1 %vm1116_vm3, %v1480_v42 }
 0x701   : > { %5173 = vmatpush3.bf16.msra.mxu1 %v1579_v43  ;;  %5174 = vmatprep.mubr.msk.bf16.mxu1 %vm5720_vm1, %v5719_v31 }
 0x702   : > { %5190 = vmatprep.subr.bf16.mxu1 %v5719_v31 }
 0x708   : > { %5175 = vmatmul.mubr.msk.bf16.vlgmr.msra.gmra.mxu1 %vm1069_vm2, %v1173_v45  ;;  %v4599_v45 = vld [vmem:[%s6745_s12 + $0x8] sm:$0xf] }
 0x709   : > { %5191 = vmatpush3.bf16.msra.mxu1 %v5553_v44  ;;  %5198 = vmatprep.mubr.msk.bf16.mxu1 %vm5720_vm1, %v5719_v31 }
 0x70a   : > { %5192 = vmatprep.subr.bf16.mxu1 %v5719_v31 }
 0x70d   : > { %5193 = vmatpush3.bf16.msra.mxu1 %v5554_v46  ;;  %v1978_v46 = vsel %vm1531_vm4, %v4599_v45, 0 }
 0x70e   : > { %5194 = vmatprep.subr.bf16.mxu1 %v5719_v31 }
 0x711   : > { %5195 = vmatpush3.bf16.msra.mxu1 %v5555_v47 }
 0x712   : > { %5196 = vmatprep.subr.bf16.mxu1 %v5719_v31 }
 0x715   : > { %5197 = vmatpush3.bf16.msra.mxu1 %v5556_v48 }
 0x716   : > { %5214 = vmatprep.subr.bf16.mxu1 %v5719_v31 }
 0x718   : > { %5199 = vmatmul.mubr.msk.bf16.vlgmr.msra.gmra.mxu1 %vm760_vm0, %v5928_v62 }
 0x719   : > { %5216 = vmatprep.mubr.msk.bf16.mxu1 %vm5720_vm1, %v5719_v31 }
 0x7c0   : > { %v1519_v49 = vpop.f32.mrf.mxu1 }
 0x7c1   : > { %v1525_v51 = vpack.c.bf16 %v1519_v49, %v1519_v49 }
 0x7c2   : > { %v5164_v52 = vpop.f32.mrf.mxu1 }
 0x7c3   : > { %5169 = vmatmul.mubr.msk.bf16.vlgmr.msra.gmra.mxu0 %vm1069_vm2, %v1525_v51  ;;  %v5566_v52 = vld [vmem:[%s6777_s30 + $0x70] sm:$0xff]  }
 0x7c4   : > { %5179 = vmatpush3.bf16.msra.mxu0 %v5557_v50  ;;  %v1522_v53 = vpop.f32.mrf.mxu1  ;;  %5186 = vmatprep.mubr.msk.bf16.mxu0 %vm5720_vm1, %v5719_v31  ;;  %v5565_v50 = vld [vmem:[%s6777_s30 + $0x78] sm:$0xff]  }
 0x7c5   : > { %5180 = vmatprep.subr.bf16.mxu0 %v5719_v31  ;;  %v5567_v53 = vld [vmem:[%s6777_s30 + $0x68] sm:$0xff]  }
 0x7c6   : > { %v5165_v55 = vpop.f32.mrf.mxu1 }
 0x7c7   : > { %v5569_v55 = vld [vmem:[%s6743_s10 + $0x78] sm:$0xff]  }
 0x7c8   : > { %5181 = vmatpush3.bf16.msra.mxu0 %v5558_v54  ;;  %v6103_v56 = vpop.f32.mrf.mxu1  ;;  %v5568_v54 = vld [vmem:[%s6777_s30 + $0x60] sm:$0xff]  }
 0x7c9   : > { %5182 = vmatprep.subr.bf16.mxu0 %v5719_v31 }
 0x7ca   : > { %v5176_v58 = vpop.f32.mrf.mxu1 }
 0x7cb   : > { %v5571_v58 = vld [vmem:[%s6743_s10 + $0x68] sm:$0xff]  }
 0x7cc   : > { %5183 = vmatpush3.bf16.msra.mxu0 %v5559_v57  ;;  %v1618_v59 = vpop.f32.mrf.mxu1  ;;  %v5570_v57 = vld [vmem:[%s6743_s10 + $0x70] sm:$0xff]  }
 0x7cd   : > { %5184 = vmatprep.subr.bf16.mxu0 %v5719_v31  ;;  %v5572_v59 = vld [vmem:[%s6743_s10 + $0x60] sm:$0xff]  }
 0x7ce   : > { %v5177_v61 = vpop.f32.mrf.mxu1 }
 0x7cf   : > { %v5573_v61 = vld [vmem:[%s6741_s8 + $0x78] sm:$0xff]  }
 0x7d0   : > { %5185 = vmatpush3.bf16.msra.mxu0 %v5560_v60 }
 0x7d1   : > { %5202 = vmatprep.subr.bf16.mxu0 %v5719_v31 }
 0x7d3   : > { %5187 = vmatmul.mubr.msk.bf16.vlgmr.msra.gmra.mxu0 %vm760_vm0, %v5933_v0 }
 0x7d4   : > { %5203 = vmatpush3.bf16.msra.mxu0 %v5561_v63  ;;  %5210 = vmatprep.mubr.msk.bf16.mxu0 %vm5720_vm1, %v5719_v31 }
 0x7d5   : > { %5204 = vmatprep.subr.bf16.mxu0 %v5719_v31 }
 0x7d8   : > { %v1778_v2 = vpop.f32.mrf.mxu1  ;;  %5205 = vmatpush3.bf16.msra.mxu0 %v5562_v1 }
 0x7d9   : > { %5206 = vmatprep.subr.bf16.mxu0 %v5719_v31  ;;  %v1779_v8 = vadd.f32 %v4576_v4, %v1778_v2 }
 0x7da   : > { %v5200_v5 = vpop.f32.mrf.mxu1 }
 0x7db   : > { %v5575_v5 = vld [vmem:[%s6741_s8 + $0x68] sm:$0xff]  }
 0x7dc   : > { %v1781_v6 = vpop.f32.mrf.mxu1  ;;  %5207 = vmatpush3.bf16.msra.mxu0 %v5563_v3  ;;  %v5574_v3 = vld [vmem:[%s6741_s8 + $0x70] sm:$0xff]  }
 0x7dd   : > { %v1782_v9 = vadd.f32 %v4576_v4, %v1781_v6  ;;  %5208 = vmatprep.subr.bf16.mxu0 %v5719_v31  ;;  %v5576_v6 = vld [vmem:[%s6741_s8 + $0x60] sm:$0xff]  }
 0x7de   : > { %v5201_v10 = vpop.f32.mrf.mxu1 }
 0x7df   : > { %v1868_v12 = vpack.c.bf16 %v1782_v9, %v1779_v8 }
 0x7e0   : > { %5209 = vmatpush3.bf16.msra.mxu0 %v5564_v7 }
 0x7e1   : > { %v1873_v13 = vsel %vm1069_vm2, %v1868_v12, 0  ;;  %5226 = vmatprep.subr.bf16.mxu0 %v5719_v31 }
 0x7e2   : > { %5215 = vmatpush3.bf16.xpose.msra.mxu1 %v1873_v13  ;;  %v4640_v13 = vld [vmem:[%s6744_s11 + $0x3] ss:$0 sm:$0xff] }
 0x7e3   : > { %5211 = vmatmul.mubr.msk.bf16.vlgmr.msra.gmra.mxu0 %vm760_vm0, %v5928_v62  ;;  %5220 = vmatprep.subr.bf16.mxu1 %v5719_v31 }
 0x7e4   : > { %5228 = vmatprep.mubr.msk.bf16.mxu0 %vm5720_vm1, %v5719_v31  ;;  %5227 = vmatpush3.bf16.msra.mxu0 %v1978_v46 }
 0x7e5   : > { %5244 = vmatprep.subr.bf16.mxu0 %v5719_v31 }
 0x883   : > { %v6143_v14 = vpop.f32.mrf.mxu0 }
 0x885   : > { %v5170_v15 = vpop.f32.mrf.mxu0 }
 0x887   : > { %v1572_v16 = vpop.f32.mrf.mxu0 }
 0x889   : > { %v5171_v17 = vpop.f32.mrf.mxu0 }
 0x893   : > { %v1696_v19 = vpop.f32.mrf.mxu0 }
 0x894   : > { %v1697_v20 = vadd.f32 %v4561_v18, %v1696_v19 }
 0x895   : > { %v5188_v21 = vpop.f32.mrf.mxu0 }
 0x896   : > { %v1702_v22 = vmul.f32 0.35355338, %v1697_v20  ;;  %v1616_v21 = vadd.f32 %v6103_v56, %v6143_v14 }
 0x897   : > { %v1699_v23 = vpop.f32.mrf.mxu0 }
 0x898   : > { %v1867_v24 = vpack.c.bf16 %v1702_v22, %v1702_v22 }
 0x899   : > { %v5189_v25 = vpop.f32.mrf.mxu0 }
 0x89a   : > { %5217 = vmatmul.mubr.msk.bf16.vlgmr.msra.gmra.mxu1 %vm1069_vm2, %v1867_v24 }
 0x89b   : > { %5222 = vmatprep.mubr.msk.bf16.mxu1 %vm5720_vm1, %v5719_v31 }
 0x8a3   : > { %v1860_v26 = vpop.f32.mrf.mxu0 }
 0x8a4   : > { %v1861_v30 = vadd.f32 %v4591_v27, %v1860_v26 }
 0x8a5   : > { %v5212_v28 = vpop.f32.mrf.mxu0 }
 0x8a6   : > { %v4625_v28 = vld [vmem:[%s6742_s9 + $0x3] ss:$0 sm:$0xff] }
 0x8a7   : > { %v1863_v29 = vpop.f32.mrf.mxu0 }
 0x8a8   : > { %v1864_v32 = vadd.f32 %v4591_v27, %v1863_v29 }
 0x8a9   : > { %v5213_v33 = vpop.f32.mrf.mxu0 }
 0x8aa   : > { %v1927_v34 = vpack.c.bf16 %v1864_v32, %v1861_v30  ;;  %v4610_v30 = vld [vmem:[%s6740_s7 + $0x3] ss:$0 sm:$0xff] }
 0x8ac   : > { %5221 = vmatpush3.bf16.msra.mxu1 %v1927_v34 }
 0x8ad   : > { %5232 = vmatprep.subr.bf16.mxu1 %v5719_v31 }
 0x95a   : > { %v1909_v35 = vpop.f32.mrf.mxu1 }
 0x95b   : > { %v1915_v36 = vsel %vm1116_vm3, %v1909_v35, -inf }
 0x95c   : > { %1916 = vmax.xlane.f32.xlu0 %v1915_v36  ;;  %v5218_v37 = vpop.f32.mrf.mxu1 }
 0x95e   : > { %v1912_v38 = vpop.f32.mrf.mxu1 }
 0x960   : > { %v5219_v39 = vpop.f32.mrf.mxu1 }
 0x9e5   : > { %v1917_v40 = vpop.xlane.xlu0 %1916 }
 0x9e6   : > { %v1918_v41 = vsub.f32 %v1909_v35, %v1917_v40 }
 0x9e8   : > { %v1919_v42 = vmul.f32 1.442695, %v1918_v41 }
 0x9ea   : > { %5667 = vpow2.f32 %v1919_v42 }
 0x9f7   : > { %v5668_v43 = vpop.eup %5667 }
 0x9f8   : > { %v1921_v44 = vsel %vm1116_vm3, %v5668_v43, 0.0 }
 0x9f9   : > { %1922 = vadd.xlane.f32.xlu1 %v1921_v44 }
 0xa82   : > { %v1923_v47 = vpop.xlane.xlu1 %1922 }
 0xa83   : > { %5669 = vrcp.f32 %v1923_v47 }
 0xa90   : > { %v5670_v48 = vpop.eup %5669 }
 0xa91   : > { %v1925_v49 = vmul.f32 %v5670_v48, %v5668_v43 }
 0xa93   : > { %v1926_v51 = vpack.c.bf16 %v1925_v49, %v1925_v49  ;;  %v4648_v49 = vld [vmem:[%s6745_s12 + $0xc] sm:$0xf] }
 0xa95   : > { %5223 = vmatmul.mubr.msk.bf16.vlgmr.msra.gmra.mxu1 %vm1116_vm3, %v1926_v51 }
 0xa96   : > { %5233 = vmatpush3.bf16.msra.mxu1 %v5565_v50  ;;  %5240 = vmatprep.mubr.msk.bf16.mxu1 %vm5720_vm1, %v5719_v31  ;;  %v2378_v50 = vsel %vm1531_vm4, %v4648_v49, 0 }
 0xa97   : > { %5234 = vmatprep.subr.bf16.mxu1 %v5719_v31 }
 0xa9a   : > { %5235 = vmatpush3.bf16.msra.mxu1 %v5566_v52 }
 0xa9b   : > { %5236 = vmatprep.subr.bf16.mxu1 %v5719_v31 }
 0xa9e   : > { %5237 = vmatpush3.bf16.msra.mxu1 %v5567_v53 }
 0xa9f   : > { %5238 = vmatprep.subr.bf16.mxu1 %v5719_v31 }
 0xaa2   : > { %5239 = vmatpush3.bf16.msra.mxu1 %v5568_v54  ;;  %v5577_v54 = vld [vmem:[%s6777_s30 + $0x98] sm:$0xff]  }
 0xaa3   : > { %5256 = vmatprep.subr.bf16.mxu1 %v5719_v31 }
 0xaa5   : > { %5241 = vmatmul.mubr.msk.bf16.vlgmr.msra.gmra.mxu1 %vm760_vm0, %v5933_v0 }
 0xaa6   : > { %5257 = vmatpush3.bf16.msra.mxu1 %v5569_v55  ;;  %5264 = vmatprep.mubr.msk.bf16.mxu1 %vm5720_vm1, %v5719_v31 }
 0xaa7   : > { %5258 = vmatprep.subr.bf16.mxu1 %v5719_v31 }
 0xaaa   : > { %5259 = vmatpush3.bf16.msra.mxu1 %v5570_v57  ;;  %v5578_v57 = vld [vmem:[%s6777_s30 + $0x90] sm:$0xff]  }
 0xaab   : > { %5260 = vmatprep.subr.bf16.mxu1 %v5719_v31 }
 0xaae   : > { %5261 = vmatpush3.bf16.msra.mxu1 %v5571_v58  ;;  %v5579_v58 = vld [vmem:[%s6777_s30 + $0x88] sm:$0xff]  }
 0xaaf   : > { %5262 = vmatprep.subr.bf16.mxu1 %v5719_v31 }
 0xab2   : > { %5263 = vmatpush3.bf16.msra.mxu1 %v5572_v59  ;;  %v5580_v59 = vld [vmem:[%s6777_s30 + $0x80] sm:$0xff]  }
 0xab3   : > { %5280 = vmatprep.subr.bf16.mxu1 %v5719_v31 }
 0xab5   : > { %5265 = vmatmul.mubr.msk.bf16.vlgmr.msra.gmra.mxu1 %vm760_vm0, %v5928_v62 }
 0xab6   : > { %5282 = vmatprep.mubr.msk.bf16.mxu1 %vm5720_vm1, %v5719_v31  ;;  %5281 = vmatpush3.bf16.msra.mxu1 %v2378_v50 }
 0xab7   : > { %5298 = vmatprep.subr.bf16.mxu1 %v5719_v31 }
 0xb55   : > { %v1965_v60 = vpop.f32.mrf.mxu1 }
 0xb56   : > { %v1971_v63 = vpack.c.bf16 %v1965_v60, %v1965_v60  ;;  %v5581_v60 = vld [vmem:[%s6743_s10 + $0x98] sm:$0xff]  }
 0xb57   : > { %v5224_v1 = vpop.f32.mrf.mxu1 }
 0xb58   : > { %5229 = vmatmul.mubr.msk.bf16.vlgmr.msra.gmra.mxu0 %vm1069_vm2, %v1971_v63  ;;  %v5583_v63 = vld [vmem:[%s6743_s10 + $0x88] sm:$0xff]   ;;  %v5584_v1 = vld [vmem:[%s6743_s10 + $0x80] sm:$0xff]  }
 0xb59   : > { %5245 = vmatpush3.bf16.msra.mxu0 %v5573_v61  ;;  %v1968_v2 = vpop.f32.mrf.mxu1  ;;  %5252 = vmatprep.mubr.msk.bf16.mxu0 %vm5720_vm1, %v5719_v31  ;;  %v5582_v61 = vld [vmem:[%s6743_s10 + $0x90] sm:$0xff]  }
 0xb5a   : > { %5246 = vmatprep.subr.bf16.mxu0 %v5719_v31 }
 0xb5b   : > { %v5225_v4 = vpop.f32.mrf.mxu1 }
 0xb5d   : > { %5247 = vmatpush3.bf16.msra.mxu0 %v5574_v3  ;;  %v5585_v3 = vld [vmem:[%s6741_s8 + $0x98] sm:$0xff]  }
 0xb5e   : > { %5248 = vmatprep.subr.bf16.mxu0 %v5719_v31 }
 0xb61   : > { %5249 = vmatpush3.bf16.msra.mxu0 %v5575_v5 }
 0xb62   : > { %5250 = vmatprep.subr.bf16.mxu0 %v5719_v31 }
 0xb65   : > { %v2096_v7 = vpop.f32.mrf.mxu1  ;;  %5251 = vmatpush3.bf16.msra.mxu0 %v5576_v6 }
 0xb66   : > { %5268 = vmatprep.subr.bf16.mxu0 %v5719_v31  ;;  %v2097_v14 = vadd.f32 %v4610_v30, %v2096_v7  ;;  %v5586_v7 = vld [vmem:[%s6741_s8 + $0x90] sm:$0xff]  }
 0xb67   : > { %v5242_v8 = vpop.f32.mrf.mxu1 }
 0xb68   : > { %5253 = vmatmul.mubr.msk.bf16.vlgmr.msra.gmra.mxu0 %vm760_vm0, %v5928_v62  ;;  %v2102_v37 = vmul.f32 0.35355338, %v2097_v14 }
 0xb69   : > { %v2099_v9 = vpop.f32.mrf.mxu1  ;;  %5270 = vmatprep.mubr.msk.bf16.mxu0 %vm5720_vm1, %v5719_v31 }
 0xb6a   : > { %v2267_v38 = vpack.c.bf16 %v2102_v37, %v2102_v37  ;;  %v5587_v9 = vld [vmem:[%s6741_s8 + $0x88] sm:$0xff]  }
 0xb6b   : > { %v5243_v10 = vpop.f32.mrf.mxu1 }
 0xb6c   : > { %v5588_v10 = vld [vmem:[%s6741_s8 + $0x80] sm:$0xff]  }
 0xb75   : > { %v2260_v12 = vpop.f32.mrf.mxu1 }
 0xb76   : > { %v2261_v17 = vadd.f32 %v4640_v13, %v2260_v12 }
 0xb77   : > { %v5266_v15 = vpop.f32.mrf.mxu1 }
 0xb79   : > { %v2263_v16 = vpop.f32.mrf.mxu1 }
 0xb7a   : > { %v2264_v18 = vadd.f32 %v4640_v13, %v2263_v16 }
 0xb7b   : > { %v5267_v19 = vpop.f32.mrf.mxu1 }
 0xb7c   : > { %v2327_v20 = vpack.c.bf16 %v2264_v18, %v2261_v17  ;;  %v4689_v18 = vld [vmem:[%s6744_s11 + $0x4] ss:$0 sm:$0xff] }
 0xc18   : > { %v2014_v22 = vpop.f32.mrf.mxu0 }
 0xc19   : > { %v6233_v23 = vadd.f32 %v2014_v22, %v1616_v21 }
 0xc1a   : > { %v5230_v24 = vpop.f32.mrf.mxu0 }
 0xc1c   : > { %v2017_v25 = vpop.f32.mrf.mxu0 }
 0xc1e   : > { %v5231_v26 = vpop.f32.mrf.mxu0 }
 0xc28   : > { %v2178_v27 = vpop.f32.mrf.mxu0 }
 0xc29   : > { %v2179_v33 = vadd.f32 %v4625_v28, %v2178_v27 }
 0xc2a   : > { %v5254_v29 = vpop.f32.mrf.mxu0 }
 0xc2c   : > { %v2181_v32 = vpop.f32.mrf.mxu0 }
 0xc2d   : > { %v2182_v34 = vadd.f32 %v4625_v28, %v2181_v32 }
 0xc2e   : > { %v5255_v56 = vpop.f32.mrf.mxu0 }
 0xc2f   : > { %v2268_v35 = vpack.c.bf16 %v2182_v34, %v2179_v33  ;;  %v4674_v33 = vld [vmem:[%s6742_s9 + $0x4] ss:$0 sm:$0xff] }
 0xc30   : > { %v4659_v56 = vld [vmem:[%s6740_s7 + $0x4] ss:$0 sm:$0xff] }
 0xc31   : > { %v2273_v36 = vsel %vm1069_vm2, %v2268_v35, 0 }
 0xc32   : > { %5269 = vmatpush3.bf16.xpose.msra.mxu0 %v2273_v36 }
 0xc33   : > { %5274 = vmatprep.subr.bf16.mxu0 %v5719_v31 }
 0xc39   : > { %5271 = vmatmul.mubr.msk.bf16.vlgmr.msra.gmra.mxu0 %vm1069_vm2, %v2267_v38 }
 0xc3a   : > { %5275 = vmatpush3.bf16.msra.mxu0 %v2327_v20  ;;  %5276 = vmatprep.mubr.msk.bf16.mxu0 %vm5720_vm1, %v5719_v31 }
 0xc3b   : > { %5286 = vmatprep.subr.bf16.mxu0 %v5719_v31 }
 0xcf9   : > { %v2309_v39 = vpop.f32.mrf.mxu0 }
 0xcfa   : > { %v2315_v40 = vsel %vm1116_vm3, %v2309_v39, -inf }
 0xcfb   : > { %2316 = vmax.xlane.f32.xlu0 %v2315_v40  ;;  %v5272_v41 = vpop.f32.mrf.mxu0 }
 0xcfd   : > { %v2312_v42 = vpop.f32.mrf.mxu0 }
 0xcff   : > { %v5273_v43 = vpop.f32.mrf.mxu0 }
 0xd84   : > { %v2317_v44 = vpop.xlane.xlu0 %2316 }
 0xd85   : > { %v2318_v45 = vsub.f32 %v2309_v39, %v2317_v44 }
 0xd87   : > { %v2319_v46 = vmul.f32 1.442695, %v2318_v45 }
 0xd89   : > { %5671 = vpow2.f32 %v2319_v46 }
 0xd96   : > { %v5672_v47 = vpop.eup %5671 }
 0xd97   : > { %v2321_v48 = vsel %vm1116_vm3, %v5672_v47, 0.0 }
 0xd98   : > { %2322 = vadd.xlane.f32.xlu1 %v2321_v48 }
 0xe21   : > { %v2323_v51 = vpop.xlane.xlu1 %2322 }
 0xe22   : > { %5673 = vrcp.f32 %v2323_v51 }
 0xe2f   : > { %v5674_v52 = vpop.eup %5673 }
 0xe30   : > { %v2325_v53 = vmul.f32 %v5674_v52, %v5672_v47  ;;  %v4697_v52 = vld [vmem:[%s6745_s12 + $0x10] sm:$0xf] }
 0xe32   : > { %v2326_v55 = vpack.c.bf16 %v2325_v53, %v2325_v53  ;;  %v2778_v53 = vsel %vm1531_vm4, %v4697_v52, 0 }
 0xe34   : > { %5277 = vmatmul.mubr.msk.bf16.vlgmr.msra.gmra.mxu0 %vm1116_vm3, %v2326_v55 }
 0xe35   : > { %5287 = vmatpush3.bf16.msra.mxu0 %v5577_v54  ;;  %5294 = vmatprep.mubr.msk.bf16.mxu0 %vm5720_vm1, %v5719_v31 }
 0xe36   : > { %5288 = vmatprep.subr.bf16.mxu0 %v5719_v31 }
 0xe39   : > { %5289 = vmatpush3.bf16.msra.mxu0 %v5578_v57 }
 0xe3a   : > { %5290 = vmatprep.subr.bf16.mxu0 %v5719_v31 }
 0xe3d   : > { %5291 = vmatpush3.bf16.msra.mxu0 %v5579_v58  ;;  %v5589_v58 = vld [vmem:[%s6777_s30 + $0xb8] sm:$0xff]  }
 0xe3e   : > { %5292 = vmatprep.subr.bf16.mxu0 %v5719_v31 }
 0xe41   : > { %5293 = vmatpush3.bf16.msra.mxu0 %v5580_v59 }
 0xe42   : > { %5310 = vmatprep.subr.bf16.mxu0 %v5719_v31 }
 0xe44   : > { %5295 = vmatmul.mubr.msk.bf16.vlgmr.msra.gmra.mxu0 %vm760_vm0, %v5933_v0 }
 0xe45   : > { %5311 = vmatpush3.bf16.msra.mxu0 %v5581_v60  ;;  %5318 = vmatprep.mubr.msk.bf16.mxu0 %vm5720_vm1, %v5719_v31  ;;  %v5590_v60 = vld [vmem:[%s6777_s30 + $0xb0] sm:$0xff]  }
 0xe46   : > { %5312 = vmatprep.subr.bf16.mxu0 %v5719_v31 }
 0xe49   : > { %5313 = vmatpush3.bf16.msra.mxu0 %v5582_v61  ;;  %v5591_v61 = vld [vmem:[%s6777_s30 + $0xa8] sm:$0xff]  }
 0xe4a   : > { %5314 = vmatprep.subr.bf16.mxu0 %v5719_v31 }
 0xe4d   : > { %5315 = vmatpush3.bf16.msra.mxu0 %v5583_v63  ;;  %v5592_v63 = vld [vmem:[%s6777_s30 + $0xa0] sm:$0xff]  }
 0xe4e   : > { %5316 = vmatprep.subr.bf16.mxu0 %v5719_v31 }
 0xe51   : > { %5317 = vmatpush3.bf16.msra.mxu0 %v5584_v1  ;;  %v5593_v1 = vld [vmem:[%s6743_s10 + $0xb8] sm:$0xff]  }
 0xe52   : > { %5334 = vmatprep.subr.bf16.mxu0 %v5719_v31 }
 0xe54   : > { %5319 = vmatmul.mubr.msk.bf16.vlgmr.msra.gmra.mxu0 %vm760_vm0, %v5928_v62 }
 0xe55   : > { %5336 = vmatprep.mubr.msk.bf16.mxu0 %vm5720_vm1, %v5719_v31  ;;  %5335 = vmatpush3.bf16.msra.mxu0 %v2778_v53 }
 0xe56   : > { %5352 = vmatprep.subr.bf16.mxu0 %v5719_v31 }
 0xef4   : > { %v2365_v2 = vpop.f32.mrf.mxu0 }
 0xef5   : > { %v2371_v4 = vpack.c.bf16 %v2365_v2, %v2365_v2  ;;  %v5594_v2 = vld [vmem:[%s6743_s10 + $0xb0] sm:$0xff]  }
 0xef6   : > { %v5278_v5 = vpop.f32.mrf.mxu0 }
 0xef7   : > { %5283 = vmatmul.mubr.msk.bf16.vlgmr.msra.gmra.mxu1 %vm1069_vm2, %v2371_v4  ;;  %v5596_v4 = vld [vmem:[%s6743_s10 + $0xa0] sm:$0xff]  }
 0xef8   : > { %5299 = vmatpush3.bf16.msra.mxu1 %v5585_v3  ;;  %v2368_v6 = vpop.f32.mrf.mxu0  ;;  %5306 = vmatprep.mubr.msk.bf16.mxu1 %vm5720_vm1, %v5719_v31  ;;  %v5595_v3 = vld [vmem:[%s6743_s10 + $0xa8] sm:$0xff]  }
 0xef9   : > { %5300 = vmatprep.subr.bf16.mxu1 %v5719_v31  ;;  %v5597_v6 = vld [vmem:[%s6741_s8 + $0xb8] sm:$0xff]  }
 0xefa   : > { %v5279_v8 = vpop.f32.mrf.mxu0 }
 0xefc   : > { %5301 = vmatpush3.bf16.msra.mxu1 %v5586_v7 }
 0xefd   : > { %5302 = vmatprep.subr.bf16.mxu1 %v5719_v31 }
 0xf00   : > { %5303 = vmatpush3.bf16.msra.mxu1 %v5587_v9 }
 0xf01   : > { %5304 = vmatprep.subr.bf16.mxu1 %v5719_v31 }
 0xf04   : > { %v2496_v12 = vpop.f32.mrf.mxu0  ;;  %5305 = vmatpush3.bf16.msra.mxu1 %v5588_v10  ;;  %v5598_v10 = vld [vmem:[%s6741_s8 + $0xb0] sm:$0xff]  }
 0xf05   : > { %5322 = vmatprep.subr.bf16.mxu1 %v5719_v31  ;;  %v2497_v38 = vadd.f32 %v4659_v56, %v2496_v12 }
 0xf06   : > { %v5296_v13 = vpop.f32.mrf.mxu0 }
 0xf07   : > { %5307 = vmatmul.mubr.msk.bf16.vlgmr.msra.gmra.mxu1 %vm760_vm0, %v5928_v62  ;;  %v2502_v40 = vmul.f32 0.35355338, %v2497_v38  ;;  %v5599_v13 = vld [vmem:[%s6741_s8 + $0xa8] sm:$0xff]  }
 0xf08   : > { %v2499_v15 = vpop.f32.mrf.mxu0  ;;  %5324 = vmatprep.mubr.msk.bf16.mxu1 %vm5720_vm1, %v5719_v31 }
 0xf09   : > { %v2667_v41 = vpack.c.bf16 %v2502_v40, %v2502_v40  ;;  %v5600_v15 = vld [vmem:[%s6741_s8 + $0xa0] sm:$0xff]  }
 0xf0a   : > { %v5297_v16 = vpop.f32.mrf.mxu0 }
 0xf14   : > { %v2660_v17 = vpop.f32.mrf.mxu0 }
 0xf15   : > { %v2661_v21 = vadd.f32 %v4689_v18, %v2660_v17 }
 0xf16   : > { %v5320_v19 = vpop.f32.mrf.mxu0 }
 0xf18   : > { %v2663_v20 = vpop.f32.mrf.mxu0 }
 0xf19   : > { %v2664_v22 = vadd.f32 %v4689_v18, %v2663_v20 }
 0xf1a   : > { %v5321_v24 = vpop.f32.mrf.mxu0 }
 0xf1b   : > { %v2727_v25 = vpack.c.bf16 %v2664_v22, %v2661_v21  ;;  %v4738_v21 = vld [vmem:[%s6744_s11 + $0x5] ss:$0 sm:$0xff] }
 0xfb7   : > { %v2414_v26 = vpop.f32.mrf.mxu1 }
 0xfb8   : > { %v6324_v27 = vadd.f32 %v2414_v26, %v6233_v23 }
 0xfb9   : > { %v5284_v28 = vpop.f32.mrf.mxu1 }
 0xfbb   : > { %v2417_v29 = vpop.f32.mrf.mxu1 }
 0xfbd   : > { %v5285_v30 = vpop.f32.mrf.mxu1 }
 0xfc7   : > { %v2578_v32 = vpop.f32.mrf.mxu1 }
 0xfc8   : > { %v2579_v35 = vadd.f32 %v4674_v33, %v2578_v32 }
 0xfc9   : > { %v5308_v34 = vpop.f32.mrf.mxu1 }
 0xfcb   : > { %v2581_v14 = vpop.f32.mrf.mxu1 }
 0xfcc   : > { %v2582_v36 = vadd.f32 %v4674_v33, %v2581_v14 }
 0xfcd   : > { %v5309_v37 = vpop.f32.mrf.mxu1 }
 0xfce   : > { %v2668_v23 = vpack.c.bf16 %v2582_v36, %v2579_v35  ;;  %v4723_v35 = vld [vmem:[%s6742_s9 + $0x5] ss:$0 sm:$0xff] }
 0xfcf   : > { %v4708_v37 = vld [vmem:[%s6740_s7 + $0x5] ss:$0 sm:$0xff] }
 0xfd0   : > { %v2673_v39 = vsel %vm1069_vm2, %v2668_v23, 0 }
 0xfd1   : > { %5323 = vmatpush3.bf16.xpose.msra.mxu1 %v2673_v39 }
 0xfd2   : > { %5328 = vmatprep.subr.bf16.mxu1 %v5719_v31 }
 0xfd8   : > { %5325 = vmatmul.mubr.msk.bf16.vlgmr.msra.gmra.mxu1 %vm1069_vm2, %v2667_v41 }
 0xfd9   : > { %5329 = vmatpush3.bf16.msra.mxu1 %v2727_v25  ;;  %5330 = vmatprep.mubr.msk.bf16.mxu1 %vm5720_vm1, %v5719_v31 }
 0xfda   : > { %5340 = vmatprep.subr.bf16.mxu1 %v5719_v31 }
0x1098   : > { %v2709_v42 = vpop.f32.mrf.mxu1 }
0x1099   : > { %v2715_v43 = vsel %vm1116_vm3, %v2709_v42, -inf }
0x109a   : > { %2716 = vmax.xlane.f32.xlu0 %v2715_v43  ;;  %v5326_v44 = vpop.f32.mrf.mxu1 }
0x109c   : > { %v2712_v45 = vpop.f32.mrf.mxu1 }
0x109e   : > { %v5327_v46 = vpop.f32.mrf.mxu1 }
0x1123   : > { %v2717_v47 = vpop.xlane.xlu0 %2716 }
0x1124   : > { %v2718_v48 = vsub.f32 %v2709_v42, %v2717_v47 }
0x1126   : > { %v2719_v49 = vmul.f32 1.442695, %v2718_v48 }
0x1128   : > { %5675 = vpow2.f32 %v2719_v49 }
0x1135   : > { %v5676_v50 = vpop.eup %5675 }
0x1136   : > { %v2721_v51 = vsel %vm1116_vm3, %v5676_v50, 0.0 }
0x1137   : > { %2722 = vadd.xlane.f32.xlu1 %v2721_v51 }
0x11c0   : > { %v2723_v54 = vpop.xlane.xlu1 %2722 }
0x11c1   : > { %5677 = vrcp.f32 %v2723_v54 }
0x11ce   : > { %v5678_v55 = vpop.eup %5677 }
0x11cf   : > { %v2725_v57 = vmul.f32 %v5678_v55, %v5676_v50  ;;  %v4746_v55 = vld [vmem:[%s6745_s12 + $0x14] sm:$0xf] }
0x11d1   : > { %v2726_v59 = vpack.c.bf16 %v2725_v57, %v2725_v57  ;;  %v3178_v57 = vsel %vm1531_vm4, %v4746_v55, 0 }
0x11d3   : > { %5331 = vmatmul.mubr.msk.bf16.vlgmr.msra.gmra.mxu1 %vm1116_vm3, %v2726_v59 }
0x11d4   : > { %5341 = vmatpush3.bf16.msra.mxu1 %v5589_v58  ;;  %5348 = vmatprep.mubr.msk.bf16.mxu1 %vm5720_vm1, %v5719_v31 }
0x11d5   : > { %5342 = vmatprep.subr.bf16.mxu1 %v5719_v31 }
0x11d8   : > { %5343 = vmatpush3.bf16.msra.mxu1 %v5590_v60 }
0x11d9   : > { %5344 = vmatprep.subr.bf16.mxu1 %v5719_v31 }
0x11dc   : > { %5345 = vmatpush3.bf16.msra.mxu1 %v5591_v61  ;;  %v5601_v61 = vld [vmem:[%s6777_s30 + $0xd8] sm:$0xff]  }
0x11dd   : > { %5346 = vmatprep.subr.bf16.mxu1 %v5719_v31 }
0x11e0   : > { %5347 = vmatpush3.bf16.msra.mxu1 %v5592_v63 }
0x11e1   : > { %5364 = vmatprep.subr.bf16.mxu1 %v5719_v31 }
0x11e3   : > { %5349 = vmatmul.mubr.msk.bf16.vlgmr.msra.gmra.mxu1 %vm760_vm0, %v5933_v0 }
0x11e4   : > { %5365 = vmatpush3.bf16.msra.mxu1 %v5593_v1  ;;  %5372 = vmatprep.mubr.msk.bf16.mxu1 %vm5720_vm1, %v5719_v31  ;;  %v5602_v1 = vld [vmem:[%s6777_s30 + $0xd0] sm:$0xff]  }
0x11e5   : > { %5366 = vmatprep.subr.bf16.mxu1 %v5719_v31 }
0x11e8   : > { %5367 = vmatpush3.bf16.msra.mxu1 %v5594_v2  ;;  %v5603_v2 = vld [vmem:[%s6777_s30 + $0xc8] sm:$0xff]  }
0x11e9   : > { %5368 = vmatprep.subr.bf16.mxu1 %v5719_v31 }
0x11ec   : > { %5369 = vmatpush3.bf16.msra.mxu1 %v5595_v3  ;;  %v5604_v3 = vld [vmem:[%s6777_s30 + $0xc0] sm:$0xff]  }
0x11ed   : > { %5370 = vmatprep.subr.bf16.mxu1 %v5719_v31 }
0x11f0   : > { %5371 = vmatpush3.bf16.msra.mxu1 %v5596_v4  ;;  %v5605_v4 = vld [vmem:[%s6743_s10 + $0xd8] sm:$0xff]  }
0x11f1   : > { %5388 = vmatprep.subr.bf16.mxu1 %v5719_v31 }
0x11f3   : > { %5373 = vmatmul.mubr.msk.bf16.vlgmr.msra.gmra.mxu1 %vm760_vm0, %v5928_v62 }
0x11f4   : > { %5390 = vmatprep.mubr.msk.bf16.mxu1 %vm5720_vm1, %v5719_v31  ;;  %5389 = vmatpush3.bf16.msra.mxu1 %v3178_v57 }
0x11f5   : > { %5406 = vmatprep.subr.bf16.mxu1 %v5719_v31 }
0x1293   : > { %v2765_v5 = vpop.f32.mrf.mxu1 }
0x1294   : > { %v2771_v7 = vpack.c.bf16 %v2765_v5, %v2765_v5  ;;  %v5606_v5 = vld [vmem:[%s6743_s10 + $0xd0] sm:$0xff]  }
0x1295   : > { %v5332_v8 = vpop.f32.mrf.mxu1 }
0x1296   : > { %5337 = vmatmul.mubr.msk.bf16.vlgmr.msra.gmra.mxu0 %vm1069_vm2, %v2771_v7  ;;  %v5608_v7 = vld [vmem:[%s6743_s10 + $0xc0] sm:$0xff]  }
0x1297   : > { %5353 = vmatpush3.bf16.msra.mxu0 %v5597_v6  ;;  %v2768_v9 = vpop.f32.mrf.mxu1  ;;  %5360 = vmatprep.mubr.msk.bf16.mxu0 %vm5720_vm1, %v5719_v31  ;;  %v5607_v6 = vld [vmem:[%s6743_s10 + $0xc8] sm:$0xff]  }
0x1298   : > { %5354 = vmatprep.subr.bf16.mxu0 %v5719_v31  ;;  %v5609_v9 = vld [vmem:[%s6741_s8 + $0xd8] sm:$0xff]  }
0x1299   : > { %v5333_v12 = vpop.f32.mrf.mxu1 }
0x129b   : > { %5355 = vmatpush3.bf16.msra.mxu0 %v5598_v10 }
0x129c   : > { %5356 = vmatprep.subr.bf16.mxu0 %v5719_v31 }
0x129f   : > { %5357 = vmatpush3.bf16.msra.mxu0 %v5599_v13 }
0x12a0   : > { %5358 = vmatprep.subr.bf16.mxu0 %v5719_v31 }
0x12a3   : > { %v2896_v16 = vpop.f32.mrf.mxu1  ;;  %5359 = vmatpush3.bf16.msra.mxu0 %v5600_v15  ;;  %v5610_v15 = vld [vmem:[%s6741_s8 + $0xd0] sm:$0xff]  }
0x12a4   : > { %5376 = vmatprep.subr.bf16.mxu0 %v5719_v31  ;;  %v2897_v41 = vadd.f32 %v4708_v37, %v2896_v16 }
0x12a5   : > { %v5350_v17 = vpop.f32.mrf.mxu1 }
0x12a6   : > { %5361 = vmatmul.mubr.msk.bf16.vlgmr.msra.gmra.mxu0 %vm760_vm0, %v5928_v62  ;;  %v2902_v43 = vmul.f32 0.35355338, %v2897_v41  ;;  %v5611_v17 = vld [vmem:[%s6741_s8 + $0xc8] sm:$0xff]  }
0x12a7   : > { %v2899_v18 = vpop.f32.mrf.mxu1  ;;  %5378 = vmatprep.mubr.msk.bf16.mxu0 %vm5720_vm1, %v5719_v31 }
0x12a8   : > { %v3067_v44 = vpack.c.bf16 %v2902_v43, %v2902_v43  ;;  %v5612_v18 = vld [vmem:[%s6741_s8 + $0xc0] sm:$0xff]  }
0x12a9   : > { %v5351_v19 = vpop.f32.mrf.mxu1 }
0x12b3   : > { %v3060_v20 = vpop.f32.mrf.mxu1 }
0x12b4   : > { %v3061_v25 = vadd.f32 %v4738_v21, %v3060_v20 }
0x12b5   : > { %v5374_v22 = vpop.f32.mrf.mxu1 }
0x12b7   : > { %v3063_v24 = vpop.f32.mrf.mxu1 }
0x12b8   : > { %v3064_v26 = vadd.f32 %v4738_v21, %v3063_v24 }
0x12b9   : > { %v5375_v28 = vpop.f32.mrf.mxu1 }
0x12ba   : > { %v3127_v29 = vpack.c.bf16 %v3064_v26, %v3061_v25  ;;  %v4787_v25 = vld [vmem:[%s6744_s11 + $0x6] ss:$0 sm:$0xff] }
0x1356   : > { %v2814_v30 = vpop.f32.mrf.mxu0 }
0x1357   : > { %v6415_v32 = vadd.f32 %v2814_v30, %v6324_v27 }
0x1358   : > { %v5338_v33 = vpop.f32.mrf.mxu0 }
0x135a   : > { %v2817_v34 = vpop.f32.mrf.mxu0 }
0x135c   : > { %v5339_v56 = vpop.f32.mrf.mxu0 }
0x1366   : > { %v2978_v14 = vpop.f32.mrf.mxu0 }
0x1367   : > { %v2979_v23 = vadd.f32 %v4723_v35, %v2978_v14 }
0x1368   : > { %v5362_v36 = vpop.f32.mrf.mxu0 }
0x136a   : > { %v2981_v38 = vpop.f32.mrf.mxu0 }
0x136b   : > { %v2982_v39 = vadd.f32 %v4723_v35, %v2981_v38 }
0x136c   : > { %v5363_v40 = vpop.f32.mrf.mxu0 }
0x136d   : > { %v3068_v27 = vpack.c.bf16 %v2982_v39, %v2979_v23  ;;  %v4772_v23 = vld [vmem:[%s6742_s9 + $0x6] ss:$0 sm:$0xff] }
0x136e   : > { %v4757_v40 = vld [vmem:[%s6740_s7 + $0x6] ss:$0 sm:$0xff] }
0x136f   : > { %v3073_v42 = vsel %vm1069_vm2, %v3068_v27, 0 }
0x1370   : > { %5377 = vmatpush3.bf16.xpose.msra.mxu0 %v3073_v42 }
0x1371   : > { %5382 = vmatprep.subr.bf16.mxu0 %v5719_v31 }
0x1377   : > { %5379 = vmatmul.mubr.msk.bf16.vlgmr.msra.gmra.mxu0 %vm1069_vm2, %v3067_v44 }
0x1378   : > { %5383 = vmatpush3.bf16.msra.mxu0 %v3127_v29  ;;  %5384 = vmatprep.mubr.msk.bf16.mxu0 %vm5720_vm1, %v5719_v31 }
0x1379   : > { %5394 = vmatprep.subr.bf16.mxu0 %v5719_v31 }
0x1437   : > { %v3109_v45 = vpop.f32.mrf.mxu0 }
0x1438   : > { %v3115_v46 = vsel %vm1116_vm3, %v3109_v45, -inf }
0x1439   : > { %3116 = vmax.xlane.f32.xlu0 %v3115_v46  ;;  %v5380_v47 = vpop.f32.mrf.mxu0 }
0x143b   : > { %v3112_v48 = vpop.f32.mrf.mxu0 }
0x143d   : > { %v5381_v49 = vpop.f32.mrf.mxu0 }
0x14c2   : > { %v3117_v50 = vpop.xlane.xlu0 %3116 }
0x14c3   : > { %v3118_v51 = vsub.f32 %v3109_v45, %v3117_v50 }
0x14c5   : > { %v3119_v52 = vmul.f32 1.442695, %v3118_v51 }
0x14c7   : > { %5679 = vpow2.f32 %v3119_v52 }
0x14d4   : > { %v5680_v53 = vpop.eup %5679 }
0x14d5   : > { %v3121_v54 = vsel %vm1116_vm3, %v5680_v53, 0.0 }
0x14d6   : > { %3122 = vadd.xlane.f32.xlu1 %v3121_v54 }
0x155f   : > { %v3123_v58 = vpop.xlane.xlu1 %3122 }
0x1560   : > { %5681 = vrcp.f32 %v3123_v58 }
0x156d   : > { %v5682_v59 = vpop.eup %5681 }
0x156e   : > { %v3125_v60 = vmul.f32 %v5682_v59, %v5680_v53  ;;  %v4795_v59 = vld [vmem:[%s6745_s12 + $0x18] sm:$0xf] }
0x1570   : > { %v3126_v63 = vpack.c.bf16 %v3125_v60, %v3125_v60  ;;  %v3578_v60 = vsel %vm1531_vm4, %v4795_v59, 0 }
0x1572   : > { %5385 = vmatmul.mubr.msk.bf16.vlgmr.msra.gmra.mxu0 %vm1116_vm3, %v3126_v63 }
0x1573   : > { %5395 = vmatpush3.bf16.msra.mxu0 %v5601_v61  ;;  %5402 = vmatprep.mubr.msk.bf16.mxu0 %vm5720_vm1, %v5719_v31 }
0x1574   : > { %5396 = vmatprep.subr.bf16.mxu0 %v5719_v31 }
0x1577   : > { %5397 = vmatpush3.bf16.msra.mxu0 %v5602_v1 }
0x1578   : > { %5398 = vmatprep.subr.bf16.mxu0 %v5719_v31 }
0x157b   : > { %5399 = vmatpush3.bf16.msra.mxu0 %v5603_v2  ;;  %v5613_v2 = vld [vmem:[%s6777_s30 + $0xf8] sm:$0xff]  }
0x157c   : > { %5400 = vmatprep.subr.bf16.mxu0 %v5719_v31 }
0x157f   : > { %5401 = vmatpush3.bf16.msra.mxu0 %v5604_v3 }
0x1580   : > { %5418 = vmatprep.subr.bf16.mxu0 %v5719_v31 }
0x1582   : > { %5403 = vmatmul.mubr.msk.bf16.vlgmr.msra.gmra.mxu0 %vm760_vm0, %v5933_v0 }
0x1583   : > { %5419 = vmatpush3.bf16.msra.mxu0 %v5605_v4  ;;  %5426 = vmatprep.mubr.msk.bf16.mxu0 %vm5720_vm1, %v5719_v31  ;;  %v5614_v4 = vld [vmem:[%s6777_s30 + $0xf0] sm:$0xff]  }
0x1584   : > { %5420 = vmatprep.subr.bf16.mxu0 %v5719_v31 }
0x1587   : > { %5421 = vmatpush3.bf16.msra.mxu0 %v5606_v5  ;;  %v5615_v5 = vld [vmem:[%s6777_s30 + $0xe8] sm:$0xff]  }
0x1588   : > { %5422 = vmatprep.subr.bf16.mxu0 %v5719_v31 }
0x158b   : > { %5423 = vmatpush3.bf16.msra.mxu0 %v5607_v6  ;;  %v5616_v6 = vld [vmem:[%s6777_s30 + $0xe0] sm:$0xff]  }
0x158c   : > { %5424 = vmatprep.subr.bf16.mxu0 %v5719_v31 }
0x158f   : > { %5425 = vmatpush3.bf16.msra.mxu0 %v5608_v7  ;;  %v5617_v7 = vld [vmem:[%s6743_s10 + $0xf8] sm:$0xff]  }
0x1590   : > { %5442 = vmatprep.subr.bf16.mxu0 %v5719_v31 }
0x1592   : > { %5427 = vmatmul.mubr.msk.bf16.vlgmr.msra.gmra.mxu0 %vm760_vm0, %v5928_v62 }
0x1593   : > { %5444 = vmatprep.mubr.msk.bf16.mxu0 %vm5720_vm1, %v5719_v31  ;;  %5443 = vmatpush3.bf16.msra.mxu0 %v3578_v60  ;;  %v4844_v60 = vld [vmem:[%s6745_s12 + $0x1c] sm:$0xf] }
0x1594   : > { %5460 = vmatprep.subr.bf16.mxu0 %v5719_v31 }
0x1632   : > { %v3165_v8 = vpop.f32.mrf.mxu0 }
0x1633   : > { %v3171_v10 = vpack.c.bf16 %v3165_v8, %v3165_v8  ;;  %v5618_v8 = vld [vmem:[%s6743_s10 + $0xf0] sm:$0xff]  }
0x1634   : > { %v5386_v12 = vpop.f32.mrf.mxu0 }
0x1635   : > { %5391 = vmatmul.mubr.msk.bf16.vlgmr.msra.gmra.mxu1 %vm1069_vm2, %v3171_v10  ;;  %v5621_v12 = vld [vmem:[%s6741_s8 + $0xf8] sm:$0xff]  }
0x1636   : > { %5407 = vmatpush3.bf16.msra.mxu1 %v5609_v9  ;;  %v3168_v13 = vpop.f32.mrf.mxu0  ;;  %5414 = vmatprep.mubr.msk.bf16.mxu1 %vm5720_vm1, %v5719_v31  ;;  %v5619_v9 = vld [vmem:[%s6743_s10 + $0xe8] sm:$0xff]  }
0x1637   : > { %5408 = vmatprep.subr.bf16.mxu1 %v5719_v31 }
0x1638   : > { %v5387_v16 = vpop.f32.mrf.mxu0 }
0x163a   : > { %5409 = vmatpush3.bf16.msra.mxu1 %v5610_v15 }
0x163b   : > { %5410 = vmatprep.subr.bf16.mxu1 %v5719_v31 }
0x163e   : > { %5411 = vmatpush3.bf16.msra.mxu1 %v5611_v17  ;;  %v5622_v17 = vld [vmem:[%s6741_s8 + $0xf0] sm:$0xff]  }
0x163f   : > { %5412 = vmatprep.subr.bf16.mxu1 %v5719_v31 }
0x1642   : > { %v3296_v19 = vpop.f32.mrf.mxu0  ;;  %5413 = vmatpush3.bf16.msra.mxu1 %v5612_v18 }
0x1643   : > { %5430 = vmatprep.subr.bf16.mxu1 %v5719_v31  ;;  %v3297_v44 = vadd.f32 %v4757_v40, %v3296_v19  ;;  %v5623_v19 = vld [vmem:[%s6741_s8 + $0xe8] sm:$0xff]   ;;  %v4821_v40 = vld [vmem:[%s6742_s9 + $0x7] ss:$0 sm:$0xff] }
0x1644   : > { %v5404_v20 = vpop.f32.mrf.mxu0 }
0x1645   : > { %5415 = vmatmul.mubr.msk.bf16.vlgmr.msra.gmra.mxu1 %vm760_vm0, %v5928_v62  ;;  %v3302_v46 = vmul.f32 0.35355338, %v3297_v44  ;;  %v5624_v20 = vld [vmem:[%s6741_s8 + $0xe0] sm:$0xff]  }
0x1646   : > { %v3299_v21 = vpop.f32.mrf.mxu0  ;;  %5432 = vmatprep.mubr.msk.bf16.mxu1 %vm5720_vm1, %v5719_v31 }
0x1647   : > { %v3467_v47 = vpack.c.bf16 %v3302_v46, %v3302_v46 }
0x1648   : > { %v5405_v22 = vpop.f32.mrf.mxu0 }
0x1652   : > { %v3460_v24 = vpop.f32.mrf.mxu0 }
0x1653   : > { %v3461_v29 = vadd.f32 %v4787_v25, %v3460_v24 }
0x1654   : > { %v5428_v26 = vpop.f32.mrf.mxu0 }
0x1656   : > { %v3463_v28 = vpop.f32.mrf.mxu0 }
0x1657   : > { %v3464_v30 = vadd.f32 %v4787_v25, %v3463_v28  ;;  %v4836_v28 = vld [vmem:[%s6744_s11 + $0x7] ss:$0 sm:$0xff] }
0x1658   : > { %v5429_v33 = vpop.f32.mrf.mxu0 }
0x1659   : > { %v3527_v34 = vpack.c.bf16 %v3464_v30, %v3461_v29 }
0x16f5   : > { %v3214_v56 = vpop.f32.mrf.mxu1 }
0x16f6   : > { %v6506_v14 = vadd.f32 %v3214_v56, %v6415_v32 }
0x16f7   : > { %v5392_v35 = vpop.f32.mrf.mxu1 }
0x16f9   : > { %v3217_v36 = vpop.f32.mrf.mxu1 }
0x16fb   : > { %v5393_v37 = vpop.f32.mrf.mxu1 }
0x1705   : > { %v3378_v38 = vpop.f32.mrf.mxu1 }
0x1706   : > { %v3379_v27 = vadd.f32 %v4772_v23, %v3378_v38 }
0x1707   : > { %v5416_v39 = vpop.f32.mrf.mxu1 }
0x1709   : > { %v3381_v41 = vpop.f32.mrf.mxu1 }
0x170a   : > { %v3382_v42 = vadd.f32 %v4772_v23, %v3381_v41 }
0x170b   : > { %v5417_v43 = vpop.f32.mrf.mxu1 }
0x170c   : > { %v3468_v32 = vpack.c.bf16 %v3382_v42, %v3379_v27  ;;  %v4806_v27 = vld [vmem:[%s6740_s7 + $0x7] ss:$0 sm:$0xff] }
0x170e   : > { %v3473_v45 = vsel %vm1069_vm2, %v3468_v32, 0 }
0x170f   : > { %5431 = vmatpush3.bf16.xpose.msra.mxu1 %v3473_v45 }
0x1710   : > { %5436 = vmatprep.subr.bf16.mxu1 %v5719_v31 }
0x1716   : > { %5433 = vmatmul.mubr.msk.bf16.vlgmr.msra.gmra.mxu1 %vm1069_vm2, %v3467_v47 }
0x1717   : > { %5437 = vmatpush3.bf16.msra.mxu1 %v3527_v34  ;;  %5438 = vmatprep.mubr.msk.bf16.mxu1 %vm5720_vm1, %v5719_v31 }
0x1718   : > { %5448 = vmatprep.subr.bf16.mxu1 %v5719_v31 }
0x17d6   : > { %v3509_v48 = vpop.f32.mrf.mxu1 }
0x17d7   : > { %v3515_v49 = vsel %vm1116_vm3, %v3509_v48, -inf }
0x17d8   : > { %3516 = vmax.xlane.f32.xlu0 %v3515_v49  ;;  %v5434_v50 = vpop.f32.mrf.mxu1 }
0x17da   : > { %v3512_v51 = vpop.f32.mrf.mxu1 }
0x17dc   : > { %v5435_v52 = vpop.f32.mrf.mxu1 }
0x1861   : > { %v3517_v53 = vpop.xlane.xlu0 %3516 }
0x1862   : > { %v3518_v54 = vsub.f32 %v3509_v48, %v3517_v53 }
0x1864   : > { %v3519_v55 = vmul.f32 1.442695, %v3518_v54 }
0x1866   : > { %5683 = vpow2.f32 %v3519_v55 }
0x1873   : > { %v5684_v57 = vpop.eup %5683 }
0x1874   : > { %v3521_v58 = vsel %vm1116_vm3, %v5684_v57, 0.0 }
0x1875   : > { %3522 = vadd.xlane.f32.xlu1 %v3521_v58 }
0x18fe   : > { %v3523_v61 = vpop.xlane.xlu1 %3522 }
0x18ff   : > { %5685 = vrcp.f32 %v3523_v61 }
0x190c   : > { %v5686_v63 = vpop.eup %5685 }
0x190d   : > { %v3525_v1 = vmul.f32 %v5686_v63, %v5684_v57 }
0x190f   : > { %v3526_v3 = vpack.c.bf16 %v3525_v1, %v3525_v1 }
0x1911   : > { %5439 = vmatmul.mubr.msk.bf16.vlgmr.msra.gmra.mxu1 %vm1116_vm3, %v3526_v3 }
0x1912   : > { %5449 = vmatpush3.bf16.msra.mxu1 %v5613_v2  ;;  %5456 = vmatprep.mubr.msk.bf16.mxu1 %vm5720_vm1, %v5719_v31 }
0x1913   : > { %5450 = vmatprep.subr.bf16.mxu1 %v5719_v31 }
0x1916   : > { %5451 = vmatpush3.bf16.msra.mxu1 %v5614_v4 }
0x1917   : > { %5452 = vmatprep.subr.bf16.mxu1 %v5719_v31 }
0x191a   : > { %5453 = vmatpush3.bf16.msra.mxu1 %v5615_v5 }
0x191b   : > { %5454 = vmatprep.subr.bf16.mxu1 %v5719_v31 }
0x191e   : > { %5455 = vmatpush3.bf16.msra.mxu1 %v5616_v6 }
0x191f   : > { %5472 = vmatprep.subr.bf16.mxu1 %v5719_v31 }
0x1921   : > { %5457 = vmatmul.mubr.msk.bf16.vlgmr.msra.gmra.mxu1 %vm760_vm0, %v5933_v0  ;;  %v5620_v0 = vld [vmem:[%s6743_s10 + $0xe0] sm:$0xff]  }
0x1922   : > { %5473 = vmatpush3.bf16.msra.mxu1 %v5617_v7  ;;  %5480 = vmatprep.mubr.msk.bf16.mxu1 %vm5720_vm1, %v5719_v31 }
0x1923   : > { %5474 = vmatprep.subr.bf16.mxu1 %v5719_v31 }
0x1926   : > { %5475 = vmatpush3.bf16.msra.mxu1 %v5618_v8 }
0x1927   : > { %5476 = vmatprep.subr.bf16.mxu1 %v5719_v31 }
0x192a   : > { %5477 = vmatpush3.bf16.msra.mxu1 %v5619_v9 }
0x192b   : > { %5478 = vmatprep.subr.bf16.mxu1 %v5719_v31 }
0x192e   : > { %5479 = vmatpush3.bf16.msra.mxu1 %v5620_v0  ;;  %v4846_v0 = vld [vmem:[%s6746_s13] ss:$0 sm:$0xff] }
0x192f   : > { %5496 = vmatprep.subr.bf16.mxu1 %v5719_v31 }
0x1931   : > { %5481 = vmatmul.mubr.msk.bf16.vlgmr.msra.gmra.mxu1 %vm760_vm0, %v5928_v62 }
0x1932   : > { %5498 = vmatprep.mubr.msk.bf16.mxu1 %vm5720_vm1, %v5719_v31 }
0x19d1   : > { %v3565_v10 = vpop.f32.mrf.mxu1 }
0x19d2   : > { %v3571_v13 = vpack.c.bf16 %v3565_v10, %v3565_v10 }
0x19d3   : > { %v5440_v15 = vpop.f32.mrf.mxu1 }
0x19d4   : > { %5445 = vmatmul.mubr.msk.bf16.vlgmr.msra.gmra.mxu0 %vm1069_vm2, %v3571_v13 }
0x19d5   : > { %5461 = vmatpush3.bf16.msra.mxu0 %v5621_v12  ;;  %v3568_v16 = vpop.f32.mrf.mxu1  ;;  %5468 = vmatprep.mubr.msk.bf16.mxu0 %vm5720_vm1, %v5719_v31 }
0x19d6   : > { %5462 = vmatprep.subr.bf16.mxu0 %v5719_v31 }
0x19d7   : > { %v5441_v18 = vpop.f32.mrf.mxu1 }
0x19d9   : > { %5463 = vmatpush3.bf16.msra.mxu0 %v5622_v17 }
0x19da   : > { %5464 = vmatprep.subr.bf16.mxu0 %v5719_v31 }
0x19dd   : > { %5465 = vmatpush3.bf16.msra.mxu0 %v5623_v19 }
0x19de   : > { %5466 = vmatprep.subr.bf16.mxu0 %v5719_v31 }
0x19e1   : > { %v3696_v21 = vpop.f32.mrf.mxu1  ;;  %5467 = vmatpush3.bf16.msra.mxu0 %v5624_v20 }
0x19e2   : > { %5484 = vmatprep.subr.bf16.mxu0 %v5719_v31  ;;  %v3697_v45 = vadd.f32 %v4806_v27, %v3696_v21  ;;  %v5647_v27 = vld [vmem:[%s6751_s18 + $0x50] sm:$0xff]  }
0x19e3   : > { %v5458_v22 = vpop.f32.mrf.mxu1 }
0x19e4   : > { %5469 = vmatmul.mubr.msk.bf16.vlgmr.msra.gmra.mxu0 %vm760_vm0, %v5928_v62  ;;  %v3702_v47 = vmul.f32 0.35355338, %v3697_v45 }
0x19e5   : > { %v3699_v24 = vpop.f32.mrf.mxu1  ;;  %5486 = vmatprep.mubr.msk.bf16.mxu0 %vm5720_vm1, %v5719_v31 }
0x19e6   : > { %v3867_v48 = vpack.c.bf16 %v3702_v47, %v3702_v47  ;;  %v5625_v24 = vld [vmem:[%s6749_s16 + $0x30] ss:$8 sps:$4 sm:$0xff]   ;;  %v4848_v47 = vld [vmem:[%s6748_s15] ss:$0 sm:$0xff] }
0x19e7   : > { %v5459_v25 = vpop.f32.mrf.mxu1 }
0x19e8   : > { %v5630_v25 = vld [vmem:[%s6749_s16 + $0x24] ss:$8 sps:$4 sm:$0xff]  }
0x19f1   : > { %v3860_v26 = vpop.f32.mrf.mxu1 }
0x19f2   : > { %v3861_v33 = vadd.f32 %v4836_v28, %v3860_v26  ;;  %v5628_v26 = vld [vmem:[%s6749_s16 + $0x20] ss:$8 sps:$4 sm:$0xff]  }
0x19f3   : > { %v5482_v29 = vpop.f32.mrf.mxu1 }
0x19f4   : > { %v5631_v29 = vld [vmem:[%s6749_s16 + $0x10] ss:$8 sps:$4 sm:$0xff]  }
0x19f5   : > { %v3863_v30 = vpop.f32.mrf.mxu1 }
0x19f6   : > { %v3864_v34 = vadd.f32 %v4836_v28, %v3863_v30  ;;  %v5633_v28 = vld [vmem:[%s6749_s16 + $0x14] ss:$8 sps:$4 sm:$0xff]   ;;  %v5636_v30 = vld [vmem:[%s6749_s16 + $0x4] ss:$8 sps:$4 sm:$0xff]  }
0x19f7   : > { %v5483_v56 = vpop.f32.mrf.mxu1 }
0x19f8   : > { %v3927_v35 = vpack.c.bf16 %v3864_v34, %v3861_v33  ;;  %v5634_v33 = vld [vmem:[%s6749_s16] ss:$8 sps:$4 sm:$0xff]   ;;  %v5721_v34 = vmov 0   ;;  %v5637_v56 = vld [vmem:[%s6751_s18 + $0x78] sm:$0xff]  }
0x1a94   : > { %v3614_v36 = vpop.f32.mrf.mxu0 }
0x1a95   : > { %v3620_v37 = vadd.f32 %v3614_v36, %v6506_v14  ;;  %v5639_v36 = vld [vmem:[%s6751_s18 + $0x70] sm:$0xff]  }
0x1a96   : > { %v5446_v62 = vpop.f32.mrf.mxu0 }
0x1a97   : > { %v5641_v62 = vld [vmem:[%s6751_s18 + $0x68] sm:$0xff]  }
0x1a98   : > { %v3617_v38 = vpop.f32.mrf.mxu0 }
0x1a99   : > { %v5642_v38 = vld [vmem:[%s6751_s18 + $0x28] sm:$0xff]  }
0x1a9a   : > { %v5447_v23 = vpop.f32.mrf.mxu0 }
0x1a9b   : > { %v5643_v23 = vld [vmem:[%s6751_s18 + $0x60] sm:$0xff]  }
0x1aa4   : > { %v3778_v39 = vpop.f32.mrf.mxu0 }
0x1aa5   : > { %v3779_v43 = vadd.f32 %v4821_v40, %v3778_v39  ;;  %v5644_v39 = vld [vmem:[%s6751_s18 + $0x20] sm:$0xff]  }
0x1aa6   : > { %v5470_v41 = vpop.f32.mrf.mxu0 }
0x1aa7   : > { %v5646_v41 = vld [vmem:[%s6751_s18 + $0x18] sm:$0xff]  }
0x1aa8   : > { %v3781_v42 = vpop.f32.mrf.mxu0 }
0x1aa9   : > { %v3782_v44 = vadd.f32 %v4821_v40, %v3781_v42  ;;  %v5645_v40 = vld [vmem:[%s6751_s18 + $0x58] sm:$0xff]   ;;  %v5648_v42 = vld [vmem:[%s6751_s18 + $0x10] sm:$0xff]  }
0x1aaa   : > { %v5471_v32 = vpop.f32.mrf.mxu0 }
0x1aab   : > { %v3868_v46 = vpack.c.bf16 %v3782_v44, %v3779_v43 }
0x1aad   : > { %v3873_v14 = vsel %vm1069_vm2, %v3868_v46, 0  ;;  %v4847_v46 = vld [vmem:[%s6747_s14] ss:$0 sm:$0xff] }
0x1aae   : > { %5485 = vmatpush3.bf16.xpose.msra.mxu0 %v3873_v14 }
0x1aaf   : > { %5490 = vmatprep.subr.bf16.mxu0 %v5719_v31 }
0x1ab5   : > { %5487 = vmatmul.mubr.msk.bf16.vlgmr.msra.gmra.mxu0 %vm1069_vm2, %v3867_v48 }
0x1ab6   : > { %5491 = vmatpush3.bf16.msra.mxu0 %v3927_v35  ;;  %5492 = vmatprep.mubr.msk.bf16.mxu0 %vm5720_vm1, %v5719_v31  ;;  %v3978_v31 = vsel %vm1531_vm4, %v4844_v60, 0  ;;  %v5638_v35 = vld [vmem:[%s6751_s18 + $0x38] sm:$0xff]  }
0x1ab7   : > { %5497 = vmatpush3.bf16.msra.mxu1 %v3978_v31 }
0x1ab8   : > { %5048 = vmatprep.subr.bf16.mxu1 %v5637_v56 }
0x1b75   : > { %v3909_v49 = vpop.f32.mrf.mxu0 }
0x1b76   : > { %v3915_v50 = vsel %vm1116_vm3, %v3909_v49, -inf }
0x1b77   : > { %3916 = vmax.xlane.f32.xlu0 %v3915_v50  ;;  %v5488_v51 = vpop.f32.mrf.mxu0 }
0x1b78   : > { %v5649_v51 = vld [vmem:[%s6751_s18 + $0x48] sm:$0xff]  }
0x1b79   : > { %v3912_v52 = vpop.f32.mrf.mxu0 }
0x1b7a   : > { %v5650_v52 = vld [vmem:[%s6751_s18 + $0x8] sm:$0xff]  }
0x1b7b   : > { %v5489_v53 = vpop.f32.mrf.mxu0 }
0x1b7c   : > { %v5651_v53 = vld [vmem:[%s6751_s18 + $0x40] sm:$0xff]  }
0x1c00   : > { %v3917_v54 = vpop.xlane.xlu0 %3916 }
0x1c01   : > { %v3918_v55 = vsub.f32 %v3909_v49, %v3917_v54  ;;  %v5652_v54 = vld [vmem:[%s6751_s18] sm:$0xff]  }
0x1c03   : > { %v3919_v57 = vmul.f32 1.442695, %v3918_v55  ;;  %v4070_v55 = vlaneseq }
0x1c05   : > { %5687 = vpow2.f32 %v3919_v57  ;;  %v4071_v57 = vshrl.u32 %v4070_v55, 7 }
0x1c07   : > { %v4076_v60 = vsub.s32 1, %v4071_v57 }
0x1c12   : > { %v5688_v58 = vpop.eup %5687 }
0x1c13   : > { %v3921_v59 = vsel %vm1116_vm3, %v5688_v58, 0.0 }
0x1c14   : > { %3922 = vadd.xlane.f32.xlu1 %v3921_v59  ;;  %v4068_v59 = vld [vmem:[%s6750_s17] sm:$0x3] }
0x1c9d   : > { %v3923_v61 = vpop.xlane.xlu1 %3922 }
0x1c9e   : > { %5689 = vrcp.f32 %v3923_v61  ;;  %v4077_v61 = vrot.slane %v4068_v59, %v4076_v60 }
0x1cab   : > { %v5690_v63 = vpop.eup %5689 }
0x1cac   : > { %v3925_v1 = vmul.f32 %v5690_v63, %v5688_v58  ;;  %v4072_v58 = vsub.s32 0, %v4071_v57 }
0x1cae   : > { %v3926_v2 = vpack.c.bf16 %v3925_v1, %v3925_v1  ;;  %v4073_v31 = vrot.slane %v4068_v59, %v4072_v58 }
0x1cb0   : > { %5493 = vmatmul.mubr.msk.bf16.vlgmr.msra.gmra.mxu0 %vm1116_vm3, %v3926_v2 }
0x1cb1   : > { %4155 = vmatprep.mubr.bf16.mxu0 %v5721_v34  ;;  %v4876_v34 = vld [vmem:[%s6780_s29] ss:$0 sm:$0xff] }
0x1d70   : > { %v3965_v3 = vpop.f32.mrf.mxu0 }
0x1d71   : > { %v3971_v4 = vpack.c.bf16 %v3965_v3, %v3965_v3 }
0x1d72   : > { %v5494_v5 = vpop.f32.mrf.mxu0 }
0x1d73   : > { %5499 = vmatmul.mubr.msk.bf16.vlgmr.msra.gmra.mxu1 %vm1069_vm2, %v3971_v4 }
0x1d74   : > { %v3968_v6 = vpop.f32.mrf.mxu0  ;;  %5049 = vmatpush3.bf16.msra.mxu1 %v5638_v35 }
0x1d75   : > { %5050 = vmatprep.subr.bf16.mxu1 %v5639_v36 }
0x1d76   : > { %v5495_v7 = vpop.f32.mrf.mxu0 }
0x1e33   : > { %v4014_v8 = vpop.f32.mrf.mxu1 }
0x1e34   : > { %v4020_v9 = vadd.f32 %v4014_v8, %v3620_v37  ;;  %v5640_v37 = vld [vmem:[%s6751_s18 + $0x30] sm:$0xff]  }
0x1e35   : > { %v5500_v10 = vpop.f32.mrf.mxu1  ;;  %5051 = vmatpush3.bf16.msra.mxu1 %v5640_v37 }
0x1e36   : > { %v4021_v12 = vadd.f32 %v4020_v9, %v5874_v11  ;;  %v5627_v11 = vld [vmem:[%s6749_s16 + $0x34] ss:$8 sps:$4 sm:$0xff]   ;;  %5052 = vmatprep.subr.bf16.mxu1 %v5641_v62  ;;  %v4858_v10 = vld [vmem:[%s6752_s19] ss:$0 sm:$0xff] }
0x1e37   : > { %v4017_v13 = vpop.f32.mrf.mxu1  ;;  %4131 = vmatprep.subr.bf16.mxu0 %v5627_v11 }
0x1e38   : > { %v6620_v15 = vadd.f32 %v4846_v0, %v4021_v12  ;;  %4132 = vmatpush1.bf16.msra.mxu0 %v5625_v24 }
0x1e39   : > { %v5501_v16 = vpop.f32.mrf.mxu1  ;;  %4133 = vmatprep.subr.bf16.mxu0 %v5630_v25  ;;  %5053 = vmatpush3.bf16.msra.mxu1 %v5642_v38 }
0x1e3a   : > { %v4032_v17 = vsel %vm760_vm0, %v6620_v15, 0.0  ;;  %5054 = vmatprep.subr.bf16.mxu1 %v5643_v23 }
0x1e3b   : > { %4033 = vadd.xlane.f32.xlu0 %v4032_v17 }
0x1e3c   : > { %4134 = vmatpush1.bf16.msra.mxu0 %v5628_v26 }
0x1e3d   : > { %4135 = vmatprep.subr.bf16.mxu0 %v5633_v28  ;;  %5055 = vmatpush3.bf16.msra.mxu1 %v5644_v39 }
0x1e3e   : > { %5056 = vmatprep.subr.bf16.mxu1 %v5645_v40 }
0x1e40   : > { %4136 = vmatpush1.bf16.msra.mxu0 %v5631_v29 }
0x1e41   : > { %4137 = vmatprep.subr.bf16.mxu0 %v5636_v30  ;;  %5057 = vmatpush3.bf16.msra.mxu1 %v5646_v41 }
0x1e42   : > { %5058 = vmatprep.subr.bf16.mxu1 %v5647_v27 }
0x1e44   : > { %4138 = vmatpush1.bf16.msra.mxu0 %v5634_v33 }
0x1e45   : > { %5059 = vmatpush3.bf16.msra.mxu1 %v5648_v42 }
0x1e46   : > { %5060 = vmatprep.subr.bf16.mxu1 %v5649_v51 }
0x1e49   : > { %5061 = vmatpush3.bf16.msra.mxu1 %v5650_v52 }
0x1e4a   : > { %5062 = vmatprep.subr.bf16.mxu1 %v5651_v53 }
0x1e4d   : > { %5063 = vmatpush3.bf16.msra.mxu1 %v5652_v54 }
0x1ec4   : > { %v4034_v18 = vpop.xlane.xlu0 %4033 }
0x1ec5   : > { %v4035_v19 = vmul.f32 0.015625, %v4034_v18 }
0x1ec7   : > { %v4036_v20 = vsub.f32 %v6620_v15, %v4035_v19 }
0x1ec9   : > { %v4037_v21 = vmul.f32 %v4036_v20, %v4036_v20 }
0x1ecb   : > { %v4038_v22 = vsel %vm760_vm0, %v4037_v21, 0.0 }
0x1ecc   : > { %4039 = vadd.xlane.f32.xlu1 %v4038_v22 }
0x1f55   : > { %v4040_v43 = vpop.xlane.xlu1 %4039 }
0x1f56   : > { %v4041_v44 = vmul.f32 0.015625, %v4040_v43 }
0x1f58   : > { %v4042_v32 = vadd.f32 1e-05, %v4041_v44 }
0x1f5a   : > { %5691 = vrsqrt.f32 %v4042_v32 }
0x1f67   : > { %v5692_v45 = vpop.eup %5691 }
0x1f68   : > { %v4044_v14 = vmul.f32 %v5692_v45, %v4036_v20 }
0x1f6a   : > { %v4051_v48 = vmul.f32 %v4847_v46, %v4044_v14 }
0x1f6c   : > { %v4058_v49 = vadd.f32 %v4848_v47, %v4051_v48 }
0x1f6e   : > { %v4059_v50 = vpack.c.bf16 %v4058_v49, %v4058_v49 }
0x1f70   : > { %4857 = vmatmul.mubr.msk.bf16.vlgmr.msra.gmra.mxu0 %vm760_vm0, %v4059_v50 }
0x2030   : > { %v4157_v63 = vpop.f32.mrf.mxu0 }
0x2031   : > { %v4158_v1 = vadd.f32 %v4157_v63, %v4073_v31 }
0x2032   : > { %v4159_v2 = vpop.f32.mrf.mxu0 }
0x2033   : > { %v4160_v3 = vadd.f32 %v4159_v2, %v4077_v61  ;;  %v4164_v4 = vmax.f32 %v4158_v1, 0.0 }
0x2034   : > { %v4161_v5 = vpop.f32.mrf.mxu0 }
0x2035   : > { %v4165_v6 = vmax.f32 %v4160_v3, 0.0  ;;  %v4166_v9 = vpack.c.bf16 %v4164_v4, %v4164_v4 }
0x2036   : > { %v4162_v7 = vpop.f32.mrf.mxu0 }
0x2037   : > { %v4167_v8 = vpack.c.bf16 %v4165_v6, %v4165_v6 }
0x2039   : > { %4335 = vmatprep.mubr.bf16.mxu1 %v4167_v8 }
0x203a   : > { %4336 = vmatmul.mubr.bf16.vlgmr.msra.gmra.mxu1 %v4166_v9 }
0x20fa   : > { %v5064_v0 = vpop.f32.mrf.mxu1 }
0x20fc   : > { %v5065_v12 = vpop.f32.mrf.mxu1 }
0x20fd   : > { %v5066_v13 = vadd.f32 %v5065_v12, %v5064_v0 }
0x20fe   : > { %v5067_v16 = vpop.f32.mrf.mxu1 }
0x20ff   : > { %v4338_v17 = vadd.f32 %v5066_v13, %v4858_v10 }
0x2100   : > { %v5068_v18 = vpop.f32.mrf.mxu1 }
0x2101   : > { %v4343_v19 = vadd.f32 %v4338_v17, %v6620_v15  ;;  %v4875_v15 = vld [vmem:[%s6753_s20] ss:$0 sm:$0xff] }
0x2103   : > { %v4346_v20 = vsel %vm760_vm0, %v4343_v19, 0.0 }
0x2104   : > { %4347 = vadd.xlane.f32.xlu0 %v4346_v20 }
0x218d   : > { %v4348_v21 = vpop.xlane.xlu0 %4347 }
0x218e   : > { %v4349_v22 = vmul.f32 0.015625, %v4348_v21 }
0x2190   : > { %v4350_v11 = vsub.f32 %v4343_v19, %v4349_v22 }
0x2192   : > { %v4351_v24 = vmul.f32 %v4350_v11, %v4350_v11 }
0x2194   : > { %v4352_v25 = vsel %vm760_vm0, %v4351_v24, 0.0 }
0x2195   : > { %4353 = vadd.xlane.f32.xlu1 %v4352_v25 }
0x221e   : > { %v4354_v26 = vpop.xlane.xlu1 %4353 }
0x221f   : > { %v4355_v28 = vmul.f32 0.015625, %v4354_v26 }
0x2221   : > { %v4356_v29 = vadd.f32 1e-05, %v4355_v28 }
0x2223   : > { %5693 = vrsqrt.f32 %v4356_v29 }
0x2230   : > { %v5694_v30 = vpop.eup %5693 }
0x2231   : > { %v4358_v33 = vmul.f32 %v5694_v30, %v4350_v11 }
0x2233   : > { %v4365_v56 = vmul.f32 %v4875_v15, %v4358_v33 }
0x2235   : > { %v4372_v35 = vadd.f32 %v4876_v34, %v4365_v56 }
0x2237   : > { %4374 = vst.msk [vmem:[%s744_s6] sm:$0x1] %vm4373_vm5, %v4372_v35 }
0x2238 PF: > { %s6782_s25 = sld [smem:[#allocation3_spill]] }
0x2239   : > { %s6783_s3 = sld [smem:[#allocation2_spill]] }
0x223a   : > { %s6784_s28 = sld [smem:[#allocation4_spill]] }
0x223e   : > { %s32_s29 = sadd.s32 1, %s6782_s25  }
0x223f   : > { %p29_p5 = scmp.ge.s32.totalorder %s32_s29, 4  }
0x2241   :  { %31 = sbr.rel (!%p29_p5) target bundleno = 10 (0xa), region = 193 }

</bundles_post_ra>
